<compile_context>
chip_gen: v7x
topology: tpu7x:2x2x1
jax: 0.10.0
libtpu: 0.0.40
codegen_flags: <defaults>
</compile_context>

<pallas_src>
import jax
import jax.numpy as jnp
from jax.experimental import pallas as pl
from jax.experimental.pallas import tpu as pltpu


def _fused_double_conv_kernel(x_ref, w1_ref, w2_ref, o_ref,
                              xpad_ref, y1pad_ref, p2_ref):
    """Fused 3x3 conv (no bias) + ReLU -> 3x3 conv (no bias) + ReLU, one image.

    x_ref    : (1, H, W, Cin)     f32   unpadded NHWC input block
    w1_ref   : (9*Cin, Cemb)      f32   conv1 weights, HWIO flattened (kh*3+kw)*Cin+ci
    w2_ref   : (9*Cemb, Cemb)     bf16  conv2 weights, same flattening
    o_ref    : (1, H*W, Cemb)     f32   output block (== final module layout)
    xpad_ref : (H+2, W+2, Cin)    f32   VMEM scratch: input with zero 1-px halo
    y1pad_ref: (H+2, W+2, Cemb)   bf16  VMEM scratch: ReLU(conv1) with zero halo
    p2_ref   : (H*W, 9*Cemb)      bf16  VMEM scratch: im2col patches for conv2
    """
    _, H, W, Cin = x_ref.shape
    Cemb = o_ref.shape[-1]
    HW = H * W

    # Zero halos every step (cheap; keeps correctness when the batch grid axis
    # is sharded across TensorCores, each with its own scratch).
    xpad_ref[...] = jnp.zeros_like(xpad_ref)
    y1pad_ref[...] = jnp.zeros_like(y1pad_ref)

    # ---- stage 0: in-kernel 'same' padding (no jnp.pad / HBM copy) ----------
    xpad_ref[1:H + 1, 1:W + 1, :] = x_ref[0]

    # ---- stage 1: conv1 as ONE matmul with the 3x3 taps folded into K -------
    # im2col patches (H*W, 9*Cin) built as a value (tiny: Cin is small).
    p1 = jnp.concatenate(
        [xpad_ref[kh:kh + H, kw:kw + W, :].reshape(HW, Cin)
         for kh in range(3) for kw in range(3)], axis=-1)
    y1 = jnp.dot(p1, w1_ref[...], preferred_element_type=jnp.float32)
    y1 = jnp.maximum(y1, 0.0)                              # ReLU fused

    # Intermediate never leaves VMEM: write ReLU(conv1) (bf16) into the padded
    # scratch that feeds conv2.
    y1pad_ref[1:H + 1, 1:W + 1, :] = (
        y1.reshape(H, W, Cemb).astype(y1pad_ref.dtype))

    # ---- stage 2: conv2, taps folded into K = 9*Cemb, bf16 operands ---------
    # Explicit im2col patch buffer in VMEM; each tap writes a Cemb-wide
    # (lane-aligned for Cemb % 128 == 0) column band.
    for kh in range(3):
        for kw in range(3):
            t = kh * 3 + kw
            p2_ref[:, t * Cemb:(t + 1) * Cemb] = (
                y1pad_ref[kh:kh + H, kw:kw + W, :].reshape(HW, Cemb))

    y2 = jnp.dot(p2_ref[...], w2_ref[...], preferred_element_type=jnp.float32)
    y2 = jnp.maximum(y2, 0.0)                              # ReLU fused

    # Lane-dense store: last dim = Cemb (128 here, 768 at the module default),
    # and (1, H*W, Cemb) is already the module's output layout.
    o_ref[...] = y2.reshape(1, HW, Cemb).astype(o_ref.dtype)


def conv_module_forward(x_nchw, w1_hwio, w2_hwio):
    """Forward of the PyTorch `conv` module: (N, Cin, H, W) -> (N, H*W, Cemb)."""
    N, Cin, H, W = x_nchw.shape
    Cemb = w2_hwio.shape[-1]
    HW = H * W

    # NCHW -> NHWC (channels-last = lane dim); cheap XLA glue.
    x_nhwc = jnp.transpose(x_nchw, (0, 2, 3, 1))
    # Fold the 3x3 taps into the contraction dim: HWIO (3,3,Ci,Co) -> (9*Ci,Co).
    w1_flat = w1_hwio.reshape(9 * Cin, Cemb)                        # f32 (tiny)
    w2_flat = w2_hwio.reshape(9 * Cemb, Cemb).astype(jnp.bfloat16)  # bf16 MXU operand

    flops = 2 * N * HW * 9 * (Cin * Cemb + Cemb * Cemb)
    bytes_accessed = (x_nhwc.size * 4 + w1_flat.size * 4
                      + w2_flat.size * 2 + N * HW * Cemb * 4)

    # TODO(synk): for large feature maps / v7x's 64 MiB VMEM, switch to halo'd
    # row-band spatial tiling (grid=(N, H//tile_h)) instead of one whole image
    # per grid step; at the small decoder-feature sizes here one image fits.
    return pl.pallas_call(
        _fused_double_conv_kernel,
        out_shape=jax.ShapeDtypeStruct((N, HW, Cemb), jnp.float32),
        grid_spec=pltpu.PrefetchScalarGridSpec(
            num_scalar_prefetch=0,
            grid=(N,),
            in_specs=[
                pl.BlockSpec((1, H, W, Cin), lambda n: (n, 0, 0, 0)),
                pl.BlockSpec((9 * Cin, Cemb), lambda n: (0, 0)),
                pl.BlockSpec((9 * Cemb, Cemb), lambda n: (0, 0)),
            ],
            out_specs=pl.BlockSpec((1, HW, Cemb), lambda n: (n, 0, 0)),
            scratch_shapes=[
                pltpu.VMEM((H + 2, W + 2, Cin), jnp.float32),    # padded input
                pltpu.VMEM((H + 2, W + 2, Cemb), jnp.bfloat16),  # padded relu(conv1)
                pltpu.VMEM((HW, 9 * Cemb), jnp.bfloat16),        # conv2 im2col
            ],
        ),
        compiler_params=pltpu.CompilerParams(
            dimension_semantics=("parallel",)),
        cost_estimate=pl.CostEstimate(
            flops=flops, transcendentals=0, bytes_accessed=bytes_accessed),
    )(x_nhwc, w1_flat, w2_flat)


def _reference_forward(x_nchw, w1_hwio, w2_hwio):
    """Pure-JAX (lax conv) reference matching the kernel's dtype policy."""
    x = jnp.transpose(x_nchw, (0, 2, 3, 1))
    dn = ('NHWC', 'HWIO', 'NHWC')
    y = jax.lax.conv_general_dilated(
        x, w1_hwio, (1, 1), 'SAME', dimension_numbers=dn,
        preferred_element_type=jnp.float32)
    y = jnp.maximum(y, 0.0)
    # Kernel runs conv2 with bf16 operands and f32 accumulation.
    y = jax.lax.conv_general_dilated(
        y.astype(jnp.bfloat16), w2_hwio.astype(jnp.bfloat16),
        (1, 1), 'SAME', dimension_numbers=dn,
        preferred_element_type=jnp.float32)
    y = jnp.maximum(y, 0.0)
    N, H, W, C = y.shape
    return y.reshape(N, H * W, C)


if __name__ == "__main__":
    key = jax.random.PRNGKey(0)
    k_x, k_w1, k_w2 = jax.random.split(key, 3)

    # Small shapes consistent with the module: input_dim=4, embed_dim=128
    # (128 keeps the output lane-dense; the module default is 768 = 6*128).
    N, Cin, H, W = 2, 4, 16, 16
    Cemb = 128

    x = jax.random.normal(k_x, (N, Cin, H, W), dtype=jnp.float32)
    # Deterministic synthetic HWIO weights (PyTorch stores OIHW; only the
    # layout of the values differs, not the semantics).
    w1 = jax.random.normal(k_w1, (3, 3, Cin, Cemb), dtype=jnp.float32) * 0.1
    w2 = jax.random.normal(k_w2, (3, 3, Cemb, Cemb), dtype=jnp.float32) * 0.1

    fwd = jax.jit(conv_module_forward)
    out = jax.block_until_ready(fwd(x, w1, w2))
    ref = jax.block_until_ready(_reference_forward(x, w1, w2))

    assert out.shape == (N, H * W, Cemb), out.shape
    max_err = float(jnp.max(jnp.abs(out - ref)))
    assert jnp.allclose(out, ref, atol=5e-3, rtol=5e-3), (
        f"mismatch vs reference, max abs err={max_err}")

    print("KERNEL_OK")
</pallas_src>

<mosaic_0001>
module attributes {stable_mosaic.version = 11 : i64} {
  func.func @_fused_double_conv_kernel(%arg0: i32, %arg1: memref<1x16x16x4xf32, #tpu.memory_space<vmem>>, %arg2: memref<36x128xf32, #tpu.memory_space<vmem>>, %arg3: memref<1152x128xbf16, #tpu.memory_space<vmem>>, %arg4: memref<1x256x128xf32, #tpu.memory_space<vmem>>, %arg5: memref<18x18x4xf32, #tpu.memory_space<vmem>>, %arg6: memref<18x18x128xbf16, #tpu.memory_space<vmem>>, %arg7: memref<256x1152xbf16, #tpu.memory_space<vmem>>) attributes {dimension_semantics = [#tpu.dimension_semantics<parallel>], iteration_bounds = array<i64: 2>, scalar_prefetch = 0 : i64, scratch_operands = 3 : i64, tpu.core_type = #tpu.core_type<tc>, window_params = [{transform_indices = @transform_0, window_bounds = array<i64: 1, 16, 16, 4>}, {pipeline_mode = #tpu.pipeline_mode<synchronous>, transform_indices = @transform_1, window_bounds = array<i64: 36, 128>}, {pipeline_mode = #tpu.pipeline_mode<synchronous>, transform_indices = @transform_2, window_bounds = array<i64: 1152, 128>}, {transform_indices = @transform_3, window_bounds = array<i64: 1, 256, 128>}]} {
    %cst = arith.constant 0.000000e+00 : f32
    %0 = vector.broadcast %cst : f32 to vector<18x18x4xf32>
    %c0 = arith.constant 0 : index
    %c0_0 = arith.constant 0 : index
    %c0_1 = arith.constant 0 : index
    %1 = vector.load %arg5[%c0, %c0_0, %c0_1] : memref<18x18x4xf32, #tpu.memory_space<vmem>>, vector<18x18x4xf32>
    tpu.vector_store %arg5[%c0, %c0_0, %c0_1], %0 {strides = array<i32>} : memref<18x18x4xf32, #tpu.memory_space<vmem>>, vector<18x18x4xf32>,
    %cst_2 = arith.constant 0.000000e+00 : bf16
    %2 = vector.broadcast %cst_2 : bf16 to vector<18x18x128xbf16>
    %c0_3 = arith.constant 0 : index
    %c0_4 = arith.constant 0 : index
    %c0_5 = arith.constant 0 : index
    %3 = vector.load %arg6[%c0_3, %c0_4, %c0_5] : memref<18x18x128xbf16, #tpu.memory_space<vmem>>, vector<18x18x128xbf16>
    tpu.vector_store %arg6[%c0_3, %c0_4, %c0_5], %2 {strides = array<i32>} : memref<18x18x128xbf16, #tpu.memory_space<vmem>>, vector<18x18x128xbf16>,
    %c0_6 = arith.constant 0 : index
    %c0_7 = arith.constant 0 : index
    %c0_8 = arith.constant 0 : index
    %c0_9 = arith.constant 0 : index
    %4 = vector.load %arg1[%c0_6, %c0_7, %c0_8, %c0_9] : memref<1x16x16x4xf32, #tpu.memory_space<vmem>>, vector<1x16x16x4xf32>
    %5 = vector.shape_cast %4 : vector<1x16x16x4xf32> to vector<16x16x4xf32>
    %c1 = arith.constant 1 : index
    %c1_10 = arith.constant 1 : index
    %c0_11 = arith.constant 0 : index
    %6 = vector.load %arg5[%c1, %c1_10, %c0_11] : memref<18x18x4xf32, #tpu.memory_space<vmem>>, vector<16x16x4xf32>
    tpu.vector_store %arg5[%c1, %c1_10, %c0_11], %5 {strides = array<i32>} : memref<18x18x4xf32, #tpu.memory_space<vmem>>, vector<16x16x4xf32>,
    %c0_12 = arith.constant 0 : index
    %c0_13 = arith.constant 0 : index
    %c0_14 = arith.constant 0 : index
    %7 = vector.load %arg5[%c0_12, %c0_13, %c0_14] : memref<18x18x4xf32, #tpu.memory_space<vmem>>, vector<16x16x4xf32>
    %8 = vector.shape_cast %7 : vector<16x16x4xf32> to vector<256x4xf32>
    %c0_15 = arith.constant 0 : index
    %c1_16 = arith.constant 1 : index
    %c0_17 = arith.constant 0 : index
    %9 = vector.load %arg5[%c0_15, %c1_16, %c0_17] : memref<18x18x4xf32, #tpu.memory_space<vmem>>, vector<16x16x4xf32>
    %10 = vector.shape_cast %9 : vector<16x16x4xf32> to vector<256x4xf32>
    %c0_18 = arith.constant 0 : index
    %c2 = arith.constant 2 : index
    %c0_19 = arith.constant 0 : index
    %11 = vector.load %arg5[%c0_18, %c2, %c0_19] : memref<18x18x4xf32, #tpu.memory_space<vmem>>, vector<16x16x4xf32>
    %12 = vector.shape_cast %11 : vector<16x16x4xf32> to vector<256x4xf32>
    %c1_20 = arith.constant 1 : index
    %c0_21 = arith.constant 0 : index
    %c0_22 = arith.constant 0 : index
    %13 = vector.load %arg5[%c1_20, %c0_21, %c0_22] : memref<18x18x4xf32, #tpu.memory_space<vmem>>, vector<16x16x4xf32>
    %14 = vector.shape_cast %13 : vector<16x16x4xf32> to vector<256x4xf32>
    %c1_23 = arith.constant 1 : index
    %c1_24 = arith.constant 1 : index
    %c0_25 = arith.constant 0 : index
    %15 = vector.load %arg5[%c1_23, %c1_24, %c0_25] : memref<18x18x4xf32, #tpu.memory_space<vmem>>, vector<16x16x4xf32>
    %16 = vector.shape_cast %15 : vector<16x16x4xf32> to vector<256x4xf32>
    %c1_26 = arith.constant 1 : index
    %c2_27 = arith.constant 2 : index
    %c0_28 = arith.constant 0 : index
    %17 = vector.load %arg5[%c1_26, %c2_27, %c0_28] : memref<18x18x4xf32, #tpu.memory_space<vmem>>, vector<16x16x4xf32>
    %18 = vector.shape_cast %17 : vector<16x16x4xf32> to vector<256x4xf32>
    %c2_29 = arith.constant 2 : index
    %c0_30 = arith.constant 0 : index
    %c0_31 = arith.constant 0 : index
    %19 = vector.load %arg5[%c2_29, %c0_30, %c0_31] : memref<18x18x4xf32, #tpu.memory_space<vmem>>, vector<16x16x4xf32>
    %20 = vector.shape_cast %19 : vector<16x16x4xf32> to vector<256x4xf32>
    %c2_32 = arith.constant 2 : index
    %c1_33 = arith.constant 1 : index
    %c0_34 = arith.constant 0 : index
    %21 = vector.load %arg5[%c2_32, %c1_33, %c0_34] : memref<18x18x4xf32, #tpu.memory_space<vmem>>, vector<16x16x4xf32>
    %22 = vector.shape_cast %21 : vector<16x16x4xf32> to vector<256x4xf32>
    %c2_35 = arith.constant 2 : index
    %c2_36 = arith.constant 2 : index
    %c0_37 = arith.constant 0 : index
    %23 = vector.load %arg5[%c2_35, %c2_36, %c0_37] : memref<18x18x4xf32, #tpu.memory_space<vmem>>, vector<16x16x4xf32>
    %24 = vector.shape_cast %23 : vector<16x16x4xf32> to vector<256x4xf32>
    %25 = tpu.concatenate %8, %10, %12, %14, %16, %18, %20, %22, %24 in 1 : vector<256x4xf32>, vector<256x4xf32>, vector<256x4xf32>, vector<256x4xf32>, vector<256x4xf32>, vector<256x4xf32>, vector<256x4xf32>, vector<256x4xf32>, vector<256x4xf32> -> vector<256x36xf32>
    %c0_38 = arith.constant 0 : index
    %c0_39 = arith.constant 0 : index
    %26 = vector.load %arg2[%c0_38, %c0_39] : memref<36x128xf32, #tpu.memory_space<vmem>>, vector<36x128xf32>
    %cst_40 = arith.constant dense<0.000000e+00> : vector<256x128xf32>
    %27 = tpu.matmul %25, %26, %cst_40 {dimension_numbers = #tpu.dot_dimension_numbers<[1], [0], [0], [1], [0, 0, 1, 1], [], []>} : vector<256x36xf32>, vector<36x128xf32>, vector<256x128xf32> -> vector<256x128xf32>
    %cst_41 = arith.constant 0.000000e+00 : f32
    %28 = vector.broadcast %cst_41 : f32 to vector<256x128xf32>
    %29 = arith.maximumf %27, %28 : vector<256x128xf32>
    %30 = vector.shape_cast %29 : vector<256x128xf32> to vector<16x16x128xf32>
    %31 = arith.truncf %30 : vector<16x16x128xf32> to vector<16x16x128xbf16>
    %c1_42 = arith.constant 1 : index
    %c1_43 = arith.constant 1 : index
    %c0_44 = arith.constant 0 : index
    %32 = vector.load %arg6[%c1_42, %c1_43, %c0_44] : memref<18x18x128xbf16, #tpu.memory_space<vmem>>, vector<16x16x128xbf16>
    tpu.vector_store %arg6[%c1_42, %c1_43, %c0_44], %31 {strides = array<i32>} : memref<18x18x128xbf16, #tpu.memory_space<vmem>>, vector<16x16x128xbf16>,
    %c0_45 = arith.constant 0 : index
    %c0_46 = arith.constant 0 : index
    %c0_47 = arith.constant 0 : index
    %33 = vector.load %arg6[%c0_45, %c0_46, %c0_47] : memref<18x18x128xbf16, #tpu.memory_space<vmem>>, vector<16x16x128xbf16>
    %34 = vector.shape_cast %33 : vector<16x16x128xbf16> to vector<256x128xbf16>
    %c0_48 = arith.constant 0 : index
    %c0_49 = arith.constant 0 : index
    %35 = vector.load %arg7[%c0_48, %c0_49] : memref<256x1152xbf16, #tpu.memory_space<vmem>>, vector<256x128xbf16>
    tpu.vector_store %arg7[%c0_48, %c0_49], %34 {strides = array<i32>} : memref<256x1152xbf16, #tpu.memory_space<vmem>>, vector<256x128xbf16>,
    %c0_50 = arith.constant 0 : index
    %c1_51 = arith.constant 1 : index
    %c0_52 = arith.constant 0 : index
    %36 = vector.load %arg6[%c0_50, %c1_51, %c0_52] : memref<18x18x128xbf16, #tpu.memory_space<vmem>>, vector<16x16x128xbf16>
    %37 = vector.shape_cast %36 : vector<16x16x128xbf16> to vector<256x128xbf16>
    %c0_53 = arith.constant 0 : index
    %c128 = arith.constant 128 : index
    %38 = vector.load %arg7[%c0_53, %c128] : memref<256x1152xbf16, #tpu.memory_space<vmem>>, vector<256x128xbf16>
    tpu.vector_store %arg7[%c0_53, %c128], %37 {strides = array<i32>} : memref<256x1152xbf16, #tpu.memory_space<vmem>>, vector<256x128xbf16>,
    %c0_54 = arith.constant 0 : index
    %c2_55 = arith.constant 2 : index
    %c0_56 = arith.constant 0 : index
    %39 = vector.load %arg6[%c0_54, %c2_55, %c0_56] : memref<18x18x128xbf16, #tpu.memory_space<vmem>>, vector<16x16x128xbf16>
    %40 = vector.shape_cast %39 : vector<16x16x128xbf16> to vector<256x128xbf16>
    %c0_57 = arith.constant 0 : index
    %c256 = arith.constant 256 : index
    %41 = vector.load %arg7[%c0_57, %c256] : memref<256x1152xbf16, #tpu.memory_space<vmem>>, vector<256x128xbf16>
    tpu.vector_store %arg7[%c0_57, %c256], %40 {strides = array<i32>} : memref<256x1152xbf16, #tpu.memory_space<vmem>>, vector<256x128xbf16>,
    %c1_58 = arith.constant 1 : index
    %c0_59 = arith.constant 0 : index
    %c0_60 = arith.constant 0 : index
    %42 = vector.load %arg6[%c1_58, %c0_59, %c0_60] : memref<18x18x128xbf16, #tpu.memory_space<vmem>>, vector<16x16x128xbf16>
    %43 = vector.shape_cast %42 : vector<16x16x128xbf16> to vector<256x128xbf16>
    %c0_61 = arith.constant 0 : index
    %c384 = arith.constant 384 : index
    %44 = vector.load %arg7[%c0_61, %c384] : memref<256x1152xbf16, #tpu.memory_space<vmem>>, vector<256x128xbf16>
    tpu.vector_store %arg7[%c0_61, %c384], %43 {strides = array<i32>} : memref<256x1152xbf16, #tpu.memory_space<vmem>>, vector<256x128xbf16>,
    %c1_62 = arith.constant 1 : index
    %c1_63 = arith.constant 1 : index
    %c0_64 = arith.constant 0 : index
    %45 = vector.load %arg6[%c1_62, %c1_63, %c0_64] : memref<18x18x128xbf16, #tpu.memory_space<vmem>>, vector<16x16x128xbf16>
    %46 = vector.shape_cast %45 : vector<16x16x128xbf16> to vector<256x128xbf16>
    %c0_65 = arith.constant 0 : index
    %c512 = arith.constant 512 : index
    %47 = vector.load %arg7[%c0_65, %c512] : memref<256x1152xbf16, #tpu.memory_space<vmem>>, vector<256x128xbf16>
    tpu.vector_store %arg7[%c0_65, %c512], %46 {strides = array<i32>} : memref<256x1152xbf16, #tpu.memory_space<vmem>>, vector<256x128xbf16>,
    %c1_66 = arith.constant 1 : index
    %c2_67 = arith.constant 2 : index
    %c0_68 = arith.constant 0 : index
    %48 = vector.load %arg6[%c1_66, %c2_67, %c0_68] : memref<18x18x128xbf16, #tpu.memory_space<vmem>>, vector<16x16x128xbf16>
    %49 = vector.shape_cast %48 : vector<16x16x128xbf16> to vector<256x128xbf16>
    %c0_69 = arith.constant 0 : index
    %c640 = arith.constant 640 : index
    %50 = vector.load %arg7[%c0_69, %c640] : memref<256x1152xbf16, #tpu.memory_space<vmem>>, vector<256x128xbf16>
    tpu.vector_store %arg7[%c0_69, %c640], %49 {strides = array<i32>} : memref<256x1152xbf16, #tpu.memory_space<vmem>>, vector<256x128xbf16>,
    %c2_70 = arith.constant 2 : index
    %c0_71 = arith.constant 0 : index
    %c0_72 = arith.constant 0 : index
    %51 = vector.load %arg6[%c2_70, %c0_71, %c0_72] : memref<18x18x128xbf16, #tpu.memory_space<vmem>>, vector<16x16x128xbf16>
    %52 = vector.shape_cast %51 : vector<16x16x128xbf16> to vector<256x128xbf16>
    %c0_73 = arith.constant 0 : index
    %c768 = arith.constant 768 : index
    %53 = vector.load %arg7[%c0_73, %c768] : memref<256x1152xbf16, #tpu.memory_space<vmem>>, vector<256x128xbf16>
    tpu.vector_store %arg7[%c0_73, %c768], %52 {strides = array<i32>} : memref<256x1152xbf16, #tpu.memory_space<vmem>>, vector<256x128xbf16>,
    %c2_74 = arith.constant 2 : index
    %c1_75 = arith.constant 1 : index
    %c0_76 = arith.constant 0 : index
    %54 = vector.load %arg6[%c2_74, %c1_75, %c0_76] : memref<18x18x128xbf16, #tpu.memory_space<vmem>>, vector<16x16x128xbf16>
    %55 = vector.shape_cast %54 : vector<16x16x128xbf16> to vector<256x128xbf16>
    %c0_77 = arith.constant 0 : index
    %c896 = arith.constant 896 : index
    %56 = vector.load %arg7[%c0_77, %c896] : memref<256x1152xbf16, #tpu.memory_space<vmem>>, vector<256x128xbf16>
    tpu.vector_store %arg7[%c0_77, %c896], %55 {strides = array<i32>} : memref<256x1152xbf16, #tpu.memory_space<vmem>>, vector<256x128xbf16>,
    %c2_78 = arith.constant 2 : index
    %c2_79 = arith.constant 2 : index
    %c0_80 = arith.constant 0 : index
    %57 = vector.load %arg6[%c2_78, %c2_79, %c0_80] : memref<18x18x128xbf16, #tpu.memory_space<vmem>>, vector<16x16x128xbf16>
    %58 = vector.shape_cast %57 : vector<16x16x128xbf16> to vector<256x128xbf16>
    %c0_81 = arith.constant 0 : index
    %c1024 = arith.constant 1024 : index
    %59 = vector.load %arg7[%c0_81, %c1024] : memref<256x1152xbf16, #tpu.memory_space<vmem>>, vector<256x128xbf16>
    tpu.vector_store %arg7[%c0_81, %c1024], %58 {strides = array<i32>} : memref<256x1152xbf16, #tpu.memory_space<vmem>>, vector<256x128xbf16>,
    %c0_82 = arith.constant 0 : index
    %c0_83 = arith.constant 0 : index
    %60 = vector.load %arg7[%c0_82, %c0_83] : memref<256x1152xbf16, #tpu.memory_space<vmem>>, vector<256x1152xbf16>
    %c0_84 = arith.constant 0 : index
    %c0_85 = arith.constant 0 : index
    %61 = vector.load %arg3[%c0_84, %c0_85] : memref<1152x128xbf16, #tpu.memory_space<vmem>>, vector<1152x128xbf16>
    %cst_86 = arith.constant dense<0.000000e+00> : vector<256x128xf32>
    %62 = tpu.matmul %60, %61, %cst_86 {dimension_numbers = #tpu.dot_dimension_numbers<[1], [0], [0], [1], [0, 0, 1, 1], [], []>} : vector<256x1152xbf16>, vector<1152x128xbf16>, vector<256x128xf32> -> vector<256x128xf32>
    %cst_87 = arith.constant 0.000000e+00 : f32
    %63 = vector.broadcast %cst_87 : f32 to vector<256x128xf32>
    %64 = arith.maximumf %62, %63 : vector<256x128xf32>
    %65 = vector.shape_cast %64 : vector<256x128xf32> to vector<1x256x128xf32>
    %c0_88 = arith.constant 0 : index
    %c0_89 = arith.constant 0 : index
    %c0_90 = arith.constant 0 : index
    %66 = vector.load %arg4[%c0_88, %c0_89, %c0_90] : memref<1x256x128xf32, #tpu.memory_space<vmem>>, vector<1x256x128xf32>
    tpu.vector_store %arg4[%c0_88, %c0_89, %c0_90], %65 {strides = array<i32>} : memref<1x256x128xf32, #tpu.memory_space<vmem>>, vector<1x256x128xf32>,
    return
  }
  func.func @transform_0(%arg0: i32) -> (i32, i32, i32, i32) {
    %c0_i32 = arith.constant 0 : i32
    %c0_i32_0 = arith.constant 0 : i32
    %c0_i32_1 = arith.constant 0 : i32
    %c0_i32_2 = arith.constant 0 : i32
    return %arg0, %c0_i32, %c0_i32_0, %c0_i32_1 : i32, i32, i32, i32
  }
  func.func @transform_1(%arg0: i32) -> (i32, i32) {
    %c0_i32 = arith.constant 0 : i32
    %c0_i32_0 = arith.constant 0 : i32
    %c0_i32_1 = arith.constant 0 : i32
    return %c0_i32, %c0_i32_0 : i32, i32
  }
  func.func @transform_2(%arg0: i32) -> (i32, i32) {
    %c0_i32 = arith.constant 0 : i32
    %c0_i32_0 = arith.constant 0 : i32
    %c0_i32_1 = arith.constant 0 : i32
    return %c0_i32, %c0_i32_0 : i32, i32
  }
  func.func @transform_3(%arg0: i32) -> (i32, i32, i32) {
    %c0_i32 = arith.constant 0 : i32
    %c0_i32_0 = arith.constant 0 : i32
    %c0_i32_1 = arith.constant 0 : i32
    return %arg0, %c0_i32, %c0_i32_0 : i32, i32, i32
  }
}

</mosaic_0001>

<bundles_post_ra>
// kernel: conv_module_forward.1
= control target key start
LH: loop header
LB: loop body
LE: loop exit
PB: predicated region body
PF: predicated region fallthrough
CT: control target
= control target key end

     0   :  { %8 = vsyncpa [#allocation6], 0  ;;  %s11605_s0 = inlined_call_operand.vmem [shape: f32[2,16,16,4], index: 0, kind: input, shape index: {}]   ;;  %s11606_s1 = inlined_call_operand.vmem [shape: f32[36,128], index: 1, kind: input, shape index: {}]   ;;  %s11607_s2 = inlined_call_operand.vmem [shape: bf16[1152,128], index: 2, kind: input, shape index: {}]   ;;  %s11608_s3 = inlined_call_operand.hbm [shape: f32[2,256,128], index: 3, kind: output, shape index: {}]  }
   0x1   :  { %10 = vsyncpa [#allocation6 + $0x1], 0  ;;  %s8609_s12 = smov 0   ;;  %s8611_s13 = smov 0  }
   0x2   :  { %s8613_s14 = smov 0   ;;  %s8615_s15 = smov 0  }
   0x3 LB: > { %s8630_s16 = sadd.s32 4294967295, %s8575_s15   ;;  %s7325_s17 = sadd.s32 4294967294, %s8575_s15   ;;  %s8575_s15 = sphi %s8615_s15, %s11735_s15   ;;  %s8571_s14 = sphi %s8613_s14, %s11734_s14   ;;  %s8567_s13 = sphi %s8611_s13, %s11733_s13   ;;  %s8563_s12 = sphi %s8609_s12, %s11732_s12  }
   0x4   : > { %s8634_s18 = sadd.s32 1, %s8575_s15   ;;  %s91_s19 = sadd.s32 1, %s8571_s14 }
   0x5   : > { %s88_s20 = ssub.s32 %s8575_s15, %s8634_s18  ;;  %p101_p0 = scmp.ne.s32.totalorder %s8571_s14, %s8567_s13 }
   0x6   : > { %p89_p1 = scmp.eq.s32.totalorder %s88_s20, 0  ;;  %p102_p2 = scmp.eq.s32.totalorder %s8630_s16, 1 }
   0x7   : > { %p107_p3 = scmp.ne.s32.totalorder %s8567_s13, %s8563_s12  ;;  %p108_p4 = scmp.eq.s32.totalorder %s7325_s17, 1 }
   0x8   : > { %s8645_s21 = scalar_select %p89_p1, %s8571_s14, %s91_s19  }
   0x9   : > { %p8647_p5 = por %p102_p2, %p101_p0  ;;  %p8651_p6 = por %p108_p4, %p107_p3 }
   0xa   : > { %p7328_p7 = scmp.ge.s32.totalorder %s8575_s15, 1  ;;  %p140_p8 = scmp.lt.s32.totalorder %s8575_s15, 3 }
   0xc   : > { %p141_p9 = pnand %p7328_p7, %p140_p8 }
   0xe   : > { %144 = sbr.rel (%p141_p9) target bundleno = 1307 (0x51b), region = 32 }
  0x15   : > { %vm170_vm0 = vcmask 31744   ;;  %vm173_vm1 = vcmask 25600   ;;  %v8577_v0 = vmov 0.0   ;;  %p164_p10 = scmp.lt.s32.totalorder %s8630_s16, 1  ;;  %s8578_s29 = smov 8   ;;  %v1921_v22 = vld [vmem:[%s11606_s1] sm:$0xff] }
  0x16   : > { %171 = vst.msk [vmem:[#allocation2] sm:$0xff] %vm170_vm0, %v8577_v0  ;;  %172 = vst.msk [vmem:[#allocation2 + $0x8] sm:$0xff] %vm170_vm0, %v8577_v0  ;;  %s8579_s30 = smov 4   ;;  %s8580_s4 = smov 12   ;;  %v1922_v23 = vld [vmem:[%s11606_s1 + $0x8] sm:$0xff]  ;;  %v1923_v26 = vld [vmem:[%s11606_s1 + $0x10] sm:$0xff] }
  0x17   : > { %175 = vst.msk [vmem:[#allocation2 + $0x18] sm:$0xff] %vm170_vm0, %v8577_v0  ;;  %176 = vst.msk [vmem:[#allocation2 + $0x20] sm:$0xff] %vm170_vm0, %v8577_v0  ;;  %s165_s24 = scalar_select %p164_p10, %s8630_s16, 1  ;;  %v8315_v25 = vpack.c.bf16 %v1922_v23, %v1921_v22  ;;  %v1924_v27 = vld [vmem:[%s11606_s1 + $0x18] sm:$0xff]  ;;  %vm2023_vm2 = vcmask 1043456   ;;  %vm11609_vm3 = vcmask 64512  }
  0x18   : > { %178 = vst.msk [vmem:[#allocation2 + $0x30] sm:$0xff] %vm170_vm0, %v8577_v0  ;;  %179 = vst.msk [vmem:[#allocation2 + $0x38] sm:$0xff] %vm170_vm0, %v8577_v0  ;;  %s8581_s5 = smov 16   ;;  %s8582_s6 = smov 20   ;;  %v8319_v28 = vpack.c.bf16 %v1924_v27, %v1923_v26  ;;  %v1925_v33 = vld [vmem:[%s11606_s1 + $0x20] sm:$0xf] }
  0x19   : > { %181 = vst.msk [vmem:[#allocation2 + $0x48] sm:$0xff] %vm170_vm0, %v8577_v0  ;;  %182 = vst.msk [vmem:[#allocation2 + $0x50] sm:$0xff] %vm170_vm0, %v8577_v0  ;;  %s7666_s25 = sshll.u32 %s165_s24, 8  ;;  %8316 = vmatprep.subr.bf16.mxu0 %v8315_v25  ;;  %s8583_s24 = smov 24   ;;  %vm1723_vm4 = vcmask 97280   ;;  %vm1756_vm5 = vcmask 130048  }
  0x1a   : > { %184 = vst.msk [vmem:[#allocation2 + $0x60] sm:$0xff] %vm170_vm0, %v8577_v0  ;;  %185 = vst.msk [vmem:[#allocation2 + $0x68] sm:$0xff] %vm170_vm0, %v8577_v0  ;;  %s8716_s28 = scalar_lea.vmem %s11605_s0, %s7666_s25  ;;  %8318 = vmatpush3.bf16.msra.mxu0 %v8315_v25  ;;  %s8584_s27 = smov 28   ;;  %vm1789_vm6 = vcmask 162816   ;;  %vm1822_vm7 = vcmask 195584   ;;  %vm1855_vm8 = vcmask 228352  }
  0x1b   : > { %187 = vst.msk [vmem:[#allocation2 + $0x78] sm:$0xff] %vm170_vm0, %v8577_v0  ;;  %188 = vst.msk [vmem:[#allocation2 + $0x80] sm:$0xff] %vm170_vm0, %v8577_v0  ;;  %v280_v1 = vld [vmem:[%s8716_s28] sm:$0xff]  ;;  %v281_v2 = vld [vmem:[%s8716_s28 + $0x8] sm:$0xff]  ;;  %8320 = vmatprep.subr.bf16.mxu0 %v8319_v28  ;;  %s8585_s7 = smov 32   ;;  %vm1888_vm9 = vcmask 261120  }
  0x1c   : > { %190 = vst.msk [vmem:[#allocation2 + $0x90] sm:$0xff] %vm170_vm0, %v8577_v0  ;;  %191 = vst.msk [vmem:[#allocation2 + $0x98] sm:$0xff] %vm170_vm0, %v8577_v0  ;;  %v282_v3 = vld [vmem:[%s8716_s28 + $0x10] sm:$0xff]  ;;  %v283_v8 = vld [vmem:[%s8716_s28 + $0x18] sm:$0xff]  ;;  %vm1926_vm10 = vcmask 293888   ;;  %s161_s9 = sand.u32 1, %s8567_s13  }
  0x1d   : > { %193 = vst.msk [vmem:[#allocation2 + $0xa8] sm:$0xff] %vm170_vm0, %v8577_v0  ;;  %194 = vst.msk [vmem:[#allocation2 + $0xb0] sm:$0xff] %vm170_vm0, %v8577_v0  ;;  %v409_v4 = vld [vmem:[#allocation2 + $0x2] sm:$0xff]  ;;  %v286_v11 = vld [vmem:[%s8716_s28 + $0x30] sm:$0xff]  ;;  %vm3013_vm11 = vsmask.f32 3328 }
  0x1e   : > { %196 = vst.msk [vmem:[#allocation2 + $0xc0] sm:$0xff] %vm170_vm0, %v8577_v0  ;;  %197 = vst.msk [vmem:[#allocation2 + $0xc8] sm:$0xff] %vm170_vm0, %v8577_v0  ;;  %v377_v5 = vld [vmem:[#allocation2 + $0x1] sm:$0xff]  ;;  %794 = vrot.lane.b32.xlu1 %v409_v4, %s8578_s29  ;;  %v287_v12 = vld [vmem:[%s8716_s28 + $0x38] sm:$0xff]  ;;  %8322 = vmatpush3.bf16.msra.mxu0 %v8319_v28  ;;  %vm3014_vm12 = vsmask.f32 7440 }
  0x1f   : > { %199 = vst.msk [vmem:[#allocation2 + $0xd8] sm:$0xff] %vm170_vm0, %v8577_v0  ;;  %200 = vst.msk [vmem:[#allocation2 + $0xe0] sm:$0xff] %vm170_vm0, %v8577_v0  ;;  %666 = vrot.lane.b32.xlu0 %v377_v5, %s8579_s30  ;;  %v284_v9 = vld [vmem:[%s8716_s28 + $0x20] sm:$0xff]  ;;  %v285_v10 = vld [vmem:[%s8716_s28 + $0x28] sm:$0xff]  ;;  %8217 = vmatprep.subr.msk.mxu0 %vm2023_vm2, %v1925_v33  ;;  %vm2705_vm14 = vsmask.f32 7938 }
  0x20   : > { %202 = vst.msk [vmem:[#allocation2 + $0xf0] sm:$0xff] %vm170_vm0, %v8577_v0  ;;  %203 = vst.msk [vmem:[#allocation2 + $0xf8] sm:$0xff] %vm170_vm0, %v8577_v0  ;;  %v288_v13 = vld [vmem:[%s8716_s28 + $0x40] sm:$0xff]  ;;  %v289_v14 = vld [vmem:[%s8716_s28 + $0x48] sm:$0xff]  ;;  %vm2380_vm15 = vsmask.f32 256 }
  0x21   : > { %205 = vst.msk [vmem:[#allocation2 + $0x108] sm:$0xff] %vm170_vm0, %v8577_v0  ;;  %206 = vst.msk [vmem:[#allocation2 + $0x110] sm:$0xff] %vm170_vm0, %v8577_v0  ;;  %v290_v29 = vld [vmem:[%s8716_s28 + $0x50] sm:$0xff]  ;;  %v291_v30 = vld [vmem:[%s8716_s28 + $0x58] sm:$0xff]  ;;  %s7329_s10 = sshll.u32 %s161_s9, 8 }
  0x22   : > { %208 = vst.msk [vmem:[#allocation2 + $0x120] sm:$0xff] %vm170_vm0, %v8577_v0  ;;  %209 = vst.msk [vmem:[#allocation2 + $0x128] sm:$0xff] %vm170_vm0, %v8577_v0  ;;  %8218 = vmatpush3.msk.msra.mxu0 %vm2023_vm2, %v1925_v33  ;;  %v292_v36 = vld [vmem:[%s8716_s28 + $0x60] sm:$0xff]  ;;  %v293_v37 = vld [vmem:[%s8716_s28 + $0x68] sm:$0xff] }
  0x23   : > { %211 = vst.msk [vmem:[#allocation2 + $0x138] sm:$0xff] %vm170_vm0, %v8577_v0  ;;  %212 = vst.msk [vmem:[#allocation2 + $0x140] sm:$0xff] %vm170_vm0, %v8577_v0  ;;  %v294_v44 = vld [vmem:[%s8716_s28 + $0x70] sm:$0xff]  ;;  %v295_v45 = vld [vmem:[%s8716_s28 + $0x78] sm:$0xff] }
  0x24   : > { %214 = vst.msk [vmem:[#allocation2 + $0x150] sm:$0xff] %vm170_vm0, %v8577_v0  ;;  %215 = vst.msk [vmem:[#allocation2 + $0x158] sm:$0xff] %vm170_vm0, %v8577_v0  ;;  %v296_v52 = vld [vmem:[%s8716_s28 + $0x80] sm:$0xff]  ;;  %v297_v53 = vld [vmem:[%s8716_s28 + $0x88] sm:$0xff] }
  0x25   : > { %217 = vst.msk [vmem:[#allocation2 + $0x168] sm:$0xff] %vm170_vm0, %v8577_v0  ;;  %218 = vst.msk [vmem:[#allocation2 + $0x170] sm:$0xff] %vm170_vm0, %v8577_v0  ;;  %v299_v22 = vld [vmem:[%s8716_s28 + $0x98] sm:$0xff] }
  0x26   : > { %220 = vst.msk [vmem:[#allocation2 + $0x180] sm:$0xff] %vm170_vm0, %v8577_v0  ;;  %221 = vst.msk [vmem:[#allocation2 + $0x188] sm:$0xff] %vm170_vm0, %v8577_v0 }
  0x27   : > { %223 = vst.msk [vmem:[#allocation2 + $0x198] sm:$0xff] %vm170_vm0, %v8577_v0  ;;  %224 = vst.msk [vmem:[#allocation2 + $0x1a0] sm:$0xff] %vm170_vm0, %v8577_v0 }
  0x28   : > { %174 = vst.msk [vmem:[#allocation2 + $0x10] sm:$0x3] %vm173_vm1, %v8577_v0  ;;  %177 = vst.msk [vmem:[#allocation2 + $0x28] sm:$0x3] %vm173_vm1, %v8577_v0 }
  0x29   : > { %180 = vst.msk [vmem:[#allocation2 + $0x40] sm:$0x3] %vm173_vm1, %v8577_v0  ;;  %183 = vst.msk [vmem:[#allocation2 + $0x58] sm:$0x3] %vm173_vm1, %v8577_v0 }
  0x2a   : > { %186 = vst.msk [vmem:[#allocation2 + $0x70] sm:$0x3] %vm173_vm1, %v8577_v0  ;;  %189 = vst.msk [vmem:[#allocation2 + $0x88] sm:$0x3] %vm173_vm1, %v8577_v0 }
  0x2b   : > { %192 = vst.msk [vmem:[#allocation2 + $0xa0] sm:$0x3] %vm173_vm1, %v8577_v0  ;;  %195 = vst.msk [vmem:[#allocation2 + $0xb8] sm:$0x3] %vm173_vm1, %v8577_v0 }
  0x2c   : > { %198 = vst.msk [vmem:[#allocation2 + $0xd0] sm:$0x3] %vm173_vm1, %v8577_v0  ;;  %201 = vst.msk [vmem:[#allocation2 + $0xe8] sm:$0x3] %vm173_vm1, %v8577_v0 }
  0x2d   : > { %204 = vst.msk [vmem:[#allocation2 + $0x100] sm:$0x3] %vm173_vm1, %v8577_v0  ;;  %207 = vst.msk [vmem:[#allocation2 + $0x118] sm:$0x3] %vm173_vm1, %v8577_v0 }
  0x2e   : > { %210 = vst.msk [vmem:[#allocation2 + $0x130] sm:$0x3] %vm173_vm1, %v8577_v0  ;;  %213 = vst.msk [vmem:[#allocation2 + $0x148] sm:$0x3] %vm173_vm1, %v8577_v0 }
  0x2f   : > { %216 = vst.msk [vmem:[#allocation2 + $0x160] sm:$0x3] %vm173_vm1, %v8577_v0  ;;  %219 = vst.msk [vmem:[#allocation2 + $0x178] sm:$0x3] %vm173_vm1, %v8577_v0  ;;  %v410_v6 = vld [vmem:[#allocation2 + $0xa] sm:$0xff] }
  0x30   : > { %222 = vst.msk [vmem:[#allocation2 + $0x190] sm:$0x3] %vm173_vm1, %v8577_v0  ;;  %225 = vst.msk [vmem:[#allocation2 + $0x1a8] sm:$0x3] %vm173_vm1, %v8577_v0  ;;  %v378_v7 = vld [vmem:[#allocation2 + $0x9] sm:$0xff]  ;;  %796 = vrot.lane.b32.xlu1 %v410_v6, %s8578_s29  ;;  %v345_v6 = vld [vmem:[#allocation2] sm:$0xff] }
  0x31   : > { %313 = vst.msk [vmem:[#allocation2 + $0x19] sm:$0xff] %vm170_vm0, %v280_v1  ;;  %314 = vst.msk [vmem:[#allocation2 + $0x21] sm:$0xff] %vm170_vm0, %v281_v2  ;;  %668 = vrot.lane.b32.xlu0 %v378_v7, %s8579_s30  ;;  %vm2711_vm1 = vcmask 1040384  }
  0x32   : > { %315 = vst.msk [vmem:[#allocation2 + $0x31] sm:$0xff] %vm170_vm0, %v282_v3  ;;  %316 = vst.msk [vmem:[#allocation2 + $0x39] sm:$0xff] %vm170_vm0, %v283_v8 }
  0x33   : > { %317 = vst.msk [vmem:[#allocation2 + $0x49] sm:$0xff] %vm170_vm0, %v284_v9  ;;  %318 = vst.msk [vmem:[#allocation2 + $0x51] sm:$0xff] %vm170_vm0, %v285_v10  ;;  %v346_v10 = vld [vmem:[#allocation2 + $0x8] sm:$0xff] }
  0x34   : > { %319 = vst.msk [vmem:[#allocation2 + $0x61] sm:$0xff] %vm170_vm0, %v286_v11  ;;  %320 = vst.msk [vmem:[#allocation2 + $0x69] sm:$0xff] %vm170_vm0, %v287_v12 }
  0x35   : > { %321 = vst.msk [vmem:[#allocation2 + $0x79] sm:$0xff] %vm170_vm0, %v288_v13  ;;  %322 = vst.msk [vmem:[#allocation2 + $0x81] sm:$0xff] %vm170_vm0, %v289_v14 }
  0x36   : > { %323 = vst.msk [vmem:[#allocation2 + $0x91] sm:$0xff] %vm170_vm0, %v290_v29  ;;  %324 = vst.msk [vmem:[#allocation2 + $0x99] sm:$0xff] %vm170_vm0, %v291_v30 }
  0x37   : > { %325 = vst.msk [vmem:[#allocation2 + $0xa9] sm:$0xff] %vm170_vm0, %v292_v36  ;;  %326 = vst.msk [vmem:[#allocation2 + $0xb1] sm:$0xff] %vm170_vm0, %v293_v37 }
  0x38   : > { %v8742_v15 = vld [vmem:[#allocation2 + $0x20] sm:$0xff]  ;;  %v8744_v16 = vld [vmem:[#allocation2 + $0x18] sm:$0xff]  ;;  %327 = vst.msk [vmem:[#allocation2 + $0xc1] sm:$0xff] %vm170_vm0, %v294_v44  ;;  %328 = vst.msk [vmem:[#allocation2 + $0xc9] sm:$0xff] %vm170_vm0, %v295_v45 }
  0x39   : > { %924 = vrot.lane.b32.xlu1 %v8742_v15, %s8580_s4  ;;  %922 = vrot.lane.b32.xlu0 %v8744_v16, %s8580_s4  ;;  %v474_v17 = vld [vmem:[#allocation2 + $0x21] sm:$0xff]  ;;  %v473_v18 = vld [vmem:[#allocation2 + $0x19] sm:$0xff]  ;;  %v8762_v24 = vld [vmem:[#allocation2 + $0x30] sm:$0xff]  ;;  %329 = vst.msk [vmem:[#allocation2 + $0xd9] sm:$0xff] %vm170_vm0, %v296_v52 }
  0x3a   : > { %v506_v19 = vld [vmem:[#allocation2 + $0x22] sm:$0xff]  ;;  %v505_v20 = vld [vmem:[#allocation2 + $0x1a] sm:$0xff]  ;;  %v570_v32 = vld [vmem:[#allocation2 + $0x31] sm:$0xff]  ;;  %330 = vst.msk [vmem:[#allocation2 + $0xe1] sm:$0xff] %vm170_vm0, %v297_v53 }
  0x3b   : > { %v8754_v21 = vld [vmem:[#allocation2 + $0x38] sm:$0xff]  ;;  %v8801_v38 = vld [vmem:[#allocation2 + $0x48] sm:$0xff]  ;;  %v8805_v39 = vld [vmem:[#allocation2 + $0x50] sm:$0xff]  ;;  %332 = vst.msk [vmem:[#allocation2 + $0xf9] sm:$0xff] %vm170_vm0, %v299_v22 }
  0x3c   : > { %v571_v31 = vld [vmem:[#allocation2 + $0x39] sm:$0xff]  ;;  %v572_v40 = vld [vmem:[#allocation2 + $0x49] sm:$0xff]  ;;  %v573_v41 = vld [vmem:[#allocation2 + $0x51] sm:$0xff] }
  0x3d   : > { %1052 = vrot.lane.b32.xlu1 %v474_v17, %s8581_s5  ;;  %1050 = vrot.lane.b32.xlu0 %v473_v18, %s8581_s5  ;;  %v602_v34 = vld [vmem:[#allocation2 + $0x32] sm:$0xff]  ;;  %v603_v35 = vld [vmem:[#allocation2 + $0x3a] sm:$0xff]  ;;  %v604_v42 = vld [vmem:[#allocation2 + $0x4a] sm:$0xff] }
  0x3e   : > { %v605_v43 = vld [vmem:[#allocation2 + $0x52] sm:$0xff]  ;;  %v8831_v46 = vld [vmem:[#allocation2 + $0x60] sm:$0xff]  ;;  %v8833_v47 = vld [vmem:[#allocation2 + $0x68] sm:$0xff] }
  0x3f   : > { %v574_v48 = vld [vmem:[#allocation2 + $0x61] sm:$0xff]  ;;  %v575_v49 = vld [vmem:[#allocation2 + $0x69] sm:$0xff]  ;;  %v8859_v54 = vld [vmem:[#allocation2 + $0x78] sm:$0xff] }
  0x40   : > { %v606_v50 = vld [vmem:[#allocation2 + $0x62] sm:$0xff]  ;;  %v607_v51 = vld [vmem:[#allocation2 + $0x6a] sm:$0xff]  ;;  %v8867_v58 = vld [vmem:[#allocation2 + $0x79] sm:$0xff] }
  0x41   : > { %1180 = vrot.lane.b32.xlu1 %v506_v19, %s8582_s6  ;;  %1178 = vrot.lane.b32.xlu0 %v505_v20, %s8582_s6  ;;  %v8861_v55 = vld [vmem:[#allocation2 + $0x80] sm:$0xff]  ;;  %vm9225_vm13 = vmor %vm3013_vm11, %vm3014_vm12  ;;  %vm2381_vm11 = vsmask.f32 4368 }
  0x42   : > { %v8869_v59 = vld [vmem:[#allocation2 + $0x81] sm:$0xff]  ;;  %v8931_v45 = vld [vmem:[#allocation2 + $0x99] sm:$0xff]  ;;  %vm9448_vm12 = vmand %vm2023_vm2, %vm2705_vm14  ;;  %vm11629_vm14 = vcmask 64512  }
  0x43   : > { %v8875_v62 = vld [vmem:[#allocation2 + $0x7a] sm:$0xff]  ;;  %v8880_v1 = vld [vmem:[#allocation2 + $0x82] sm:$0xff]  ;;  %vm9466_vm2 = vmor %vm2380_vm15, %vm2381_vm11 }
  0x45   : > { %1308 = vrot.lane.b32.xlu1 %v8754_v21, %s8583_s24  ;;  %1306 = vrot.lane.b32.xlu0 %v8762_v24, %s8583_s24 }
  0x49   : > { %1436 = vrot.lane.b32.xlu1 %v571_v31, %s8584_s27  ;;  %1434 = vrot.lane.b32.xlu0 %v570_v32, %s8584_s27 }
  0x4d   : > { %1562 = vrot.lane.b32.xlu0 %v602_v34, %s8585_s7  ;;  %670 = vrot.lane.b32.xlu1 %v473_v18, %s8579_s30 }
  0x51   : > { %1564 = vrot.lane.b32.xlu0 %v603_v35, %s8585_s7  ;;  %672 = vrot.lane.b32.xlu1 %v474_v17, %s8579_s30 }
  0x55   : > { %798 = vrot.lane.b32.xlu0 %v505_v20, %s8578_s29  ;;  %800 = vrot.lane.b32.xlu1 %v506_v19, %s8578_s29  ;;  %v298_v20 = vld [vmem:[%s8716_s28 + $0x90] sm:$0xff] }
  0x56   : > { %331 = vst.msk [vmem:[#allocation2 + $0xf1] sm:$0xff] %vm170_vm0, %v298_v20  ;;  %v8989_v20 = vld [vmem:[#allocation2 + $0xb0] sm:$0xff] }
  0x59   : > { %926 = vrot.lane.b32.xlu0 %v8762_v24, %s8580_s4  ;;  %928 = vrot.lane.b32.xlu1 %v8754_v21, %s8580_s4 }
  0x5d   : > { %1054 = vrot.lane.b32.xlu0 %v570_v32, %s8581_s5  ;;  %1056 = vrot.lane.b32.xlu1 %v571_v31, %s8581_s5 }
  0x61   : > { %1182 = vrot.lane.b32.xlu0 %v602_v34, %s8582_s6  ;;  %1184 = vrot.lane.b32.xlu1 %v603_v35, %s8582_s6 }
  0x65   : > { %1310 = vrot.lane.b32.xlu0 %v8801_v38, %s8583_s24  ;;  %1312 = vrot.lane.b32.xlu1 %v8805_v39, %s8583_s24 }
  0x69   : > { %1438 = vrot.lane.b32.xlu0 %v572_v40, %s8584_s27  ;;  %1440 = vrot.lane.b32.xlu1 %v573_v41, %s8584_s27 }
  0x6d   : > { %1566 = vrot.lane.b32.xlu0 %v604_v42, %s8585_s7  ;;  %674 = vrot.lane.b32.xlu1 %v570_v32, %s8579_s30 }
  0x71   : > { %1568 = vrot.lane.b32.xlu0 %v605_v43, %s8585_s7  ;;  %676 = vrot.lane.b32.xlu1 %v571_v31, %s8579_s30 }
  0x75   : > { %802 = vrot.lane.b32.xlu0 %v602_v34, %s8578_s29  ;;  %804 = vrot.lane.b32.xlu1 %v603_v35, %s8578_s29  ;;  %v8918_v34 = vld [vmem:[#allocation2 + $0x90] sm:$0xff] }
  0x79   : > { %930 = vrot.lane.b32.xlu0 %v8801_v38, %s8580_s4  ;;  %932 = vrot.lane.b32.xlu1 %v8805_v39, %s8580_s4 }
  0x7d   : > { %1058 = vrot.lane.b32.xlu0 %v572_v40, %s8581_s5  ;;  %1060 = vrot.lane.b32.xlu1 %v573_v41, %s8581_s5 }
  0x81   : > { %1186 = vrot.lane.b32.xlu0 %v604_v42, %s8582_s6  ;;  %1188 = vrot.lane.b32.xlu1 %v605_v43, %s8582_s6 }
  0x85   : > { %1314 = vrot.lane.b32.xlu0 %v8831_v46, %s8583_s24  ;;  %1316 = vrot.lane.b32.xlu1 %v8833_v47, %s8583_s24 }
  0x89   : > { %1442 = vrot.lane.b32.xlu0 %v574_v48, %s8584_s27  ;;  %1444 = vrot.lane.b32.xlu1 %v575_v49, %s8584_s27 }
  0x8d   : > { %1570 = vrot.lane.b32.xlu0 %v606_v50, %s8585_s7  ;;  %678 = vrot.lane.b32.xlu1 %v572_v40, %s8579_s30  ;;  %v8921_v40 = vld [vmem:[#allocation2 + $0x98] sm:$0xff] }
  0x90   : > { %v795_v56 = vpop.permute.xlu1 %794 }
  0x91   : > { %1572 = vrot.lane.b32.xlu0 %v607_v51, %s8585_s7  ;;  %680 = vrot.lane.b32.xlu1 %v573_v41, %s8579_s30  ;;  %v667_v57 = vpop.permute.xlu0 %666 }
  0x92   : > { %v1658_v7 = vsel %vm170_vm0, %v345_v6, %v667_v57 }
  0x93   : > { %v1691_v11 = vsel %vm11609_vm3, %v1658_v7, %v795_v56 }
  0x95   : > { %806 = vrot.lane.b32.xlu0 %v604_v42, %s8578_s29  ;;  %808 = vrot.lane.b32.xlu1 %v605_v43, %s8578_s29  ;;  %v8929_v42 = vld [vmem:[#allocation2 + $0x91] sm:$0xff] }
  0x99   : > { %934 = vrot.lane.b32.xlu0 %v8831_v46, %s8580_s4  ;;  %936 = vrot.lane.b32.xlu1 %v8833_v47, %s8580_s4 }
  0x9d   : > { %1062 = vrot.lane.b32.xlu0 %v574_v48, %s8581_s5  ;;  %1064 = vrot.lane.b32.xlu1 %v575_v49, %s8581_s5 }
  0xa1   : > { %1190 = vrot.lane.b32.xlu0 %v606_v50, %s8582_s6  ;;  %1192 = vrot.lane.b32.xlu1 %v607_v51, %s8582_s6 }
  0xa2   : > { %v797_v60 = vpop.permute.xlu1 %796 }
  0xa3   : > { %v669_v61 = vpop.permute.xlu0 %668 }
  0xa4   : > { %v1659_v12 = vsel %vm170_vm0, %v346_v10, %v669_v61 }
  0xa5   : > { %1318 = vrot.lane.b32.xlu0 %v8859_v54, %s8583_s24  ;;  %1320 = vrot.lane.b32.xlu1 %v8861_v55, %s8583_s24  ;;  %v1692_v23 = vsel %vm11609_vm3, %v1659_v12, %v797_v60 }
  0xa9   : > { %1446 = vrot.lane.b32.xlu0 %v8867_v58, %s8584_s27  ;;  %1448 = vrot.lane.b32.xlu1 %v8869_v59, %s8584_s27 }
  0xab   : > { %v925_v63 = vpop.permute.xlu1 %924  ;;  %v923_v0 = vpop.permute.xlu0 %922 }
  0xac   : > { %v1724_v13 = vsel %vm1723_vm4, %v1691_v11, %v923_v0  ;;  %v1725_v26 = vsel %vm1723_vm4, %v1692_v23, %v925_v63  ;;  %v8997_v23 = vld [vmem:[#allocation2 + $0xa9] sm:$0xff] }
  0xad   : > { %1574 = vrot.lane.b32.xlu0 %v8875_v62, %s8585_s7  ;;  %682 = vrot.lane.b32.xlu1 %v574_v48, %s8579_s30  ;;  %v8937_v48 = vld [vmem:[#allocation2 + $0x92] sm:$0xff] }
  0xaf   : > { %v1053_v2 = vpop.permute.xlu1 %1052  ;;  %v1051_v3 = vpop.permute.xlu0 %1050 }
  0xb0   : > { %v1757_v18 = vsel %vm1756_vm5, %v1724_v13, %v1051_v3  ;;  %v1758_v30 = vsel %vm1756_vm5, %v1725_v26, %v1053_v2 }
  0xb1   : > { %1576 = vrot.lane.b32.xlu0 %v8880_v1, %s8585_s7  ;;  %684 = vrot.lane.b32.xlu1 %v575_v49, %s8579_s30 }
  0xb3   : > { %v1181_v4 = vpop.permute.xlu1 %1180  ;;  %v1179_v5 = vpop.permute.xlu0 %1178 }
  0xb4   : > { %v1790_v19 = vsel %vm1789_vm6, %v1757_v18, %v1179_v5  ;;  %v1791_v32 = vsel %vm1789_vm6, %v1758_v30, %v1181_v4  ;;  %v301_v4 = vld [vmem:[%s8716_s28 + $0xa8] sm:$0xff] }
  0xb5   : > { %810 = vrot.lane.b32.xlu0 %v606_v50, %s8578_s29  ;;  %812 = vrot.lane.b32.xlu1 %v607_v51, %s8578_s29  ;;  %v8943_v51 = vld [vmem:[#allocation2 + $0x9a] sm:$0xff]  ;;  %334 = vst.msk [vmem:[#allocation2 + $0x111] sm:$0xff] %vm170_vm0, %v301_v4 }
  0xb7   : > { %v1309_v8 = vpop.permute.xlu1 %1308  ;;  %v1307_v9 = vpop.permute.xlu0 %1306 }
  0xb8   : > { %v1823_v25 = vsel %vm1822_vm7, %v1790_v19, %v1307_v9  ;;  %v1824_v33 = vsel %vm1822_vm7, %v1791_v32, %v1309_v8 }
  0xb9   : > { %938 = vrot.lane.b32.xlu0 %v8859_v54, %s8580_s4  ;;  %940 = vrot.lane.b32.xlu1 %v8861_v55, %s8580_s4 }
  0xbb   : > { %v1437_v14 = vpop.permute.xlu1 %1436  ;;  %v1435_v17 = vpop.permute.xlu0 %1434 }
  0xbc   : > { %v1856_v27 = vsel %vm1855_vm8, %v1823_v25, %v1435_v17  ;;  %v1857_v35 = vsel %vm1855_vm8, %v1824_v33, %v1437_v14  ;;  %v8986_v14 = vld [vmem:[#allocation2 + $0xa8] sm:$0xff] }
  0xbd   : > { %1066 = vrot.lane.b32.xlu0 %v8867_v58, %s8581_s5  ;;  %1068 = vrot.lane.b32.xlu1 %v8869_v59, %s8581_s5 }
  0xbf   : > { %v1563_v28 = vpop.permute.xlu0 %1562  ;;  %v671_v29 = vpop.permute.xlu1 %670 }
  0xc0   : > { %v1889_v31 = vsel %vm1888_vm9, %v1856_v27, %v1563_v28  ;;  %v1660_v61 = vsel %vm170_vm0, %v8744_v16, %v671_v29  ;;  %v300_v16 = vld [vmem:[%s8716_s28 + $0xa0] sm:$0xff]  ;;  %v8999_v27 = vld [vmem:[#allocation2 + $0xb1] sm:$0xff] }
  0xc1   : > { %8219 = vmatprep.mubr.msk.f32.mxu0 %vm1926_vm10, %v1889_v31  ;;  %1194 = vrot.lane.b32.xlu0 %v8875_v62, %s8582_s6  ;;  %333 = vst.msk [vmem:[#allocation2 + $0x109] sm:$0xff] %vm170_vm0, %v300_v16  ;;  %v9005_v28 = vld [vmem:[#allocation2 + $0xaa] sm:$0xff]  ;;  %v9011_v31 = vld [vmem:[#allocation2 + $0xb2] sm:$0xff] }
  0xc2   : > { %1196 = vrot.lane.b32.xlu1 %v8880_v1, %s8582_s6  ;;  %v551_v16 = vld [vmem:[#allocation2 + $0xc8] sm:$0xff] }
  0xc3   : > { %v1565_v36 = vpop.permute.xlu0 %1564  ;;  %v673_v37 = vpop.permute.xlu1 %672 }
  0xc4   : > { %v1890_v41 = vsel %vm1888_vm9, %v1857_v35, %v1565_v36 }
  0xc5   : > { %8220 = vmatmul.mubr.msk.f32.vlgmr.msra.gmra.mrb[0].mxu0 %vm1926_vm10, %v1890_v41  ;;  %1322 = vrot.lane.b32.xlu0 %v8918_v34, %s8583_s24 }
  0xc6   : > { %1324 = vrot.lane.b32.xlu1 %v8921_v40, %s8583_s24 }
  0xc7   : > { %v799_v43 = vpop.permute.xlu0 %798  ;;  %v801_v44 = vpop.permute.xlu1 %800 }
  0xc9   : > { %1450 = vrot.lane.b32.xlu0 %v8929_v42, %s8584_s27 }
  0xca   : > { %1452 = vrot.lane.b32.xlu1 %v8931_v45, %s8584_s27 }
  0xcb   : > { %v927_v49 = vpop.permute.xlu0 %926  ;;  %v929_v50 = vpop.permute.xlu1 %928 }
  0xcd   : > { %1578 = vrot.lane.b32.xlu0 %v8937_v48, %s8585_s7 }
  0xce   : > { %686 = vrot.lane.b32.xlu1 %v8867_v58, %s8579_s30 }
  0xcf   : > { %v1055_v52 = vpop.permute.xlu0 %1054  ;;  %v1057_v53 = vpop.permute.xlu1 %1056 }
  0xd1   : > { %1580 = vrot.lane.b32.xlu0 %v8943_v51, %s8585_s7 }
  0xd2   : > { %688 = vrot.lane.b32.xlu1 %v8869_v59, %s8579_s30  ;;  %v1693_v59 = vsel %vm11609_vm3, %v1660_v61, %v799_v43 }
  0xd3   : > { %v1183_v56 = vpop.permute.xlu0 %1182  ;;  %v1185_v57 = vpop.permute.xlu1 %1184  ;;  %v1726_v63 = vsel %vm1723_vm4, %v1693_v59, %v927_v49 }
  0xd4   : > { %v1759_v2 = vsel %vm1756_vm5, %v1726_v63, %v1055_v52  ;;  %v303_v52 = vld [vmem:[%s8716_s28 + $0xb8] sm:$0xff] }
  0xd5   : > { %814 = vrot.lane.b32.xlu0 %v8875_v62, %s8578_s29  ;;  %v1792_v3 = vsel %vm1789_vm6, %v1759_v2, %v1183_v56  ;;  %336 = vst.msk [vmem:[#allocation2 + $0x129] sm:$0xff] %vm170_vm0, %v303_v52 }
  0xd6   : > { %816 = vrot.lane.b32.xlu1 %v8880_v1, %s8578_s29  ;;  %v1661_v1 = vsel %vm170_vm0, %v8742_v15, %v673_v37 }
  0xd7   : > { %v1311_v58 = vpop.permute.xlu0 %1310  ;;  %v1313_v60 = vpop.permute.xlu1 %1312  ;;  %v1694_v5 = vsel %vm11609_vm3, %v1661_v1, %v801_v44 }
  0xd8   : > { %v1825_v6 = vsel %vm1822_vm7, %v1792_v3, %v1311_v58  ;;  %v1727_v15 = vsel %vm1723_vm4, %v1694_v5, %v929_v50  ;;  %v9064_v5 = vld [vmem:[#allocation2 + $0xc1] sm:$0xff] }
  0xd9   : > { %942 = vrot.lane.b32.xlu0 %v8918_v34, %s8580_s4  ;;  %v1760_v10 = vsel %vm1756_vm5, %v1727_v15, %v1057_v53 }
  0xda   : > { %944 = vrot.lane.b32.xlu1 %v8921_v40, %s8580_s4  ;;  %v1793_v12 = vsel %vm1789_vm6, %v1760_v10, %v1185_v57 }
  0xdb   : > { %v1439_v62 = vpop.permute.xlu0 %1438  ;;  %v1441_v0 = vpop.permute.xlu1 %1440  ;;  %v1826_v13 = vsel %vm1822_vm7, %v1793_v12, %v1313_v60 }
  0xdc   : > { %v1858_v7 = vsel %vm1855_vm8, %v1825_v6, %v1439_v62  ;;  %v1859_v17 = vsel %vm1855_vm8, %v1826_v13, %v1441_v0  ;;  %v9054_v0 = vld [vmem:[#allocation2 + $0xc0] sm:$0xff] }
  0xdd   : > { %1070 = vrot.lane.b32.xlu0 %v8929_v42, %s8581_s5 }
  0xde   : > { %1072 = vrot.lane.b32.xlu1 %v8931_v45, %s8581_s5 }
  0xdf   : > { %v1567_v8 = vpop.permute.xlu0 %1566  ;;  %v675_v9 = vpop.permute.xlu1 %674 }
  0xe0   : > { %v1891_v11 = vsel %vm1888_vm9, %v1858_v7, %v1567_v8  ;;  %v9068_v7 = vld [vmem:[#allocation2 + $0xc9] sm:$0xff] }
  0xe1   : > { %1198 = vrot.lane.b32.xlu0 %v8937_v48, %s8582_s6  ;;  %8222 = vmatprep.mubr.msk.f32.mxu0 %vm1926_vm10, %v1891_v11  ;;  %v9074_v8 = vld [vmem:[#allocation2 + $0xc2] sm:$0xff]  ;;  %v9084_v11 = vld [vmem:[#allocation2 + $0xca] sm:$0xff] }
  0xe2   : > { %1200 = vrot.lane.b32.xlu1 %v8943_v51, %s8582_s6 }
  0xe3   : > { %v1569_v18 = vpop.permute.xlu0 %1568  ;;  %v677_v19 = vpop.permute.xlu1 %676 }
  0xe4   : > { %v1892_v22 = vsel %vm1888_vm9, %v1859_v17, %v1569_v18  ;;  %v1663_v50 = vsel %vm170_vm0, %v8754_v21, %v677_v19  ;;  %v8389_v17 = vld [vmem:[%s11607_s2 + $0x40] sm:$0xff]  }
  0xe5   : > { %1326 = vrot.lane.b32.xlu0 %v8986_v14, %s8583_s24  ;;  %8223 = vmatmul.mubr.msk.f32.gmra.mrb[2].mxu0 %vm1926_vm10, %v1892_v22  ;;  %v8390_v18 = vld [vmem:[%s11607_s2] sm:$0xff]  }
  0xe6   : > { %1328 = vrot.lane.b32.xlu1 %v8989_v20, %s8583_s24  ;;  %7737 = vmatprep.subr.bf16.mxu1 %v8389_v17 }
  0xe7   : > { %v803_v25 = vpop.permute.xlu0 %802  ;;  %v805_v26 = vpop.permute.xlu1 %804  ;;  %7738 = vmatpush3.bf16.msra.mxu1 %v8390_v18 }
  0xe8   : > { %v1696_v53 = vsel %vm11609_vm3, %v1663_v50, %v805_v26 }
  0xe9   : > { %1454 = vrot.lane.b32.xlu0 %v8997_v23, %s8584_s27 }
  0xea   : > { %1456 = vrot.lane.b32.xlu1 %v8999_v27, %s8584_s27 }
  0xeb   : > { %v931_v29 = vpop.permute.xlu0 %930  ;;  %v933_v30 = vpop.permute.xlu1 %932 }
  0xec   : > { %v1729_v21 = vsel %vm1723_vm4, %v1696_v53, %v933_v30  ;;  %v8394_v30 = vld [vmem:[%s11607_s2 + $0x10] sm:$0xff]  }
  0xed   : > { %1582 = vrot.lane.b32.xlu0 %v9005_v28, %s8585_s7 }
  0xee   : > { %690 = vrot.lane.b32.xlu1 %v8929_v42, %s8579_s30  ;;  %v1662_v42 = vsel %vm170_vm0, %v8762_v24, %v675_v9  ;;  %v302_v24 = vld [vmem:[%s8716_s28 + $0xb0] sm:$0xff] }
  0xef   : > { %v1059_v32 = vpop.permute.xlu0 %1058  ;;  %v1061_v33 = vpop.permute.xlu1 %1060  ;;  %v1695_v43 = vsel %vm11609_vm3, %v1662_v42, %v803_v25  ;;  %335 = vst.msk [vmem:[#allocation2 + $0x121] sm:$0xff] %vm170_vm0, %v302_v24  ;;  %v8392_v25 = vld [vmem:[%s11607_s2 + $0x8] sm:$0xff]  }
  0xf0   : > { %v1728_v44 = vsel %vm1723_vm4, %v1695_v43, %v931_v29  ;;  %v1762_v61 = vsel %vm1756_vm5, %v1729_v21, %v1061_v33  ;;  %v8393_v29 = vld [vmem:[%s11607_s2 + $0x50] sm:$0xff]   ;;  %v8396_v43 = vld [vmem:[%s11607_s2 + $0x18] sm:$0xff]  }
  0xf1   : > { %1584 = vrot.lane.b32.xlu0 %v9011_v31, %s8585_s7  ;;  %v1761_v49 = vsel %vm1756_vm5, %v1728_v44, %v1059_v32  ;;  %v8586_v32 = vmov 0   ;;  %v304_v44 = vld [vmem:[%s8716_s28 + $0xc0] sm:$0xff] }
  0xf2   : > { %692 = vrot.lane.b32.xlu1 %v8931_v45, %s8579_s30  ;;  %231 = vst [vmem:[#allocation3 + $0x14] sm:$0x1] %v8586_v32  ;;  %226 = vst [vmem:[#allocation3] sm:$0xf] %v8586_v32 }
  0xf3   : > { %v1187_v35 = vpop.permute.xlu0 %1186  ;;  %v1189_v36 = vpop.permute.xlu1 %1188  ;;  %227 = vst [vmem:[#allocation3 + $0x4] sm:$0xf] %v8586_v32  ;;  %228 = vst [vmem:[#allocation3 + $0x8] sm:$0x1] %v8586_v32 }
  0xf4   : > { %v1795_v63 = vsel %vm1789_vm6, %v1762_v61, %v1189_v36  ;;  %229 = vst [vmem:[#allocation3 + $0xc] sm:$0xf] %v8586_v32  ;;  %230 = vst [vmem:[#allocation3 + $0x10] sm:$0xf] %v8586_v32 }
  0xf5   : > { %818 = vrot.lane.b32.xlu0 %v8937_v48, %s8578_s29  ;;  %232 = vst [vmem:[#allocation3 + $0x18] sm:$0xf] %v8586_v32  ;;  %233 = vst [vmem:[#allocation3 + $0x1c] sm:$0xf] %v8586_v32 }
  0xf6   : > { %820 = vrot.lane.b32.xlu1 %v8943_v51, %s8578_s29  ;;  %v1794_v51 = vsel %vm1789_vm6, %v1761_v49, %v1187_v35  ;;  %234 = vst [vmem:[#allocation3 + $0x20] sm:$0x1] %v8586_v32  ;;  %235 = vst [vmem:[#allocation3 + $0x24] sm:$0xf] %v8586_v32 }
  0xf7   : > { %v1315_v37 = vpop.permute.xlu0 %1314  ;;  %v1317_v41 = vpop.permute.xlu1 %1316  ;;  %236 = vst [vmem:[#allocation3 + $0x28] sm:$0xf] %v8586_v32  ;;  %237 = vst [vmem:[#allocation3 + $0x2c] sm:$0x1] %v8586_v32 }
  0xf8   : > { %v1827_v56 = vsel %vm1822_vm7, %v1794_v51, %v1315_v37  ;;  %v1828_v62 = vsel %vm1822_vm7, %v1795_v63, %v1317_v41  ;;  %238 = vst [vmem:[#allocation3 + $0x30] sm:$0xf] %v8586_v32  ;;  %239 = vst [vmem:[#allocation3 + $0x34] sm:$0xf] %v8586_v32  ;;  %v8395_v37 = vld [vmem:[%s11607_s2 + $0x58] sm:$0xff]  }
  0xf9   : > { %946 = vrot.lane.b32.xlu0 %v8986_v14, %s8580_s4  ;;  %240 = vst [vmem:[#allocation3 + $0x38] sm:$0x1] %v8586_v32  ;;  %241 = vst [vmem:[#allocation3 + $0x3c] sm:$0xf] %v8586_v32 }
  0xfa   : > { %948 = vrot.lane.b32.xlu1 %v8989_v20, %s8580_s4  ;;  %242 = vst [vmem:[#allocation3 + $0x40] sm:$0xf] %v8586_v32  ;;  %243 = vst [vmem:[#allocation3 + $0x44] sm:$0x1] %v8586_v32 }
  0xfb   : > { %v1443_v45 = vpop.permute.xlu0 %1442  ;;  %v1445_v48 = vpop.permute.xlu1 %1444  ;;  %244 = vst [vmem:[#allocation3 + $0x48] sm:$0xf] %v8586_v32  ;;  %245 = vst [vmem:[#allocation3 + $0x4c] sm:$0xf] %v8586_v32 }
  0xfc   : > { %v1860_v57 = vsel %vm1855_vm8, %v1827_v56, %v1443_v45  ;;  %v1861_v2 = vsel %vm1855_vm8, %v1828_v62, %v1445_v48  ;;  %246 = vst [vmem:[#allocation3 + $0x50] sm:$0x1] %v8586_v32  ;;  %247 = vst [vmem:[#allocation3 + $0x54] sm:$0xf] %v8586_v32  ;;  %v305_v45 = vld [vmem:[%s8716_s28 + $0xc8] sm:$0xff]  ;;  %v8397_v56 = vld [vmem:[%s11607_s2 + $0x60] sm:$0xff]  }
  0xfd   : > { %1074 = vrot.lane.b32.xlu0 %v8997_v23, %s8581_s5  ;;  %248 = vst [vmem:[#allocation3 + $0x58] sm:$0xf] %v8586_v32  ;;  %249 = vst [vmem:[#allocation3 + $0x5c] sm:$0x1] %v8586_v32  ;;  %v9185_v62 = vld [vmem:[#allocation2 + $0xe0] sm:$0xff] }
  0xfe   : > { %1076 = vrot.lane.b32.xlu1 %v8999_v27, %s8581_s5  ;;  %250 = vst [vmem:[#allocation3 + $0x60] sm:$0xf] %v8586_v32  ;;  %251 = vst [vmem:[#allocation3 + $0x64] sm:$0xf] %v8586_v32 }
  0xff   : > { %v1571_v58 = vpop.permute.xlu0 %1570  ;;  %v679_v60 = vpop.permute.xlu1 %678  ;;  %252 = vst [vmem:[#allocation3 + $0x68] sm:$0x1] %v8586_v32  ;;  %253 = vst [vmem:[#allocation3 + $0x6c] sm:$0xf] %v8586_v32 }
 0x100   : > { %v1893_v59 = vsel %vm1888_vm9, %v1860_v57, %v1571_v58  ;;  %254 = vst [vmem:[#allocation3 + $0x70] sm:$0xf] %v8586_v32  ;;  %255 = vst [vmem:[#allocation3 + $0x74] sm:$0x1] %v8586_v32  ;;  %v8398_v57 = vld [vmem:[%s11607_s2 + $0x20] sm:$0xff]  }
 0x101   : > { %1202 = vrot.lane.b32.xlu0 %v9005_v28, %s8582_s6  ;;  %8225 = vmatprep.mubr.msk.f32.mxu0 %vm1926_vm10, %v1893_v59  ;;  %256 = vst [vmem:[#allocation3 + $0x78] sm:$0xf] %v8586_v32  ;;  %257 = vst [vmem:[#allocation3 + $0x7c] sm:$0xf] %v8586_v32 }
 0x102   : > { %1204 = vrot.lane.b32.xlu1 %v9011_v31, %s8582_s6  ;;  %258 = vst [vmem:[#allocation3 + $0x80] sm:$0x1] %v8586_v32  ;;  %259 = vst [vmem:[#allocation3 + $0x84] sm:$0xf] %v8586_v32 }
 0x103   : > { %v1573_v1 = vpop.permute.xlu0 %1572  ;;  %v9057_v3 = vpop.permute.xlu1 %680  ;;  %260 = vst [vmem:[#allocation3 + $0x88] sm:$0xf] %v8586_v32  ;;  %261 = vst [vmem:[#allocation3 + $0x8c] sm:$0x1] %v8586_v32 }
 0x104   : > { %v1894_v4 = vsel %vm1888_vm9, %v1861_v2, %v1573_v1  ;;  %262 = vst [vmem:[#allocation3 + $0x90] sm:$0xf] %v8586_v32  ;;  %263 = vst [vmem:[#allocation3 + $0x94] sm:$0xf] %v8586_v32  ;;  %v1665_v41 = vsel %vm170_vm0, %v8805_v39, %v9057_v3  ;;  %v8399_v1 = vld [vmem:[%s11607_s2 + $0x68] sm:$0xff]  }
 0x105   : > { %1330 = vrot.lane.b32.xlu0 %v9054_v0, %s8583_s24  ;;  %8226 = vmatmul.mubr.msk.f32.gmra.mrb[4].mxu0 %vm1926_vm10, %v1894_v4  ;;  %264 = vst [vmem:[#allocation3 + $0x98] sm:$0x1] %v8586_v32  ;;  %265 = vst [vmem:[#allocation3 + $0x9c] sm:$0xf] %v8586_v32  ;;  %v8400_v3 = vld [vmem:[%s11607_s2 + $0x28] sm:$0xff]  }
 0x106   : > { %1332 = vrot.lane.b32.xlu1 %v551_v16, %s8583_s24  ;;  %266 = vst [vmem:[#allocation3 + $0xa0] sm:$0xf] %v8586_v32  ;;  %267 = vst [vmem:[#allocation3 + $0xa4] sm:$0x1] %v8586_v32  ;;  %v2965_v4 = vld [vmem:[#allocation3] sm:$0xf] }
 0x107   : > { %v807_v6 = vpop.permute.xlu0 %806  ;;  %v9066_v15 = vpop.permute.xlu1 %808  ;;  %268 = vst [vmem:[#allocation3 + $0xa8] sm:$0xf] %v8586_v32  ;;  %269 = vst [vmem:[#allocation3 + $0xac] sm:$0xf] %v8586_v32 }
 0x108   : > { %270 = vst [vmem:[#allocation3 + $0xb0] sm:$0x1] %v8586_v32  ;;  %271 = vst [vmem:[#allocation3 + $0xb4] sm:$0xf] %v8586_v32  ;;  %v1698_v48 = vsel %vm11609_vm3, %v1665_v41, %v9066_v15 }
 0x109   : > { %1458 = vrot.lane.b32.xlu0 %v9064_v5, %s8584_s27  ;;  %272 = vst [vmem:[#allocation3 + $0xb8] sm:$0xf] %v8586_v32  ;;  %273 = vst [vmem:[#allocation3 + $0xbc] sm:$0x1] %v8586_v32 }
 0x10a   : > { %1460 = vrot.lane.b32.xlu1 %v9068_v7, %s8584_s27  ;;  %274 = vst [vmem:[#allocation3 + $0xc0] sm:$0xf] %v8586_v32  ;;  %275 = vst [vmem:[#allocation3 + $0xc4] sm:$0xf] %v8586_v32 }
 0x10b   : > { %v9076_v9 = vpop.permute.xlu0 %934  ;;  %v9078_v10 = vpop.permute.xlu1 %936  ;;  %276 = vst [vmem:[#allocation3 + $0xc8] sm:$0x1] %v8586_v32  ;;  %277 = vst [vmem:[#allocation3 + $0xcc] sm:$0xf] %v8586_v32 }
 0x10c   : > { %278 = vst [vmem:[#allocation3 + $0xd0] sm:$0xf] %v8586_v32  ;;  %279 = vst [vmem:[#allocation3 + $0xd4] sm:$0x1] %v8586_v32  ;;  %v1731_v39 = vsel %vm1723_vm4, %v1698_v48, %v9078_v10  ;;  %v9203_v10 = vld [vmem:[#allocation2 + $0xe1] sm:$0xff] }
 0x10d   : > { %1586 = vrot.lane.b32.xlu0 %v9074_v8, %s8585_s7  ;;  %337 = vst.msk [vmem:[#allocation2 + $0x139] sm:$0xff] %vm170_vm0, %v304_v44  ;;  %338 = vst.msk [vmem:[#allocation2 + $0x141] sm:$0xff] %vm170_vm0, %v305_v45 }
 0x10e   : > { %694 = vrot.lane.b32.xlu1 %v8997_v23, %s8579_s30  ;;  %v8391_v23 = vld [vmem:[%s11607_s2 + $0x48] sm:$0xff]  }
 0x10f   : > { %v9086_v12 = vpop.permute.xlu0 %1062  ;;  %v9088_v13 = vpop.permute.xlu1 %1064  ;;  %7739 = vmatprep.subr.bf16.mxu1 %v8391_v23 }
 0x110   : > { %7740 = vmatpush3.bf16.msra.mxu1 %v8392_v25  ;;  %v1764_v52 = vsel %vm1756_vm5, %v1731_v39, %v9088_v13  ;;  %v3020_v13 = vshll.u32 %v2965_v4, 16 }
 0x111   : > { %1588 = vrot.lane.b32.xlu0 %v9084_v11, %s8585_s7  ;;  %7741 = vmatprep.subr.bf16.mxu1 %v8393_v29  ;;  %v2967_v29 = vld [vmem:[#allocation3 + $0x8] sm:$0x1] }
 0x112   : > { %696 = vrot.lane.b32.xlu1 %v8999_v27, %s8579_s30  ;;  %v3022_v25 = vrot.slane %v3020_v13, 5 }
 0x113   : > { %v9100_v19 = vpop.permute.xlu0 %1190  ;;  %v9102_v22 = vpop.permute.xlu1 %1192 }
 0x114   : > { %7742 = vmatpush3.bf16.msra.mxu1 %v8394_v30  ;;  %v1797_v21 = vsel %vm1789_vm6, %v1764_v52, %v9102_v22  ;;  %v8402_v22 = vld [vmem:[%s11607_s2 + $0x30] sm:$0xff]  }
 0x115   : > { %822 = vrot.lane.b32.xlu0 %v9005_v28, %s8578_s29  ;;  %v1664_v28 = vsel %vm170_vm0, %v8801_v38, %v679_v60  ;;  %7743 = vmatprep.subr.bf16.mxu1 %v8395_v37  ;;  %v9180_v60 = vld [vmem:[#allocation2 + $0xd8] sm:$0xff] }
 0x116   : > { %824 = vrot.lane.b32.xlu1 %v9011_v31, %s8578_s29  ;;  %v1697_v31 = vsel %vm11609_vm3, %v1664_v28, %v807_v6  ;;  %v2966_v6 = vld [vmem:[#allocation3 + $0x4] sm:$0xf] }
 0x117   : > { %v9114_v26 = vpop.permute.xlu0 %1318  ;;  %v9116_v27 = vpop.permute.xlu1 %1320  ;;  %v1730_v38 = vsel %vm1723_vm4, %v1697_v31, %v9076_v9  ;;  %v3026_v17 = vshll.u32 %v2966_v6, 16  ;;  %v3030_v18 = vshrl.u32 %v2966_v6, 16 }
 0x118   : > { %v1763_v36 = vsel %vm1756_vm5, %v1730_v38, %v9086_v12  ;;  %7744 = vmatpush3.bf16.msra.mxu1 %v8396_v43  ;;  %v1830_v58 = vsel %vm1822_vm7, %v1797_v21, %v9116_v27  ;;  %v3017_v12 = vshrl.u32 %v2965_v4, 16  ;;  %v9215_v27 = vld [vmem:[#allocation2 + $0xda] sm:$0xff]  ;;  %v3036_v38 = vshll.u32 %v2967_v29, 16  ;;  %v9231_v43 = vld [vmem:[#allocation2 + $0xe2] sm:$0xff]  ;;  %v9294_v29 = vld [vmem:[#allocation2 + $0xf2] sm:$0xff] }
 0x119   : > { %950 = vrot.lane.b32.xlu0 %v9054_v0, %s8580_s4  ;;  %v1796_v42 = vsel %vm1789_vm6, %v1763_v36, %v9100_v19  ;;  %7745 = vmatprep.subr.bf16.mxu1 %v8397_v56  ;;  %v8401_v19 = vld [vmem:[%s11607_s2 + $0x70] sm:$0xff]   ;;  %v3032_v28 = vrot.slane %v3030_v18, 4 }
 0x11a   : > { %952 = vrot.lane.b32.xlu1 %v551_v16, %s8580_s4  ;;  %v1829_v49 = vsel %vm1822_vm7, %v1796_v42, %v9114_v26  ;;  %v9199_v16 = vld [vmem:[#allocation2 + $0xd9] sm:$0xff]  ;;  %v3019_v23 = vrot.slane %v3017_v12, 4  ;;  %v3028_v26 = vrot.slane %v3026_v17, 5  ;;  %v3038_v42 = vrot.slane %v3036_v38, 5 }
 0x11b   : > { %v1447_v33 = vpop.permute.xlu0 %1446  ;;  %v1449_v35 = vpop.permute.xlu1 %1448  ;;  %v555_v17 = vld [vmem:[#allocation2 + $0xf8] sm:$0xff] }
 0x11c   : > { %v1862_v50 = vsel %vm1855_vm8, %v1829_v49, %v1447_v33  ;;  %v1863_v61 = vsel %vm1855_vm8, %v1830_v58, %v1449_v35  ;;  %7746 = vmatpush3.bf16.msra.mxu1 %v8398_v57  ;;  %v3023_v32 = vor.u32 %v3022_v25, %v3019_v23  ;;  %v8403_v33 = vld [vmem:[%s11607_s2 + $0x78] sm:$0xff]   ;;  %v3033_v41 = vor.u32 %v3032_v28, %v3028_v26 }
 0x11d   : > { %1078 = vrot.lane.b32.xlu0 %v9064_v5, %s8581_s5  ;;  %7747 = vmatprep.subr.bf16.mxu1 %v8399_v1  ;;  %v8404_v35 = vld [vmem:[%s11607_s2 + $0x38] sm:$0xff]  }
 0x11e   : > { %1080 = vrot.lane.b32.xlu1 %v9068_v7, %s8581_s5  ;;  %v3024_v37 = vrot.slane %v3023_v32, 4  ;;  %v3034_v49 = vrot.slane %v3033_v41, 4  ;;  %v9288_v25 = vld [vmem:[#allocation2 + $0xf9] sm:$0xff] }
 0x11f   : > { %v1575_v51 = vpop.permute.xlu0 %1574  ;;  %v9160_v24 = vpop.permute.xlu1 %682 }
 0x120   : > { %v1895_v53 = vsel %vm1888_vm9, %v1862_v50, %v1575_v51  ;;  %7748 = vmatpush3.bf16.msra.mxu1 %v8400_v3  ;;  %v3029_v48 = vsel %vm9225_vm13, %v3024_v37, %v3028_v26  ;;  %v3039_v39 = vsel %vm9225_vm13, %v3034_v49, %v3038_v42  ;;  %v8405_v50 = vld [vmem:[#allocation3] sm:$0xff]   ;;  %v1666_v21 = vsel %vm170_vm0, %v8831_v46, %v9160_v24 }
 0x121   : > { %1206 = vrot.lane.b32.xlu0 %v9074_v8, %s8582_s6  ;;  %8228 = vmatprep.mubr.msk.f32.mxu0 %vm1926_vm10, %v1895_v53 }
 0x122   : > { %1208 = vrot.lane.b32.xlu1 %v9084_v11, %s8582_s6  ;;  %7749 = vmatprep.subr.bf16.mxu1 %v8401_v19 }
 0x123   : > { %v1577_v59 = vpop.permute.xlu0 %1576  ;;  %v9183_v63 = vpop.permute.xlu1 %684 }
 0x124   : > { %v1896_v2 = vsel %vm1888_vm9, %v1863_v61, %v1577_v59  ;;  %7750 = vmatpush3.bf16.msra.mxu1 %v8402_v22  ;;  %v1667_v61 = vsel %vm170_vm0, %v8833_v47, %v9183_v63  ;;  %v306_v59 = vld [vmem:[%s8716_s28 + $0xd0] sm:$0xff] }
 0x125   : > { %1334 = vrot.lane.b32.xlu0 %v9180_v60, %s8583_s24  ;;  %8229 = vmatmul.mubr.msk.f32.gmra.mrb[6].mxu0 %vm1926_vm10, %v1896_v2  ;;  %339 = vst.msk [vmem:[#allocation2 + $0x151] sm:$0xff] %vm170_vm0, %v306_v59  ;;  %v9286_v22 = vld [vmem:[#allocation2 + $0xf1] sm:$0xff] }
 0x126   : > { %1336 = vrot.lane.b32.xlu1 %v9185_v62, %s8583_s24  ;;  %7751 = vmatprep.subr.bf16.mxu1 %v8403_v33  ;;  %v9348_v59 = vld [vmem:[#allocation2 + $0x111] sm:$0xff] }
 0x127   : > { %v811_v15 = vpop.permute.xlu0 %810  ;;  %v9201_v9 = vpop.permute.xlu1 %812 }
 0x128   : > { %7752 = vmatpush3.bf16.msra.mxu1 %v8404_v35  ;;  %v1700_v24 = vsel %vm11609_vm3, %v1667_v61, %v9201_v9  ;;  %v554_v9 = vld [vmem:[#allocation2 + $0xf0] sm:$0xff] }
 0x129   : > { %1462 = vrot.lane.b32.xlu0 %v9199_v16, %s8584_s27 }
 0x12a   : > { %1464 = vrot.lane.b32.xlu1 %v9203_v10, %s8584_s27 }
 0x12b   : > { %v939_v30 = vpop.permute.xlu0 %938  ;;  %v941_v31 = vpop.permute.xlu1 %940 }
 0x12c   : > { %v1733_v2 = vsel %vm1723_vm4, %v1700_v24, %v941_v31  ;;  %v9300_v31 = vld [vmem:[#allocation2 + $0xfa] sm:$0xff]  ;;  %v9346_v24 = vld [vmem:[#allocation2 + $0x109] sm:$0xff] }
 0x12d   : > { %1590 = vrot.lane.b32.xlu0 %v9215_v27, %s8585_s7 }
 0x12e   : > { %698 = vrot.lane.b32.xlu1 %v9064_v5, %s8579_s30  ;;  %v7413_v5 = vcombine.low %v3029_v48, %v3039_v39  ;;  %v308_v39 = vld [vmem:[%s8716_s28 + $0xe0] sm:$0xff] }
 0x12f   : > { %v1067_v44 = vpop.permute.xlu0 %1066  ;;  %v1069_v45 = vpop.permute.xlu1 %1068  ;;  %341 = vst.msk [vmem:[#allocation2 + $0x169] sm:$0xff] %vm170_vm0, %v308_v39  ;;  %v9414_v39 = vld [vmem:[#allocation2 + $0x122] sm:$0xff] }
 0x130   : > { %6412 = vmatprep.mubr.bf16.mxu1 %v7413_v5  ;;  %v1766_v63 = vsel %vm1756_vm5, %v1733_v2, %v1069_v45  ;;  %v9354_v2 = vld [vmem:[#allocation2 + $0x10a] sm:$0xff] }
 0x131   : > { %1592 = vrot.lane.b32.xlu0 %v9231_v43, %s8585_s7  ;;  %6413 = vmatmul.mubr.bf16.vlgmr.msra.gmra.mrb[0].mxu1 %v8405_v50  ;;  %v309_v50 = vld [vmem:[%s8716_s28 + $0xe8] sm:$0xff] }
 0x132   : > { %700 = vrot.lane.b32.xlu1 %v9068_v7, %s8579_s30  ;;  %v1699_v7 = vsel %vm11609_vm3, %v1666_v21, %v811_v15  ;;  %342 = vst.msk [vmem:[#allocation2 + $0x171] sm:$0xff] %vm170_vm0, %v309_v50 }
 0x133   : > { %v1195_v51 = vpop.permute.xlu0 %1194 }
 0x134   : > { %v1197_v52 = vpop.permute.xlu1 %1196 }
 0x135   : > { %826 = vrot.lane.b32.xlu0 %v9074_v8, %s8578_s29  ;;  %v1732_v8 = vsel %vm1723_vm4, %v1699_v7, %v939_v30  ;;  %v1799_v6 = vsel %vm1789_vm6, %v1766_v63, %v1197_v52  ;;  %v9360_v63 = vld [vmem:[#allocation2 + $0x112] sm:$0xff] }
 0x136   : > { %828 = vrot.lane.b32.xlu1 %v9084_v11, %s8578_s29  ;;  %v1765_v11 = vsel %vm1756_vm5, %v1732_v8, %v1067_v44  ;;  %v556_v8 = vld [vmem:[#allocation2 + $0x108] sm:$0xff] }
 0x137   : > { %v1323_v53 = vpop.permute.xlu0 %1322  ;;  %v1798_v46 = vsel %vm1789_vm6, %v1765_v11, %v1195_v51 }
 0x138   : > { %v1325_v56 = vpop.permute.xlu1 %1324 }
 0x139   : > { %954 = vrot.lane.b32.xlu0 %v9180_v60, %s8580_s4  ;;  %v1831_v60 = vsel %vm1822_vm7, %v1798_v46, %v1323_v53  ;;  %v1832_v15 = vsel %vm1822_vm7, %v1799_v6, %v1325_v56 }
 0x13a   : > { %956 = vrot.lane.b32.xlu1 %v9185_v62, %s8580_s4  ;;  %v307_v62 = vld [vmem:[%s8716_s28 + $0xd8] sm:$0xff] }
 0x13b   : > { %v1451_v57 = vpop.permute.xlu0 %1450  ;;  %340 = vst.msk [vmem:[#allocation2 + $0x159] sm:$0xff] %vm170_vm0, %v307_v62 }
 0x13c   : > { %v1453_v58 = vpop.permute.xlu1 %1452  ;;  %v1864_v1 = vsel %vm1855_vm8, %v1831_v60, %v1451_v57 }
 0x13d   : > { %1082 = vrot.lane.b32.xlu0 %v9199_v16, %s8581_s5  ;;  %v1865_v12 = vsel %vm1855_vm8, %v1832_v15, %v1453_v58  ;;  %v557_v58 = vld [vmem:[#allocation2 + $0x110] sm:$0xff] }
 0x13e   : > { %1084 = vrot.lane.b32.xlu1 %v9203_v10, %s8581_s5 }
 0x13f   : > { %v1579_v47 = vpop.permute.xlu0 %1578 }
 0x140   : > { %v1897_v3 = vsel %vm1888_vm9, %v1864_v1, %v1579_v47  ;;  %v687_v4 = vpop.permute.xlu1 %686 }
 0x141   : > { %1210 = vrot.lane.b32.xlu0 %v9215_v27, %s8582_s6  ;;  %8231 = vmatprep.mubr.msk.f32.mxu0 %vm1926_vm10, %v1897_v3  ;;  %v1668_v41 = vsel %vm170_vm0, %v8859_v54, %v687_v4 }
 0x142   : > { %1212 = vrot.lane.b32.xlu1 %v9231_v43, %s8582_s6 }
 0x143   : > { %v1581_v13 = vpop.permute.xlu0 %1580 }
 0x144   : > { %v1898_v18 = vsel %vm1888_vm9, %v1865_v12, %v1581_v13  ;;  %v689_v19 = vpop.permute.xlu1 %688 }
 0x145   : > { %1338 = vrot.lane.b32.xlu0 %v554_v9, %s8583_s24  ;;  %8232 = vmatmul.mubr.msk.f32.gmra.mrb[8].mxu0 %vm1926_vm10, %v1898_v18 }
 0x146   : > { %1340 = vrot.lane.b32.xlu1 %v555_v17, %s8583_s24 }
 0x147   : > { %v815_v23 = vpop.permute.xlu0 %814 }
 0x148   : > { %v817_v26 = vpop.permute.xlu1 %816  ;;  %v1701_v42 = vsel %vm11609_vm3, %v1668_v41, %v815_v23  ;;  %v558_v41 = vld [vmem:[#allocation2 + $0x120] sm:$0xff] }
 0x149   : > { %1466 = vrot.lane.b32.xlu0 %v9286_v22, %s8584_s27 }
 0x14a   : > { %1468 = vrot.lane.b32.xlu1 %v9288_v25, %s8584_s27 }
 0x14b   : > { %v943_v28 = vpop.permute.xlu0 %942 }
 0x14c   : > { %v945_v30 = vpop.permute.xlu1 %944 }
 0x14d   : > { %1594 = vrot.lane.b32.xlu0 %v9294_v29, %s8585_s7 }
 0x14e   : > { %702 = vrot.lane.b32.xlu1 %v9199_v16, %s8579_s30 }
 0x14f   : > { %v1071_v32 = vpop.permute.xlu0 %1070 }
 0x150   : > { %v1073_v38 = vpop.permute.xlu1 %1072 }
 0x151   : > { %1596 = vrot.lane.b32.xlu0 %v9300_v31, %s8585_s7 }
 0x152   : > { %704 = vrot.lane.b32.xlu1 %v9203_v10, %s8579_s30  ;;  %v1734_v10 = vsel %vm1723_vm4, %v1701_v42, %v943_v28  ;;  %v310_v28 = vld [vmem:[%s8716_s28 + $0xf0] sm:$0xff] }
 0x153   : > { %v1199_v33 = vpop.permute.xlu0 %1198  ;;  %343 = vst.msk [vmem:[#allocation2 + $0x181] sm:$0xff] %vm170_vm0, %v310_v28 }
 0x154   : > { %v1201_v35 = vpop.permute.xlu1 %1200 }
 0x155   : > { %830 = vrot.lane.b32.xlu0 %v9215_v27, %s8578_s29  ;;  %v1767_v27 = vsel %vm1756_vm5, %v1734_v10, %v1071_v32 }
 0x156   : > { %832 = vrot.lane.b32.xlu1 %v9231_v43, %s8578_s29  ;;  %v1669_v43 = vsel %vm170_vm0, %v8861_v55, %v689_v19  ;;  %v1800_v48 = vsel %vm1789_vm6, %v1767_v27, %v1199_v33 }
 0x157   : > { %v1327_v37 = vpop.permute.xlu0 %1326  ;;  %v1702_v54 = vsel %vm11609_vm3, %v1669_v43, %v817_v26  ;;  %v9406_v43 = vld [vmem:[#allocation2 + $0x121] sm:$0xff] }
 0x158   : > { %v1329_v16 = vpop.permute.xlu1 %1328  ;;  %v1833_v49 = vsel %vm1822_vm7, %v1800_v48, %v1327_v37  ;;  %v1735_v5 = vsel %vm1723_vm4, %v1702_v54, %v945_v30  ;;  %v311_v30 = vld [vmem:[%s8716_s28 + $0xf8] sm:$0xff]  ;;  %v9408_v54 = vld [vmem:[#allocation2 + $0x129] sm:$0xff]  ;;  %s8587_s28 = smov [#allocation5]  }
 0x159   : > { %958 = vrot.lane.b32.xlu0 %v554_v9, %s8580_s4  ;;  %v1768_v55 = vsel %vm1756_vm5, %v1735_v5, %v1073_v38  ;;  %344 = vst.msk [vmem:[#allocation2 + $0x189] sm:$0xff] %vm170_vm0, %v311_v30  ;;  %s8517_s19 = sshll.u32 %s8587_s28, 4  ;;  %s8518_s19 = int_to_ptr.vmem [resolvable:$false] %s8517_s19 }
 0x15a   : > { %960 = vrot.lane.b32.xlu1 %v555_v17, %s8580_s4  ;;  %v1801_v21 = vsel %vm1789_vm6, %v1768_v55, %v1201_v35  ;;  %s8519_s20 = scalar_lea.vmem %s8518_s19, 8192 }
 0x15b   : > { %v1455_v44 = vpop.permute.xlu0 %1454  ;;  %v1834_v7 = vsel %vm1822_vm7, %v1801_v21, %v1329_v16 }
 0x15c   : > { %v1457_v45 = vpop.permute.xlu1 %1456  ;;  %v1866_v51 = vsel %vm1855_vm8, %v1833_v49, %v1455_v44  ;;  %v559_v44 = vld [vmem:[#allocation2 + $0x128] sm:$0xff] }
 0x15d   : > { %1086 = vrot.lane.b32.xlu0 %v9286_v22, %s8581_s5  ;;  %v1867_v57 = vsel %vm1855_vm8, %v1834_v7, %v1457_v45 }
 0x15e   : > { %1088 = vrot.lane.b32.xlu1 %v9288_v25, %s8581_s5 }
 0x15f   : > { %v1583_v52 = vpop.permute.xlu0 %1582 }
 0x160   : > { %v1899_v53 = vsel %vm1888_vm9, %v1866_v51, %v1583_v52  ;;  %v691_v56 = vpop.permute.xlu1 %690  ;;  %v9420_v51 = vld [vmem:[#allocation2 + $0x12a] sm:$0xff] }
 0x161   : > { %1214 = vrot.lane.b32.xlu0 %v9294_v29, %s8582_s6  ;;  %8234 = vmatprep.mubr.msk.f32.mxu0 %vm1926_vm10, %v1899_v53  ;;  %v1670_v13 = vsel %vm170_vm0, %v8918_v34, %v691_v56 }
 0x162   : > { %1216 = vrot.lane.b32.xlu1 %v9300_v31, %s8582_s6 }
 0x163   : > { %v1585_v11 = vpop.permute.xlu0 %1584 }
 0x164   : > { %v1900_v61 = vsel %vm1888_vm9, %v1867_v57, %v1585_v11  ;;  %v693_v46 = vpop.permute.xlu1 %692 }
 0x165   : > { %1342 = vrot.lane.b32.xlu0 %v556_v8, %s8583_s24  ;;  %8235 = vmatmul.mubr.msk.f32.gmra.mrb[10].mxu0 %vm1926_vm10, %v1900_v61 }
 0x166   : > { %1344 = vrot.lane.b32.xlu1 %v557_v58, %s8583_s24 }
 0x167   : > { %v819_v60 = vpop.permute.xlu0 %818 }
 0x168   : > { %v821_v62 = vpop.permute.xlu1 %820  ;;  %v1703_v17 = vsel %vm11609_vm3, %v1670_v13, %v819_v60 }
 0x169   : > { %1470 = vrot.lane.b32.xlu0 %v9346_v24, %s8584_s27 }
 0x16a   : > { %1472 = vrot.lane.b32.xlu1 %v9348_v59, %s8584_s27 }
 0x16b   : > { %v947_v1 = vpop.permute.xlu0 %946 }
 0x16c   : > { %v949_v47 = vpop.permute.xlu1 %948  ;;  %v1736_v18 = vsel %vm1723_vm4, %v1703_v17, %v947_v1 }
 0x16d   : > { %1598 = vrot.lane.b32.xlu0 %v9354_v2, %s8585_s7 }
 0x16e   : > { %706 = vrot.lane.b32.xlu1 %v9286_v22, %s8579_s30 }
 0x16f   : > { %v1075_v3 = vpop.permute.xlu0 %1074 }
 0x170   : > { %v1077_v4 = vpop.permute.xlu1 %1076  ;;  %v1769_v22 = vsel %vm1756_vm5, %v1736_v18, %v1075_v3 }
 0x171   : > { %1600 = vrot.lane.b32.xlu0 %v9360_v63, %s8585_s7 }
 0x172   : > { %708 = vrot.lane.b32.xlu1 %v9288_v25, %s8579_s30  ;;  %v1671_v25 = vsel %vm170_vm0, %v8921_v40, %v693_v46 }
 0x173   : > { %v1203_v6 = vpop.permute.xlu0 %1202  ;;  %v1704_v34 = vsel %vm11609_vm3, %v1671_v25, %v821_v62 }
 0x174   : > { %v1205_v15 = vpop.permute.xlu1 %1204  ;;  %v1802_v26 = vsel %vm1789_vm6, %v1769_v22, %v1203_v6  ;;  %v2713_v22 = vld [vmem:[#allocation3 + $0x14] sm:$0x1] }
 0x175   : > { %834 = vrot.lane.b32.xlu0 %v9294_v29, %s8578_s29 }
 0x176   : > { %836 = vrot.lane.b32.xlu1 %v9300_v31, %s8578_s29  ;;  %v1737_v31 = vsel %vm1723_vm4, %v1704_v34, %v949_v47 }
 0x177   : > { %v1331_v9 = vpop.permute.xlu0 %1330  ;;  %v1770_v40 = vsel %vm1756_vm5, %v1737_v31, %v1077_v4 }
 0x178   : > { %v1333_v12 = vpop.permute.xlu1 %1332  ;;  %v1835_v29 = vsel %vm1822_vm7, %v1802_v26, %v1331_v9  ;;  %v1803_v37 = vsel %vm1789_vm6, %v1770_v40, %v1205_v15 }
 0x179   : > { %962 = vrot.lane.b32.xlu0 %v556_v8, %s8580_s4  ;;  %v1836_v16 = vsel %vm1822_vm7, %v1803_v37, %v1333_v12 }
 0x17a   : > { %964 = vrot.lane.b32.xlu1 %v557_v58, %s8580_s4 }
 0x17b   : > { %v1459_v19 = vpop.permute.xlu0 %1458 }
 0x17c   : > { %v1461_v23 = vpop.permute.xlu1 %1460  ;;  %v1868_v32 = vsel %vm1855_vm8, %v1835_v29, %v1459_v19 }
 0x17d   : > { %1090 = vrot.lane.b32.xlu0 %v9346_v24, %s8581_s5  ;;  %v1869_v42 = vsel %vm1855_vm8, %v1836_v16, %v1461_v23 }
 0x17e   : > { %1092 = vrot.lane.b32.xlu1 %v9348_v59, %s8581_s5 }
 0x17f   : > { %v1587_v38 = vpop.permute.xlu0 %1586 }
 0x180   : > { %v1901_v33 = vsel %vm1888_vm9, %v1868_v32, %v1587_v38  ;;  %v695_v35 = vpop.permute.xlu1 %694  ;;  %v2707_v32 = vld [vmem:[#allocation3 + $0xc] sm:$0xf] }
 0x181   : > { %1218 = vrot.lane.b32.xlu0 %v9354_v2, %s8582_s6  ;;  %8237 = vmatprep.mubr.msk.f32.mxu0 %vm1926_vm10, %v1901_v33  ;;  %v1672_v57 = vsel %vm170_vm0, %v8986_v14, %v695_v35  ;;  %v560_v35 = vld [vmem:[#allocation2 + $0x138] sm:$0xff] }
 0x182   : > { %1220 = vrot.lane.b32.xlu1 %v9360_v63, %s8582_s6 }
 0x183   : > { %v1589_v10 = vpop.permute.xlu0 %1588 }
 0x184   : > { %v1902_v27 = vsel %vm1888_vm9, %v1869_v42, %v1589_v10  ;;  %v697_v45 = vpop.permute.xlu1 %696  ;;  %v561_v42 = vld [vmem:[#allocation2 + $0x140] sm:$0xff] }
 0x185   : > { %1346 = vrot.lane.b32.xlu0 %v558_v41, %s8583_s24  ;;  %8238 = vmatmul.mubr.msk.f32.gmra.mrb[12].mxu0 %vm1926_vm10, %v1902_v27  ;;  %v1673_v14 = vsel %vm170_vm0, %v8989_v20, %v697_v45 }
 0x186   : > { %1348 = vrot.lane.b32.xlu1 %v559_v44, %s8583_s24 }
 0x187   : > { %v823_v48 = vpop.permute.xlu0 %822 }
 0x188   : > { %v825_v49 = vpop.permute.xlu1 %824  ;;  %v1705_v61 = vsel %vm11609_vm3, %v1672_v57, %v823_v48  ;;  %v9489_v48 = vld [vmem:[#allocation2 + $0x139] sm:$0xff] }
 0x189   : > { %1474 = vrot.lane.b32.xlu0 %v9406_v43, %s8584_s27  ;;  %v1706_v3 = vsel %vm11609_vm3, %v1673_v14, %v825_v49  ;;  %vm9456_vm3 = vmand %vm2711_vm1, %vm2380_vm15 }
 0x18a   : > { %1476 = vrot.lane.b32.xlu1 %v9408_v54, %s8584_s27  ;;  %vm11630_vm15 = vmmov %vm11629_vm14 }
 0x18b   : > { %v951_v50 = vpop.permute.xlu0 %950  ;;  %vm11631_vm1 = vmmov %vm11629_vm14 }
 0x18c   : > { %v953_v5 = vpop.permute.xlu1 %952  ;;  %vm11632_vm11 = vmmov %vm11631_vm1 }
 0x18d   : > { %1602 = vrot.lane.b32.xlu0 %v9414_v39, %s8585_s7  ;;  %v1739_v15 = vsel %vm1723_vm4, %v1706_v3, %v953_v5 }
 0x18e   : > { %710 = vrot.lane.b32.xlu1 %v9346_v24, %s8579_s30  ;;  %v1738_v24 = vsel %vm1723_vm4, %v1705_v61, %v951_v50  ;;  %v9491_v50 = vld [vmem:[#allocation2 + $0x141] sm:$0xff] }
 0x18f   : > { %v1079_v52 = vpop.permute.xlu0 %1078 }
 0x190   : > { %v1081_v55 = vpop.permute.xlu1 %1080  ;;  %v1771_v62 = vsel %vm1756_vm5, %v1738_v24, %v1079_v52  ;;  %v9497_v52 = vld [vmem:[#allocation2 + $0x13a] sm:$0xff] }
 0x191   : > { %1604 = vrot.lane.b32.xlu0 %v9420_v51, %s8585_s7  ;;  %v1772_v18 = vsel %vm1756_vm5, %v1739_v15, %v1081_v55 }
 0x192   : > { %712 = vrot.lane.b32.xlu1 %v9348_v59, %s8579_s30 }
 0x193   : > { %v1207_v53 = vpop.permute.xlu0 %1206 }
 0x194   : > { %v1209_v56 = vpop.permute.xlu1 %1208  ;;  %v1804_v47 = vsel %vm1789_vm6, %v1771_v62, %v1207_v53 }
 0x195   : > { %838 = vrot.lane.b32.xlu0 %v9354_v2, %s8578_s29  ;;  %v1805_v29 = vsel %vm1789_vm6, %v1772_v18, %v1209_v56 }
 0x196   : > { %840 = vrot.lane.b32.xlu1 %v9360_v63, %s8578_s29 }
 0x197   : > { %v1335_v21 = vpop.permute.xlu0 %1334 }
 0x198   : > { %v1337_v7 = vpop.permute.xlu1 %1336  ;;  %v8221_v8 = vpop.f32.mrb[0].mxu0  ;;  %v1837_v4 = vsel %vm1822_vm7, %v1804_v47, %v1335_v21 }
 0x199   : > { %v2253_v11 = vmax.f32 %v8221_v8, 0.0  ;;  %v2093_v58 = vpop.f32.mrb[1].mxu0  ;;  %966 = vrot.lane.b32.xlu0 %v558_v41, %s8580_s4  ;;  %v1838_v38 = vsel %vm1822_vm7, %v1805_v29, %v1337_v7 }
 0x19a   : > { %v2252_v46 = vmax.f32 %v2093_v58, 0.0  ;;  %968 = vrot.lane.b32.xlu1 %v559_v44, %s8580_s4  ;;  %v9503_v58 = vld [vmem:[#allocation2 + $0x142] sm:$0xff] }
 0x19b   : > { %v7668_v60 = vpack.c.bf16 %v2253_v11, %v2253_v11  ;;  %v1463_v59 = vpop.permute.xlu0 %1462 }
 0x19c   : > { %v7667_v2 = vpack.c.bf16 %v2252_v46, %v2252_v46  ;;  %v1465_v1 = vpop.permute.xlu1 %1464  ;;  %v1870_v13 = vsel %vm1855_vm8, %v1837_v4, %v1463_v59 }
 0x19d   : > { %v2392_v63 = vshrl.u32 %v7668_v60, 16  ;;  %1094 = vrot.lane.b32.xlu0 %v9406_v43, %s8581_s5  ;;  %v2395_v12 = vshll.u32 %v7668_v60, 16  ;;  %v1871_v16 = vsel %vm1855_vm8, %v1838_v38, %v1465_v1 }
 0x19e   : > { %v2384_v6 = vshrl.u32 %v7667_v2, 16  ;;  %1096 = vrot.lane.b32.xlu1 %v9408_v54, %s8581_s5  ;;  %v2387_v25 = vshll.u32 %v7667_v2, 16 }
 0x19f   : > { %v2394_v9 = vrot.slane %v2392_v63, 7  ;;  %v1591_v17 = vpop.permute.xlu0 %1590 }
 0x1a0   : > { %v2386_v23 = vrot.slane %v2384_v6, 7  ;;  %v1903_v26 = vsel %vm1888_vm9, %v1870_v13, %v1591_v17  ;;  %v9461_v34 = vpop.permute.xlu1 %698 }
 0x1a1   : > { %v2397_v28 = vor.u32 %v2395_v12, %v2394_v9  ;;  %v2399_v30 = vrot.slane %v2394_v9, 4  ;;  %1222 = vrot.lane.b32.xlu0 %v9414_v39, %s8582_s6  ;;  %8240 = vmatprep.mubr.msk.f32.mxu0 %vm1926_vm10, %v1903_v26 }
 0x1a2   : > { %v2389_v40 = vor.u32 %v2387_v25, %v2386_v23  ;;  %v2390_v33 = vrot.slane %v2386_v23, 4  ;;  %1224 = vrot.lane.b32.xlu1 %v9420_v51, %s8582_s6 }
 0x1a3   : > { %v2714_v37 = vsel %vm9456_vm3, %v2399_v30, %v2713_v22  ;;  %v1593_v41 = vpop.permute.xlu0 %1592  ;;  %v1674_v22 = vsel %vm170_vm0, %v9054_v0, %v9461_v34  ;;  %v8509_v0 = vld [vmem:[#allocation2 + $0xc8] sm:$0xff] }
 0x1a4   : > { %2715 = vst [vmem:[#allocation3 + $0x14] sm:$0x1] %v2714_v37  ;;  %v2398_v10 = vsel %vm9466_vm2, %v2390_v33, %v2397_v28  ;;  %v2708_v44 = vsel %vm9448_vm12, %v2389_v40, %v2707_v32  ;;  %v1904_v27 = vsel %vm1888_vm9, %v1871_v16, %v1593_v41  ;;  %v9484_v45 = vpop.permute.xlu1 %700 }
 0x1a5   : > { %2709 = vst [vmem:[#allocation3 + $0xc] sm:$0xf] %v2708_v44  ;;  %2710 = vst [vmem:[#allocation3 + $0x10] sm:$0xf] %v2398_v10  ;;  %1350 = vrot.lane.b32.xlu0 %v560_v35, %s8583_s24  ;;  %8241 = vmatmul.mubr.msk.f32.gmra.mrb[14].mxu0 %vm1926_vm10, %v1904_v27  ;;  %v1675_v34 = vsel %vm170_vm0, %v8509_v0, %v9484_v45 }
 0x1a6   : > { %1352 = vrot.lane.b32.xlu1 %v561_v42, %s8583_s24 }
 0x1a7   : > { %v827_v49 = vpop.permute.xlu0 %826 }
 0x1a8   : > { %v829_v5 = vpop.permute.xlu1 %828  ;;  %v1707_v25 = vsel %vm11629_vm14, %v1674_v22, %v827_v49  ;;  %v2720_v49 = vld [vmem:[#allocation3 + $0x20] sm:$0x1]  ;;  %vm11633_vm14 = vmmov %vm11631_vm1 }
 0x1a9   : > { %1478 = vrot.lane.b32.xlu0 %v9489_v48, %s8584_s27 }
 0x1aa   : > { %1480 = vrot.lane.b32.xlu1 %v9491_v50, %s8584_s27 }
 0x1ab   : > { %v955_v55 = vpop.permute.xlu0 %954  ;;  %v2970_v7 = vld [vmem:[#allocation3 + $0x14] sm:$0x1] }
 0x1ac   : > { %v957_v53 = vpop.permute.xlu1 %956  ;;  %v2968_v56 = vld [vmem:[#allocation3 + $0xc] sm:$0xf]  ;;  %v2969_v21 = vld [vmem:[#allocation3 + $0x10] sm:$0xf]  ;;  %v3060_v1 = vshll.u32 %v2970_v7, 16  ;;  %v1740_v26 = vsel %vm1723_vm4, %v1707_v25, %v955_v55 }
 0x1ad   : > { %1606 = vrot.lane.b32.xlu0 %v9497_v52, %s8585_s7  ;;  %v3041_v8 = vshrl.u32 %v2968_v56, 16  ;;  %v3044_v57 = vshll.u32 %v2968_v56, 16  ;;  %v3050_v11 = vshll.u32 %v2969_v21, 16  ;;  %v3054_v61 = vshrl.u32 %v2969_v21, 16  ;;  %v8406_v18 = vld [vmem:[#allocation3 + $0xc] sm:$0xff]  }
 0x1ae   : > { %714 = vrot.lane.b32.xlu1 %v9406_v43, %s8579_s30  ;;  %v3062_v6 = vrot.slane %v3060_v1, 5 }
 0x1af   : > { %v1083_v46 = vpop.permute.xlu0 %1082  ;;  %v3043_v24 = vrot.slane %v3041_v8, 4  ;;  %v3046_v60 = vrot.slane %v3044_v57, 5  ;;  %v3052_v59 = vrot.slane %v3050_v11, 5  ;;  %v3056_v2 = vrot.slane %v3054_v61, 4  ;;  %v2716_v11 = vld [vmem:[#allocation3 + $0x18] sm:$0xf] }
 0x1b0   : > { %v1085_v62 = vpop.permute.xlu1 %1084  ;;  %v1773_v30 = vsel %vm1756_vm5, %v1740_v26, %v1083_v46 }
 0x1b1   : > { %1608 = vrot.lane.b32.xlu0 %v9503_v58, %s8585_s7  ;;  %v3047_v14 = vor.u32 %v3046_v60, %v3043_v24  ;;  %v3057_v47 = vor.u32 %v3056_v2, %v3052_v59  ;;  %v562_v24 = vld [vmem:[#allocation2 + $0x150] sm:$0xff]  ;;  %v9550_v2 = vld [vmem:[#allocation2 + $0x158] sm:$0xff] }
 0x1b2   : > { %716 = vrot.lane.b32.xlu1 %v9408_v54, %s8579_s30 }
 0x1b3   : > { %v1211_v63 = vpop.permute.xlu0 %1210  ;;  %v3048_v43 = vrot.slane %v3047_v14, 4  ;;  %v3058_v4 = vrot.slane %v3057_v47, 4 }
 0x1b4   : > { %v1213_v3 = vpop.permute.xlu1 %1212  ;;  %v1806_v40 = vsel %vm1789_vm6, %v1773_v30, %v1211_v63 }
 0x1b5   : > { %842 = vrot.lane.b32.xlu0 %v9414_v39, %s8578_s29  ;;  %v3053_v15 = vsel %vm9225_vm13, %v3048_v43, %v3052_v59  ;;  %v3063_v9 = vsel %vm9225_vm13, %v3058_v4, %v3062_v6  ;;  %v9563_v43 = vld [vmem:[#allocation2 + $0x151] sm:$0xff]  ;;  %v9565_v4 = vld [vmem:[#allocation2 + $0x159] sm:$0xff] }
 0x1b6   : > { %844 = vrot.lane.b32.xlu1 %v9420_v51, %s8578_s29  ;;  %v7414_v54 = vcombine.low %v3053_v15, %v3063_v9  ;;  %v9573_v15 = vld [vmem:[#allocation2 + $0x152] sm:$0xff] }
 0x1b7   : > { %v1339_v12 = vpop.permute.xlu0 %1338 }
 0x1b8   : > { %v1341_v13 = vpop.permute.xlu1 %1340  ;;  %v8224_v17 = vpop.f32.mrb[2].mxu0  ;;  %6420 = vmatprep.mubr.bf16.mxu1 %v7414_v54  ;;  %v1839_v37 = vsel %vm1822_vm7, %v1806_v40, %v1339_v12 }
 0x1b9   : > { %v2255_v23 = vmax.f32 %v8224_v17, 0.0  ;;  %970 = vrot.lane.b32.xlu0 %v560_v35, %s8580_s4  ;;  %v2103_v39 = vpop.f32.mrb[3].mxu0  ;;  %6421 = vmatmul.mubr.bf16.gmra.mrb[4].mxu1 %v8406_v18  ;;  %v1708_v35 = vsel %vm11630_vm15, %v1675_v34, %v829_v5  ;;  %vm11634_vm15 = vmmov %vm11631_vm1 }
 0x1ba   : > { %972 = vrot.lane.b32.xlu1 %v561_v42, %s8580_s4  ;;  %v2254_v51 = vmax.f32 %v2103_v39, 0.0  ;;  %v1741_v41 = vsel %vm1723_vm4, %v1708_v35, %v957_v53  ;;  %v9579_v39 = vld [vmem:[#allocation2 + $0x15a] sm:$0xff] }
 0x1bb   : > { %v7670_v29 = vpack.c.bf16 %v2255_v23, %v2255_v23  ;;  %v1467_v28 = vpop.permute.xlu0 %1466  ;;  %v1774_v45 = vsel %vm1756_vm5, %v1741_v41, %v1085_v62  ;;  %v363_v41 = vld [vmem:[#allocation2 + $0xd8] sm:$0xff] }
 0x1bc   : > { %v7669_v32 = vpack.c.bf16 %v2254_v51, %v2254_v51  ;;  %v1469_v38 = vpop.permute.xlu1 %1468  ;;  %v1872_v44 = vsel %vm1855_vm8, %v1839_v37, %v1467_v28  ;;  %v1807_v7 = vsel %vm1789_vm6, %v1774_v45, %v1213_v3 }
 0x1bd   : > { %v2409_v33 = vshrl.u32 %v7670_v29, 16  ;;  %1098 = vrot.lane.b32.xlu0 %v9489_v48, %s8581_s5  ;;  %v2412_v10 = vshll.u32 %v7670_v29, 16  ;;  %v1840_v53 = vsel %vm1822_vm7, %v1807_v7, %v1341_v13 }
 0x1be   : > { %v2401_v16 = vshrl.u32 %v7669_v32, 16  ;;  %1100 = vrot.lane.b32.xlu1 %v9491_v50, %s8581_s5  ;;  %v2404_v56 = vshll.u32 %v7669_v32, 16  ;;  %v1873_v59 = vsel %vm1855_vm8, %v1840_v53, %v1469_v38 }
 0x1bf   : > { %v2411_v42 = vrot.slane %v2409_v33, 7  ;;  %v1595_v27 = vpop.permute.xlu0 %1594 }
 0x1c0   : > { %v2403_v55 = vrot.slane %v2401_v16, 7  ;;  %v1905_v5 = vsel %vm1888_vm9, %v1872_v44, %v1595_v27  ;;  %v9538_v21 = vpop.permute.xlu1 %702 }
 0x1c1   : > { %v2414_v8 = vor.u32 %v2412_v10, %v2411_v42  ;;  %v2416_v57 = vrot.slane %v2411_v42, 4  ;;  %1226 = vrot.lane.b32.xlu0 %v9497_v52, %s8582_s6  ;;  %8243 = vmatprep.mubr.msk.f32.mxu0 %vm1926_vm10, %v1905_v5 }
 0x1c2   : > { %v2406_v61 = vor.u32 %v2404_v56, %v2403_v55  ;;  %v2407_v46 = vrot.slane %v2403_v55, 4  ;;  %1228 = vrot.lane.b32.xlu1 %v9503_v58, %s8582_s6  ;;  %v364_v56 = vld [vmem:[#allocation2 + $0xe0] sm:$0xff] }
 0x1c3   : > { %v2721_v60 = vsel %vm9456_vm3, %v2416_v57, %v2720_v49  ;;  %v1597_v62 = vpop.permute.xlu0 %1596  ;;  %v1676_v49 = vsel %vm170_vm0, %v363_v41, %v9538_v21  ;;  %v9650_v41 = vld [vmem:[#allocation2 + $0x16a] sm:$0xff] }
 0x1c4   : > { %2722 = vst [vmem:[#allocation3 + $0x20] sm:$0x1] %v2721_v60  ;;  %v2415_v1 = vsel %vm9466_vm2, %v2407_v46, %v2414_v8  ;;  %v2717_v14 = vsel %vm9448_vm12, %v2406_v61, %v2716_v11  ;;  %v1906_v47 = vsel %vm1888_vm9, %v1873_v59, %v1597_v62  ;;  %v9557_v63 = vpop.permute.xlu1 %704 }
 0x1c5   : > { %2718 = vst [vmem:[#allocation3 + $0x18] sm:$0xf] %v2717_v14  ;;  %2719 = vst [vmem:[#allocation3 + $0x1c] sm:$0xf] %v2415_v1  ;;  %1354 = vrot.lane.b32.xlu0 %v562_v24, %s8583_s24  ;;  %8244 = vmatmul.mubr.msk.f32.gmra.mrb[16].mxu0 %vm1926_vm10, %v1906_v47  ;;  %v1677_v61 = vsel %vm170_vm0, %v364_v56, %v9557_v63 }
 0x1c6   : > { %1356 = vrot.lane.b32.xlu1 %v9550_v2, %s8583_s24 }
 0x1c7   : > { %v831_v3 = vpop.permute.xlu0 %830 }
 0x1c8   : > { %v9567_v6 = vpop.permute.xlu1 %832  ;;  %v1709_v5 = vsel %vm11631_vm1, %v1676_v49, %v831_v3 }
 0x1c9   : > { %1482 = vrot.lane.b32.xlu0 %v9563_v43, %s8584_s27  ;;  %v1710_v60 = vsel %vm11632_vm11, %v1677_v61, %v9567_v6  ;;  %vm11635_vm11 = vmmov %vm11631_vm1 }
 0x1ca   : > { %1484 = vrot.lane.b32.xlu1 %v9565_v4, %s8584_s27 }
 0x1cb   : > { %v959_v9 = vpop.permute.xlu0 %958  ;;  %v2973_v17 = vld [vmem:[#allocation3 + $0x20] sm:$0x1] }
 0x1cc   : > { %v961_v12 = vpop.permute.xlu1 %960  ;;  %v2971_v54 = vld [vmem:[#allocation3 + $0x18] sm:$0xf]  ;;  %v2972_v13 = vld [vmem:[#allocation3 + $0x1c] sm:$0xf]  ;;  %v3084_v38 = vshll.u32 %v2973_v17, 16  ;;  %v1742_v7 = vsel %vm1723_vm4, %v1709_v5, %v959_v9 }
 0x1cd   : > { %1610 = vrot.lane.b32.xlu0 %v9573_v15, %s8585_s7  ;;  %v3065_v18 = vshrl.u32 %v2971_v54, 16  ;;  %v3068_v22 = vshll.u32 %v2971_v54, 16  ;;  %v3074_v23 = vshll.u32 %v2972_v13, 16  ;;  %v3078_v25 = vshrl.u32 %v2972_v13, 16  ;;  %v8407_v45 = vld [vmem:[#allocation3 + $0x18] sm:$0xff]  }
 0x1ce   : > { %718 = vrot.lane.b32.xlu1 %v9489_v48, %s8579_s30  ;;  %v3086_v37 = vrot.slane %v3084_v38, 5  ;;  %v2727_v9 = vld [vmem:[#allocation3 + $0x2c] sm:$0x1]  ;;  %v9627_v38 = vld [vmem:[#allocation2 + $0x170] sm:$0xff] }
 0x1cf   : > { %v1087_v51 = vpop.permute.xlu0 %1086  ;;  %v3067_v26 = vrot.slane %v3065_v18, 4  ;;  %v3070_v29 = vrot.slane %v3068_v22, 5  ;;  %v3076_v28 = vrot.slane %v3074_v23, 5  ;;  %v3080_v32 = vrot.slane %v3078_v25, 4  ;;  %v2723_v25 = vld [vmem:[#allocation3 + $0x24] sm:$0xf] }
 0x1d0   : > { %v1089_v30 = vpop.permute.xlu1 %1088  ;;  %v1775_v11 = vsel %vm1756_vm5, %v1742_v7, %v1087_v51 }
 0x1d1   : > { %1612 = vrot.lane.b32.xlu0 %v9579_v39, %s8585_s7  ;;  %v3071_v0 = vor.u32 %v3070_v29, %v3067_v26  ;;  %v3081_v34 = vor.u32 %v3080_v32, %v3076_v28  ;;  %v564_v29 = vld [vmem:[#allocation2 + $0x168] sm:$0xff] }
 0x1d2   : > { %720 = vrot.lane.b32.xlu1 %v9491_v50, %s8579_s30 }
 0x1d3   : > { %v1215_v40 = vpop.permute.xlu0 %1214  ;;  %v3072_v48 = vrot.slane %v3071_v0, 4  ;;  %v3082_v35 = vrot.slane %v3081_v34, 4 }
 0x1d4   : > { %v1217_v33 = vpop.permute.xlu1 %1216  ;;  %v1808_v46 = vsel %vm1789_vm6, %v1775_v11, %v1215_v40 }
 0x1d5   : > { %846 = vrot.lane.b32.xlu0 %v9497_v52, %s8578_s29  ;;  %v3077_v16 = vsel %vm9225_vm13, %v3072_v48, %v3076_v28  ;;  %v3087_v42 = vsel %vm9225_vm13, %v3082_v35, %v3086_v37  ;;  %v9642_v37 = vld [vmem:[#allocation2 + $0x171] sm:$0xff] }
 0x1d6   : > { %848 = vrot.lane.b32.xlu1 %v9503_v58, %s8578_s29  ;;  %v7415_v10 = vcombine.low %v3077_v16, %v3087_v42 }
 0x1d7   : > { %v1343_v50 = vpop.permute.xlu0 %1342 }
 0x1d8   : > { %v1345_v44 = vpop.permute.xlu1 %1344  ;;  %v8227_v27 = vpop.f32.mrb[4].mxu0  ;;  %6428 = vmatprep.mubr.bf16.mxu1 %v7415_v10  ;;  %v1841_v59 = vsel %vm1822_vm7, %v1808_v46, %v1343_v50 }
 0x1d9   : > { %v2257_v55 = vmax.f32 %v8227_v27, 0.0  ;;  %974 = vrot.lane.b32.xlu0 %v562_v24, %s8580_s4  ;;  %v2113_v52 = vpop.f32.mrb[5].mxu0  ;;  %6429 = vmatmul.mubr.bf16.gmra.mrb[8].mxu1 %v8407_v45 }
 0x1da   : > { %976 = vrot.lane.b32.xlu1 %v9550_v2, %s8580_s4  ;;  %v2256_v58 = vmax.f32 %v2113_v52, 0.0  ;;  %v1743_v2 = vsel %vm1723_vm4, %v1710_v60, %v961_v12  ;;  %v9656_v52 = vld [vmem:[#allocation2 + $0x172] sm:$0xff] }
 0x1db   : > { %v7672_v8 = vpack.c.bf16 %v2257_v55, %v2257_v55  ;;  %v1471_v57 = vpop.permute.xlu0 %1470  ;;  %v1776_v3 = vsel %vm1756_vm5, %v1743_v2, %v1089_v30  ;;  %v365_v2 = vld [vmem:[#allocation2 + $0xf0] sm:$0xff] }
 0x1dc   : > { %v7671_v21 = vpack.c.bf16 %v2256_v58, %v2256_v58  ;;  %v1473_v53 = vpop.permute.xlu1 %1472  ;;  %v1874_v47 = vsel %vm1855_vm8, %v1841_v59, %v1471_v57  ;;  %v1809_v18 = vsel %vm1789_vm6, %v1776_v3, %v1217_v33  ;;  %v9640_v33 = vld [vmem:[#allocation2 + $0x169] sm:$0xff] }
 0x1dd   : > { %v2426_v24 = vshrl.u32 %v7672_v8, 16  ;;  %1102 = vrot.lane.b32.xlu0 %v9563_v43, %s8581_s5  ;;  %v2429_v14 = vshll.u32 %v7672_v8, 16  ;;  %v1842_v12 = vsel %vm1822_vm7, %v1809_v18, %v1345_v44 }
 0x1de   : > { %v2418_v62 = vshrl.u32 %v7671_v21, 16  ;;  %1104 = vrot.lane.b32.xlu1 %v9565_v4, %s8581_s5  ;;  %v2421_v13 = vshll.u32 %v7671_v21, 16  ;;  %v1875_v30 = vsel %vm1855_vm8, %v1842_v12, %v1473_v53 }
 0x1df   : > { %v2428_v1 = vrot.slane %v2426_v24, 7  ;;  %v1599_v63 = vpop.permute.xlu0 %1598 }
 0x1e0   : > { %v2420_v54 = vrot.slane %v2418_v62, 7  ;;  %v1907_v6 = vsel %vm1888_vm9, %v1874_v47, %v1599_v63  ;;  %v9615_v17 = vpop.permute.xlu1 %706 }
 0x1e1   : > { %v2431_v22 = vor.u32 %v2429_v14, %v2428_v1  ;;  %v2433_v23 = vrot.slane %v2428_v1, 4  ;;  %1230 = vrot.lane.b32.xlu0 %v9573_v15, %s8582_s6  ;;  %8246 = vmatprep.mubr.msk.f32.mxu0 %vm1926_vm10, %v1907_v6 }
 0x1e2   : > { %v2423_v51 = vor.u32 %v2421_v13, %v2420_v54  ;;  %v2424_v26 = vrot.slane %v2420_v54, 4  ;;  %1232 = vrot.lane.b32.xlu1 %v9579_v39, %s8582_s6  ;;  %v366_v13 = vld [vmem:[#allocation2 + $0xf8] sm:$0xff] }
 0x1e3   : > { %v2728_v28 = vsel %vm9456_vm3, %v2433_v23, %v2727_v9  ;;  %v1601_v32 = vpop.permute.xlu0 %1600  ;;  %v1678_v9 = vsel %vm170_vm0, %v365_v2, %v9615_v17  ;;  %v9730_v2 = vld [vmem:[#allocation2 + $0x189] sm:$0xff] }
 0x1e4   : > { %2729 = vst [vmem:[#allocation3 + $0x2c] sm:$0x1] %v2728_v28  ;;  %v2432_v0 = vsel %vm9466_vm2, %v2424_v26, %v2431_v22  ;;  %v2724_v34 = vsel %vm9448_vm12, %v2423_v51, %v2723_v25  ;;  %v1908_v40 = vsel %vm1888_vm9, %v1875_v30, %v1601_v32  ;;  %v9634_v48 = vpop.permute.xlu1 %708 }
 0x1e5   : > { %2725 = vst [vmem:[#allocation3 + $0x24] sm:$0xf] %v2724_v34  ;;  %2726 = vst [vmem:[#allocation3 + $0x28] sm:$0xf] %v2432_v0  ;;  %1358 = vrot.lane.b32.xlu0 %v564_v29, %s8583_s24  ;;  %8247 = vmatmul.mubr.msk.f32.gmra.mrb[18].mxu0 %vm1926_vm10, %v1908_v40  ;;  %v1679_v51 = vsel %vm170_vm0, %v366_v13, %v9634_v48  ;;  %v9750_v13 = vld [vmem:[#allocation2 + $0x18a] sm:$0xff] }
 0x1e6   : > { %1360 = vrot.lane.b32.xlu1 %v9627_v38, %s8583_s24 }
 0x1e7   : > { %v835_v35 = vpop.permute.xlu0 %834 }
 0x1e8   : > { %v9644_v16 = vpop.permute.xlu1 %836  ;;  %v1711_v6 = vsel %vm11633_vm14, %v1678_v9, %v835_v35  ;;  %vm11636_vm14 = vmmov %vm11631_vm1 }
 0x1e9   : > { %1486 = vrot.lane.b32.xlu0 %v9640_v33, %s8584_s27  ;;  %v1712_v28 = vsel %vm11634_vm15, %v1679_v51, %v9644_v16  ;;  %vm11637_vm15 = vmmov %vm11631_vm1 }
 0x1ea   : > { %1488 = vrot.lane.b32.xlu1 %v9642_v37, %s8584_s27 }
 0x1eb   : > { %v963_v42 = vpop.permute.xlu0 %962  ;;  %v2976_v27 = vld [vmem:[#allocation3 + $0x2c] sm:$0x1] }
 0x1ec   : > { %v965_v50 = vpop.permute.xlu1 %964  ;;  %v2974_v10 = vld [vmem:[#allocation3 + $0x24] sm:$0xf]  ;;  %v2975_v44 = vld [vmem:[#allocation3 + $0x28] sm:$0xf]  ;;  %v3108_v21 = vshll.u32 %v2976_v27, 16  ;;  %v1744_v18 = vsel %vm1723_vm4, %v1711_v6, %v963_v42 }
 0x1ed   : > { %1614 = vrot.lane.b32.xlu0 %v9650_v41, %s8585_s7  ;;  %v3089_v45 = vshrl.u32 %v2974_v10, 16  ;;  %v3092_v49 = vshll.u32 %v2974_v10, 16  ;;  %v3098_v55 = vshll.u32 %v2975_v44, 16  ;;  %v3102_v56 = vshrl.u32 %v2975_v44, 16  ;;  %v8408_v3 = vld [vmem:[#allocation3 + $0x24] sm:$0xff]  }
 0x1ee   : > { %722 = vrot.lane.b32.xlu1 %v9563_v43, %s8579_s30  ;;  %v3110_v59 = vrot.slane %v3108_v21, 5  ;;  %v2734_v42 = vld [vmem:[#allocation3 + $0x38] sm:$0x1] }
 0x1ef   : > { %v1091_v5 = vpop.permute.xlu0 %1090  ;;  %v3091_v58 = vrot.slane %v3089_v45, 4  ;;  %v3094_v7 = vrot.slane %v3092_v49, 5  ;;  %v3100_v8 = vrot.slane %v3098_v55, 5  ;;  %v3104_v11 = vrot.slane %v3102_v56, 4  ;;  %v2730_v56 = vld [vmem:[#allocation3 + $0x30] sm:$0xf] }
 0x1f0   : > { %v1093_v57 = vpop.permute.xlu1 %1092  ;;  %v1777_v25 = vsel %vm1756_vm5, %v1744_v18, %v1091_v5  ;;  %v9706_v21 = vld [vmem:[#allocation2 + $0x188] sm:$0xff] }
 0x1f1   : > { %1616 = vrot.lane.b32.xlu0 %v9656_v52, %s8585_s7  ;;  %v3095_v53 = vor.u32 %v3094_v7, %v3091_v58  ;;  %v3105_v61 = vor.u32 %v3104_v11, %v3100_v8  ;;  %v9701_v7 = vld [vmem:[#allocation2 + $0x180] sm:$0xff] }
 0x1f2   : > { %724 = vrot.lane.b32.xlu1 %v9565_v4, %s8579_s30 }
 0x1f3   : > { %v1219_v46 = vpop.permute.xlu0 %1218  ;;  %v3096_v43 = vrot.slane %v3095_v53, 4  ;;  %v3106_v60 = vrot.slane %v3105_v61, 4 }
 0x1f4   : > { %v1221_v24 = vpop.permute.xlu1 %1220  ;;  %v1810_v26 = vsel %vm1789_vm6, %v1777_v25, %v1219_v46 }
 0x1f5   : > { %850 = vrot.lane.b32.xlu0 %v9573_v15, %s8578_s29  ;;  %v3101_v62 = vsel %vm9225_vm13, %v3096_v43, %v3100_v8  ;;  %v3111_v1 = vsel %vm9225_vm13, %v3106_v60, %v3110_v59  ;;  %v8414_v60 = vld [vmem:[%s11607_s2 + $0x80] sm:$0xff]  }
 0x1f6   : > { %852 = vrot.lane.b32.xlu1 %v9579_v39, %s8578_s29  ;;  %v7416_v14 = vcombine.low %v3101_v62, %v3111_v1  ;;  %v9726_v59 = vld [vmem:[#allocation2 + $0x181] sm:$0xff] }
 0x1f7   : > { %v1347_v4 = vpop.permute.xlu0 %1346 }
 0x1f8   : > { %v1349_v47 = vpop.permute.xlu1 %1348  ;;  %v8230_v63 = vpop.f32.mrb[6].mxu0  ;;  %6436 = vmatprep.mubr.bf16.mxu1 %v7416_v14  ;;  %v1843_v30 = vsel %vm1822_vm7, %v1810_v26, %v1347_v4 }
 0x1f9   : > { %v2259_v54 = vmax.f32 %v8230_v63, 0.0  ;;  %978 = vrot.lane.b32.xlu0 %v564_v29, %s8580_s4  ;;  %v2123_v15 = vpop.f32.mrb[7].mxu0  ;;  %6437 = vmatmul.mubr.bf16.gmra.mrb[12].mxu1 %v8408_v3  ;;  %v8416_v63 = vld [vmem:[%s11607_s2 + $0x88] sm:$0xff]  }
 0x1fa   : > { %980 = vrot.lane.b32.xlu1 %v9627_v38, %s8580_s4  ;;  %v2258_v39 = vmax.f32 %v2123_v15, 0.0  ;;  %v1745_v38 = vsel %vm1723_vm4, %v1712_v28, %v965_v50  ;;  %v9744_v3 = vld [vmem:[#allocation2 + $0x182] sm:$0xff] }
 0x1fb   : > { %v7674_v22 = vpack.c.bf16 %v2259_v54, %v2259_v54  ;;  %v1475_v23 = vpop.permute.xlu0 %1474  ;;  %v1778_v35 = vsel %vm1756_vm5, %v1745_v38, %v1093_v57 }
 0x1fc   : > { %v7673_v17 = vpack.c.bf16 %v2258_v39, %v2258_v39  ;;  %v1477_v12 = vpop.permute.xlu1 %1476  ;;  %v1876_v40 = vsel %vm1855_vm8, %v1843_v30, %v1475_v23  ;;  %v1811_v45 = vsel %vm1789_vm6, %v1778_v35, %v1221_v24  ;;  %v8413_v24 = vld [vmem:[%s11607_s2 + $0xc0] sm:$0xff]  }
 0x1fd   : > { %v2443_v29 = vshrl.u32 %v7674_v22, 16  ;;  %1106 = vrot.lane.b32.xlu0 %v9640_v33, %s8581_s5  ;;  %v2446_v34 = vshll.u32 %v7674_v22, 16  ;;  %v1844_v50 = vsel %vm1822_vm7, %v1811_v45, %v1349_v47  ;;  %7849 = vmatprep.subr.bf16.mxu0 %v8413_v24  ;;  %v8415_v47 = vld [vmem:[%s11607_s2 + $0xc8] sm:$0xff]   ;;  %v368_v24 = vld [vmem:[#allocation2 + $0x110] sm:$0xff] }
 0x1fe   : > { %v2435_v32 = vshrl.u32 %v7673_v17, 16  ;;  %1108 = vrot.lane.b32.xlu1 %v9642_v37, %s8581_s5  ;;  %v2438_v44 = vshll.u32 %v7673_v17, 16  ;;  %v1877_v57 = vsel %vm1855_vm8, %v1844_v50, %v1477_v12  ;;  %7850 = vmatpush3.bf16.msra.mxu0 %v8414_v60  ;;  %v8421_v50 = vld [vmem:[%s11607_s2 + $0xe0] sm:$0xff]  }
 0x1ff   : > { %v2445_v0 = vrot.slane %v2443_v29, 7  ;;  %v1603_v48 = vpop.permute.xlu0 %1602  ;;  %7851 = vmatprep.subr.bf16.mxu0 %v8415_v47  ;;  %v8417_v29 = vld [vmem:[%s11607_s2 + $0xd0] sm:$0xff]  }
 0x200   : > { %v2437_v10 = vrot.slane %v2435_v32, 7  ;;  %v1909_v16 = vsel %vm1888_vm9, %v1876_v40, %v1603_v48  ;;  %v9692_v27 = vpop.permute.xlu1 %710 }
 0x201   : > { %v2448_v49 = vor.u32 %v2446_v34, %v2445_v0  ;;  %v2450_v55 = vrot.slane %v2445_v0, 4  ;;  %1234 = vrot.lane.b32.xlu0 %v9650_v41, %s8582_s6  ;;  %8249 = vmatprep.mubr.msk.f32.mxu0 %vm1926_vm10, %v1909_v16  ;;  %v8418_v0 = vld [vmem:[%s11607_s2 + $0x90] sm:$0xff]  }
 0x202   : > { %v2440_v5 = vor.u32 %v2438_v44, %v2437_v10  ;;  %v2441_v58 = vrot.slane %v2437_v10, 4  ;;  %1236 = vrot.lane.b32.xlu1 %v9656_v52, %s8582_s6  ;;  %7852 = vmatpush3.bf16.msra.mxu0 %v8416_v63  ;;  %v8420_v10 = vld [vmem:[%s11607_s2 + $0x98] sm:$0xff]  }
 0x203   : > { %v2735_v8 = vsel %vm9456_vm3, %v2450_v55, %v2734_v42  ;;  %v1605_v11 = vpop.permute.xlu0 %1604  ;;  %7853 = vmatprep.subr.bf16.mxu0 %v8417_v29  ;;  %v8419_v42 = vld [vmem:[%s11607_s2 + $0xd8] sm:$0xff]  }
 0x204   : > { %2736 = vst [vmem:[#allocation3 + $0x38] sm:$0x1] %v2735_v8  ;;  %v2449_v53 = vsel %vm9466_vm2, %v2441_v58, %v2448_v49  ;;  %v2731_v61 = vsel %vm9448_vm12, %v2440_v5, %v2730_v56  ;;  %v1910_v46 = vsel %vm1888_vm9, %v1877_v57, %v1605_v11  ;;  %v9713_v43 = vpop.permute.xlu1 %712  ;;  %v7753_v4 = vpop.f32.mrb[0].mxu1  ;;  %v367_v5 = vld [vmem:[#allocation2 + $0x108] sm:$0xff] }
 0x205   : > { %2732 = vst [vmem:[#allocation3 + $0x30] sm:$0xf] %v2731_v61  ;;  %2733 = vst [vmem:[#allocation3 + $0x34] sm:$0xf] %v2449_v53  ;;  %1362 = vrot.lane.b32.xlu0 %v9701_v7, %s8583_s24  ;;  %8250 = vmatmul.mubr.msk.f32.gmra.mrb[20].mxu0 %vm1926_vm10, %v1910_v46  ;;  %v7754_v14 = vpop.f32.mrb[1].mxu1  ;;  %v1680_v61 = vsel %vm170_vm0, %v367_v5, %v9692_v27 }
 0x206   : > { %1364 = vrot.lane.b32.xlu1 %v9706_v21, %s8583_s24  ;;  %v9746_v9 = vadd.f32 %v7754_v14, %v7753_v4  ;;  %v7756_v54 = vpop.f32.mrb[2].mxu1  ;;  %7854 = vmatpush3.bf16.msra.mxu0 %v8418_v0  ;;  %v8424_v14 = vld [vmem:[%s11607_s2 + $0xe8] sm:$0xff]  }
 0x207   : > { %v9728_v62 = vpop.permute.xlu0 %838  ;;  %v7757_v6 = vpop.f32.mrb[3].mxu1  ;;  %7855 = vmatprep.subr.bf16.mxu0 %v8419_v42 }
 0x208   : > { %v9732_v1 = vpop.permute.xlu1 %840  ;;  %v9754_v25 = vadd.f32 %v7757_v6, %v7756_v54  ;;  %v1713_v60 = vsel %vm11631_vm1, %v1680_v61, %v9728_v62 }
 0x209   : > { %1490 = vrot.lane.b32.xlu0 %v9726_v59, %s8584_s27 }
 0x20a   : > { %1492 = vrot.lane.b32.xlu1 %v9730_v2, %s8584_s27  ;;  %7856 = vmatpush3.bf16.msra.mxu0 %v8420_v10 }
 0x20b   : > { %v9748_v15 = vpop.permute.xlu0 %966  ;;  %v2979_v23 = vld [vmem:[#allocation3 + $0x38] sm:$0x1]  ;;  %7857 = vmatprep.subr.bf16.mxu0 %v8421_v50 }
 0x20c   : > { %v9752_v39 = vpop.permute.xlu1 %968  ;;  %v2977_v18 = vld [vmem:[#allocation3 + $0x30] sm:$0xf]  ;;  %v2978_v22 = vld [vmem:[#allocation3 + $0x34] sm:$0xf]  ;;  %v3132_v48 = vshll.u32 %v2979_v23, 16  ;;  %v1746_v27 = vsel %vm1723_vm4, %v1713_v60, %v9748_v15 }
 0x20d   : > { %1618 = vrot.lane.b32.xlu0 %v9744_v3, %s8585_s7  ;;  %v3113_v17 = vshrl.u32 %v2977_v18, 16  ;;  %v3116_v12 = vshll.u32 %v2977_v18, 16  ;;  %v3122_v51 = vshll.u32 %v2978_v22, 16  ;;  %v3126_v26 = vshrl.u32 %v2978_v22, 16  ;;  %v8409_v53 = vld [vmem:[#allocation3 + $0x30] sm:$0xff]  }
 0x20e   : > { %1620 = vrot.lane.b32.xlu1 %v9750_v13, %s8585_s7 }
 0x20f   : > { %v1095_v28 = vpop.permute.xlu0 %1094  ;;  %v3115_v30 = vrot.slane %v3113_v17, 4  ;;  %v3118_v32 = vrot.slane %v3116_v12, 5  ;;  %v3124_v38 = vrot.slane %v3122_v51, 5  ;;  %v3128_v40 = vrot.slane %v3126_v26, 4  ;;  %v8426_v12 = vld [vmem:[%s11607_s2 + $0xf0] sm:$0xff]  }
 0x210   : > { %v9766_v34 = vpop.permute.xlu1 %1096  ;;  %v1779_v62 = vsel %vm1756_vm5, %v1746_v27, %v1095_v28  ;;  %v2741_v28 = vld [vmem:[#allocation3 + $0x44] sm:$0x1] }
 0x211   : > { %726 = vrot.lane.b32.xlu0 %v9640_v33, %s8579_s30  ;;  %v3119_v35 = vor.u32 %v3118_v32, %v3115_v30  ;;  %v3129_v44 = vor.u32 %v3128_v40, %v3124_v38  ;;  %v3134_v33 = vrot.slane %v3132_v48, 5 }
 0x212   : > { %728 = vrot.lane.b32.xlu1 %v9642_v37, %s8579_s30  ;;  %s11480_s30 = scalar_lea.vmem [#allocation5], %s7329_s10 }
 0x213   : > { %v1223_v16 = vpop.permute.xlu0 %1222  ;;  %v3120_v45 = vrot.slane %v3119_v35, 4  ;;  %v3130_v55 = vrot.slane %v3129_v44, 4  ;;  %v2737_v35 = vld [vmem:[#allocation3 + $0x3c] sm:$0xf]  ;;  %v568_v44 = vld [vmem:[#allocation2 + $0x198] sm:$0xff] }
 0x214   : > { %v1225_v49 = vpop.permute.xlu1 %1224  ;;  %v1812_v18 = vsel %vm1789_vm6, %v1779_v62, %v1223_v16  ;;  %v8428_v16 = vld [vmem:[%s11607_s2 + $0xf8] sm:$0xff]  }
 0x215   : > { %854 = vrot.lane.b32.xlu0 %v9650_v41, %s8578_s29  ;;  %v3125_v56 = vsel %vm9225_vm13, %v3120_v45, %v3124_v38  ;;  %v3135_v37 = vsel %vm9225_vm13, %v3130_v55, %v3134_v33  ;;  %v8422_v41 = vld [vmem:[%s11607_s2 + $0xa0] sm:$0xff]   ;;  %v8429_v33 = vld [vmem:[%s11607_s2 + $0xb8] sm:$0xff]  }
 0x216   : > { %856 = vrot.lane.b32.xlu1 %v9656_v52, %s8578_s29  ;;  %v7417_v8 = vcombine.low %v3125_v56, %v3135_v37  ;;  %7858 = vmatpush3.bf16.msra.mxu0 %v8422_v41  ;;  %v569_v55 = vld [vmem:[#allocation2 + $0x1a0] sm:$0xff] }
 0x217   : > { %v1351_v58 = vpop.permute.xlu0 %1350  ;;  %7859 = vmatprep.subr.bf16.mxu0 %v8424_v14  ;;  %v600_v37 = vld [vmem:[#allocation2 + $0x199] sm:$0xff] }
 0x218   : > { %v1353_v57 = vpop.permute.xlu1 %1352  ;;  %v8233_v11 = vpop.f32.mrb[8].mxu0  ;;  %6444 = vmatprep.mubr.bf16.mxu1 %v7417_v8  ;;  %v1845_v23 = vsel %vm1822_vm7, %v1812_v18, %v1351_v58  ;;  %v601_v8 = vld [vmem:[#allocation2 + $0x1a1] sm:$0xff] }
 0x219   : > { %v2261_v46 = vmax.f32 %v8233_v11, 0.0  ;;  %982 = vrot.lane.b32.xlu0 %v9701_v7, %s8580_s4  ;;  %v2133_v52 = vpop.f32.mrb[9].mxu0  ;;  %6445 = vmatmul.mubr.bf16.gmra.mrb[16].mxu1 %v8409_v53  ;;  %v8425_v7 = vld [vmem:[%s11607_s2 + $0xa8] sm:$0xff]  }
 0x21a   : > { %v2260_v4 = vmax.f32 %v2133_v52, 0.0  ;;  %984 = vrot.lane.b32.xlu1 %v9706_v21, %s8580_s4  ;;  %v1681_v21 = vsel %vm170_vm0, %v368_v24, %v9713_v43  ;;  %7860 = vmatpush3.bf16.msra.mxu0 %v8425_v7  ;;  %v633_v53 = vld [vmem:[#allocation2 + $0x1a2] sm:$0xff] }
 0x21b   : > { %v7676_v47 = vpack.c.bf16 %v2261_v46, %v2261_v46  ;;  %v1479_v63 = vpop.permute.xlu0 %1478  ;;  %v1714_v15 = vsel %vm11635_vm11, %v1681_v21, %v9732_v1  ;;  %v8427_v1 = vld [vmem:[%s11607_s2 + $0xb0] sm:$0xff]   ;;  %7861 = vmatprep.subr.bf16.mxu0 %v8426_v12  ;;  %vm11638_vm11 = vmmov %vm11631_vm1 }
 0x21c   : > { %v7675_v54 = vpack.c.bf16 %v2260_v4, %v2260_v4  ;;  %v1481_v6 = vpop.permute.xlu1 %1480  ;;  %v1747_v43 = vsel %vm1723_vm4, %v1714_v15, %v9752_v39 }
 0x21d   : > { %v2460_v22 = vshrl.u32 %v7676_v47, 16  ;;  %1110 = vrot.lane.b32.xlu0 %v9726_v59, %s8581_s5  ;;  %v2463_v26 = vshll.u32 %v7676_v47, 16  ;;  %v1878_v59 = vsel %vm1855_vm8, %v1845_v23, %v1479_v63 }
 0x21e   : > { %v2452_v17 = vshrl.u32 %v7675_v54, 16  ;;  %1112 = vrot.lane.b32.xlu1 %v9730_v2, %s8581_s5  ;;  %v1780_v2 = vsel %vm1756_vm5, %v1747_v43, %v9766_v34  ;;  %v2455_v32 = vshll.u32 %v7675_v54, 16  ;;  %7862 = vmatpush3.bf16.msra.mxu0 %v8427_v1 }
 0x21f   : > { %v2462_v51 = vrot.slane %v2460_v22, 7  ;;  %v1607_v29 = vpop.permute.xlu0 %1606  ;;  %v1813_v39 = vsel %vm1789_vm6, %v1780_v2, %v1225_v49  ;;  %7863 = vmatprep.subr.bf16.mxu0 %v8428_v16 }
 0x220   : > { %v2454_v30 = vrot.slane %v2452_v17, 7  ;;  %v1911_v38 = vsel %vm1888_vm9, %v1878_v59, %v1607_v29  ;;  %v9831_v0 = vpop.permute.xlu1 %714  ;;  %v1846_v34 = vsel %vm1822_vm7, %v1813_v39, %v1353_v57  ;;  %v632_v57 = vld [vmem:[#allocation2 + $0x19a] sm:$0xff] }
 0x221   : > { %v2465_v40 = vor.u32 %v2463_v26, %v2462_v51  ;;  %v2467_v48 = vrot.slane %v2462_v51, 4  ;;  %1238 = vrot.lane.b32.xlu0 %v9744_v3, %s8582_s6  ;;  %8252 = vmatprep.mubr.msk.f32.mxu0 %vm1926_vm10, %v1911_v38  ;;  %v1879_v49 = vsel %vm1855_vm8, %v1846_v34, %v1481_v6  ;;  %v369_v26 = vld [vmem:[#allocation2 + $0x120] sm:$0xff] }
 0x222   : > { %v2457_v42 = vor.u32 %v2455_v32, %v2454_v30  ;;  %v2458_v10 = vrot.slane %v2454_v30, 4  ;;  %1240 = vrot.lane.b32.xlu1 %v9750_v13, %s8582_s6  ;;  %7864 = vmatpush3.bf16.msra.mxu0 %v8429_v33  ;;  %v1682_v32 = vsel %vm170_vm0, %v369_v26, %v9831_v0  ;;  %s7699_s6 = sshll.u32 %s8630_s16, 12  ;;  %s11563_s16 = scalar_lea.sflag [#allocation6], %s161_s9 }
 0x223   : > { %v2742_v45 = vsel %vm9456_vm3, %v2467_v48, %v2741_v28  ;;  %v1609_v3 = vpop.permute.xlu0 %1608  ;;  %s11554_s11 = scalar_lea.hbm %s11608_s3, %s7699_s6 }
 0x224   : > { %2743 = vst [vmem:[#allocation3 + $0x44] sm:$0x1] %v2742_v45  ;;  %v2466_v13 = vsel %vm9466_vm2, %v2458_v10, %v2465_v40  ;;  %v2738_v56 = vsel %vm9448_vm12, %v2457_v42, %v2737_v35  ;;  %v1912_v50 = vsel %vm1888_vm9, %v1879_v49, %v1609_v3  ;;  %v9854_v5 = vpop.permute.xlu1 %716  ;;  %v370_v40 = vld [vmem:[#allocation2 + $0x128] sm:$0xff] }
 0x225   : > { %2739 = vst [vmem:[#allocation3 + $0x3c] sm:$0xf] %v2738_v56  ;;  %2740 = vst [vmem:[#allocation3 + $0x40] sm:$0xf] %v2466_v13  ;;  %1366 = vrot.lane.b32.xlu0 %v568_v44, %s8583_s24  ;;  %8253 = vmatmul.mubr.msk.f32.gmra.mrb[22].mxu0 %vm1926_vm10, %v1912_v50  ;;  %v1683_v49 = vsel %vm170_vm0, %v370_v40, %v9854_v5 }
 0x226   : > { %1368 = vrot.lane.b32.xlu1 %v569_v55, %s8583_s24  ;;  %s7263_s24 = sshll.u32 %s11480_s30, 4  ;;  %s11557_s24 = int_to_ptr.vmem [resolvable:$true] %s7263_s24 }
 0x227   : > { %v843_v58 = vpop.permute.xlu0 %842  ;;  %s8513_s17 = scalar_lea.vmem %s11557_s24, 4096  ;;  %p8520_p0 = scmp.lt.s32.totalorder %s11557_s24, %s8518_s19 }
 0x228   : > { %v845_v41 = vpop.permute.xlu1 %844  ;;  %v1715_v48 = vsel %vm11636_vm14, %v1682_v32, %v843_v58  ;;  %vm11639_vm14 = vmmov %vm11631_vm1  ;;  %p8514_p11 = scmp.ne.s32.totalorder %s11557_s24, %s8513_s17  ;;  %p8521_p1 = scmp.lt.s32.totalorder %s8519_s20, %s8513_s17 }
 0x229   : > { %1494 = vrot.lane.b32.xlu0 %v600_v37, %s8584_s27  ;;  %v1716_v55 = vsel %vm11637_vm15, %v1683_v49, %v845_v41  ;;  %vm11640_vm15 = vmmov %vm11631_vm1 }
 0x22a   : > { %1496 = vrot.lane.b32.xlu1 %v601_v8, %s8584_s27  ;;  %p8515_p12 = pnand %p8514_p11, %p8647_p5  ;;  %p8522_p2 = por %p8521_p1, %p8520_p0 }
 0x22b   : > { %v971_v11 = vpop.permute.xlu0 %970  ;;  %v2982_v24 = vld [vmem:[#allocation3 + $0x44] sm:$0x1] }
 0x22c   : > { %v973_v61 = vpop.permute.xlu1 %972  ;;  %v2980_v46 = vld [vmem:[#allocation3 + $0x3c] sm:$0xf]  ;;  %v2981_v52 = vld [vmem:[#allocation3 + $0x40] sm:$0xf]  ;;  %v3156_v21 = vshll.u32 %v2982_v24, 16  ;;  %v1748_v34 = vsel %vm1723_vm4, %v1715_v48, %v971_v11  ;;  %p8516_p13 = pneg %p8515_p12 }
 0x22d   : > { %1622 = vrot.lane.b32.xlu0 %v632_v57, %s8585_s7  ;;  %v3137_v60 = vshrl.u32 %v2980_v46, 16  ;;  %v3140_v4 = vshll.u32 %v2980_v46, 16  ;;  %v3146_v14 = vshll.u32 %v2981_v52, 16  ;;  %v3150_v27 = vshrl.u32 %v2981_v52, 16  ;;  %v8410_v30 = vld [vmem:[#allocation3 + $0x3c] sm:$0xff]  }
 0x22e   : > { %1624 = vrot.lane.b32.xlu1 %v633_v53, %s8585_s7  ;;  %v3158_v43 = vrot.slane %v3156_v21, 5  ;;  %v1749_v56 = vsel %vm1723_vm4, %v1716_v55, %v973_v61  ;;  %v2748_v11 = vld [vmem:[#allocation3 + $0x50] sm:$0x1]  ;;  %p8523_p3 = pnand %p8522_p2, %p8516_p13 }
 0x22f   : > { %v1099_v47 = vpop.permute.xlu0 %1098  ;;  %v3139_v63 = vrot.slane %v3137_v60, 4  ;;  %v3142_v7 = vrot.slane %v3140_v4, 5  ;;  %v3148_v62 = vrot.slane %v3146_v14, 5  ;;  %v3152_v6 = vrot.slane %v3150_v27, 4  ;;  %v2744_v4 = vld [vmem:[#allocation3 + $0x48] sm:$0xf] }
 0x230   : > { %v1101_v54 = vpop.permute.xlu1 %1100  ;;  %v1781_v44 = vsel %vm1756_vm5, %v1748_v34, %v1099_v47 }
 0x231   : > { %v3143_v18 = vor.u32 %v3142_v7, %v3139_v63  ;;  %v3153_v22 = vor.u32 %v3152_v6, %v3148_v62  ;;  %v1782_v57 = vsel %vm1756_vm5, %v1749_v56, %v1101_v54 }
 0x233   : > { %v1227_v15 = vpop.permute.xlu0 %1226  ;;  %v3144_v23 = vrot.slane %v3143_v18, 4  ;;  %v3154_v12 = vrot.slane %v3153_v22, 4 }
 0x234   : > { %v1229_v17 = vpop.permute.xlu1 %1228  ;;  %v1814_v0 = vsel %vm1789_vm6, %v1781_v44, %v1227_v15 }
 0x235   : > { %v3149_v51 = vsel %vm9225_vm13, %v3144_v23, %v3148_v62  ;;  %v3159_v59 = vsel %vm9225_vm13, %v3154_v12, %v3158_v43  ;;  %v1815_v41 = vsel %vm1789_vm6, %v1782_v57, %v1229_v17 }
 0x236   : > { %v7418_v1 = vcombine.low %v3149_v51, %v3159_v59 }
 0x237   : > { %v1355_v29 = vpop.permute.xlu0 %1354 }
 0x238   : > { %v1357_v2 = vpop.permute.xlu1 %1356  ;;  %v8236_v28 = vpop.f32.mrb[10].mxu0  ;;  %6452 = vmatprep.mubr.bf16.mxu1 %v7418_v1  ;;  %v1847_v33 = vsel %vm1822_vm7, %v1814_v0, %v1355_v29 }
 0x239   : > { %v2263_v38 = vmax.f32 %v8236_v28, 0.0  ;;  %v2143_v39 = vpop.f32.mrb[11].mxu0  ;;  %6453 = vmatmul.mubr.bf16.gmra.mrb[20].mxu1 %v8410_v30  ;;  %v1848_v61 = vsel %vm1822_vm7, %v1815_v41, %v1357_v2 }
 0x23a   : > { %v2262_v35 = vmax.f32 %v2143_v39, 0.0 }
 0x23b   : > { %v7678_v42 = vpack.c.bf16 %v2263_v38, %v2263_v38  ;;  %v1483_v10 = vpop.permute.xlu0 %1482 }
 0x23c   : > { %v7677_v16 = vpack.c.bf16 %v2262_v35, %v2262_v35  ;;  %v1485_v45 = vpop.permute.xlu1 %1484  ;;  %v1880_v58 = vsel %vm1855_vm8, %v1847_v33, %v1483_v10 }
 0x23d   : > { %v2477_v3 = vshrl.u32 %v7678_v42, 16  ;;  %v2480_v37 = vshll.u32 %v7678_v42, 16  ;;  %v1881_v63 = vsel %vm1855_vm8, %v1848_v61, %v1485_v45  ;;  %v371_v45 = vld [vmem:[#allocation2 + $0x138] sm:$0xff] }
 0x23e   : > { %v2469_v13 = vshrl.u32 %v7677_v16, 16  ;;  %v2472_v5 = vshll.u32 %v7677_v16, 16 }
 0x23f   : > { %v2479_v50 = vrot.slane %v2477_v3, 7  ;;  %v1611_v8 = vpop.permute.xlu0 %1610 }
 0x240   : > { %v2471_v53 = vrot.slane %v2469_v13, 7  ;;  %v1913_v46 = vsel %vm1888_vm9, %v1880_v58, %v1611_v8  ;;  %v719_v52 = vpop.permute.xlu1 %718  ;;  %v372_v58 = vld [vmem:[#allocation2 + $0x140] sm:$0xff] }
 0x241   : > { %v2482_v24 = vor.u32 %v2480_v37, %v2479_v50  ;;  %v2484_v60 = vrot.slane %v2479_v50, 4  ;;  %8255 = vmatprep.mubr.msk.f32.mxu0 %vm1926_vm10, %v1913_v46  ;;  %v1684_v56 = vsel %vm170_vm0, %v371_v45, %v719_v52 }
 0x242   : > { %v2474_v14 = vor.u32 %v2472_v5, %v2471_v53  ;;  %v2475_v27 = vrot.slane %v2471_v53, 4 }
 0x243   : > { %v2749_v47 = vsel %vm9456_vm3, %v2484_v60, %v2748_v11  ;;  %v1613_v7 = vpop.permute.xlu0 %1612 }
 0x244   : > { %2750 = vst [vmem:[#allocation3 + $0x50] sm:$0x1] %v2749_v47  ;;  %v2483_v62 = vsel %vm9466_vm2, %v2475_v27, %v2482_v24  ;;  %v2745_v54 = vsel %vm9448_vm12, %v2474_v14, %v2744_v4  ;;  %v1914_v6 = vsel %vm1888_vm9, %v1881_v63, %v1613_v7  ;;  %v721_v21 = vpop.permute.xlu1 %720 }
 0x245   : > { %2746 = vst [vmem:[#allocation3 + $0x48] sm:$0xf] %v2745_v54  ;;  %2747 = vst [vmem:[#allocation3 + $0x4c] sm:$0xf] %v2483_v62  ;;  %8256 = vmatmul.mubr.msk.f32.gmra.mrb[24].mxu0 %vm1926_vm10, %v1914_v6  ;;  %v1685_v60 = vsel %vm170_vm0, %v372_v58, %v721_v21 }
 0x247   : > { %v847_v18 = vpop.permute.xlu0 %846 }
 0x248   : > { %v849_v22 = vpop.permute.xlu1 %848  ;;  %v1717_v8 = vsel %vm11631_vm1, %v1684_v56, %v847_v18  ;;  %v2755_v18 = vld [vmem:[#allocation3 + $0x5c] sm:$0x1] }
 0x249   : > { %v1718_v61 = vsel %vm11638_vm11, %v1685_v60, %v849_v22  ;;  %vm11641_vm11 = vmmov %vm11631_vm1 }
 0x24b   : > { %v975_v15 = vpop.permute.xlu0 %974  ;;  %v2985_v43 = vld [vmem:[#allocation3 + $0x50] sm:$0x1] }
 0x24c   : > { %v977_v23 = vpop.permute.xlu1 %976  ;;  %v2983_v17 = vld [vmem:[#allocation3 + $0x48] sm:$0xf]  ;;  %v2984_v12 = vld [vmem:[#allocation3 + $0x4c] sm:$0xf]  ;;  %v3180_v39 = vshll.u32 %v2985_v43, 16  ;;  %v1750_v11 = vsel %vm1723_vm4, %v1717_v8, %v975_v15 }
 0x24d   : > { %v3161_v51 = vshrl.u32 %v2983_v17, 16  ;;  %v3164_v26 = vshll.u32 %v2983_v17, 16  ;;  %v3170_v59 = vshll.u32 %v2984_v12, 16  ;;  %v3174_v29 = vshrl.u32 %v2984_v12, 16  ;;  %v8411_v13 = vld [vmem:[#allocation3 + $0x48] sm:$0xff]  }
 0x24e   : > { %v3182_v44 = vrot.slane %v3180_v39, 5  ;;  %v1751_v47 = vsel %vm1723_vm4, %v1718_v61, %v977_v23 }
 0x24f   : > { %v1103_v1 = vpop.permute.xlu0 %1102  ;;  %v3163_v2 = vrot.slane %v3161_v51, 4  ;;  %v3166_v28 = vrot.slane %v3164_v26, 5  ;;  %v3172_v30 = vrot.slane %v3170_v59, 5  ;;  %v3176_v38 = vrot.slane %v3174_v29, 4  ;;  %v2751_v26 = vld [vmem:[#allocation3 + $0x54] sm:$0xf] }
 0x250   : > { %v1105_v32 = vpop.permute.xlu1 %1104  ;;  %v1783_v46 = vsel %vm1756_vm5, %v1750_v11, %v1103_v1 }
 0x251   : > { %v3167_v40 = vor.u32 %v3166_v28, %v3163_v2  ;;  %v3177_v48 = vor.u32 %v3176_v38, %v3172_v30  ;;  %v1784_v6 = vsel %vm1756_vm5, %v1751_v47, %v1105_v32 }
 0x253   : > { %v1231_v35 = vpop.permute.xlu0 %1230  ;;  %v3168_v34 = vrot.slane %v3167_v40, 4  ;;  %v3178_v10 = vrot.slane %v3177_v48, 4 }
 0x254   : > { %v1233_v42 = vpop.permute.xlu1 %1232  ;;  %v1816_v52 = vsel %vm1789_vm6, %v1783_v46, %v1231_v35 }
 0x255   : > { %v3173_v16 = vsel %vm9225_vm13, %v3168_v34, %v3172_v30  ;;  %v3183_v49 = vsel %vm9225_vm13, %v3178_v10, %v3182_v44  ;;  %v1817_v22 = vsel %vm1789_vm6, %v1784_v6, %v1233_v42 }
 0x256   : > { %v7419_v3 = vcombine.low %v3173_v16, %v3183_v49 }
 0x257   : > { %v1359_v0 = vpop.permute.xlu0 %1358 }
 0x258   : > { %v1361_v55 = vpop.permute.xlu1 %1360  ;;  %v8239_v33 = vpop.f32.mrb[12].mxu0  ;;  %6460 = vmatprep.mubr.bf16.mxu1 %v7419_v3  ;;  %v1849_v14 = vsel %vm1822_vm7, %v1816_v52, %v1359_v0  ;;  %v374_v52 = vld [vmem:[#allocation2 + $0x158] sm:$0xff] }
 0x259   : > { %v2265_v50 = vmax.f32 %v8239_v33, 0.0  ;;  %v2153_v37 = vpop.f32.mrb[13].mxu0  ;;  %6461 = vmatmul.mubr.bf16.gmra.mrb[24].mxu1 %v8411_v13  ;;  %v1850_v23 = vsel %vm1822_vm7, %v1817_v22, %v1361_v55 }
 0x25a   : > { %v2264_v57 = vmax.f32 %v2153_v37, 0.0 }
 0x25b   : > { %v7680_v53 = vpack.c.bf16 %v2265_v50, %v2265_v50  ;;  %v1487_v5 = vpop.permute.xlu0 %1486 }
 0x25c   : > { %v7679_v41 = vpack.c.bf16 %v2264_v57, %v2264_v57  ;;  %v1489_v24 = vpop.permute.xlu1 %1488  ;;  %v1882_v62 = vsel %vm1855_vm8, %v1849_v14, %v1487_v5 }
 0x25d   : > { %v2494_v4 = vshrl.u32 %v7680_v53, 16  ;;  %v2497_v7 = vshll.u32 %v7680_v53, 16  ;;  %v1883_v2 = vsel %vm1855_vm8, %v1850_v23, %v1489_v24  ;;  %v373_v24 = vld [vmem:[#allocation2 + $0x150] sm:$0xff] }
 0x25e   : > { %v2486_v27 = vshrl.u32 %v7679_v41, 16  ;;  %v2489_v21 = vshll.u32 %v7679_v41, 16 }
 0x25f   : > { %v2496_v63 = vrot.slane %v2494_v4, 7  ;;  %v1615_v54 = vpop.permute.xlu0 %1614 }
 0x260   : > { %v2488_v15 = vrot.slane %v2486_v27, 7  ;;  %v1915_v17 = vsel %vm1888_vm9, %v1882_v62, %v1615_v54  ;;  %v723_v12 = vpop.permute.xlu1 %722 }
 0x261   : > { %v2499_v43 = vor.u32 %v2497_v7, %v2496_v63  ;;  %v2501_v51 = vrot.slane %v2496_v63, 4  ;;  %8258 = vmatprep.mubr.msk.f32.mxu0 %vm1926_vm10, %v1915_v17  ;;  %v1686_v63 = vsel %vm170_vm0, %v373_v24, %v723_v12 }
 0x262   : > { %v2491_v59 = vor.u32 %v2489_v21, %v2488_v15  ;;  %v2492_v29 = vrot.slane %v2488_v15, 4 }
 0x263   : > { %v2756_v1 = vsel %vm9456_vm3, %v2501_v51, %v2755_v18  ;;  %v1617_v28 = vpop.permute.xlu0 %1616 }
 0x264   : > { %2757 = vst [vmem:[#allocation3 + $0x5c] sm:$0x1] %v2756_v1  ;;  %v2500_v30 = vsel %vm9466_vm2, %v2492_v29, %v2499_v43  ;;  %v2752_v32 = vsel %vm9448_vm12, %v2491_v59, %v2751_v26  ;;  %v1916_v38 = vsel %vm1888_vm9, %v1883_v2, %v1617_v28  ;;  %v725_v39 = vpop.permute.xlu1 %724 }
 0x265   : > { %2753 = vst [vmem:[#allocation3 + $0x54] sm:$0xf] %v2752_v32  ;;  %2754 = vst [vmem:[#allocation3 + $0x58] sm:$0xf] %v2500_v30  ;;  %8259 = vmatmul.mubr.msk.f32.gmra.mrb[26].mxu0 %vm1926_vm10, %v1916_v38  ;;  %v1687_v54 = vsel %vm170_vm0, %v374_v52, %v725_v39 }
 0x267   : > { %v851_v40 = vpop.permute.xlu0 %850 }
 0x268   : > { %v853_v48 = vpop.permute.xlu1 %852  ;;  %v1719_v6 = vsel %vm11639_vm14, %v1686_v63, %v851_v40 }
 0x269   : > { %v1720_v15 = vsel %vm11640_vm15, %v1687_v54, %v853_v48  ;;  %v2762_v48 = vld [vmem:[#allocation3 + $0x68] sm:$0x1] }
 0x26b   : > { %v979_v35 = vpop.permute.xlu0 %978  ;;  %v2988_v44 = vld [vmem:[#allocation3 + $0x5c] sm:$0x1] }
 0x26c   : > { %v981_v34 = vpop.permute.xlu1 %980  ;;  %v2986_v42 = vld [vmem:[#allocation3 + $0x54] sm:$0xf]  ;;  %v2987_v10 = vld [vmem:[#allocation3 + $0x58] sm:$0xf]  ;;  %v3204_v37 = vshll.u32 %v2988_v44, 16  ;;  %v1752_v21 = vsel %vm1723_vm4, %v1719_v6, %v979_v35 }
 0x26d   : > { %v3185_v16 = vshrl.u32 %v2986_v42, 16  ;;  %v3188_v45 = vshll.u32 %v2986_v42, 16  ;;  %v3194_v49 = vshll.u32 %v2987_v10, 16  ;;  %v3198_v0 = vshrl.u32 %v2987_v10, 16  ;;  %v8412_v47 = vld [vmem:[#allocation3 + $0x54] sm:$0xff]  }
 0x26e   : > { %v3206_v46 = vrot.slane %v3204_v37, 5  ;;  %v1753_v43 = vsel %vm1723_vm4, %v1720_v15, %v981_v34 }
 0x26f   : > { %v1107_v3 = vpop.permute.xlu0 %1106  ;;  %v3187_v55 = vrot.slane %v3185_v16, 4  ;;  %v3190_v33 = vrot.slane %v3188_v45, 5  ;;  %v3196_v13 = vrot.slane %v3194_v49, 5  ;;  %v3200_v50 = vrot.slane %v3198_v0, 4  ;;  %v2758_v49 = vld [vmem:[#allocation3 + $0x60] sm:$0xf] }
 0x270   : > { %v1109_v56 = vpop.permute.xlu1 %1108  ;;  %v1785_v51 = vsel %vm1756_vm5, %v1752_v21, %v1107_v3 }
 0x271   : > { %v3191_v58 = vor.u32 %v3190_v33, %v3187_v55  ;;  %v3201_v8 = vor.u32 %v3200_v50, %v3196_v13  ;;  %v1786_v23 = vsel %vm1756_vm5, %v1753_v43, %v1109_v56 }
 0x273   : > { %v1235_v57 = vpop.permute.xlu0 %1234  ;;  %v3192_v11 = vrot.slane %v3191_v58, 4  ;;  %v3202_v5 = vrot.slane %v3201_v8, 4  ;;  %v8444_v58 = vld [vmem:[%s11607_s2 + $0x140] sm:$0xff]  }
 0x274   : > { %v1237_v53 = vpop.permute.xlu1 %1236  ;;  %v1818_v59 = vsel %vm1789_vm6, %v1785_v51, %v1235_v57  ;;  %v8445_v8 = vld [vmem:[%s11607_s2 + $0x100] sm:$0xff]   ;;  %7961 = vmatprep.subr.bf16.mxu1 %v8444_v58 }
 0x275   : > { %v3197_v41 = vsel %vm9225_vm13, %v3192_v11, %v3196_v13  ;;  %v3207_v60 = vsel %vm9225_vm13, %v3202_v5, %v3206_v46  ;;  %v1819_v1 = vsel %vm1789_vm6, %v1786_v23, %v1237_v53  ;;  %7962 = vmatpush3.bf16.msra.mxu1 %v8445_v8  ;;  %v8510_v53 = vld [vmem:[#allocation2 + $0x168] sm:$0xff]  ;;  %v8511_v46 = vld [vmem:[#allocation2 + $0x170] sm:$0xff] }
 0x276   : > { %v7420_v61 = vcombine.low %v3197_v41, %v3207_v60 }
 0x277   : > { %v1363_v4 = vpop.permute.xlu0 %1362 }
 0x278   : > { %v1365_v14 = vpop.permute.xlu1 %1364  ;;  %v8242_v27 = vpop.f32.mrb[14].mxu0  ;;  %6468 = vmatprep.mubr.bf16.mxu1 %v7420_v61  ;;  %v1851_v2 = vsel %vm1822_vm7, %v1818_v59, %v1363_v4 }
 0x279   : > { %v2267_v7 = vmax.f32 %v8242_v27, 0.0  ;;  %v2163_v62 = vpop.f32.mrb[15].mxu0  ;;  %6469 = vmatmul.mubr.bf16.gmra.mrb[28].mxu1 %v8412_v47  ;;  %v1852_v30 = vsel %vm1822_vm7, %v1819_v1, %v1365_v14 }
 0x27a   : > { %v2266_v18 = vmax.f32 %v2163_v62, 0.0 }
 0x27b   : > { %v7682_v17 = vpack.c.bf16 %v2267_v7, %v2267_v7  ;;  %v1491_v22 = vpop.permute.xlu0 %1490 }
 0x27c   : > { %v7681_v12 = vpack.c.bf16 %v2266_v18, %v2266_v18  ;;  %v1493_v26 = vpop.permute.xlu1 %1492  ;;  %v1884_v39 = vsel %vm1855_vm8, %v1851_v2, %v1491_v22  ;;  %v8446_v2 = vld [vmem:[%s11607_s2 + $0x148] sm:$0xff]  }
 0x27d   : > { %v2511_v29 = vshrl.u32 %v7682_v17, 16  ;;  %v2514_v38 = vshll.u32 %v7682_v17, 16  ;;  %v1885_v42 = vsel %vm1855_vm8, %v1852_v30, %v1493_v26  ;;  %7963 = vmatprep.subr.bf16.mxu1 %v8446_v2  ;;  %v8430_v2 = vld [vmem:[#allocation3 + $0xc] sm:$0xff]  }
 0x27e   : > { %v2503_v28 = vshrl.u32 %v7681_v12, 16  ;;  %v2506_v34 = vshll.u32 %v7681_v12, 16 }
 0x27f   : > { %v2513_v32 = vrot.slane %v2511_v29, 7  ;;  %v1619_v40 = vpop.permute.xlu0 %1618 }
 0x280   : > { %v2505_v35 = vrot.slane %v2503_v28, 7  ;;  %v1917_v10 = vsel %vm1888_vm9, %v1884_v39, %v1619_v40  ;;  %v1621_v44 = vpop.permute.xlu1 %1620  ;;  %v8447_v28 = vld [vmem:[%s11607_s2 + $0x108] sm:$0xff]  }
 0x281   : > { %v2516_v16 = vor.u32 %v2514_v38, %v2513_v32  ;;  %v2518_v45 = vrot.slane %v2513_v32, 4  ;;  %v1918_v0 = vsel %vm1888_vm9, %v1885_v42, %v1621_v44  ;;  %8261 = vmatprep.mubr.msk.f32.mxu0 %vm1926_vm10, %v1917_v10  ;;  %v3481_v42 = vld [vmem:[#allocation3 + $0x4] sm:$0xf]  ;;  %7964 = vmatpush3.bf16.msra.mxu1 %v8447_v28 }
 0x282   : > { %v2508_v3 = vor.u32 %v2506_v34, %v2505_v35  ;;  %v2509_v55 = vrot.slane %v2505_v35, 4  ;;  %8262 = vmatmul.mubr.msk.f32.gmra.mrb[28].mxu0 %vm1926_vm10, %v1918_v0 }
 0x283   : > { %v2763_v33 = vsel %vm9456_vm3, %v2518_v45, %v2762_v48  ;;  %v727_v13 = vpop.permute.xlu0 %726 }
 0x284   : > { %2764 = vst [vmem:[#allocation3 + $0x68] sm:$0x1] %v2763_v33  ;;  %v2517_v56 = vsel %vm9466_vm2, %v2509_v55, %v2516_v16  ;;  %v2759_v50 = vsel %vm9448_vm12, %v2508_v3, %v2758_v49  ;;  %v729_v37 = vpop.permute.xlu1 %728  ;;  %v1688_v5 = vsel %vm170_vm0, %v8510_v53, %v727_v13  ;;  %v3480_v3 = vld [vmem:[#allocation3] sm:$0xe]  ;;  %v3581_v55 = vrot.slane %v3481_v42, 5 }
 0x285   : > { %2760 = vst [vmem:[#allocation3 + $0x60] sm:$0xf] %v2759_v50  ;;  %2761 = vst [vmem:[#allocation3 + $0x64] sm:$0xf] %v2517_v56  ;;  %v1689_v41 = vsel %vm170_vm0, %v8511_v46, %v729_v37  ;;  %v3482_v37 = vld [vmem:[#allocation3 + $0x8] sm:$0x1] }
 0x286   : > { %vm3576_vm0 = vcmask 1042432   ;;  %v7429_v53 = vrot.slane %v3480_v3, 9  ;;  %v3487_v42 = vld [vmem:[#allocation3 + $0x1c] sm:$0xf] }
 0x287   : > { %v855_v57 = vpop.permute.xlu0 %854  ;;  %v3595_v3 = vrot.slane %v3487_v42, 5  ;;  %v3493_v42 = vld [vmem:[#allocation3 + $0x34] sm:$0xf] }
 0x288   : > { %v857_v11 = vpop.permute.xlu1 %856  ;;  %v1721_v7 = vsel %vm11631_vm1, %v1688_v5, %v855_v57 }
 0x289   : > { %v1722_v62 = vsel %vm11641_vm11, %v1689_v41, %v857_v11 }
 0x28b   : > { %v983_v24 = vpop.permute.xlu0 %982  ;;  %v2991_v61 = vld [vmem:[#allocation3 + $0x68] sm:$0x1] }
 0x28c   : > { %v985_v60 = vpop.permute.xlu1 %984  ;;  %v2989_v52 = vld [vmem:[#allocation3 + $0x60] sm:$0xf]  ;;  %v2990_v4 = vld [vmem:[#allocation3 + $0x64] sm:$0xf]  ;;  %v7759_v14 = vpop.f32.mrb[4].mxu1  ;;  %v3228_v23 = vshll.u32 %v2991_v61, 16  ;;  %v1754_v59 = vsel %vm1723_vm4, %v1721_v7, %v983_v24 }
 0x28d   : > { %v3209_v27 = vshrl.u32 %v2989_v52, 16  ;;  %v3212_v47 = vshll.u32 %v2989_v52, 16  ;;  %v3218_v63 = vshll.u32 %v2990_v4, 16  ;;  %v7760_v54 = vpop.f32.mrb[5].mxu1  ;;  %v3222_v6 = vshrl.u32 %v2990_v4, 16  ;;  %v8423_v50 = vld [vmem:[#allocation3 + $0x60] sm:$0xff]  }
 0x28e   : > { %v9959_v18 = vadd.f32 %v7760_v54, %v7759_v14  ;;  %v7762_v15 = vpop.f32.mrb[6].mxu1  ;;  %v1755_v30 = vsel %vm1723_vm4, %v1722_v62, %v985_v60  ;;  %v3230_v34 = vrot.slane %v3228_v23, 5  ;;  %vm3577_vm4 = vcmask 1046532   ;;  %v3484_v7 = vld [vmem:[#allocation3 + $0x10] sm:$0xf] }
 0x28f   : > { %v1111_v21 = vpop.permute.xlu0 %1110  ;;  %v3211_v17 = vrot.slane %v3209_v27, 4  ;;  %v3214_v22 = vrot.slane %v3212_v47, 5  ;;  %v3220_v43 = vrot.slane %v3218_v63, 5  ;;  %v7763_v51 = vpop.f32.mrb[7].mxu1  ;;  %v3224_v26 = vrot.slane %v3222_v6, 4 }
 0x290   : > { %v1113_v12 = vpop.permute.xlu1 %1112  ;;  %v9962_v29 = vadd.f32 %v7763_v51, %v7762_v15  ;;  %v1787_v40 = vsel %vm1756_vm5, %v1754_v59, %v1111_v21  ;;  %v3583_v24 = vrot.slane %v3581_v55, 4  ;;  %v3584_v60 = vrot.slane %v3482_v37, 5  ;;  %v2765_v59 = vld [vmem:[#allocation3 + $0x6c] sm:$0xf] }
 0x291   : > { %v3215_v1 = vor.u32 %v3214_v22, %v3211_v17  ;;  %v3225_v32 = vor.u32 %v3224_v26, %v3220_v43  ;;  %v1788_v10 = vsel %vm1756_vm5, %v1755_v30, %v1113_v12  ;;  %vm9984_vm5 = vmor %vm3576_vm0, %vm3577_vm4  ;;  %v2769_v17 = vld [vmem:[#allocation3 + $0x74] sm:$0x1]  ;;  %v3588_v28 = vrot.slane %v3484_v7, 5 }
 0x292   : > { %v3582_v15 = vsel %vm9984_vm5, %v7429_v53, %v3581_v55  ;;  %v3585_v21 = vsel %vm9984_vm5, %v3583_v24, %v3584_v60  ;;  %v3488_v55 = vld [vmem:[#allocation3 + $0x20] sm:$0x1]  ;;  %v3490_v53 = vld [vmem:[#allocation3 + $0x28] sm:$0xf] }
 0x293   : > { %v1239_v38 = vpop.permute.xlu0 %1238  ;;  %v3216_v39 = vrot.slane %v3215_v1, 4  ;;  %v3226_v35 = vrot.slane %v3225_v32, 4  ;;  %v3598_v37 = vrot.slane %v3488_v55, 5 }
 0x294   : > { %v1241_v48 = vpop.permute.xlu1 %1240  ;;  %v1820_v45 = vsel %vm1789_vm6, %v1787_v40, %v1239_v38  ;;  %v7445_v38 = vcombine.low %v3582_v15, %v3585_v21 }
 0x295   : > { %v3221_v44 = vsel %vm9225_vm13, %v3216_v39, %v3220_v43  ;;  %v3231_v16 = vsel %vm9225_vm13, %v3226_v35, %v3230_v34  ;;  %v1821_v33 = vsel %vm1789_vm6, %v1788_v10, %v1241_v48  ;;  %v3483_v35 = vld [vmem:[#allocation3 + $0xc] sm:$0xe]  ;;  %v3485_v34 = vld [vmem:[#allocation3 + $0x14] sm:$0x1]  ;;  %v8431_v10 = vld [vmem:[#allocation3 + $0x18] sm:$0xff]  }
 0x296   : > { %v7421_v0 = vcombine.low %v3221_v44, %v3231_v16  ;;  %v3590_v44 = vrot.slane %v3588_v28, 4  ;;  %v8450_v16 = vld [vmem:[%s11607_s2 + $0x150] sm:$0xff]  }
 0x297   : > { %v1367_v49 = vpop.permute.xlu0 %1366  ;;  %7965 = vmatprep.subr.bf16.mxu1 %v8450_v16 }
 0x298   : > { %v1369_v13 = vpop.permute.xlu1 %1368  ;;  %v8245_v56 = vpop.f32.mrb[16].mxu0  ;;  %6476 = vmatprep.mubr.bf16.mxu1 %v7421_v0  ;;  %v1853_v57 = vsel %vm1822_vm7, %v1820_v45, %v1367_v49  ;;  %v8451_v45 = vld [vmem:[%s11607_s2 + $0x110] sm:$0xff]   ;;  %v7430_v49 = vrot.slane %v3483_v35, 9  ;;  %v3591_v0 = vrot.slane %v3485_v34, 5 }
 0x299   : > { %v2269_v58 = vmax.f32 %v8245_v56, 0.0  ;;  %v2173_v8 = vpop.f32.mrb[17].mxu0  ;;  %6477 = vmatmul.mubr.bf16.gmra.mrb[32].mxu1 %v8423_v50  ;;  %v1854_v5 = vsel %vm1822_vm7, %v1821_v33, %v1369_v13  ;;  %v3486_v56 = vld [vmem:[#allocation3 + $0x18] sm:$0xe]  ;;  %v3597_v50 = vrot.slane %v3595_v3, 4 }
 0x29a   : > { %v2268_v11 = vmax.f32 %v2173_v8, 0.0  ;;  %7966 = vmatpush3.bf16.msra.mxu1 %v8451_v45  ;;  %v3592_v33 = vsel %vm9984_vm5, %v3590_v44, %v3591_v0  ;;  %v3589_v13 = vsel %vm9984_vm5, %v7430_v49, %v3588_v28 }
 0x29b   : > { %v7684_v46 = vpack.c.bf16 %v2269_v58, %v2269_v58  ;;  %v1495_v41 = vpop.permute.xlu0 %1494  ;;  %v7446_v58 = vcombine.low %v3589_v13, %v3592_v33  ;;  %v3609_v33 = vrot.slane %v3493_v42, 5  ;;  %v3500_v42 = vld [vmem:[#allocation3 + $0x50] sm:$0x1] }
 0x29c   : > { %v7683_v52 = vpack.c.bf16 %v2268_v11, %v2268_v11  ;;  %v1497_v4 = vpop.permute.xlu1 %1496  ;;  %v1886_v14 = vsel %vm1855_vm8, %v1853_v57, %v1495_v41 }
 0x29d   : > { %v2528_v61 = vshrl.u32 %v7684_v46, 16  ;;  %v1887_v47 = vsel %vm1855_vm8, %v1854_v5, %v1497_v4  ;;  %v2531_v54 = vshll.u32 %v7684_v46, 16  ;;  %v8432_v46 = vld [vmem:[#allocation3 + $0x24] sm:$0xff]  }
 0x29e   : > { %v2520_v27 = vshrl.u32 %v7683_v52, 16  ;;  %v2523_v43 = vshll.u32 %v7683_v52, 16 }
 0x29f   : > { %v2530_v62 = vrot.slane %v2528_v61, 7  ;;  %v1623_v6 = vpop.permute.xlu0 %1622  ;;  %v7431_v61 = vrot.slane %v3486_v56, 9 }
 0x2a0   : > { %v2522_v22 = vrot.slane %v2520_v27, 7  ;;  %v1919_v51 = vsel %vm1888_vm9, %v1886_v14, %v1623_v6  ;;  %v1625_v12 = vpop.permute.xlu1 %1624 }
 0x2a1   : > { %v2533_v26 = vor.u32 %v2531_v54, %v2530_v62  ;;  %v2535_v23 = vrot.slane %v2530_v62, 4  ;;  %v1920_v1 = vsel %vm1888_vm9, %v1887_v47, %v1625_v12  ;;  %8264 = vmatprep.mubr.msk.f32.mxu0 %vm1926_vm10, %v1919_v51  ;;  %v8452_v51 = vld [vmem:[%s11607_s2 + $0x158] sm:$0xff]   ;;  %v8453_v12 = vld [vmem:[%s11607_s2 + $0x1c0] sm:$0xff]  }
 0x2a2   : > { %v2525_v30 = vor.u32 %v2523_v43, %v2522_v22  ;;  %v2526_v32 = vrot.slane %v2522_v22, 4  ;;  %8265 = vmatmul.mubr.msk.f32.gmra.mrb[30].mxu0 %vm1926_vm10, %v1920_v1  ;;  %v3602_v43 = vrot.slane %v3490_v53, 5  ;;  %v3596_v1 = vsel %vm9984_vm5, %v7431_v61, %v3595_v3  ;;  %7967 = vmatprep.subr.bf16.mxu1 %v8452_v51  ;;  %v8435_v53 = vld [vmem:[#allocation3 + $0x3c] sm:$0xff]  }
 0x2a3   : > { %v2770_v39 = vsel %vm9456_vm3, %v2535_v23, %v2769_v17  ;;  %6573 = vmatprep.mubr.bf16.mxu0 %v8430_v2  ;;  %v3599_v17 = vsel %vm9984_vm5, %v3597_v50, %v3598_v37  ;;  %v8454_v23 = vld [vmem:[%s11607_s2 + $0x118] sm:$0xff]   ;;  %8073 = vmatprep.subr.bf16.mxu0 %v8453_v12  ;;  %v2776_v61 = vld [vmem:[#allocation3 + $0x80] sm:$0x1]  ;;  %v3497_v12 = vld [vmem:[#allocation3 + $0x44] sm:$0x1] }
 0x2a4   : > { %2771 = vst [vmem:[#allocation3 + $0x74] sm:$0x1] %v2770_v39  ;;  %v2534_v40 = vsel %vm9466_vm2, %v2526_v32, %v2533_v26  ;;  %v2766_v48 = vsel %vm9448_vm12, %v2525_v30, %v2765_v59  ;;  %v8455_v59 = vld [vmem:[%s11607_s2 + $0x180] sm:$0xff]   ;;  %v7447_v28 = vcombine.low %v3596_v1, %v3599_v17  ;;  %v3491_v39 = vld [vmem:[#allocation3 + $0x2c] sm:$0x1]  ;;  %7968 = vmatpush3.bf16.msra.mxu1 %v8454_v23  ;;  %v3604_v35 = vrot.slane %v3602_v43, 4 }
 0x2a5   : > { %2767 = vst [vmem:[#allocation3 + $0x6c] sm:$0xf] %v2766_v48  ;;  %2768 = vst [vmem:[#allocation3 + $0x70] sm:$0xf] %v2534_v40  ;;  %v8433_v40 = vld [vmem:[#allocation3 + $0x30] sm:$0xff]   ;;  %v3605_v16 = vrot.slane %v3491_v39, 5 }
 0x2a6   : > { %6574 = vmatmul.mubr.bf16.vlgmr.msra.gmra.mrb[32].mxu0 %v7445_v38  ;;  %v3489_v38 = vld [vmem:[#allocation3 + $0x24] sm:$0xe]  ;;  %v8436_v1 = vld [vmem:[#allocation3 + $0x48] sm:$0xff]   ;;  %v8460_v39 = vld [vmem:[%s11607_s2 + $0x120] sm:$0xff]  }
 0x2a7   : > { %6581 = vmatprep.mubr.bf16.mxu0 %v8431_v10  ;;  %8074 = vmatpush3.bf16.msra.mxu0 %v8455_v59  ;;  %v7432_v44 = vrot.slane %v3489_v38, 9  ;;  %v3606_v55 = vsel %vm9984_vm5, %v3604_v35, %v3605_v16  ;;  %v8459_v38 = vld [vmem:[%s11607_s2 + $0x1c8] sm:$0xff]   ;;  %v3619_v35 = vrot.slane %v3497_v12, 5  ;;  %v3498_v16 = vld [vmem:[#allocation3 + $0x48] sm:$0xe] }
 0x2a8   : > { %8075 = vmatprep.subr.bf16.mxu0 %v8459_v38  ;;  %v3505_v38 = vld [vmem:[#allocation3 + $0x64] sm:$0xf] }
 0x2a9   : > { %v3603_v50 = vsel %vm9984_vm5, %v7432_v44, %v3602_v43 }
 0x2ab   : > { %v2994_v11 = vld [vmem:[#allocation3 + $0x74] sm:$0x1] }
 0x2ac   : > { %v2992_v8 = vld [vmem:[#allocation3 + $0x6c] sm:$0xf]  ;;  %v2993_v57 = vld [vmem:[#allocation3 + $0x70] sm:$0xf]  ;;  %v7765_v5 = vpop.f32.mrb[8].mxu1  ;;  %v3252_v15 = vshll.u32 %v2994_v11, 16 }
 0x2ad   : > { %v3233_v41 = vshrl.u32 %v2992_v8, 16  ;;  %v3236_v24 = vshll.u32 %v2992_v8, 16  ;;  %v3242_v60 = vshll.u32 %v2993_v57, 16  ;;  %v3246_v52 = vshrl.u32 %v2993_v57, 16  ;;  %v7766_v4 = vpop.f32.mrb[9].mxu1  ;;  %v8434_v49 = vld [vmem:[#allocation3 + $0x6c] sm:$0xff]  }
 0x2ae   : > { %6582 = vmatmul.mubr.bf16.gmra.mrb[36].mxu0 %v7446_v58  ;;  %v10012_v14 = vadd.f32 %v7766_v4, %v7765_v5  ;;  %v7768_v27 = vpop.f32.mrb[10].mxu1  ;;  %v3254_v32 = vrot.slane %v3252_v15, 5  ;;  %v7448_v58 = vcombine.low %v3603_v50, %v3606_v55  ;;  %v3492_v8 = vld [vmem:[#allocation3 + $0x30] sm:$0xe]  ;;  %v3494_v57 = vld [vmem:[#allocation3 + $0x38] sm:$0x1] }
 0x2af   : > { %6589 = vmatprep.mubr.bf16.mxu0 %v8432_v46  ;;  %v3235_v47 = vrot.slane %v3233_v41, 4  ;;  %v3238_v7 = vrot.slane %v3236_v24, 5  ;;  %v3244_v62 = vrot.slane %v3242_v60, 5  ;;  %v7769_v54 = vpop.f32.mrb[11].mxu1  ;;  %v3248_v6 = vrot.slane %v3246_v52, 4  ;;  %v8437_v50 = vld [vmem:[#allocation3 + $0x54] sm:$0xff]  }
 0x2b0   : > { %v10014_v21 = vadd.f32 %v7769_v54, %v7768_v27  ;;  %v3611_v5 = vrot.slane %v3609_v33, 4  ;;  %v3496_v41 = vld [vmem:[#allocation3 + $0x40] sm:$0xf]  ;;  %v7433_v52 = vrot.slane %v3492_v8, 9  ;;  %v3612_v4 = vrot.slane %v3494_v57, 5 }
 0x2b1   : > { %v3239_v22 = vor.u32 %v3238_v7, %v3235_v47  ;;  %v3249_v26 = vor.u32 %v3248_v6, %v3244_v62  ;;  %v2772_v54 = vld [vmem:[#allocation3 + $0x78] sm:$0xf]  ;;  %v3616_v15 = vrot.slane %v3496_v41, 5 }
 0x2b2   : > { %v3613_v6 = vsel %vm9984_vm5, %v3611_v5, %v3612_v4  ;;  %v3610_v51 = vsel %vm9984_vm5, %v7433_v52, %v3609_v33 }
 0x2b3   : > { %v3240_v2 = vrot.slane %v3239_v22, 4  ;;  %v3250_v30 = vrot.slane %v3249_v26, 4  ;;  %v7449_v59 = vcombine.low %v3610_v51, %v3613_v6  ;;  %v8463_v6 = vld [vmem:[%s11607_s2 + $0x1d0] sm:$0xff]  }
 0x2b5   : > { %v3245_v48 = vsel %vm9225_vm13, %v3240_v2, %v3244_v62  ;;  %v3255_v34 = vsel %vm9225_vm13, %v3250_v30, %v3254_v32  ;;  %v3495_v2 = vld [vmem:[#allocation3 + $0x3c] sm:$0xe]  ;;  %v3618_v30 = vrot.slane %v3616_v15, 4  ;;  %v8458_v32 = vld [vmem:[%s11607_s2 + $0x160] sm:$0xff]  }
 0x2b6   : > { %6590 = vmatmul.mubr.bf16.gmra.mrb[40].mxu0 %v7447_v28  ;;  %v7422_v10 = vcombine.low %v3245_v48, %v3255_v34  ;;  %v3499_v28 = vld [vmem:[#allocation3 + $0x4c] sm:$0xf]  ;;  %v7434_v48 = vrot.slane %v3495_v2, 9  ;;  %7969 = vmatprep.subr.bf16.mxu1 %v8458_v32  ;;  %v8438_v2 = vld [vmem:[#allocation3 + $0x60] sm:$0xff]  }
 0x2b7   : > { %6597 = vmatprep.mubr.bf16.mxu0 %v8433_v40  ;;  %v8461_v40 = vld [vmem:[%s11607_s2 + $0x188] sm:$0xff]   ;;  %v3623_v34 = vrot.slane %v3499_v28, 5  ;;  %7970 = vmatpush3.bf16.msra.mxu1 %v8460_v39 }
 0x2b8   : > { %v8248_v45 = vpop.f32.mrb[18].mxu0  ;;  %6484 = vmatprep.mubr.bf16.mxu1 %v7422_v10  ;;  %v3620_v10 = vsel %vm9984_vm5, %v3618_v30, %v3619_v35  ;;  %8076 = vmatpush3.bf16.msra.mxu0 %v8461_v40  ;;  %v3617_v44 = vsel %vm9984_vm5, %v7434_v48, %v3616_v15 }
 0x2b9   : > { %v2271_v0 = vmax.f32 %v8248_v45, 0.0  ;;  %v2183_v3 = vpop.f32.mrb[19].mxu0  ;;  %6485 = vmatmul.mubr.bf16.gmra.mrb[36].mxu1 %v8434_v49  ;;  %v3625_v45 = vrot.slane %v3623_v34, 4  ;;  %v3626_v49 = vrot.slane %v3500_v42, 5  ;;  %8077 = vmatprep.subr.bf16.mxu0 %v8463_v6  ;;  %v8468_v6 = vld [vmem:[%s11607_s2 + $0x170] sm:$0xff]  }
 0x2ba   : > { %v2270_v13 = vmax.f32 %v2183_v3, 0.0 }
 0x2bb   : > { %v7686_v56 = vpack.c.bf16 %v2271_v0, %v2271_v0  ;;  %v7450_v0 = vcombine.low %v3617_v44, %v3620_v10 }
 0x2bc   : > { %v7685_v37 = vpack.c.bf16 %v2270_v13, %v2270_v13  ;;  %v3502_v13 = vld [vmem:[#allocation3 + $0x58] sm:$0xf] }
 0x2bd   : > { %v2545_v11 = vshrl.u32 %v7686_v56, 16  ;;  %v2548_v60 = vshll.u32 %v7686_v56, 16 }
 0x2be   : > { %v2537_v46 = vshrl.u32 %v7685_v37, 16  ;;  %6598 = vmatmul.mubr.bf16.gmra.mrb[44].mxu0 %v7448_v58  ;;  %v2540_v47 = vshll.u32 %v7685_v37, 16 }
 0x2bf   : > { %v2547_v24 = vrot.slane %v2545_v11, 7  ;;  %6605 = vmatprep.mubr.bf16.mxu0 %v8435_v53  ;;  %v7435_v53 = vrot.slane %v3498_v16, 9  ;;  %v3637_v16 = vrot.slane %v3505_v38, 5 }
 0x2c0   : > { %v2539_v27 = vrot.slane %v2537_v46, 7 }
 0x2c1   : > { %v2550_v7 = vor.u32 %v2548_v60, %v2547_v24  ;;  %v2552_v62 = vrot.slane %v2547_v24, 4 }
 0x2c2   : > { %v2542_v17 = vor.u32 %v2540_v47, %v2539_v27  ;;  %v2543_v22 = vrot.slane %v2539_v27, 4  ;;  %v3627_v47 = vsel %vm9984_vm5, %v3625_v45, %v3626_v49 }
 0x2c3   : > { %v2777_v43 = vsel %vm9456_vm3, %v2552_v62, %v2776_v61  ;;  %v3630_v62 = vrot.slane %v3502_v13, 5  ;;  %v3506_v13 = vld [vmem:[#allocation3 + $0x68] sm:$0x1] }
 0x2c4   : > { %2778 = vst [vmem:[#allocation3 + $0x80] sm:$0x1] %v2777_v43  ;;  %v2551_v26 = vsel %vm9466_vm2, %v2543_v22, %v2550_v7  ;;  %v2773_v23 = vsel %vm9448_vm12, %v2542_v17, %v2772_v54  ;;  %v8462_v54 = vld [vmem:[%s11607_s2 + $0x168] sm:$0xff]   ;;  %v8465_v22 = vld [vmem:[%s11607_s2 + $0x190] sm:$0xff]   ;;  %v3624_v43 = vsel %vm9984_vm5, %v7435_v53, %v3623_v34 }
 0x2c5   : > { %2774 = vst [vmem:[#allocation3 + $0x78] sm:$0xf] %v2773_v23  ;;  %2775 = vst [vmem:[#allocation3 + $0x7c] sm:$0xf] %v2551_v26  ;;  %v8464_v17 = vld [vmem:[%s11607_s2 + $0x128] sm:$0xff]   ;;  %7971 = vmatprep.subr.bf16.mxu1 %v8462_v54  ;;  %v7451_v12 = vcombine.low %v3624_v43, %v3627_v47  ;;  %8078 = vmatpush3.bf16.msra.mxu0 %v8465_v22  ;;  %v3632_v30 = vrot.slane %v3630_v62, 4 }
 0x2c6   : > { %6606 = vmatmul.mubr.bf16.gmra.mrb[48].mxu0 %v7449_v59  ;;  %v3501_v59 = vld [vmem:[#allocation3 + $0x54] sm:$0xe]  ;;  %7972 = vmatpush3.bf16.msra.mxu1 %v8464_v17  ;;  %v8470_v17 = vld [vmem:[%s11607_s2 + $0x130] sm:$0xff]  }
 0x2c7   : > { %6613 = vmatprep.mubr.bf16.mxu0 %v8436_v1  ;;  %v3503_v1 = vld [vmem:[#allocation3 + $0x5c] sm:$0x1]  ;;  %v7436_v40 = vrot.slane %v3501_v59, 9  ;;  %v3507_v59 = vld [vmem:[#allocation3 + $0x6c] sm:$0xe]  ;;  %7973 = vmatprep.subr.bf16.mxu1 %v8468_v6 }
 0x2c8   : > { %v3633_v48 = vrot.slane %v3503_v1, 5  ;;  %v3509_v1 = vld [vmem:[#allocation3 + $0x74] sm:$0x1] }
 0x2c9   : > { %v3647_v38 = vrot.slane %v3509_v1, 5 }
 0x2ca   : > { %v3634_v44 = vsel %vm9984_vm5, %v3632_v30, %v3633_v48  ;;  %7974 = vmatpush3.bf16.msra.mxu1 %v8470_v17 }
 0x2cb   : > { %v2997_v33 = vld [vmem:[#allocation3 + $0x80] sm:$0x1] }
 0x2cc   : > { %v2995_v3 = vld [vmem:[#allocation3 + $0x78] sm:$0xf]  ;;  %v2996_v55 = vld [vmem:[#allocation3 + $0x7c] sm:$0xf]  ;;  %v7771_v56 = vpop.f32.mrb[12].mxu1  ;;  %v3276_v61 = vshll.u32 %v2997_v33, 16 }
 0x2cd   : > { %v3257_v37 = vshrl.u32 %v2995_v3, 16  ;;  %v3260_v58 = vshll.u32 %v2995_v3, 16  ;;  %v3266_v8 = vshll.u32 %v2996_v55, 16  ;;  %v3270_v57 = vshrl.u32 %v2996_v55, 16  ;;  %v7772_v11 = vpop.f32.mrb[13].mxu1  ;;  %v8439_v34 = vld [vmem:[#allocation3 + $0x78] sm:$0xff]  }
 0x2ce   : > { %6614 = vmatmul.mubr.bf16.gmra.mrb[52].mxu0 %v7450_v0  ;;  %v10066_v5 = vadd.f32 %v7772_v11, %v7771_v56  ;;  %v7774_v46 = vpop.f32.mrb[14].mxu1  ;;  %v3278_v23 = vrot.slane %v3276_v61, 5  ;;  %v3631_v0 = vsel %vm9984_vm5, %v7436_v40, %v3630_v62  ;;  %v3504_v33 = vld [vmem:[#allocation3 + $0x60] sm:$0xe]  ;;  %v2779_v61 = vld [vmem:[#allocation3 + $0x84] sm:$0xf] }
 0x2cf   : > { %6621 = vmatprep.mubr.bf16.mxu0 %v8437_v50  ;;  %v3259_v41 = vrot.slane %v3257_v37, 4  ;;  %v3262_v24 = vrot.slane %v3260_v58, 5  ;;  %v3268_v60 = vrot.slane %v3266_v8, 5  ;;  %v7775_v52 = vpop.f32.mrb[15].mxu1  ;;  %v3272_v4 = vrot.slane %v3270_v57, 4  ;;  %v8440_v50 = vld [vmem:[#allocation3 + $0x6c] sm:$0xff]  }
 0x2d0   : > { %11644 = vst [vmem:[#allocation8_spill] sm:$0xff] %v10066_v5  ;;  %v10068_v27 = vadd.f32 %v7775_v52, %v7774_v46  ;;  %v7452_v55 = vcombine.low %v3631_v0, %v3634_v44  ;;  %v3639_v37 = vrot.slane %v3637_v16, 4  ;;  %v3508_v8 = vld [vmem:[#allocation3 + $0x70] sm:$0xf]  ;;  %v7437_v53 = vrot.slane %v3504_v33, 9 }
 0x2d1   : > { %v3263_v7 = vor.u32 %v3262_v24, %v3259_v41  ;;  %v3273_v15 = vor.u32 %v3272_v4, %v3268_v60  ;;  %v3640_v46 = vrot.slane %v3506_v13, 5  ;;  %v2783_v41 = vld [vmem:[#allocation3 + $0x8c] sm:$0x1]  ;;  %v3511_v30 = vld [vmem:[#allocation3 + $0x7c] sm:$0xf] }
 0x2d2   : > { %11645 = vst [vmem:[#allocation9_spill] sm:$0xff] %v10068_v27  ;;  %v3638_v43 = vsel %vm9984_vm5, %v7437_v53, %v3637_v16  ;;  %v3512_v48 = vld [vmem:[#allocation3 + $0x80] sm:$0x1]  ;;  %v2807_v5 = vld [vmem:[#allocation3 + $0xb4] sm:$0xf] }
 0x2d3   : > { %v3264_v51 = vrot.slane %v3263_v7, 4  ;;  %v3274_v26 = vrot.slane %v3273_v15, 4  ;;  %v3641_v47 = vsel %vm9984_vm5, %v3639_v37, %v3640_v46  ;;  %v3644_v7 = vrot.slane %v3508_v8, 5  ;;  %v8469_v15 = vld [vmem:[%s11607_s2 + $0x1d8] sm:$0xff]  }
 0x2d4   : > { %8079 = vmatprep.subr.bf16.mxu0 %v8469_v15 }
 0x2d5   : > { %v3269_v28 = vsel %vm9225_vm13, %v3264_v51, %v3268_v60  ;;  %v3279_v32 = vsel %vm9225_vm13, %v3274_v26, %v3278_v23  ;;  %v8471_v51 = vld [vmem:[%s11607_s2 + $0x198] sm:$0xff]   ;;  %v7453_v23 = vcombine.low %v3638_v43, %v3641_v47 }
 0x2d6   : > { %6622 = vmatmul.mubr.bf16.gmra.mrb[56].mxu0 %v7451_v12  ;;  %v7423_v39 = vcombine.low %v3269_v28, %v3279_v32  ;;  %v3646_v28 = vrot.slane %v3644_v7, 4  ;;  %v7438_v32 = vrot.slane %v3507_v59, 9 }
 0x2d7   : > { %6629 = vmatprep.mubr.bf16.mxu0 %v8438_v2  ;;  %v8441_v2 = vld [vmem:[#allocation3 + $0x78] sm:$0xff]   ;;  %8080 = vmatpush3.bf16.msra.mxu0 %v8471_v51 }
 0x2d8   : > { %v8251_v35 = vpop.f32.mrb[20].mxu0  ;;  %6492 = vmatprep.mubr.bf16.mxu1 %v7423_v39  ;;  %v3510_v39 = vld [vmem:[#allocation3 + $0x78] sm:$0xe]  ;;  %v3648_v40 = vsel %vm9984_vm5, %v3646_v28, %v3647_v38 }
 0x2d9   : > { %v2273_v42 = vmax.f32 %v8251_v35, 0.0  ;;  %v2193_v10 = vpop.f32.mrb[21].mxu0  ;;  %6493 = vmatmul.mubr.bf16.gmra.mrb[40].mxu1 %v8439_v34  ;;  %v3651_v35 = vrot.slane %v3511_v30, 5  ;;  %v3645_v34 = vsel %vm9984_vm5, %v7438_v32, %v3644_v7 }
 0x2da   : > { %v2272_v45 = vmax.f32 %v2193_v10, 0.0  ;;  %v7454_v44 = vcombine.low %v3645_v34, %v3648_v40  ;;  %v2790_v34 = vld [vmem:[#allocation3 + $0x98] sm:$0x1] }
 0x2db   : > { %v7688_v49 = vpack.c.bf16 %v2273_v42, %v2273_v42  ;;  %v7439_v42 = vrot.slane %v3510_v39, 9  ;;  %v3653_v0 = vrot.slane %v3651_v35, 4 }
 0x2dc   : > { %v7687_v3 = vpack.c.bf16 %v2272_v45, %v2272_v45  ;;  %v3654_v45 = vrot.slane %v3512_v48, 5 }
 0x2dd   : > { %v2562_v56 = vshrl.u32 %v7688_v49, 16  ;;  %v2565_v11 = vshll.u32 %v7688_v49, 16  ;;  %v3652_v6 = vsel %vm9984_vm5, %v7439_v42, %v3651_v35 }
 0x2de   : > { %v2554_v58 = vshrl.u32 %v7687_v3, 16  ;;  %6630 = vmatmul.mubr.bf16.gmra.mrb[60].mxu0 %v7452_v55  ;;  %v2557_v60 = vshll.u32 %v7687_v3, 16 }
 0x2df   : > { %v2564_v57 = vrot.slane %v2562_v56, 7  ;;  %6637 = vmatprep.mubr.bf16.mxu0 %v8440_v50 }
 0x2e0   : > { %v2556_v24 = vrot.slane %v2554_v58, 7 }
 0x2e1   : > { %v2567_v52 = vor.u32 %v2565_v11, %v2564_v57  ;;  %v2569_v4 = vrot.slane %v2564_v57, 4 }
 0x2e2   : > { %v2559_v62 = vor.u32 %v2557_v60, %v2556_v24  ;;  %v2560_v54 = vrot.slane %v2556_v24, 4  ;;  %v8473_v60 = vld [vmem:[%s11607_s2 + $0x178] sm:$0xff]  }
 0x2e3   : > { %v2784_v22 = vsel %vm9456_vm3, %v2569_v4, %v2783_v41  ;;  %v3655_v4 = vsel %vm9984_vm5, %v3653_v0, %v3654_v45  ;;  %7975 = vmatprep.subr.bf16.mxu1 %v8473_v60  ;;  %v2786_v45 = vld [vmem:[#allocation3 + $0x90] sm:$0xf] }
 0x2e4   : > { %2785 = vst [vmem:[#allocation3 + $0x8c] sm:$0x1] %v2784_v22  ;;  %v2568_v12 = vsel %vm9466_vm2, %v2560_v54, %v2567_v52  ;;  %v2780_v26 = vsel %vm9448_vm12, %v2559_v62, %v2779_v61  ;;  %v8474_v61 = vld [vmem:[%s11607_s2 + $0x1e0] sm:$0xff]   ;;  %v8475_v62 = vld [vmem:[%s11607_s2 + $0x138] sm:$0xff]   ;;  %v7455_v15 = vcombine.low %v3652_v6, %v3655_v4 }
 0x2e5   : > { %2781 = vst [vmem:[#allocation3 + $0x84] sm:$0xf] %v2780_v26  ;;  %2782 = vst [vmem:[#allocation3 + $0x88] sm:$0xf] %v2568_v12  ;;  %v8476_v54 = vld [vmem:[%s11607_s2 + $0x1a0] sm:$0xff]   ;;  %8081 = vmatprep.subr.bf16.mxu0 %v8474_v61  ;;  %7976 = vmatpush3.bf16.msra.mxu1 %v8475_v62 }
 0x2e6   : > { %6638 = vmatmul.mubr.bf16.gmra.mrb[64].mxu0 %v7453_v23 }
 0x2e7   : > { %6645 = vmatprep.mubr.bf16.mxu0 %v8441_v2  ;;  %8082 = vmatpush3.bf16.msra.mxu0 %v8476_v54 }
 0x2eb   : > { %v3000_v10 = vld [vmem:[#allocation3 + $0x8c] sm:$0x1] }
 0x2ec   : > { %v8442_v16 = vld [vmem:[#allocation3 + $0x84] sm:$0xff]   ;;  %v7777_v49 = vpop.f32.mrb[16].mxu1  ;;  %v3300_v57 = vshll.u32 %v3000_v10, 16 }
 0x2ed   : > { %v2998_v3 = vld [vmem:[#allocation3 + $0x84] sm:$0xf]  ;;  %v2999_v55 = vld [vmem:[#allocation3 + $0x88] sm:$0xf]  ;;  %v7778_v33 = vpop.f32.mrb[17].mxu1 }
 0x2ee   : > { %6646 = vmatmul.mubr.bf16.gmra.mrb[68].mxu0 %v7454_v44  ;;  %v3281_v13 = vshrl.u32 %v2998_v3, 16  ;;  %v3284_v56 = vshll.u32 %v2998_v3, 16  ;;  %v3290_v50 = vshll.u32 %v2999_v55, 16  ;;  %v3294_v37 = vshrl.u32 %v2999_v55, 16  ;;  %v7780_v8 = vpop.f32.mrb[18].mxu1  ;;  %v8443_v59 = vld [vmem:[#allocation3 + $0x84] sm:$0xff]  }
 0x2ef   : > { %v10120_v58 = vadd.f32 %v7778_v33, %v7777_v49  ;;  %6653 = vmatprep.mubr.bf16.mxu0 %v8442_v16  ;;  %v7781_v11 = vpop.f32.mrb[19].mxu1  ;;  %v3302_v43 = vrot.slane %v3300_v57, 5  ;;  %v3514_v35 = vld [vmem:[#allocation3 + $0x88] sm:$0xf]  ;;  %v8478_v55 = vld [vmem:[%s11607_s2 + $0x1e8] sm:$0xff]   ;;  %v10150_v33 = vld [vmem:[%s11607_s2 + $0x200] sm:$0xff]  }
 0x2f0   : > { %v3283_v53 = vrot.slane %v3281_v13, 4  ;;  %v3286_v46 = vrot.slane %v3284_v56, 5  ;;  %v3292_v41 = vrot.slane %v3290_v50, 5  ;;  %v3296_v24 = vrot.slane %v3294_v37, 4  ;;  %v8480_v13 = vld [vmem:[%s11607_s2 + $0x1a8] sm:$0xff]   ;;  %8083 = vmatprep.subr.bf16.mxu0 %v8478_v55  ;;  %8323 = vmatprep.subr.bf16.mxu1 %v10150_v33 }
 0x2f1   : > { %11646 = vst [vmem:[#allocation10_spill] sm:$0xff] %v10120_v58  ;;  %v10125_v52 = vadd.f32 %v7781_v11, %v7780_v8  ;;  %v3658_v3 = vrot.slane %v3514_v35, 5  ;;  %v3513_v8 = vld [vmem:[#allocation3 + $0x84] sm:$0xe]  ;;  %v3515_v57 = vld [vmem:[#allocation3 + $0x8c] sm:$0x1]  ;;  %8084 = vmatpush3.bf16.msra.mxu0 %v8480_v13 }
 0x2f2   : > { %v3287_v47 = vor.u32 %v3286_v46, %v3283_v53  ;;  %v3297_v7 = vor.u32 %v3296_v24, %v3292_v41  ;;  %v7440_v53 = vrot.slane %v3513_v8, 9  ;;  %v3661_v46 = vrot.slane %v3515_v57, 5  ;;  %v10187_v57 = vld [vmem:[#allocation3 + $0x10] sm:$0xf] }
 0x2f3   : > { %11647 = vst [vmem:[#allocation11_spill] sm:$0xff] %v10125_v52  ;;  %v3660_v11 = vrot.slane %v3658_v3, 4  ;;  %v2811_v52 = vld [vmem:[#allocation3 + $0xbc] sm:$0x1] }
 0x2f4   : > { %v3288_v17 = vrot.slane %v3287_v47, 4  ;;  %v3298_v22 = vrot.slane %v3297_v7, 4  ;;  %v3659_v4 = vsel %vm9984_vm5, %v7440_v53, %v3658_v3 }
 0x2f6   : > { %6654 = vmatmul.mubr.bf16.gmra.mrb[72].mxu0 %v7455_v15  ;;  %v3293_v51 = vsel %vm9225_vm13, %v3288_v17, %v3292_v41  ;;  %v3303_v12 = vsel %vm9225_vm13, %v3298_v22, %v3302_v43  ;;  %v3662_v41 = vsel %vm9984_vm5, %v3660_v11, %v3661_v46 }
 0x2f7   : > { %v7424_v26 = vcombine.low %v3293_v51, %v3303_v12  ;;  %v7456_v47 = vcombine.low %v3659_v4, %v3662_v41 }
 0x2f8   : > { %v8254_v23 = vpop.f32.mrb[22].mxu0 }
 0x2f9   : > { %v2275_v1 = vmax.f32 %v8254_v23, 0.0  ;;  %6500 = vmatprep.mubr.bf16.mxu1 %v7424_v26  ;;  %v2203_v2 = vpop.f32.mrb[23].mxu0 }
 0x2fa   : > { %v2274_v28 = vmax.f32 %v2203_v2, 0.0  ;;  %6501 = vmatmul.mubr.bf16.gmra.mrb[44].mxu1 %v8443_v59 }
 0x2fb   : > { %v7690_v30 = vpack.c.bf16 %v2275_v1, %v2275_v1 }
 0x2fc   : > { %v7689_v32 = vpack.c.bf16 %v2274_v28, %v2274_v28  ;;  %v8482_v28 = vld [vmem:[%s11607_s2 + $0x1f0] sm:$0xff]  }
 0x2fd   : > { %v2579_v38 = vshrl.u32 %v7690_v30, 16  ;;  %v2582_v48 = vshll.u32 %v7690_v30, 16  ;;  %8085 = vmatprep.subr.bf16.mxu0 %v8482_v28  ;;  %v10199_v28 = vld [vmem:[#allocation3 + $0x1c] sm:$0xf] }
 0x2fe   : > { %v2571_v39 = vshrl.u32 %v7689_v32, 16  ;;  %v2574_v10 = vshll.u32 %v7689_v32, 16 }
 0x2ff   : > { %v2581_v40 = vrot.slane %v2579_v38, 7 }
 0x300   : > { %v2573_v42 = vrot.slane %v2571_v39, 7  ;;  %v8484_v39 = vld [vmem:[%s11607_s2 + $0x1b0] sm:$0xff]  }
 0x301   : > { %v2584_v44 = vor.u32 %v2582_v48, %v2581_v40  ;;  %v2586_v16 = vrot.slane %v2581_v40, 4  ;;  %v8485_v40 = vld [vmem:[%s11607_s2 + $0x1f8] sm:$0xff]   ;;  %8086 = vmatpush3.bf16.msra.mxu0 %v8484_v39 }
 0x302   : > { %v2576_v49 = vor.u32 %v2574_v10, %v2573_v42  ;;  %v2577_v0 = vrot.slane %v2573_v42, 4  ;;  %v3915_v42 = vld [vmem:[#allocation3 + $0xc] sm:$0xf]  ;;  %8087 = vmatprep.subr.bf16.mxu0 %v8485_v40 }
 0x303   : > { %v2791_v56 = vsel %vm9456_vm3, %v2586_v16, %v2790_v34  ;;  %v8486_v10 = vld [vmem:[%s11607_s2 + $0x1b8] sm:$0xff]  }
 0x304   : > { %2792 = vst [vmem:[#allocation3 + $0x98] sm:$0x1] %v2791_v56  ;;  %v2585_v50 = vsel %vm9466_vm2, %v2577_v0, %v2584_v44  ;;  %v2787_v37 = vsel %vm9448_vm12, %v2576_v49, %v2786_v45  ;;  %v3964_v49 = vshrl.u32 %v3915_v42, 16  ;;  %v3967_v0 = vshll.u32 %v3915_v42, 16 }
 0x305   : > { %2788 = vst [vmem:[#allocation3 + $0x90] sm:$0xf] %v2787_v37  ;;  %2789 = vst [vmem:[#allocation3 + $0x94] sm:$0xf] %v2585_v50  ;;  %8088 = vmatpush3.bf16.msra.mxu0 %v8486_v10  ;;  %v3916_v50 = vld [vmem:[#allocation3 + $0x10] sm:$0xf] }
 0x306   : > { %8267 = vmatprep.subr.bf16.mxu0 %v10150_v33  ;;  %v3966_v11 = vrot.slane %v3964_v49, 4  ;;  %v3969_v53 = vrot.slane %v3967_v0, 5  ;;  %v3973_v41 = vshll.u32 %v3916_v50, 16  ;;  %v3918_v10 = vld [vmem:[#allocation3 + $0x18] sm:$0xf]  ;;  %v4532_v0 = vrot.slane %v10199_v28, 5 }
 0x307   : > { %v4432_v49 = vld [vmem:[#allocation3 + $0x20] sm:$0x1] }
 0x30b   : > { %v3003_v24 = vld [vmem:[#allocation3 + $0x98] sm:$0x1] }
 0x30c   : > { %v8448_v60 = vld [vmem:[#allocation3 + $0x90] sm:$0xff]   ;;  %v7783_v61 = vpop.f32.mrb[20].mxu1  ;;  %v3324_v12 = vshll.u32 %v3003_v24, 16  ;;  %v3977_v24 = vshrl.u32 %v3916_v50, 16  ;;  %v4861_v50 = vld [vmem:[#allocation3 + $0x1c] sm:$0xf] }
 0x30d   : > { %v3001_v7 = vld [vmem:[#allocation3 + $0x90] sm:$0xf]  ;;  %v3002_v62 = vld [vmem:[#allocation3 + $0x94] sm:$0xf]  ;;  %v7784_v54 = vpop.f32.mrb[21].mxu1  ;;  %6661 = vmatprep.mubr.bf16.mxu0 %v8448_v60 }
 0x30e   : > { %v3305_v6 = vshrl.u32 %v3001_v7, 16  ;;  %v3308_v15 = vshll.u32 %v3001_v7, 16  ;;  %v3314_v17 = vshll.u32 %v3002_v62, 16  ;;  %v3318_v22 = vshrl.u32 %v3002_v62, 16  ;;  %v7786_v51 = vpop.f32.mrb[22].mxu1  ;;  %6662 = vmatmul.mubr.bf16.gmra.mrb[76].mxu0 %v7456_v47  ;;  %v8449_v55 = vld [vmem:[#allocation3 + $0x90] sm:$0xff]  }
 0x30f   : > { %v10166_v43 = vadd.f32 %v7784_v54, %v7783_v61  ;;  %v7787_v26 = vpop.f32.mrb[23].mxu1  ;;  %v3326_v34 = vrot.slane %v3324_v12, 5  ;;  %v10189_v61 = vld [vmem:[#allocation3 + $0xc] sm:$0xe]  ;;  %v10191_v47 = vld [vmem:[#allocation3 + $0x14] sm:$0x1] }
 0x310   : > { %v3307_v23 = vrot.slane %v3305_v6, 4  ;;  %v3310_v59 = vrot.slane %v3308_v15, 5  ;;  %v3316_v1 = vrot.slane %v3314_v17, 5  ;;  %v3320_v2 = vrot.slane %v3318_v22, 4  ;;  %v10194_v54 = vld [vmem:[#allocation3 + $0x94] sm:$0xf] }
 0x311   : > { %11648 = vst [vmem:[#allocation12_spill] sm:$0xff] %v10166_v43  ;;  %v10171_v30 = vadd.f32 %v7787_v26, %v7786_v51  ;;  %v4525_v7 = vrot.slane %v10187_v57, 5  ;;  %v3917_v6 = vld [vmem:[#allocation3 + $0x14] sm:$0x1]  ;;  %v3970_v15 = vor.u32 %v3969_v53, %v3966_v11  ;;  %v2797_v17 = vld [vmem:[#allocation3 + $0xa4] sm:$0x1] }
 0x312   : > { %v3311_v32 = vor.u32 %v3310_v59, %v3307_v23  ;;  %v3321_v38 = vor.u32 %v3320_v2, %v3316_v1  ;;  %v10196_v12 = vrot.slane %v3973_v41, 5  ;;  %v3979_v26 = vrot.slane %v3977_v24, 4  ;;  %v4430_v11 = vld [vmem:[#allocation3 + $0x18] sm:$0xe]  ;;  %v3920_v41 = vld [vmem:[#allocation3 + $0x20] sm:$0x1] }
 0x313   : > { %11649 = vst [vmem:[#allocation13_spill] sm:$0xff] %v10171_v30  ;;  %v4528_v2 = vrot.slane %v10191_v47, 5  ;;  %v3665_v39 = vrot.slane %v10194_v54, 5  ;;  %v3983_v40 = vshll.u32 %v3917_v6, 16  ;;  %v10207_v42 = vrot.slane %v3970_v15, 4 }
 0x314   : > { %v3312_v48 = vrot.slane %v3311_v32, 4  ;;  %v3322_v35 = vrot.slane %v3321_v38, 4  ;;  %v3988_v53 = vshrl.u32 %v3918_v10, 16  ;;  %v4918_v54 = vshll.u32 %v4861_v50, 16 }
 0x315   : > { %v7494_v6 = vrot.slane %v4430_v11, 9  ;;  %v4534_v15 = vrot.slane %v4532_v0, 4 }
 0x316   : > { %v3317_v44 = vsel %vm9225_vm13, %v3312_v48, %v3316_v1  ;;  %v3327_v16 = vsel %vm9225_vm13, %v3322_v35, %v3326_v34  ;;  %v2793_v1 = vld [vmem:[#allocation3 + $0x9c] sm:$0xf]  ;;  %v7493_v35 = vrot.slane %v10189_v61, 9  ;;  %v4527_v34 = vrot.slane %v4525_v7, 4 }
 0x317   : > { %v7425_v45 = vcombine.low %v3317_v44, %v3327_v16 }
 0x318   : > { %v8257_v3 = vpop.f32.mrb[24].mxu0 }
 0x319   : > { %v2277_v13 = vmax.f32 %v8257_v3, 0.0  ;;  %6508 = vmatprep.mubr.bf16.mxu1 %v7425_v45  ;;  %v2213_v56 = vpop.f32.mrb[25].mxu0  ;;  %v3980_v45 = vor.u32 %v3979_v26, %v10196_v12  ;;  %v3919_v3 = vld [vmem:[#allocation3 + $0x1c] sm:$0xf]  ;;  %v3990_v26 = vrot.slane %v3988_v53, 4 }
 0x31a   : > { %v2276_v37 = vmax.f32 %v2213_v56, 0.0  ;;  %6509 = vmatmul.mubr.bf16.gmra.mrb[48].mxu1 %v8449_v55  ;;  %v4860_v55 = vld [vmem:[#allocation3 + $0x18] sm:$0xf]  ;;  %v3997_v24 = vshll.u32 %v3919_v3, 16 }
 0x31b   : > { %v7692_v8 = vpack.c.bf16 %v2277_v13, %v2277_v13  ;;  %v3516_v13 = vld [vmem:[#allocation3 + $0x90] sm:$0xe]  ;;  %v3518_v56 = vld [vmem:[#allocation3 + $0x98] sm:$0x1]  ;;  %v4912_v61 = vshll.u32 %v4860_v55, 16 }
 0x31c   : > { %v7691_v46 = vpack.c.bf16 %v2276_v37, %v2276_v37  ;;  %v3667_v37 = vrot.slane %v3665_v39, 4  ;;  %v7441_v47 = vrot.slane %v3516_v13, 9 }
 0x31d   : > { %v2596_v60 = vshrl.u32 %v7692_v8, 16  ;;  %v2599_v33 = vshll.u32 %v7692_v8, 16  ;;  %v3985_v8 = vrot.slane %v3983_v40, 5 }
 0x31e   : > { %v2588_v4 = vshrl.u32 %v7691_v46, 16  ;;  %v2591_v51 = vshll.u32 %v7691_v46, 16  ;;  %v3991_v46 = vshll.u32 %v3918_v10, 16 }
 0x31f   : > { %v2598_v62 = vrot.slane %v2596_v60, 7  ;;  %v4001_v60 = vshrl.u32 %v3919_v3, 16 }
 0x320   : > { %v2590_v22 = vrot.slane %v2588_v4, 7  ;;  %v4909_v4 = vshrl.u32 %v4860_v55, 16 }
 0x321   : > { %v2601_v23 = vor.u32 %v2599_v33, %v2598_v62  ;;  %v2603_v59 = vrot.slane %v2598_v62, 4  ;;  %v3668_v62 = vrot.slane %v3518_v56, 5  ;;  %v3981_v33 = vrot.slane %v3980_v45, 4 }
 0x322   : > { %v2593_v32 = vor.u32 %v2591_v51, %v2590_v22  ;;  %v2594_v38 = vrot.slane %v2590_v22, 4  ;;  %v4922_v22 = vshrl.u32 %v4861_v50, 16  ;;  %v10221_v40 = vrot.slane %v4909_v4, 4 }
 0x323   : > { %v2798_v48 = vsel %vm9456_vm3, %v2603_v59, %v2797_v17  ;;  %v4535_v17 = vrot.slane %v4432_v49, 5  ;;  %v3669_v51 = vsel %vm9984_vm5, %v3667_v37, %v3668_v62  ;;  %v4007_v59 = vshll.u32 %v3920_v41, 16 }
 0x324   : > { %2799 = vst [vmem:[#allocation3 + $0xa4] sm:$0x1] %v2798_v48  ;;  %v2602_v44 = vsel %vm9466_vm2, %v2594_v38, %v2601_v23  ;;  %v2794_v16 = vsel %vm9448_vm12, %v2593_v32, %v2793_v1  ;;  %v3993_v23 = vrot.slane %v3991_v46, 5  ;;  %v10219_v32 = vrot.slane %v3997_v24, 5 }
 0x325   : > { %2795 = vst [vmem:[#allocation3 + $0x9c] sm:$0xf] %v2794_v16  ;;  %2796 = vst [vmem:[#allocation3 + $0xa0] sm:$0xf] %v2602_v44  ;;  %v4003_v38 = vrot.slane %v4001_v60, 4  ;;  %v10223_v48 = vrot.slane %v4912_v61, 5  ;;  %v3666_v44 = vsel %vm9984_vm5, %v7441_v47, %v3665_v39  ;;  %v10231_v16 = vsel %vm9984_vm5, %v7493_v35, %v4525_v7 }
 0x326   : > { %v10235_v45 = vsel %vm9984_vm5, %v4527_v34, %v4528_v2  ;;  %v10237_v49 = vrot.slane %v4918_v54, 5  ;;  %v7457_v55 = vcombine.low %v3666_v44, %v3669_v51  ;;  %v3976_v39 = vsel %vm9225_vm13, %v10207_v42, %v10196_v12  ;;  %v4862_v51 = vld [vmem:[#allocation3 + $0x20] sm:$0x1] }
 0x327   : > { %v3986_v57 = vsel %vm9225_vm13, %v3981_v33, %v3985_v8  ;;  %v4924_v7 = vrot.slane %v4922_v22, 4  ;;  %v10249_v41 = vsel %vm9984_vm5, %v4534_v15, %v4535_v17  ;;  %v3994_v12 = vor.u32 %v3993_v23, %v3990_v26  ;;  %v3921_v17 = vld [vmem:[#allocation3 + $0x24] sm:$0xf] }
 0x328   : > { %v4004_v62 = vor.u32 %v4003_v38, %v10219_v32  ;;  %v10256_v22 = vcombine.low %v3976_v39, %v3986_v57  ;;  %v10262_v15 = vsel %vm9984_vm5, %v7494_v6, %v4532_v0  ;;  %v4915_v38 = vor.u32 %v10223_v48, %v10221_v40  ;;  %v4864_v57 = vld [vmem:[#allocation3 + $0x28] sm:$0xf] }
 0x329   : > { %v3995_v23 = vrot.slane %v3994_v12, 4  ;;  %v4925_v28 = vor.u32 %v4924_v7, %v10237_v49  ;;  %v4012_v0 = vshrl.u32 %v3921_v17, 16  ;;  %v4015_v6 = vshll.u32 %v3921_v17, 16 }
 0x32a   : > { %v4928_v39 = vshll.u32 %v4862_v51, 16  ;;  %v10276_v12 = vrot.slane %v4915_v38, 4 }
 0x32b   : > { %v3006_v1 = vld [vmem:[#allocation3 + $0xa4] sm:$0x1]  ;;  %v4000_v7 = vsel %vm9225_vm13, %v3995_v23, %v10219_v32  ;;  %v4014_v51 = vrot.slane %v4012_v0, 4  ;;  %v4017_v23 = vrot.slane %v4015_v6, 5 }
 0x32c   : > { %v8456_v10 = vld [vmem:[#allocation3 + $0x9c] sm:$0xff]   ;;  %v7789_v3 = vpop.f32.mrb[24].mxu1  ;;  %v3348_v46 = vshll.u32 %v3006_v1, 16  ;;  %v4009_v1 = vrot.slane %v4007_v59, 5  ;;  %v10282_v17 = vrot.slane %v4928_v39, 5  ;;  %v4921_v0 = vsel %vm9225_vm13, %v10276_v12, %v10237_v49 }
 0x32d   : > { %v3004_v13 = vld [vmem:[#allocation3 + $0x9c] sm:$0xf]  ;;  %v3005_v56 = vld [vmem:[#allocation3 + $0xa0] sm:$0xf]  ;;  %v7790_v35 = vpop.f32.mrb[25].mxu1  ;;  %6669 = vmatprep.mubr.bf16.mxu0 %v8456_v10 }
 0x32e   : > { %v3329_v50 = vshrl.u32 %v3004_v13, 16  ;;  %v3332_v2 = vshll.u32 %v3004_v13, 16  ;;  %v3338_v34 = vshll.u32 %v3005_v56, 16  ;;  %v3342_v37 = vshrl.u32 %v3005_v56, 16  ;;  %v7792_v53 = vpop.f32.mrb[26].mxu1  ;;  %6670 = vmatmul.mubr.bf16.gmra.mrb[80].mxu0 %v7457_v55 }
 0x32f   : > { %v10245_v11 = vadd.f32 %v7790_v35, %v7789_v3  ;;  %v7793_v42 = vpop.f32.mrb[27].mxu1  ;;  %v3922_v10 = vld [vmem:[#allocation3 + $0x28] sm:$0xf]  ;;  %v3350_v55 = vrot.slane %v3348_v46, 5  ;;  %v4863_v13 = vld [vmem:[#allocation3 + $0x24] sm:$0xf] }
 0x330   : > { %v3331_v24 = vrot.slane %v3329_v50, 4  ;;  %v3334_v8 = vrot.slane %v3332_v2, 5  ;;  %v3340_v60 = vrot.slane %v3338_v34, 5  ;;  %v3344_v4 = vrot.slane %v3342_v37, 4  ;;  %v4434_v50 = vld [vmem:[#allocation3 + $0x28] sm:$0xf] }
 0x331   : > { %11650 = vst [vmem:[#allocation14_spill] sm:$0xff] %v10245_v11  ;;  %v10251_v61 = vadd.f32 %v7793_v42, %v7792_v53  ;;  %v4005_v56 = vrot.slane %v4004_v62, 4  ;;  %v4021_v2 = vshll.u32 %v3922_v10, 16  ;;  %v4025_v40 = vshrl.u32 %v3922_v10, 16  ;;  %v8457_v46 = vld [vmem:[#allocation3 + $0x9c] sm:$0xff]  }
 0x332   : > { %v3335_v33 = vor.u32 %v3334_v8, %v3331_v24  ;;  %v3345_v54 = vor.u32 %v3344_v4, %v3340_v60  ;;  %v4933_v34 = vshrl.u32 %v4863_v13, 16  ;;  %v4936_v37 = vshll.u32 %v4863_v13, 16  ;;  %v4865_v12 = vld [vmem:[#allocation3 + $0x2c] sm:$0x1] }
 0x333   : > { %11651 = vst [vmem:[#allocation15_spill] sm:$0xff] %v10251_v61  ;;  %v10278_v42 = vrot.slane %v4925_v28, 4  ;;  %v4942_v24 = vshll.u32 %v4864_v57, 16  ;;  %v4946_v8 = vshrl.u32 %v4864_v57, 16  ;;  %v4010_v62 = vsel %vm9225_vm13, %v4005_v56, %v4009_v1 }
 0x334   : > { %v3336_v44 = vrot.slane %v3335_v33, 4  ;;  %v3346_v3 = vrot.slane %v3345_v54, 4  ;;  %v4433_v33 = vld [vmem:[#allocation3 + $0x24] sm:$0xe]  ;;  %v4539_v54 = vrot.slane %v4434_v50, 5  ;;  %v10284_v10 = vrot.slane %v4021_v2, 5 }
 0x335   : > { %v4938_v28 = vrot.slane %v4936_v37, 5  ;;  %v7495_v57 = vrot.slane %v4433_v33, 9  ;;  %v4948_v1 = vrot.slane %v4946_v8, 4  ;;  %v3923_v2 = vld [vmem:[#allocation3 + $0x2c] sm:$0x1] }
 0x336   : > { %v3341_v35 = vsel %vm9225_vm13, %v3336_v44, %v3340_v60  ;;  %v3351_v59 = vsel %vm9225_vm13, %v3346_v3, %v3350_v55  ;;  %v4435_v44 = vld [vmem:[#allocation3 + $0x2c] sm:$0x1]  ;;  %v4027_v3 = vrot.slane %v4025_v40, 4  ;;  %v4935_v55 = vrot.slane %v4933_v34, 4 }
 0x337   : > { %v7426_v48 = vcombine.low %v3341_v35, %v3351_v59  ;;  %v10286_v35 = vrot.slane %v4942_v24, 5  ;;  %v10288_v59 = vcombine.low %v4000_v7, %v4010_v62  ;;  %v4541_v39 = vrot.slane %v4539_v54, 4  ;;  %v2804_v24 = vld [vmem:[#allocation3 + $0xb0] sm:$0x1] }
 0x338   : > { %v8260_v53 = vpop.f32.mrb[26].mxu0  ;;  %v4542_v50 = vrot.slane %v4435_v44, 5  ;;  %v4018_v40 = vor.u32 %v4017_v23, %v4014_v51  ;;  %v4028_v7 = vor.u32 %v4027_v3, %v10284_v10  ;;  %v10303_v49 = vsel %vm9984_vm5, %v7495_v57, %v4539_v54  ;;  %v10310_v51 = vld [vmem:[#allocation3 + $0x34] sm:$0xf]  ;;  %v3924_v54 = vld [vmem:[#allocation3 + $0x30] sm:$0xf] }
 0x339   : > { %v2279_v60 = vmax.f32 %v8260_v53, 0.0  ;;  %6516 = vmatprep.mubr.bf16.mxu1 %v7426_v48  ;;  %v2223_v4 = vpop.f32.mrb[27].mxu0  ;;  %v4931_v48 = vsel %vm9225_vm13, %v10278_v42, %v10282_v17  ;;  %v10298_v53 = vld [vmem:[#allocation3 + $0xa0] sm:$0xf]  ;;  %v2800_v42 = vld [vmem:[#allocation3 + $0xa8] sm:$0xf] }
 0x33a   : > { %v2278_v32 = vmax.f32 %v2223_v4, 0.0  ;;  %6517 = vmatmul.mubr.bf16.gmra.mrb[52].mxu1 %v8457_v46  ;;  %v4939_v46 = vor.u32 %v4938_v28, %v4935_v55  ;;  %v4949_v4 = vor.u32 %v4948_v1, %v10286_v35  ;;  %v10308_v17 = vsel %vm9984_vm5, %v4541_v39, %v4542_v50 }
 0x33b   : > { %v7694_v38 = vpack.c.bf16 %v2279_v60, %v2279_v60  ;;  %v3672_v44 = vrot.slane %v10298_v53, 5  ;;  %v4019_v3 = vrot.slane %v4018_v40, 4  ;;  %v4029_v28 = vrot.slane %v4028_v7, 4  ;;  %v3519_v40 = vld [vmem:[#allocation3 + $0x9c] sm:$0xe] }
 0x33c   : > { %v7693_v13 = vpack.c.bf16 %v2278_v32, %v2278_v32  ;;  %v4031_v32 = vshll.u32 %v3923_v2, 16  ;;  %v4940_v57 = vrot.slane %v4939_v46, 4  ;;  %v4952_v1 = vshll.u32 %v4865_v12, 16  ;;  %v4866_v2 = vld [vmem:[#allocation3 + $0x30] sm:$0xf] }
 0x33d   : > { %v2613_v56 = vshrl.u32 %v7694_v38, 16  ;;  %v2616_v37 = vshll.u32 %v7694_v38, 16  ;;  %v4950_v50 = vrot.slane %v4949_v4, 4  ;;  %v10322_v53 = vcombine.low %v4921_v0, %v4931_v48  ;;  %v10327_v12 = vld [vmem:[#allocation3 + $0x30] sm:$0xe] }
 0x33e   : > { %v2605_v6 = vshrl.u32 %v7693_v13, 16  ;;  %v2608_v60 = vshll.u32 %v7693_v13, 16  ;;  %v3925_v13 = vld [vmem:[#allocation3 + $0x34] sm:$0xf]  ;;  %v4036_v7 = vshrl.u32 %v3924_v54, 16  ;;  %v4039_v46 = vshll.u32 %v3924_v54, 16 }
 0x33f   : > { %v2615_v34 = vrot.slane %v2613_v56, 7  ;;  %v4045_v4 = vshll.u32 %v3925_v13, 16  ;;  %v3926_v48 = vld [vmem:[#allocation3 + $0x38] sm:$0x1]  ;;  %v4945_v54 = vsel %vm9225_vm13, %v4940_v57, %v10286_v35 }
 0x340   : > { %v2607_v8 = vrot.slane %v2605_v6, 7  ;;  %v11610_v6 = vrot.slane %v10310_v51, 5  ;;  %v4055_v35 = vshll.u32 %v3926_v48, 16 }
 0x341   : > { %v2618_v62 = vor.u32 %v2616_v37, %v2615_v34  ;;  %v2620_v33 = vrot.slane %v2615_v34, 4  ;;  %v3521_v34 = vld [vmem:[#allocation3 + $0xa4] sm:$0x1] }
 0x342   : > { %v2610_v23 = vor.u32 %v2608_v60, %v2607_v8  ;;  %v2611_v38 = vrot.slane %v2607_v8, 4  ;;  %v4024_v8 = vsel %vm9225_vm13, %v4019_v3, %v10284_v10  ;;  %v4033_v60 = vrot.slane %v4031_v32, 5 }
 0x343   : > { %v2805_v55 = vsel %vm9456_vm3, %v2620_v33, %v2804_v24  ;;  %v3674_v24 = vrot.slane %v3672_v44, 4  ;;  %v4049_v33 = vshrl.u32 %v3925_v13, 16  ;;  %v4548_v10 = vrot.slane %v11610_v6, 4 }
 0x344   : > { %2806 = vst [vmem:[#allocation3 + $0xb0] sm:$0x1] %v2805_v55  ;;  %v2619_v56 = vsel %vm9466_vm2, %v2611_v38, %v2618_v62  ;;  %v2801_v39 = vsel %vm9448_vm12, %v2610_v23, %v2800_v42  ;;  %v4438_v62 = vld [vmem:[#allocation3 + $0x38] sm:$0x1]  ;;  %v4954_v42 = vrot.slane %v4952_v1, 5  ;;  %v4957_v23 = vshrl.u32 %v4866_v2, 16 }
 0x345   : > { %2802 = vst [vmem:[#allocation3 + $0xa8] sm:$0xf] %v2801_v39  ;;  %2803 = vst [vmem:[#allocation3 + $0xac] sm:$0xf] %v2619_v56  ;;  %v4960_v38 = vshll.u32 %v4866_v2, 16  ;;  %v7442_v55 = vrot.slane %v3519_v40, 9  ;;  %v4034_v0 = vsel %vm9225_vm13, %v4029_v28, %v4033_v60 }
 0x346   : > { %v3675_v56 = vrot.slane %v3521_v34, 5  ;;  %v4038_v32 = vrot.slane %v4036_v7, 4  ;;  %v4041_v3 = vrot.slane %v4039_v46, 5  ;;  %v4955_v13 = vsel %vm9225_vm13, %v4950_v50, %v4954_v42  ;;  %v4867_v1 = vld [vmem:[#allocation3 + $0x34] sm:$0xf] }
 0x347   : > { %v7496_v2 = vrot.slane %v10327_v12, 9  ;;  %v4549_v28 = vrot.slane %v4438_v62, 5  ;;  %v10341_v40 = vrot.slane %v4045_v4, 5  ;;  %v4051_v60 = vrot.slane %v4049_v33, 4  ;;  %v4868_v42 = vld [vmem:[#allocation3 + $0x38] sm:$0x1] }
 0x348   : > { %v3676_v39 = vsel %vm9984_vm5, %v3674_v24, %v3675_v56  ;;  %v4959_v57 = vrot.slane %v4957_v23, 4  ;;  %v4962_v37 = vrot.slane %v4960_v38, 5  ;;  %v3673_v7 = vsel %vm9984_vm5, %v7442_v55, %v3672_v44 }
 0x349   : > { %v10345_v46 = vcombine.low %v4024_v8, %v4034_v0  ;;  %v10347_v50 = vcombine.low %v4945_v54, %v4955_v13  ;;  %v4966_v24 = vshll.u32 %v4867_v1, 16  ;;  %v7458_v12 = vcombine.low %v3673_v7, %v3676_v39  ;;  %v3927_v0 = vld [vmem:[#allocation3 + $0x3c] sm:$0xf] }
 0x34a   : > { %v10351_v33 = vsel %vm9984_vm5, %v4548_v10, %v4549_v28  ;;  %v4042_v23 = vor.u32 %v4041_v3, %v4038_v32  ;;  %v4970_v38 = vshrl.u32 %v4867_v1, 16  ;;  %v4052_v7 = vor.u32 %v4051_v60, %v10341_v40 }
 0x34b   : > { %v3009_v34 = vld [vmem:[#allocation3 + $0xb0] sm:$0x1]  ;;  %11652 = vst [vmem:[#allocation16_spill] sm:$0xff] %v10345_v46  ;;  %11653 = vst [vmem:[#allocation17_spill] sm:$0xff] %v10347_v50  ;;  %v4963_v6 = vor.u32 %v4962_v37, %v4959_v57  ;;  %v10374_v57 = vrot.slane %v4055_v35, 5 }
 0x34c   : > { %v8466_v26 = vld [vmem:[#allocation3 + $0xa8] sm:$0xff]   ;;  %v7795_v56 = vpop.f32.mrb[28].mxu1  ;;  %11654 = vst [vmem:[#allocation18_spill] sm:$0xff] %v10351_v33  ;;  %v3372_v39 = vshll.u32 %v3009_v34, 16  ;;  %v10366_v37 = vrot.slane %v4042_v23, 4  ;;  %v10372_v60 = vrot.slane %v4052_v7, 4 }
 0x34d   : > { %v3007_v62 = vld [vmem:[#allocation3 + $0xa8] sm:$0xf]  ;;  %v3008_v4 = vld [vmem:[#allocation3 + $0xac] sm:$0xf]  ;;  %v7796_v48 = vpop.f32.mrb[29].mxu1  ;;  %6677 = vmatprep.mubr.bf16.mxu0 %v8466_v26  ;;  %v10358_v26 = vrot.slane %v4966_v24, 5 }
 0x34e   : > { %v3353_v47 = vshrl.u32 %v3007_v62, 16  ;;  %v3356_v44 = vshll.u32 %v3007_v62, 16  ;;  %v3362_v8 = vshll.u32 %v3008_v4, 16  ;;  %v3366_v55 = vshrl.u32 %v3008_v4, 16  ;;  %v7798_v13 = vpop.f32.mrb[30].mxu1  ;;  %6678 = vmatmul.mubr.bf16.gmra.mrb[84].mxu0 %v7458_v12 }
 0x34f   : > { %v10353_v54 = vadd.f32 %v7796_v48, %v7795_v56  ;;  %v7799_v61 = vpop.f32.mrb[31].mxu1  ;;  %v4972_v62 = vrot.slane %v4970_v38, 4  ;;  %v4976_v4 = vshll.u32 %v4868_v42, 16  ;;  %v11657_v48 = vrot.slane %v10310_v51, 5  ;;  %v3928_v51 = vld [vmem:[#allocation3 + $0x40] sm:$0xf] }
 0x350   : > { %v3355_v10 = vrot.slane %v3353_v47, 4  ;;  %v3358_v28 = vrot.slane %v3356_v44, 5  ;;  %v3364_v32 = vrot.slane %v3362_v8, 5  ;;  %v3368_v3 = vrot.slane %v3366_v55, 4  ;;  %v10368_v47 = vld [vmem:[#allocation3 + $0x40] sm:$0xf] }
 0x351   : > { %11655 = vst [vmem:[#allocation19_spill] sm:$0xff] %v10353_v54  ;;  %v10356_v1 = vadd.f32 %v7799_v61, %v7798_v13  ;;  %v10364_v34 = vsel %vm9984_vm5, %v7496_v2, %v11657_v48  ;;  %v4060_v42 = vshrl.u32 %v3927_v0, 16  ;;  %v3374_v38 = vrot.slane %v3372_v39, 5  ;;  %v4441_v2 = vld [vmem:[#allocation3 + $0x44] sm:$0x1] }
 0x352   : > { %v3359_v11 = vor.u32 %v3358_v28, %v3355_v10  ;;  %v3369_v56 = vor.u32 %v3368_v3, %v3364_v32  ;;  %11658 = vst [vmem:[#allocation21_spill] sm:$0xff] %v10364_v34  ;;  %v4063_v44 = vshll.u32 %v3927_v0, 16  ;;  %v10377_v55 = vrot.slane %v4963_v6, 4  ;;  %v4869_v39 = vld [vmem:[#allocation3 + $0x3c] sm:$0xf] }
 0x353   : > { %11656 = vst [vmem:[#allocation20_spill] sm:$0xff] %v10356_v1  ;;  %v4973_v13 = vor.u32 %v4972_v62, %v10358_v26  ;;  %v10380_v10 = vrot.slane %v4976_v4, 5  ;;  %v4870_v6 = vld [vmem:[#allocation3 + $0x40] sm:$0xf]  ;;  %v4069_v4 = vshll.u32 %v3928_v51, 16  ;;  %v4981_v0 = vshrl.u32 %v4869_v39, 16 }
 0x354   : > { %v3360_v24 = vrot.slane %v3359_v11, 4  ;;  %v3370_v12 = vrot.slane %v3369_v56, 4  ;;  %v4984_v1 = vshll.u32 %v4869_v39, 16  ;;  %v4994_v54 = vshrl.u32 %v4870_v6, 16  ;;  %v10396_v62 = vld [vmem:[#allocation3 + $0x3c] sm:$0xe] }
 0x355   : > { %v8263_v8 = vpop.f32.mrb[28].mxu0  ;;  %v10394_v23 = vrot.slane %v4973_v13, 4  ;;  %v10402_v13 = vld [vmem:[#allocation3 + $0xac] sm:$0xf]  ;;  %v4983_v58 = vrot.slane %v4981_v0, 4 }
 0x356   : > { %v2281_v7 = vmax.f32 %v8263_v8, 0.0  ;;  %v2233_v28 = vpop.f32.mrb[29].mxu0  ;;  %v3365_v35 = vsel %vm9225_vm13, %v3360_v24, %v3364_v32  ;;  %v3375_v11 = vsel %vm9225_vm13, %v3370_v12, %v3374_v38  ;;  %v8467_v32 = vld [vmem:[#allocation3 + $0xa8] sm:$0xff]   ;;  %v3929_v24 = vld [vmem:[#allocation3 + $0x44] sm:$0x1]  ;;  %v4062_v8 = vrot.slane %v4060_v42, 4 }
 0x357   : > { %v2280_v3 = vmax.f32 %v2233_v28, 0.0  ;;  %v7427_v56 = vcombine.low %v3365_v35, %v3375_v11  ;;  %v4065_v12 = vrot.slane %v4063_v44, 5  ;;  %v4073_v38 = vshrl.u32 %v3928_v51, 16  ;;  %v3930_v0 = vld [vmem:[#allocation3 + $0x48] sm:$0xf] }
 0x358   : > { %v7696_v48 = vpack.c.bf16 %v2281_v7, %v2281_v7  ;;  %v4556_v35 = vrot.slane %v4441_v2, 5  ;;  %v4990_v11 = vshll.u32 %v4870_v6, 16  ;;  %v11659_v7 = vrot.slane %v10368_v47, 5 }
 0x359   : > { %v7695_v61 = vpack.c.bf16 %v2280_v3, %v2280_v3  ;;  %6524 = vmatprep.mubr.bf16.mxu1 %v7427_v56  ;;  %v10400_v42 = vrot.slane %v4069_v4, 5  ;;  %v4079_v51 = vshll.u32 %v3929_v24, 16  ;;  %v4066_v56 = vor.u32 %v4065_v12, %v4062_v8  ;;  %v4871_v8 = vld [vmem:[#allocation3 + $0x44] sm:$0x1]  ;;  %v3931_v12 = vld [vmem:[#allocation3 + $0x4c] sm:$0xf] }
 0x35a   : > { %v2630_v28 = vshrl.u32 %v7696_v48, 16  ;;  %6525 = vmatmul.mubr.bf16.gmra.mrb[56].mxu1 %v8467_v32  ;;  %v4555_v43 = vrot.slane %v11659_v7, 4  ;;  %v2633_v3 = vshll.u32 %v7696_v48, 16  ;;  %v4075_v39 = vrot.slane %v4073_v38, 4 }
 0x35b   : > { %v2622_v30 = vshrl.u32 %v7695_v61, 16  ;;  %v2625_v2 = vshll.u32 %v7695_v61, 16  ;;  %v4986_v6 = vrot.slane %v4984_v1, 5  ;;  %v10404_v33 = vrot.slane %v4990_v11, 5  ;;  %v3524_v11 = vld [vmem:[#allocation3 + $0xb0] sm:$0x1] }
 0x35c   : > { %v2632_v44 = vrot.slane %v2630_v28, 7  ;;  %v4996_v7 = vrot.slane %v4994_v54, 4  ;;  %v3679_v24 = vrot.slane %v10402_v13, 5  ;;  %v7497_v1 = vrot.slane %v10396_v62, 9  ;;  %v4873_v28 = vld [vmem:[#allocation3 + $0x4c] sm:$0xf] }
 0x35d   : > { %v2624_v32 = vrot.slane %v2622_v30, 7  ;;  %v10416_v61 = vsel %vm9984_vm5, %v4555_v43, %v4556_v35  ;;  %v4979_v54 = vsel %vm9225_vm13, %v10394_v23, %v10380_v10  ;;  %v10427_v62 = vrot.slane %v4079_v51, 5  ;;  %v4872_v43 = vld [vmem:[#allocation3 + $0x48] sm:$0xf] }
 0x35e   : > { %v2635_v27 = vor.u32 %v2633_v3, %v2632_v44  ;;  %v2637_v50 = vrot.slane %v2632_v44, 4  ;;  %11660 = vst [vmem:[#allocation22_spill] sm:$0xff] %v10416_v61  ;;  %v3522_v35 = vld [vmem:[#allocation3 + $0xa8] sm:$0xe]  ;;  %v10429_v23 = vrot.slane %v4066_v56, 4  ;;  %v4987_v10 = vor.u32 %v4986_v6, %v4983_v58 }
 0x35f   : > { %v2627_v4 = vor.u32 %v2625_v2, %v2624_v32  ;;  %v2628_v34 = vrot.slane %v2624_v32, 4  ;;  %v4997_v44 = vor.u32 %v4996_v7, %v10404_v33  ;;  %v5000_v3 = vshll.u32 %v4871_v8, 16 }
 0x360   : > { %v2812_v30 = vsel %vm9456_vm3, %v2637_v50, %v2811_v52  ;;  %v4076_v50 = vor.u32 %v4075_v39, %v10400_v42  ;;  %v4087_v13 = vshll.u32 %v3930_v0, 16  ;;  %v4093_v39 = vshll.u32 %v3931_v12, 16 }
 0x361   : > { %2813 = vst [vmem:[#allocation3 + $0xbc] sm:$0x1] %v2812_v30  ;;  %v2636_v38 = vsel %vm9466_vm2, %v2628_v34, %v2635_v27  ;;  %v2808_v52 = vsel %vm9448_vm12, %v2627_v4, %v2807_v5  ;;  %v3681_v27 = vrot.slane %v3679_v24, 4  ;;  %v10432_v34 = vld [vmem:[#allocation3 + $0x4c] sm:$0xf]  ;;  %v4084_v5 = vshrl.u32 %v3930_v0, 16 }
 0x362   : > { %2809 = vst [vmem:[#allocation3 + $0xb4] sm:$0xf] %v2808_v52  ;;  %2810 = vst [vmem:[#allocation3 + $0xb8] sm:$0xf] %v2636_v38  ;;  %v4097_v51 = vshrl.u32 %v3931_v12, 16  ;;  %v5005_v32 = vshrl.u32 %v4872_v43, 16 }
 0x363   : > { %v5008_v2 = vshll.u32 %v4872_v43, 16  ;;  %v5014_v4 = vshll.u32 %v4873_v28, 16  ;;  %v7443_v30 = vrot.slane %v3522_v35, 9  ;;  %v3682_v38 = vrot.slane %v3524_v11, 5  ;;  %v10445_v12 = vld [vmem:[#allocation3 + $0x50] sm:$0x1] }
 0x364   : > { %v10434_v52 = vrot.slane %v4076_v50, 4  ;;  %v5018_v56 = vshrl.u32 %v4873_v28, 16  ;;  %v10437_v6 = vrot.slane %v4987_v10, 4  ;;  %v10439_v7 = vrot.slane %v4997_v44, 4  ;;  %v3932_v43 = vld [vmem:[#allocation3 + $0x50] sm:$0x1] }
 0x365   : > { %v10441_v8 = vrot.slane %v5000_v3, 5  ;;  %v3683_v0 = vsel %vm9984_vm5, %v3681_v27, %v3682_v38  ;;  %v4086_v48 = vrot.slane %v4084_v5, 4  ;;  %v4089_v35 = vrot.slane %v4087_v13, 5 }
 0x366   : > { %v10447_v11 = vrot.slane %v4093_v39, 5  ;;  %v4099_v28 = vrot.slane %v4097_v51, 4  ;;  %v5007_v46 = vrot.slane %v5005_v32, 4  ;;  %v5010_v58 = vrot.slane %v5008_v2, 5  ;;  %v10471_v32 = vld [vmem:[#allocation3 + $0x48] sm:$0xe] }
 0x367   : > { %v10449_v10 = vrot.slane %v5014_v4, 5  ;;  %v3680_v3 = vsel %vm9984_vm5, %v7443_v30, %v3679_v24  ;;  %v11661_v27 = vsel %vm9225_vm13, %v10372_v60, %v10374_v57  ;;  %v11662_v5 = vsel %vm9225_vm13, %v10366_v37, %v10341_v40 }
 0x368   : > { %v3012_v50 = vld [vmem:[#allocation3 + $0xbc] sm:$0x1]  ;;  %v10463_v13 = vcombine.low %v11662_v5, %v11661_v27  ;;  %v11663_v39 = vrot.slane %v10368_v47, 5  ;;  %v5020_v24 = vrot.slane %v5018_v56, 4  ;;  %v7459_v2 = vcombine.low %v3680_v3, %v3683_v0 }
 0x369   : > { %v8472_v44 = vld [vmem:[#allocation3 + $0xb4] sm:$0xff]   ;;  %v4072_v40 = vsel %vm9225_vm13, %v10429_v23, %v10400_v42  ;;  %v11665_v37 = vsel %vm9225_vm13, %v10377_v55, %v10358_v26  ;;  %v3396_v0 = vshll.u32 %v3012_v50, 16  ;;  %v4563_v3 = vrot.slane %v10445_v12, 5  ;;  %v3527_v20 = vld [vmem:[#allocation3 + $0xbc] sm:$0x1] }
 0x36a   : > { %v10469_v51 = vsel %vm9984_vm5, %v7497_v1, %v11663_v39  ;;  %v3010_v4 = vld [vmem:[#allocation3 + $0xb4] sm:$0xf]  ;;  %v3011_v30 = vld [vmem:[#allocation3 + $0xb8] sm:$0xf]  ;;  %v10484_v47 = vcombine.low %v11665_v37, %v4979_v54  ;;  %6685 = vmatprep.mubr.bf16.mxu0 %v8472_v44  ;;  %v4090_v27 = vor.u32 %v4089_v35, %v4086_v48  ;;  %v4103_v5 = vshll.u32 %v3932_v43, 16 }
 0x36b   : > { %11664 = vst [vmem:[#allocation23_spill] sm:$0xff] %v10469_v51  ;;  %v3377_v57 = vshrl.u32 %v3010_v4, 16  ;;  %v3380_v1 = vshll.u32 %v3010_v4, 16  ;;  %v3386_v38 = vshll.u32 %v3011_v30, 16  ;;  %v3390_v56 = vshrl.u32 %v3011_v30, 16  ;;  %6686 = vmatmul.mubr.bf16.gmra.mrb[88].mxu0 %v7459_v2 }
 0x36c   : > { %v4874_v39 = vld [vmem:[#allocation3 + $0x50] sm:$0x1]  ;;  %v7801_v42 = vpop.f32.mrb[32].mxu1  ;;  %v7498_v55 = vrot.slane %v10471_v32, 9  ;;  %v11666_v54 = vrot.slane %v10432_v34, 5  ;;  %v4100_v4 = vor.u32 %v4099_v28, %v10447_v11  ;;  %v5011_v2 = vor.u32 %v5010_v58, %v5007_v46 }
 0x36d   : > { %v3379_v23 = vrot.slane %v3377_v57, 4  ;;  %v3382_v60 = vrot.slane %v3380_v1, 5  ;;  %v3388_v61 = vrot.slane %v3386_v38, 5  ;;  %v3392_v51 = vrot.slane %v3390_v56, 4  ;;  %v7802_v26 = vpop.f32.mrb[33].mxu1 }
 0x36e   : > { %v4562_v44 = vrot.slane %v11666_v54, 4  ;;  %v10491_v50 = vadd.f32 %v7802_v26, %v7801_v42  ;;  %v7804_v12 = vpop.f32.mrb[34].mxu1  ;;  %v5021_v35 = vor.u32 %v5020_v24, %v10449_v10  ;;  %v4082_v37 = vsel %vm9225_vm13, %v10434_v52, %v10427_v62  ;;  %v3933_v1 = vld [vmem:[#allocation3 + $0x54] sm:$0xf]  ;;  %v10514_v52 = vld [vmem:[#allocation3 + $0x5c] sm:$0x1] }
 0x36f   : > { %v3383_v48 = vor.u32 %v3382_v60, %v3379_v23  ;;  %v3393_v43 = vor.u32 %v3392_v51, %v3388_v61  ;;  %v7805_v30 = vpop.f32.mrb[35].mxu1  ;;  %v10498_v32 = vrot.slane %v4090_v27, 4  ;;  %v10500_v57 = vrot.slane %v4103_v5, 5  ;;  %v3934_v56 = vld [vmem:[#allocation3 + $0x58] sm:$0xf] }
 0x370   : > { %11667 = vst [vmem:[#allocation24_spill] sm:$0xff] %v10491_v50  ;;  %v5024_v28 = vshll.u32 %v4874_v39, 16  ;;  %v10502_v46 = vadd.f32 %v7805_v30, %v7804_v12  ;;  %v3398_v60 = vrot.slane %v3396_v0, 5  ;;  %v10504_v51 = vrot.slane %v4100_v4, 4  ;;  %v10526_v26 = vld [vmem:[#allocation3 + $0x54] sm:$0xe] }
 0x371   : > { %v3384_v58 = vrot.slane %v3383_v48, 4  ;;  %v3394_v38 = vrot.slane %v3393_v43, 4  ;;  %v4993_v24 = vsel %vm9225_vm13, %v10437_v6, %v10404_v33  ;;  %v5003_v62 = vsel %vm9225_vm13, %v10439_v7, %v10441_v8  ;;  %v4875_v33 = vld [vmem:[#allocation3 + $0x54] sm:$0xf] }
 0x372   : > { %11668 = vst [vmem:[#allocation25_spill] sm:$0xff] %v10502_v46  ;;  %v10516_v27 = vrot.slane %v5011_v2, 4  ;;  %v4108_v39 = vshrl.u32 %v3933_v1, 16  ;;  %v10522_v42 = vrot.slane %v5021_v35, 4  ;;  %v10524_v23 = vcombine.low %v4072_v40, %v4082_v37  ;;  %v8477_v4 = vld [vmem:[#allocation3 + $0xb4] sm:$0xff]  }
 0x373   : > { %v3389_v0 = vsel %vm9225_vm13, %v3384_v58, %v3388_v61  ;;  %v3399_v5 = vsel %vm9225_vm13, %v3394_v38, %v3398_v60  ;;  %v4111_v7 = vshll.u32 %v3933_v1, 16  ;;  %v10528_v8 = vrot.slane %v5024_v28, 5  ;;  %v4876_v35 = vld [vmem:[#allocation3 + $0x58] sm:$0xf]  ;;  %v3935_v38 = vld [vmem:[#allocation3 + $0x5c] sm:$0x1] }
 0x374   : > { %v7428_v6 = vcombine.low %v3389_v0, %v3399_v5  ;;  %v11669_v2 = vrot.slane %v10432_v34, 5  ;;  %v10536_v12 = vcombine.low %v4993_v24, %v5003_v62  ;;  %v4117_v48 = vshll.u32 %v3934_v56, 16  ;;  %v10542_v1 = vld [vmem:[#allocation3 + $0x58] sm:$0xf] }
 0x375   : > { %v8266_v54 = vpop.f32.mrb[30].mxu0  ;;  %v4121_v43 = vshrl.u32 %v3934_v56, 16  ;;  %v10540_v37 = vsel %vm9984_vm5, %v4562_v44, %v4563_v3  ;;  %v5029_v28 = vshrl.u32 %v4875_v33, 16  ;;  %v4110_v60 = vrot.slane %v4108_v39, 4 }
 0x376   : > { %v10534_v61 = vsel %vm9984_vm5, %v7498_v55, %v11669_v2  ;;  %11670 = vst [vmem:[#allocation26_spill] sm:$0xff] %v10536_v12  ;;  %v2283_v40 = vmax.f32 %v8266_v54, 0.0  ;;  %6532 = vmatprep.mubr.bf16.mxu1 %v7428_v6  ;;  %v2243_v30 = vpop.f32.mrb[31].mxu0  ;;  %v5032_v24 = vshll.u32 %v4875_v33, 16  ;;  %v11671_v56 = vcombine.low %v10231_v16, %v10235_v45 }
 0x377   : > { %v2282_v58 = vmax.f32 %v2243_v30, 0.0  ;;  %6533 = vmatmul.mubr.bf16.gmra.mrb[60].mxu1 %v8477_v4  ;;  %v4113_v0 = vrot.slane %v4111_v7, 5  ;;  %v5038_v3 = vshll.u32 %v4876_v35, 16  ;;  %v5042_v44 = vshrl.u32 %v4876_v35, 16 }
 0x378   : > { %v7698_v62 = vpack.c.bf16 %v2283_v40, %v2283_v40  ;;  %6734 = vmatprep.mubr.bf16.mxu1 %v11671_v56  ;;  %v10550_v2 = vrot.slane %v4117_v48, 5  ;;  %v4123_v4 = vrot.slane %v4121_v43, 4  ;;  %v4127_v39 = vshll.u32 %v3935_v38, 16  ;;  %v2818_v43 = vld [vmem:[#allocation3 + $0xc8] sm:$0x1] }
 0x379   : > { %v7697_v5 = vpack.c.bf16 %v2282_v58, %v2282_v58  ;;  %v7865_v6 = vpop.f32.mrb[32].mxu0  ;;  %v10552_v33 = vrot.slane %v5029_v28, 4  ;;  %v5034_v7 = vrot.slane %v5032_v24, 5  ;;  %v10554_v58 = vld [vmem:[#allocation3 + $0xb8] sm:$0xf]  ;;  %v4114_v50 = vor.u32 %v4113_v0, %v4110_v60 }
 0x37a   : > { %v2647_v30 = vshrl.u32 %v7698_v62, 16  ;;  %v2650_v55 = vshll.u32 %v7698_v62, 16  ;;  %v7866_v34 = vpop.f32.mrb[33].mxu0  ;;  %v10556_v54 = vrot.slane %v5038_v3, 5  ;;  %v5044_v48 = vrot.slane %v5042_v44, 4 }
 0x37b   : > { %v2639_v40 = vshrl.u32 %v7697_v5, 16  ;;  %v2642_v46 = vshll.u32 %v7697_v5, 16  ;;  %v7867_v16 = vadd.f32 %v7866_v34, %v7865_v6  ;;  %v7868_v45 = vpop.f32.mrb[34].mxu0  ;;  %v10564_v34 = vld [vmem:[%s11607_s2 + $0x208] sm:$0xff]   ;;  %v4124_v38 = vor.u32 %v4123_v4, %v10550_v2  ;;  %v2814_v60 = vld [vmem:[#allocation3 + $0xc0] sm:$0xf] }
 0x37c   : > { %v2649_v56 = vrot.slane %v2647_v30, 7  ;;  %v7869_v35 = vpop.f32.mrb[35].mxu0  ;;  %v4877_v24 = vld [vmem:[#allocation3 + $0x5c] sm:$0x1]  ;;  %v11672_v0 = vrot.slane %v10542_v1, 5  ;;  %v10569_v44 = vrot.slane %v4127_v39, 5 }
 0x37d   : > { %v2641_v12 = vrot.slane %v2639_v40, 7  ;;  %v10559_v62 = vadd.f32 %v7867_v16, %v9746_v9  ;;  %v7870_v28 = vadd.f32 %v7869_v35, %v7868_v45  ;;  %v3686_v16 = vrot.slane %v10554_v58, 5  ;;  %v10576_v45 = vld [vmem:[#allocation3 + $0x64] sm:$0xf]  ;;  %v10583_v4 = vld [vmem:[%s11607_s2 + $0x200] sm:$0xff]  }
 0x37e   : > { %v2652_v5 = vor.u32 %v2650_v55, %v2649_v56  ;;  %v2654_v6 = vrot.slane %v2649_v56, 4  ;;  %v4569_v3 = vrot.slane %v11672_v0, 4  ;;  %v3525_v35 = vld [vmem:[#allocation3 + $0xb4] sm:$0xe] }
 0x37f   : > { %v2644_v30 = vor.u32 %v2642_v46, %v2641_v12  ;;  %v2645_v9 = vrot.slane %v2641_v12, 4  ;;  %6735 = vmatmul.mubr.bf16.vlgmr.msra.gmra.mrb[64].mxu1 %v10256_v22  ;;  %v10573_v40 = vadd.f32 %v7870_v28, %v9754_v25  ;;  %v11673_v22 = vcombine.low %v10262_v15, %v10249_v41  ;;  %v10599_v41 = vld [vmem:[%s11607_s2 + $0x210] sm:$0xff]  }
 0x380   : > { %v2819_v55 = vsel %vm9456_vm3, %v2654_v6, %v2818_v43  ;;  %8331 = vmatpush3.bf16.msra.mxu1 %v10583_v4  ;;  %v5035_v25 = vor.u32 %v5034_v7, %v10552_v33  ;;  %v5045_v46 = vor.u32 %v5044_v48, %v10556_v54  ;;  %v5048_v12 = vshll.u32 %v4877_v24, 16  ;;  %v10605_v7 = vld [vmem:[#allocation3 + $0x68] sm:$0x1] }
 0x381   : > { %6742 = vmatprep.mubr.bf16.mxu1 %v11673_v22  ;;  %2820 = vst [vmem:[#allocation3 + $0xc8] sm:$0x1] %v2819_v55  ;;  %v2653_v19 = vsel %vm9466_vm2, %v2645_v9, %v2652_v5  ;;  %v2815_v39 = vsel %vm9448_vm12, %v2644_v30, %v2814_v60  ;;  %v7871_v56 = vpop.f32.mrb[36].mxu0  ;;  %8324 = vmatprep.subr.bf16.mxu1 %v10564_v34  ;;  %v10601_v15 = vrot.slane %v4114_v50, 4  ;;  %v10603_v33 = vrot.slane %v4124_v38, 4 }
 0x382   : > { %2816 = vst [vmem:[#allocation3 + $0xc0] sm:$0xf] %v2815_v39  ;;  %2817 = vst [vmem:[#allocation3 + $0xc4] sm:$0xf] %v2653_v19  ;;  %v7872_v31 = vpop.f32.mrb[37].mxu0  ;;  %v4096_v43 = vsel %vm9225_vm13, %v10498_v32, %v10447_v11  ;;  %v4106_v50 = vsel %vm9225_vm13, %v10504_v51, %v10500_v57  ;;  %v11615_v28 = vrot.slane %v10576_v45, 5  ;;  %v5017_v6 = vsel %vm9225_vm13, %v10516_v27, %v10449_v10 }
 0x383   : > { %v7873_v38 = vadd.f32 %v7872_v31, %v7871_v56  ;;  %v7874_v24 = vpop.f32.mrb[38].mxu0  ;;  %v3688_v5 = vrot.slane %v3686_v16, 4  ;;  %v5027_v11 = vsel %vm9225_vm13, %v10522_v42, %v10528_v8  ;;  %v10628_v32 = vld [vmem:[#allocation3 + $0x60] sm:$0xe]  ;;  %v11674_v60 = vrot.slane %v10514_v52, 5  ;;  %v10650_v52 = vld [vmem:[%s11607_s2 + $0x218] sm:$0xff]  }
 0x384   : > { %v3936_v57 = vld [vmem:[#allocation3 + $0x60] sm:$0xf]  ;;  %v7875_v51 = vpop.f32.mrb[39].mxu0  ;;  %8332 = vmatpush3.bf16.msra.mxu1 %v10564_v34  ;;  %v3937_v30 = vld [vmem:[#allocation3 + $0x64] sm:$0xf]  ;;  %v10637_v9 = vrot.slane %v5035_v25, 4 }
 0x385   : > { %v10635_v0 = vsel %vm9984_vm5, %v4569_v3, %v11674_v60  ;;  %v10639_v10 = vrot.slane %v5045_v46, 4  ;;  %v10641_v27 = vrot.slane %v5048_v12, 5  ;;  %v10644_v42 = vadd.f32 %v7873_v38, %v9959_v18  ;;  %8325 = vmatprep.subr.bf16.mxu1 %v10599_v41  ;;  %v4878_v31 = vld [vmem:[#allocation3 + $0x60] sm:$0xf] }
 0x386   : > { %v7876_v8 = vadd.f32 %v7875_v51, %v7874_v24  ;;  %v7444_v55 = vrot.slane %v3525_v35, 9  ;;  %v3689_v22 = vrot.slane %v3527_v20, 5  ;;  %v10655_v25 = vrot.slane %v11615_v28, 4  ;;  %v4879_v35 = vld [vmem:[#allocation3 + $0x64] sm:$0xf] }
 0x387   : > { %v4132_v18 = vshrl.u32 %v3936_v57, 16  ;;  %6743 = vmatmul.mubr.bf16.gmra.mrb[68].mxu1 %v10288_v59  ;;  %v4135_v39 = vshll.u32 %v3936_v57, 16  ;;  %v4141_v56 = vshll.u32 %v3937_v30, 16  ;;  %v11675_v20 = vcombine.low %v10303_v49, %v10308_v17  ;;  %v10683_v49 = vld [vmem:[%s11607_s2 + $0x220] sm:$0xff]   ;;  %v3939_v17 = vld [vmem:[#allocation3 + $0x6c] sm:$0xf] }
 0x388   : > { %v10659_v12 = vadd.f32 %v7876_v8, %v9962_v29  ;;  %v3690_v19 = vsel %vm9984_vm5, %v3688_v5, %v3689_v22  ;;  %8333 = vmatpush3.bf16.msra.mxu1 %v10599_v41  ;;  %v10668_v38 = vcombine.low %v4096_v43, %v4106_v50  ;;  %v11676_v29 = vrot.slane %v10542_v1, 5  ;;  %v3940_v51 = vld [vmem:[#allocation3 + $0x70] sm:$0xf] }
 0x389   : > { %6750 = vmatprep.mubr.bf16.mxu1 %v11675_v20  ;;  %v11677_v24 = vrot.slane %v10526_v26, 9  ;;  %v10678_v5 = vcombine.low %v5017_v6, %v5027_v11  ;;  %v4145_v57 = vshrl.u32 %v3937_v30, 16  ;;  %v7877_v43 = vpop.f32.mrb[40].mxu0  ;;  %v8481_v50 = vld [vmem:[#allocation3 + $0xc0] sm:$0xff]   ;;  %v3687_v26 = vsel %vm9984_vm5, %v7444_v55, %v3686_v16  ;;  %8326 = vmatprep.subr.bf16.mxu1 %v10650_v52 }
 0x38a   : > { %v4120_v6 = vsel %vm9225_vm13, %v10601_v15, %v10550_v2  ;;  %v4130_v11 = vsel %vm9225_vm13, %v10603_v33, %v10569_v44  ;;  %v7878_v60 = vpop.f32.mrb[41].mxu0  ;;  %v7460_v58 = vcombine.low %v3687_v26, %v3690_v19  ;;  %v5053_v30 = vshrl.u32 %v4878_v31, 16  ;;  %6693 = vmatprep.mubr.bf16.mxu0 %v8481_v50 }
 0x38b   : > { %v10676_v59 = vsel %vm9984_vm5, %v11677_v24, %v11676_v29  ;;  %v5056_v8 = vshll.u32 %v4878_v31, 16  ;;  %v5062_v16 = vshll.u32 %v4879_v35, 16  ;;  %v7879_v55 = vadd.f32 %v7878_v60, %v7877_v43  ;;  %v7880_v22 = vpop.f32.mrb[42].mxu0  ;;  %v10705_v31 = vld [vmem:[#allocation3 + $0x68] sm:$0x1] }
 0x38c   : > { %v4134_v20 = vrot.slane %v4132_v18, 4  ;;  %v4137_v29 = vrot.slane %v4135_v39, 5  ;;  %v5066_v24 = vshrl.u32 %v4879_v35, 16  ;;  %v7881_v1 = vpop.f32.mrb[43].mxu0  ;;  %6694 = vmatmul.mubr.bf16.gmra.mrb[92].mxu0 %v7460_v58  ;;  %8334 = vmatpush3.bf16.msra.mxu1 %v10650_v52  ;;  %v4156_v2 = vshrl.u32 %v3939_v17, 16  ;;  %v7807_v33 = vpop.f32.mrb[36].mxu1 }
 0x38d   : > { %v4159_v15 = vshll.u32 %v3939_v17, 16  ;;  %v4165_v48 = vshll.u32 %v3940_v51, 16  ;;  %v4169_v46 = vshrl.u32 %v3940_v51, 16  ;;  %v10702_v44 = vadd.f32 %v7879_v55, %v10012_v14  ;;  %6895 = vmatprep.mubr.bf16.mxu0 %v10322_v53  ;;  %8327 = vmatprep.subr.bf16.mxu1 %v10683_v49  ;;  %v10713_v35 = vld [vmem:[%s11607_s2 + $0x228] sm:$0xff]   ;;  %v7808_v17 = vpop.f32.mrb[37].mxu1 }
 0x38e   : > { %v7882_v19 = vadd.f32 %v7881_v1, %v7880_v22  ;;  %v10707_v18 = vrot.slane %v4141_v56, 5  ;;  %v4147_v39 = vrot.slane %v4145_v57, 4  ;;  %v10715_v51 = vcombine.low %v4120_v6, %v4130_v11  ;;  %v4881_v53 = vld [vmem:[#allocation3 + $0x6c] sm:$0xf]  ;;  %v7810_v26 = vpop.f32.mrb[38].mxu1  ;;  %v11680_v1 = vld [vmem:[#allocation16_spill] sm:$0xff] }
 0x38f   : > { %11678 = vst [vmem:[#allocation27_spill] sm:$0xff] %v10702_v44  ;;  %v10717_v14 = vrot.slane %v5053_v30, 4  ;;  %v5058_v43 = vrot.slane %v5056_v8, 5  ;;  %v10719_v50 = vrot.slane %v5062_v16, 5  ;;  %v10724_v57 = vadd.f32 %v7808_v17, %v7807_v33  ;;  %6751 = vmatmul.mubr.bf16.gmra.mrb[72].mxu1 %v11680_v1  ;;  %v7811_v55 = vpop.f32.mrb[39].mxu1  ;;  %v11681_v22 = vld [vmem:[#allocation21_spill] sm:$0xff] }
 0x390   : > { %v10722_v56 = vadd.f32 %v7882_v19, %v10014_v21  ;;  %v4138_v60 = vor.u32 %v4137_v29, %v4134_v20  ;;  %v5068_v58 = vrot.slane %v5066_v24, 4  ;;  %v11682_v6 = vld [vmem:[#allocation18_spill] sm:$0xff]  ;;  %v8487_v30 = vld [vmem:[#allocation3 + $0x18] sm:$0xff]   ;;  %v4158_v8 = vrot.slane %v4156_v2, 4  ;;  %8335 = vmatpush3.bf16.msra.mxu1 %v10683_v49 }
 0x391   : > { %v11683_v11 = vcombine.low %v11681_v22, %v11682_v6  ;;  %v4161_v16 = vrot.slane %v4159_v15, 5  ;;  %v10730_v3 = vrot.slane %v4165_v48, 5  ;;  %v4171_v28 = vrot.slane %v4169_v46, 4  ;;  %v7883_v33 = vpop.f32.mrb[44].mxu0  ;;  %v10744_v48 = vld [vmem:[#allocation3 + $0x70] sm:$0xf]  ;;  %8328 = vmatprep.subr.bf16.mxu1 %v10713_v35 }
 0x392   : > { %11679 = vst [vmem:[#allocation28_spill] sm:$0xff] %v10722_v56  ;;  %v10733_v21 = vadd.f32 %v7811_v55, %v7810_v26  ;;  %v4151_v19 = vshll.u32 %v10705_v31, 16  ;;  %v4880_v46 = vld [vmem:[#allocation3 + $0x68] sm:$0x1]  ;;  %v7884_v24 = vpop.f32.mrb[45].mxu0  ;;  %v11684_v2 = vrot.slane %v10576_v45, 5  ;;  %v4148_v17 = vor.u32 %v4147_v39, %v10707_v18 }
 0x393   : > { %6758 = vmatprep.mubr.bf16.mxu1 %v11683_v11  ;;  %v11685_v15 = vrot.slane %v10628_v32, 9  ;;  %v4882_v26 = vld [vmem:[#allocation3 + $0x70] sm:$0xf]  ;;  %v5077_v1 = vshrl.u32 %v4881_v53, 16  ;;  %v5080_v55 = vshll.u32 %v4881_v53, 16  ;;  %v10759_v22 = vld [vmem:[%s11607_s2 + $0x230] sm:$0xff]   ;;  %v7885_v6 = vadd.f32 %v7884_v24, %v7883_v33 }
 0x394   : > { %v7886_v11 = vpop.f32.mrb[46].mxu0  ;;  %v10761_v20 = vrot.slane %v4138_v60, 4  ;;  %v3941_v45 = vld [vmem:[#allocation3 + $0x74] sm:$0x1]  ;;  %v5059_v32 = vor.u32 %v5058_v43, %v10717_v14  ;;  %6896 = vmatmul.mubr.bf16.vlgmr.msra.gmra.mrb[96].mxu0 %v8487_v30  ;;  %v11616_v39 = vrot.slane %v10744_v48, 5  ;;  %v4162_v29 = vor.u32 %v4161_v16, %v4158_v8  ;;  %8336 = vmatpush3.bf16.msra.mxu1 %v10713_v35  ;;  %v11686_v44 = vld [vmem:[#allocation8_spill] sm:$0xff] }
 0x395   : > { %v10753_v31 = vsel %vm9984_vm5, %v11685_v15, %v11684_v2  ;;  %v5069_v2 = vor.u32 %v5068_v58, %v10719_v50  ;;  %v7887_v15 = vpop.f32.mrb[47].mxu0  ;;  %v4172_v53 = vor.u32 %v4171_v28, %v10730_v3  ;;  %v5072_v56 = vshll.u32 %v4880_v46, 16  ;;  %v11687_v24 = vld [vmem:[#allocation17_spill] sm:$0xff]  ;;  %8268 = vmatpush3.bf16.msra.mxu0 %v10583_v4  ;;  %v10776_v58 = vld [vmem:[%s11607_s2 + $0x238] sm:$0xff]   ;;  %8329 = vmatprep.subr.bf16.mxu1 %v10759_v22 }
 0x396   : > { %v10769_v33 = vadd.f32 %v7885_v6, %v11686_v44  ;;  %v7888_v60 = vadd.f32 %v7887_v15, %v7886_v11  ;;  %6903 = vmatprep.mubr.bf16.mxu0 %v11687_v24  ;;  %v5086_v14 = vshll.u32 %v4882_v26, 16  ;;  %v5090_v43 = vshrl.u32 %v4882_v26, 16  ;;  %8269 = vmatprep.subr.bf16.mxu0 %v10564_v34  ;;  %v11688_v16 = vld [vmem:[#allocation9_spill] sm:$0xff] }
 0x397   : > { %v10778_v30 = vrot.slane %v4148_v17, 4  ;;  %v4175_v28 = vshll.u32 %v3941_v45, 16  ;;  %v5079_v8 = vrot.slane %v5077_v1, 4  ;;  %v5082_v44 = vrot.slane %v5080_v55, 5  ;;  %6759 = vmatmul.mubr.bf16.gmra.mrb[76].mxu1 %v10463_v13  ;;  %v4453_v17 = vld [vmem:[#allocation3 + $0x74] sm:$0x1] }
 0x398   : > { %v10783_v46 = vadd.f32 %v7888_v60, %v11688_v16  ;;  %v11689_v4 = vrot.slane %v10605_v7, 5  ;;  %v10793_v6 = vrot.slane %v5059_v32, 4  ;;  %v10795_v11 = vrot.slane %v5069_v2, 4  ;;  %v11690_v1 = vld [vmem:[#allocation23_spill] sm:$0xff]  ;;  %v11691_v55 = vld [vmem:[#allocation22_spill] sm:$0xff]  ;;  %8337 = vmatpush3.bf16.msra.mxu1 %v10759_v22 }
 0x399   : > { %v11692_v45 = vcombine.low %v11690_v1, %v11691_v55  ;;  %v4153_v15 = vrot.slane %v4151_v19, 5  ;;  %v4451_v60 = vld [vmem:[#allocation3 + $0x6c] sm:$0xe]  ;;  %v4583_v13 = vrot.slane %v11616_v39, 4  ;;  %v4163_v7 = vrot.slane %v4162_v29, 4  ;;  %8270 = vmatpush3.bf16.msra.mxu0 %v10564_v34  ;;  %8330 = vmatprep.subr.bf16.mxu1 %v10776_v58  ;;  %v8488_v29 = vld [vmem:[#allocation3 + $0x24] sm:$0xff]  }
 0x39a   : > { %v10791_v26 = vsel %vm9984_vm5, %v10655_v25, %v11689_v4  ;;  %v4173_v24 = vrot.slane %v4172_v53, 4  ;;  %v7889_v25 = vpop.f32.mrb[48].mxu0  ;;  %v4144_v32 = vsel %vm9225_vm13, %v10761_v20, %v10707_v18  ;;  %v5074_v2 = vrot.slane %v5072_v56, 5  ;;  %v4883_v16 = vld [vmem:[#allocation3 + $0x74] sm:$0x1]  ;;  %8271 = vmatprep.subr.bf16.mxu0 %v10599_v41 }
 0x39b   : > { %6766 = vmatprep.mubr.bf16.mxu1 %v11692_v45  ;;  %v10808_v4 = vrot.slane %v5086_v14, 5  ;;  %v5092_v19 = vrot.slane %v5090_v43, 4  ;;  %v7890_v1 = vpop.f32.mrb[49].mxu0  ;;  %v4154_v53 = vsel %vm9225_vm13, %v10778_v30, %v4153_v15  ;;  %v4584_v55 = vrot.slane %v4453_v17, 5  ;;  %v10822_v43 = vld [vmem:[#allocation3 + $0x7c] sm:$0xf] }
 0x39c   : > { %v4177_v45 = vrot.slane %v4175_v28, 5  ;;  %v5083_v39 = vor.u32 %v5082_v44, %v5079_v8  ;;  %v7891_v18 = vadd.f32 %v7890_v1, %v7889_v25  ;;  %v7892_v56 = vpop.f32.mrb[50].mxu0  ;;  %v7501_v34 = vrot.slane %v4451_v60, 9  ;;  %v3942_v30 = vld [vmem:[#allocation3 + $0x78] sm:$0xf]  ;;  %6904 = vmatmul.mubr.bf16.gmra.mrb[100].mxu0 %v8488_v29  ;;  %8338 = vmatpush3.bf16.msra.mxu1 %v10776_v58 }
 0x39d   : > { %v5065_v20 = vsel %vm9225_vm13, %v10793_v6, %v10719_v50  ;;  %v5075_v14 = vsel %vm9225_vm13, %v10795_v11, %v5074_v2  ;;  %v7893_v17 = vpop.f32.mrb[51].mxu0  ;;  %v10826_v28 = vsel %vm9984_vm5, %v4583_v13, %v4584_v55  ;;  %v4168_v8 = vsel %vm9225_vm13, %v4163_v7, %v10730_v3  ;;  %v3943_v44 = vld [vmem:[#allocation3 + $0x7c] sm:$0xf]  ;;  %v11693_v11 = vld [vmem:[#allocation10_spill] sm:$0xff]  ;;  %6911 = vmatprep.mubr.bf16.mxu0 %v10484_v47 }
 0x39e   : > { %v4178_v50 = vsel %vm9225_vm13, %v4173_v24, %v4177_v45  ;;  %v5096_v6 = vshll.u32 %v4883_v16, 16  ;;  %v10835_v15 = vadd.f32 %v7891_v18, %v11693_v11  ;;  %v7894_v60 = vadd.f32 %v7893_v17, %v7892_v56  ;;  %8272 = vmatpush3.bf16.msra.mxu0 %v10599_v41  ;;  %v11695_v24 = vld [vmem:[#allocation11_spill] sm:$0xff] }
 0x39f   : > { %v5093_v13 = vor.u32 %v5092_v19, %v10808_v4  ;;  %v11617_v25 = vrot.slane %v10822_v43, 5  ;;  %v4180_v3 = vshrl.u32 %v3942_v30, 16  ;;  %v4183_v7 = vshll.u32 %v3942_v30, 16  ;;  %8273 = vmatprep.subr.bf16.mxu0 %v10650_v52  ;;  %6767 = vmatmul.mubr.bf16.gmra.mrb[80].mxu1 %v10524_v23  ;;  %v8490_v23 = vld [vmem:[#allocation3 + $0x30] sm:$0xff]  }
 0x3a0   : > { %11694 = vst [vmem:[#allocation16_spill] sm:$0xff] %v10835_v15  ;;  %v10841_v2 = vrot.slane %v5083_v39, 4  ;;  %v10845_v16 = vadd.f32 %v7894_v60, %v11695_v24  ;;  %v11697_v41 = vsel %vm9225_vm13, %v10639_v10, %v10641_v27  ;;  %v11698_v39 = vsel %vm9225_vm13, %v10637_v9, %v10556_v54  ;;  %v4884_v54 = vld [vmem:[#allocation3 + $0x78] sm:$0xf] }
 0x3a1   : > { %v10860_v19 = vcombine.low %v11698_v39, %v11697_v41  ;;  %v4189_v1 = vshll.u32 %v3943_v44, 16  ;;  %v11699_v29 = vcombine.low %v10534_v61, %v10540_v37  ;;  %v10865_v55 = vcombine.low %v4144_v32, %v4154_v53  ;;  %v7895_v9 = vpop.f32.mrb[52].mxu0  ;;  %v10881_v37 = vld [vmem:[#allocation3 + $0x78] sm:$0xe]  ;;  %v4456_v32 = vld [vmem:[#allocation3 + $0x80] sm:$0x1] }
 0x3a2   : > { %11696 = vst [vmem:[#allocation21_spill] sm:$0xff] %v10845_v16  ;;  %v11700_v45 = vrot.slane %v10744_v48, 5  ;;  %v4193_v27 = vshrl.u32 %v3943_v44, 16  ;;  %v10873_v18 = vrot.slane %v5096_v6, 5  ;;  %v10877_v30 = vcombine.low %v4168_v8, %v4178_v50  ;;  %v3944_v48 = vld [vmem:[#allocation3 + $0x80] sm:$0x1]  ;;  %8274 = vmatpush3.bf16.msra.mxu0 %v10650_v52 }
 0x3a3   : > { %6774 = vmatprep.mubr.bf16.mxu1 %v11699_v29  ;;  %v10879_v61 = vcombine.low %v5065_v20, %v5075_v14  ;;  %v10883_v53 = vrot.slane %v5093_v13, 4  ;;  %v7896_v17 = vpop.f32.mrb[53].mxu0  ;;  %v4590_v44 = vrot.slane %v11617_v25, 4  ;;  %v4182_v6 = vrot.slane %v4180_v3, 4  ;;  %v3945_v14 = vld [vmem:[#allocation3 + $0x84] sm:$0xf]  ;;  %8275 = vmatprep.subr.bf16.mxu0 %v10683_v49 }
 0x3a4   : > { %v10871_v10 = vsel %vm9984_vm5, %v7501_v34, %v11700_v45  ;;  %v4885_v34 = vld [vmem:[#allocation3 + $0x7c] sm:$0xf]  ;;  %v4185_v11 = vrot.slane %v4183_v7, 5  ;;  %v7897_v8 = vadd.f32 %v7896_v17, %v7895_v9  ;;  %v7898_v50 = vpop.f32.mrb[54].mxu0  ;;  %v10893_v60 = vrot.slane %v4189_v1, 5  ;;  %6912 = vmatmul.mubr.bf16.gmra.mrb[104].mxu0 %v8490_v23  ;;  %v11703_v25 = vld [vmem:[#allocation26_spill] sm:$0xff] }
 0x3a5   : > { %v3946_v13 = vld [vmem:[#allocation3 + $0x88] sm:$0xf]  ;;  %v5101_v52 = vshrl.u32 %v4884_v54, 16  ;;  %v5104_v24 = vshll.u32 %v4884_v54, 16  ;;  %v7899_v41 = vpop.f32.mrb[55].mxu0  ;;  %v4195_v39 = vrot.slane %v4193_v27, 4  ;;  %6919 = vmatprep.mubr.bf16.mxu0 %v11703_v25 }
 0x3a6   : > { %v4199_v3 = vshll.u32 %v3944_v48, 16  ;;  %v5110_v7 = vshll.u32 %v4885_v34, 16  ;;  %v5114_v29 = vshrl.u32 %v4885_v34, 16  ;;  %v11701_v45 = vld [vmem:[#allocation12_spill] sm:$0xff]  ;;  %v7900_v20 = vadd.f32 %v7899_v41, %v7898_v50  ;;  %8276 = vmatpush3.bf16.msra.mxu0 %v10683_v49  ;;  %v11704_v23 = vld [vmem:[#allocation13_spill] sm:$0xff] }
 0x3a7   : > { %v10896_v56 = vadd.f32 %v7897_v8, %v11701_v45  ;;  %v4204_v47 = vshrl.u32 %v3945_v14, 16  ;;  %v4207_v9 = vshll.u32 %v3945_v14, 16  ;;  %v4591_v17 = vrot.slane %v4456_v32, 5  ;;  %8277 = vmatprep.subr.bf16.mxu0 %v10713_v35  ;;  %6775 = vmatmul.mubr.bf16.gmra.mrb[84].mxu1 %v10668_v38  ;;  %v10906_v34 = vld [vmem:[#allocation3 + $0x80] sm:$0x1] }
 0x3a8   : > { %v4213_v54 = vshll.u32 %v3946_v13, 16  ;;  %v4217_v16 = vshrl.u32 %v3946_v13, 16  ;;  %v10903_v27 = vadd.f32 %v7900_v20, %v11704_v23  ;;  %v4186_v48 = vor.u32 %v4185_v11, %v4182_v6  ;;  %v4887_v14 = vld [vmem:[#allocation3 + $0x84] sm:$0xf]  ;;  %v10916_v50 = vld [vmem:[#allocation3 + $0x88] sm:$0xf] }
 0x3a9   : > { %11702 = vst [vmem:[#allocation18_spill] sm:$0xff] %v10896_v56  ;;  %v5103_v25 = vrot.slane %v5101_v52, 4  ;;  %v5106_v8 = vrot.slane %v5104_v24, 5  ;;  %v11706_v49 = vcombine.low %v10676_v59, %v10635_v0  ;;  %v4196_v32 = vor.u32 %v4195_v39, %v10893_v60  ;;  %v4888_v11 = vld [vmem:[#allocation3 + $0x88] sm:$0xf]  ;;  %v7901_v13 = vpop.f32.mrb[56].mxu0 }
 0x3aa   : > { %11705 = vst [vmem:[#allocation8_spill] sm:$0xff] %v10903_v27  ;;  %v5099_v20 = vsel %vm9225_vm13, %v10883_v53, %v10873_v18  ;;  %v10918_v38 = vrot.slane %v5110_v7, 5  ;;  %v5116_v6 = vrot.slane %v5114_v29, 4  ;;  %v10922_v52 = vsel %vm9984_vm5, %v4590_v44, %v4591_v17  ;;  %v3947_v59 = vld [vmem:[#allocation3 + $0x8c] sm:$0x1]  ;;  %8278 = vmatpush3.bf16.msra.mxu0 %v10713_v35  ;;  %v7902_v39 = vpop.f32.mrb[57].mxu0 }
 0x3ab   : > { %6782 = vmatprep.mubr.bf16.mxu1 %v11706_v49  ;;  %v10924_v0 = vrot.slane %v4199_v3, 5  ;;  %v4206_v24 = vrot.slane %v4204_v47, 4  ;;  %v4209_v41 = vrot.slane %v4207_v9, 5  ;;  %v8491_v18 = vld [vmem:[#allocation3 + $0x3c] sm:$0xff]   ;;  %v10927_v53 = vrot.slane %v4213_v54, 5  ;;  %8279 = vmatprep.subr.bf16.mxu0 %v10759_v22  ;;  %v7904_v49 = vpop.f32.mrb[58].mxu0 }
 0x3ac   : > { %v4219_v7 = vrot.slane %v4217_v16, 4  ;;  %v5125_v45 = vshrl.u32 %v4887_v14, 16  ;;  %v5128_v29 = vshll.u32 %v4887_v14, 16  ;;  %v7903_v23 = vadd.f32 %v7902_v39, %v7901_v13  ;;  %v7905_v1 = vpop.f32.mrb[59].mxu0  ;;  %6920 = vmatmul.mubr.bf16.gmra.mrb[108].mxu0 %v8491_v18  ;;  %v11707_v16 = vld [vmem:[#allocation14_spill] sm:$0xff]  ;;  %v7813_v14 = vpop.f32.mrb[40].mxu1 }
 0x3ad   : > { %v10930_v44 = vrot.slane %v4186_v48, 4  ;;  %v5134_v3 = vshll.u32 %v4888_v11, 16  ;;  %v5138_v17 = vshrl.u32 %v4888_v11, 16  ;;  %v10932_v47 = vrot.slane %v4196_v32, 4  ;;  %6927 = vmatprep.mubr.bf16.mxu0 %v10678_v5  ;;  %v10940_v48 = vld [vmem:[#allocation3 + $0x84] sm:$0xe] }
 0x3ae   : > { %v5107_v35 = vor.u32 %v5106_v8, %v5103_v25  ;;  %v5117_v9 = vor.u32 %v5116_v6, %v10918_v38  ;;  %v5120_v54 = vshll.u32 %v10906_v34, 16  ;;  %v10937_v27 = vadd.f32 %v7903_v23, %v11707_v16  ;;  %8280 = vmatpush3.bf16.msra.mxu0 %v10759_v22  ;;  %v7814_v32 = vpop.f32.mrb[41].mxu1  ;;  %v10944_v25 = vld [vmem:[#allocation3 + $0x8c] sm:$0x1] }
 0x3af   : > { %v7906_v56 = vadd.f32 %v7905_v1, %v7904_v49  ;;  %v11618_v11 = vrot.slane %v10916_v50, 5  ;;  %v4223_v13 = vshll.u32 %v3947_v59, 16  ;;  %v4210_v8 = vor.u32 %v4209_v41, %v4206_v24  ;;  %8281 = vmatprep.subr.bf16.mxu0 %v10776_v58  ;;  %v11709_v1 = vld [vmem:[#allocation15_spill] sm:$0xff]  ;;  %v7816_v23 = vpop.f32.mrb[42].mxu1  ;;  %6783 = vmatmul.mubr.bf16.gmra.mrb[88].mxu1 %v10715_v51  ;;  %v8493_v41 = vld [vmem:[#allocation3 + $0x48] sm:$0xff]  }
 0x3b0   : > { %11708 = vst [vmem:[#allocation17_spill] sm:$0xff] %v10937_v27  ;;  %v4220_v34 = vor.u32 %v4219_v7, %v10927_v53  ;;  %v5127_v6 = vrot.slane %v5125_v45, 4  ;;  %v5130_v39 = vrot.slane %v5128_v29, 5  ;;  %v10951_v5 = vadd.f32 %v7814_v32, %v7813_v14  ;;  %v7817_v49 = vpop.f32.mrb[43].mxu1  ;;  %v10984_v14 = vld [vmem:[#allocation3 + $0x8c] sm:$0x1] }
 0x3b1   : > { %v10949_v18 = vadd.f32 %v7906_v56, %v11709_v1  ;;  %v10954_v59 = vrot.slane %v5134_v3, 5  ;;  %v5140_v22 = vrot.slane %v5138_v17, 4  ;;  %v11711_v24 = vcombine.low %v10753_v31, %v10791_v26  ;;  %v7907_v51 = vpop.f32.mrb[60].mxu0  ;;  %v11716_v27 = vld [vmem:[#allocation20_spill] sm:$0xff] }
 0x3b2   : > { %v10960_v45 = vrot.slane %v5107_v35, 4  ;;  %v10962_v56 = vrot.slane %v5117_v9, 4  ;;  %v10964_v29 = vrot.slane %v5120_v54, 5  ;;  %v10966_v16 = vadd.f32 %v7817_v49, %v7816_v23  ;;  %v3948_v54 = vld [vmem:[#allocation3 + $0x90] sm:$0xf]  ;;  %8282 = vmatpush3.bf16.msra.mxu0 %v10776_v58 }
 0x3b3   : > { %11710 = vst [vmem:[#allocation9_spill] sm:$0xff] %v10949_v18  ;;  %6790 = vmatprep.mubr.bf16.mxu1 %v11711_v24  ;;  %v11712_v3 = vrot.slane %v10822_v43, 5  ;;  %v11713_v17 = vrot.slane %v10881_v37, 9  ;;  %v11714_v26 = vsel %vm9225_vm13, %v10841_v2, %v10808_v4  ;;  %v4598_v9 = vrot.slane %v10944_v25, 5  ;;  %v7908_v43 = vpop.f32.mrb[61].mxu0 }
 0x3b4   : > { %v10981_v35 = vcombine.low %v11714_v26, %v5099_v20  ;;  %v4597_v32 = vrot.slane %v11618_v11, 4  ;;  %v10991_v1 = vrot.slane %v4210_v8, 4  ;;  %v10993_v23 = vrot.slane %v4223_v13, 5  ;;  %v3949_v4 = vld [vmem:[#allocation3 + $0x94] sm:$0xf]  ;;  %v7910_v20 = vpop.f32.mrb[62].mxu0  ;;  %6928 = vmatmul.mubr.bf16.gmra.mrb[112].mxu0 %v8493_v41 }
 0x3b5   : > { %v10974_v31 = vsel %vm9984_vm5, %v11713_v17, %v11712_v3  ;;  %v7909_v2 = vadd.f32 %v7908_v43, %v7907_v51  ;;  %v10995_v25 = vrot.slane %v4220_v34, 4  ;;  %v5131_v49 = vor.u32 %v5130_v39, %v5127_v6  ;;  %v4890_v58 = vld [vmem:[#allocation3 + $0x90] sm:$0xf]  ;;  %v4891_v3 = vld [vmem:[#allocation3 + $0x94] sm:$0xf]  ;;  %v7911_v17 = vpop.f32.mrb[63].mxu0  ;;  %6935 = vmatprep.mubr.bf16.mxu0 %v10860_v19 }
 0x3b6   : > { %v5141_v24 = vor.u32 %v5140_v22, %v10954_v59  ;;  %v11002_v26 = vld [vmem:[#allocation3 + $0x94] sm:$0xf]  ;;  %v4228_v13 = vshrl.u32 %v3948_v54, 16  ;;  %v4231_v37 = vshll.u32 %v3948_v54, 16  ;;  %v5144_v51 = vshll.u32 %v10984_v14, 16 }
 0x3b7   : > { %v11715_v34 = vld [vmem:[#allocation19_spill] sm:$0xff]  ;;  %v7912_v6 = vadd.f32 %v7911_v17, %v7910_v20  ;;  %v4237_v39 = vshll.u32 %v3949_v4, 16  ;;  %v4241_v22 = vshrl.u32 %v3949_v4, 16  ;;  %v5149_v41 = vshrl.u32 %v4890_v58, 16  ;;  %6791 = vmatmul.mubr.bf16.gmra.mrb[92].mxu1 %v10865_v55  ;;  %v3950_v20 = vld [vmem:[#allocation3 + $0x98] sm:$0x1] }
 0x3b8   : > { %v11006_v43 = vadd.f32 %v7909_v2, %v11715_v34  ;;  %v5152_v7 = vshll.u32 %v4890_v58, 16  ;;  %v5158_v11 = vshll.u32 %v4891_v3, 16  ;;  %v5162_v18 = vshrl.u32 %v4891_v3, 16  ;;  %v8494_v58 = vld [vmem:[#allocation3 + $0x54] sm:$0xff]  }
 0x3b9   : > { %v11010_v8 = vadd.f32 %v7912_v6, %v11716_v27  ;;  %v4602_v54 = vrot.slane %v11002_v26, 5  ;;  %v5132_v14 = vrot.slane %v5131_v49, 4  ;;  %v5142_v15 = vrot.slane %v5141_v24, 4  ;;  %v4462_v27 = vld [vmem:[#allocation3 + $0x98] sm:$0x1]  ;;  %v7913_v49 = vpop.f32.mrb[64].mxu0 }
 0x3ba   : > { %v11717_v2 = vcombine.low %v10871_v10, %v10826_v28  ;;  %v4202_v19 = vsel %vm9225_vm13, %v10932_v47, %v10924_v0  ;;  %v11023_v4 = vsel %vm9984_vm5, %v4597_v32, %v4598_v9  ;;  %v5113_v55 = vsel %vm9225_vm13, %v10960_v45, %v10918_v38  ;;  %v4460_v10 = vld [vmem:[#allocation3 + $0x90] sm:$0xe]  ;;  %v7914_v32 = vpop.f32.mrb[65].mxu0 }
 0x3bb   : > { %v5123_v28 = vsel %vm9225_vm13, %v10962_v56, %v10964_v29  ;;  %v4230_v24 = vrot.slane %v4228_v13, 4  ;;  %v4233_v0 = vrot.slane %v4231_v37, 5  ;;  %v11033_v47 = vrot.slane %v4237_v39, 5  ;;  %v7916_v34 = vpop.f32.mrb[66].mxu0  ;;  %v4892_v39 = vld [vmem:[#allocation3 + $0x98] sm:$0x1] }
 0x3bc   : > { %6798 = vmatprep.mubr.bf16.mxu1 %v11717_v2  ;;  %v4243_v9 = vrot.slane %v4241_v22, 4  ;;  %v5151_v3 = vrot.slane %v5149_v41, 4  ;;  %v5154_v17 = vrot.slane %v5152_v7, 5  ;;  %v11035_v26 = vrot.slane %v5158_v11, 5  ;;  %v7917_v13 = vpop.f32.mrb[67].mxu0  ;;  %6936 = vmatmul.mubr.bf16.gmra.mrb[116].mxu0 %v8494_v58  ;;  %v11718_v22 = vld [vmem:[#allocation24_spill] sm:$0xff] }
 0x3bd   : > { %v5164_v38 = vrot.slane %v5162_v18, 4  ;;  %v7915_v45 = vadd.f32 %v7914_v32, %v7913_v49  ;;  %v4216_v56 = vsel %vm9225_vm13, %v10991_v1, %v10927_v53  ;;  %v4226_v29 = vsel %vm9225_vm13, %v10995_v25, %v10993_v23  ;;  %6943 = vmatprep.mubr.bf16.mxu0 %v10879_v61  ;;  %v11719_v49 = vld [vmem:[#allocation25_spill] sm:$0xff]  ;;  %v3951_v58 = vld [vmem:[#allocation3 + $0x9c] sm:$0xf] }
 0x3be   : > { %v4604_v37 = vrot.slane %v4602_v54, 4  ;;  %v7504_v6 = vrot.slane %v4460_v10, 9  ;;  %v4247_v7 = vshll.u32 %v3950_v20, 16  ;;  %v5137_v11 = vsel %vm9225_vm13, %v5132_v14, %v10954_v59 }
 0x3bf   : > { %v5146_v18 = vrot.slane %v5144_v51, 5  ;;  %v11049_v41 = vadd.f32 %v7915_v45, %v11718_v22  ;;  %v7918_v53 = vadd.f32 %v7917_v13, %v7916_v34  ;;  %v4605_v1 = vrot.slane %v4462_v27, 5  ;;  %6799 = vmatmul.mubr.bf16.gmra.mrb[96].mxu1 %v10877_v30  ;;  %v3952_v45 = vld [vmem:[#allocation3 + $0xa0] sm:$0xf]  ;;  %v4893_v34 = vld [vmem:[#allocation3 + $0x9c] sm:$0xf] }
 0x3c0   : > { %v4234_v2 = vor.u32 %v4233_v0, %v4230_v24  ;;  %v4244_v23 = vor.u32 %v4243_v9, %v11033_v47  ;;  %v5155_v10 = vor.u32 %v5154_v17, %v5151_v3  ;;  %v5165_v20 = vor.u32 %v5164_v38, %v11035_v26  ;;  %v8496_v0 = vld [vmem:[#allocation3 + $0x60] sm:$0xff]  }
 0x3c1   : > { %v5147_v25 = vsel %vm9225_vm13, %v5142_v15, %v5146_v18  ;;  %v11057_v59 = vadd.f32 %v7918_v53, %v11719_v49  ;;  %v11720_v51 = vrot.slane %v10916_v50, 5  ;;  %v11721_v14 = vrot.slane %v10940_v48, 9  ;;  %v7919_v3 = vpop.f32.mrb[68].mxu0  ;;  %v11104_v49 = vld [vmem:[#allocation3 + $0xa4] sm:$0x1] }
 0x3c2   : > { %v11068_v27 = vsel %vm9984_vm5, %v4604_v37, %v4605_v1  ;;  %v5168_v15 = vshll.u32 %v4892_v39, 16  ;;  %v11722_v24 = vcombine.low %v10974_v31, %v10922_v52  ;;  %v11723_v30 = vsel %vm9225_vm13, %v10930_v44, %v10893_v60  ;;  %v7920_v60 = vpop.f32.mrb[69].mxu0 }
 0x3c3   : > { %v4596_v61 = vsel %vm9984_vm5, %v11721_v14, %v11720_v51  ;;  %v7486_v50 = vcombine.low %v11723_v30, %v4202_v19  ;;  %v11079_v9 = vcombine.low %v5113_v55, %v5123_v28  ;;  %v4249_v32 = vrot.slane %v4247_v7, 5  ;;  %v4894_v28 = vld [vmem:[#allocation3 + $0xa0] sm:$0xf] }
 0x3c4   : > { %6806 = vmatprep.mubr.bf16.mxu1 %v11722_v24  ;;  %v7519_v48 = vcombine.low %v4596_v61, %v11023_v4  ;;  %v11081_v17 = vcombine.low %v4216_v56, %v4226_v29  ;;  %v11085_v52 = vsel %vm9984_vm5, %v7504_v6, %v4602_v54  ;;  %v4235_v31 = vrot.slane %v4234_v2, 4  ;;  %v7922_v56 = vpop.f32.mrb[70].mxu0  ;;  %v11091_v29 = vld [vmem:[#allocation3 + $0xa0] sm:$0xf]  ;;  %6944 = vmatmul.mubr.bf16.gmra.mrb[120].mxu0 %v8496_v0  ;;  %v8497_v24 = vld [vmem:[#allocation3 + $0x6c] sm:$0xff]  }
 0x3c5   : > { %v11087_v38 = vcombine.low %v5137_v11, %v5147_v25  ;;  %v7520_v44 = vcombine.low %v11085_v52, %v11068_v27  ;;  %v4245_v19 = vrot.slane %v4244_v23, 4  ;;  %v5156_v4 = vrot.slane %v5155_v10, 4  ;;  %v7923_v7 = vpop.f32.mrb[71].mxu0  ;;  %6951 = vmatprep.mubr.bf16.mxu0 %v10981_v35 }
 0x3c6   : > { %v5166_v55 = vrot.slane %v5165_v20, 4  ;;  %v7921_v37 = vadd.f32 %v7920_v60, %v7919_v3  ;;  %v4252_v13 = vshrl.u32 %v3951_v58, 16  ;;  %v4255_v54 = vshll.u32 %v3951_v58, 16  ;;  %v11102_v20 = vld [vmem:[#allocation3 + $0x9c] sm:$0xe] }
 0x3c7   : > { %v5170_v6 = vrot.slane %v5168_v15, 5  ;;  %v4261_v11 = vshll.u32 %v3952_v45, 16  ;;  %v4265_v18 = vshrl.u32 %v3952_v45, 16  ;;  %v5173_v39 = vshrl.u32 %v4893_v34, 16  ;;  %6807 = vmatmul.mubr.bf16.gmra.mrb[100].mxu1 %v7486_v50  ;;  %v3954_v15 = vld [vmem:[#allocation3 + $0xa8] sm:$0xf] }
 0x3c8   : > { %v5176_v22 = vshll.u32 %v4893_v34, 16  ;;  %v11094_v53 = vadd.f32 %v7921_v37, %v10724_v57  ;;  %v7924_v1 = vadd.f32 %v7923_v7, %v7922_v56  ;;  %v5182_v2 = vshll.u32 %v4894_v28, 16  ;;  %6814 = vmatprep.mubr.bf16.mxu1 %v7519_v48  ;;  %v3953_v45 = vld [vmem:[#allocation3 + $0xa4] sm:$0x1] }
 0x3c9   : > { %v5186_v23 = vshrl.u32 %v4894_v28, 16  ;;  %v4240_v25 = vsel %vm9225_vm13, %v4235_v31, %v11033_v47  ;;  %v4250_v10 = vsel %vm9225_vm13, %v4245_v19, %v4249_v32  ;;  %v5161_v57 = vsel %vm9225_vm13, %v5156_v4, %v11035_v26  ;;  %v3955_v32 = vld [vmem:[#allocation3 + $0xac] sm:$0xf]  ;;  %v7925_v3 = vpop.f32.mrb[72].mxu0  ;;  %v4895_v28 = vld [vmem:[#allocation3 + $0xa4] sm:$0x1] }
 0x3ca   : > { %v5171_v35 = vsel %vm9225_vm13, %v5166_v55, %v5170_v6  ;;  %v11112_v51 = vadd.f32 %v7924_v1, %v10733_v21  ;;  %v4609_v47 = vrot.slane %v11091_v29, 5  ;;  %v4254_v14 = vrot.slane %v4252_v13, 4  ;;  %v7926_v60 = vpop.f32.mrb[73].mxu0  ;;  %v4896_v6 = vld [vmem:[#allocation3 + $0xa8] sm:$0xf] }
 0x3cb   : > { %v4257_v61 = vrot.slane %v4255_v54, 5  ;;  %v11115_v0 = vrot.slane %v4261_v11, 5  ;;  %v4267_v30 = vrot.slane %v4265_v18, 4  ;;  %v5175_v58 = vrot.slane %v5173_v39, 4  ;;  %v7928_v56 = vpop.f32.mrb[74].mxu0 }
 0x3cc   : > { %v5178_v26 = vrot.slane %v5176_v22, 5  ;;  %v11117_v31 = vcombine.low %v4240_v25, %v4250_v10  ;;  %v4612_v21 = vrot.slane %v11104_v49, 5  ;;  %v11120_v50 = vrot.slane %v5182_v2, 5  ;;  %v7929_v7 = vpop.f32.mrb[75].mxu0  ;;  %6952 = vmatmul.mubr.bf16.gmra.mrb[124].mxu0 %v8497_v24 }
 0x3cd   : > { %v5188_v34 = vrot.slane %v5186_v23, 4  ;;  %v7505_v19 = vrot.slane %v11102_v20, 9  ;;  %v11123_v48 = vcombine.low %v5161_v57, %v5171_v35  ;;  %v4276_v4 = vshrl.u32 %v3954_v15, 16  ;;  %v7819_v2 = vpop.f32.mrb[44].mxu1  ;;  %6959 = vmatprep.mubr.bf16.mxu0 %v11079_v9  ;;  %v4897_v20 = vld [vmem:[#allocation3 + $0xac] sm:$0xf] }
 0x3ce   : > { %v4279_v55 = vshll.u32 %v3954_v15, 16  ;;  %v7927_v37 = vadd.f32 %v7926_v60, %v7925_v3  ;;  %v4611_v29 = vrot.slane %v4609_v47, 4  ;;  %v4285_v13 = vshll.u32 %v3955_v32, 16  ;;  %v7820_v49 = vpop.f32.mrb[45].mxu1 }
 0x3cf   : > { %v4289_v54 = vshrl.u32 %v3955_v32, 16  ;;  %v4258_v11 = vor.u32 %v4257_v61, %v4254_v14  ;;  %v4268_v18 = vor.u32 %v4267_v30, %v11115_v0  ;;  %v4271_v39 = vshll.u32 %v3953_v45, 16  ;;  %6815 = vmatmul.mubr.bf16.gmra.mrb[104].mxu1 %v11081_v17  ;;  %v11137_v30 = vld [vmem:[#allocation3 + $0xac] sm:$0xf]  ;;  %v8499_v17 = vld [vmem:[#allocation3 + $0x78] sm:$0xff]  }
 0x3d0   : > { %v5179_v22 = vor.u32 %v5178_v26, %v5175_v58  ;;  %v11127_v1 = vadd.f32 %v7927_v37, %v10951_v5  ;;  %v7930_v23 = vadd.f32 %v7929_v7, %v7928_v56  ;;  %v5189_v25 = vor.u32 %v5188_v34, %v11120_v50  ;;  %v7822_v5 = vpop.f32.mrb[46].mxu1  ;;  %6822 = vmatprep.mubr.bf16.mxu1 %v7520_v44  ;;  %v3956_v56 = vld [vmem:[#allocation3 + $0xb0] sm:$0x1]  ;;  %v3958_v7 = vld [vmem:[#allocation3 + $0xb8] sm:$0xf] }
 0x3d1   : > { %v5192_v10 = vshll.u32 %v4895_v28, 16  ;;  %v4278_v57 = vrot.slane %v4276_v4, 4  ;;  %v4281_v35 = vrot.slane %v4279_v55, 5  ;;  %v5197_v15 = vshrl.u32 %v4896_v6, 16  ;;  %v7823_v58 = vpop.f32.mrb[47].mxu1 }
 0x3d2   : > { %v5200_v14 = vshll.u32 %v4896_v6, 16  ;;  %v11132_v61 = vadd.f32 %v7930_v23, %v10966_v16  ;;  %v11134_v24 = vadd.f32 %v7820_v49, %v7819_v2  ;;  %v11139_v9 = vrot.slane %v4285_v13, 5  ;;  %v3957_v4 = vld [vmem:[#allocation3 + $0xb4] sm:$0xf]  ;;  %v4468_v6 = vld [vmem:[#allocation3 + $0xb0] sm:$0x1] }
 0x3d3   : > { %v4291_v32 = vrot.slane %v4289_v54, 4  ;;  %v4610_v26 = vsel %vm9984_vm5, %v7505_v19, %v4609_v47  ;;  %v4613_v16 = vsel %vm9984_vm5, %v4611_v29, %v4612_v21  ;;  %v4259_v3 = vrot.slane %v4258_v11, 4  ;;  %v11158_v2 = vld [vmem:[#allocation3 + $0xb8] sm:$0xf]  ;;  %v4898_v49 = vld [vmem:[#allocation3 + $0xb0] sm:$0x1] }
 0x3d4   : > { %v4269_v45 = vrot.slane %v4268_v18, 4  ;;  %v11148_v34 = vadd.f32 %v7823_v58, %v7822_v5  ;;  %v5180_v60 = vrot.slane %v5179_v22, 4  ;;  %v5206_v55 = vshll.u32 %v4897_v20, 16  ;;  %6960 = vmatmul.mubr.bf16.gmra.mrb[128].mxu0 %v8499_v17 }
 0x3d5   : > { %v5210_v28 = vshrl.u32 %v4897_v20, 16  ;;  %v4616_v37 = vrot.slane %v11137_v30, 5  ;;  %v5190_v27 = vrot.slane %v5189_v25, 4  ;;  %v5199_v52 = vrot.slane %v5197_v15, 4  ;;  %6967 = vmatprep.mubr.bf16.mxu0 %v11087_v38  ;;  %v11199_v30 = vld [vmem:[#allocation3 + $0xc4] sm:$0xf] }
 0x3d6   : > { %v5202_v44 = vrot.slane %v5200_v14, 5  ;;  %v4273_v13 = vrot.slane %v4271_v39, 5  ;;  %v4282_v47 = vor.u32 %v4281_v35, %v4278_v57  ;;  %v4292_v19 = vor.u32 %v4291_v32, %v11139_v9 }
 0x3d7   : > { %v5194_v21 = vrot.slane %v5192_v10, 5  ;;  %v7521_v29 = vcombine.low %v4610_v26, %v4613_v16  ;;  %v4264_v54 = vsel %vm9225_vm13, %v4259_v3, %v11115_v0  ;;  %v4300_v11 = vshrl.u32 %v3957_v4, 16  ;;  %v4466_v10 = vld [vmem:[#allocation3 + $0xa8] sm:$0xe]  ;;  %6823 = vmatmul.mubr.bf16.gmra.mrb[108].mxu1 %v11117_v31 }
 0x3d8   : > { %v4303_v18 = vshll.u32 %v3957_v4, 16  ;;  %v4274_v22 = vsel %vm9225_vm13, %v4269_v45, %v4273_v13  ;;  %v4295_v39 = vshll.u32 %v3956_v56, 16  ;;  %v11160_v23 = vrot.slane %v5206_v55, 5  ;;  %v8500_v4 = vld [vmem:[#allocation3 + $0x84] sm:$0xff]   ;;  %v4469_v56 = vld [vmem:[#allocation3 + $0xb4] sm:$0xe] }
 0x3d9   : > { %v5212_v25 = vrot.slane %v5210_v28, 4  ;;  %v4618_v20 = vrot.slane %v4616_v37, 4  ;;  %v5185_v0 = vsel %vm9225_vm13, %v5180_v60, %v11120_v50  ;;  %v5195_v38 = vsel %vm9225_vm13, %v5190_v27, %v5194_v21  ;;  %6830 = vmatprep.mubr.bf16.mxu1 %v7521_v29  ;;  %v4899_v60 = vld [vmem:[#allocation3 + $0xb4] sm:$0xf]  ;;  %v4471_v13 = vld [vmem:[#allocation3 + $0xbc] sm:$0x1] }
 0x3da   : > { %v5203_v57 = vor.u32 %v5202_v44, %v5199_v52  ;;  %v4283_v35 = vrot.slane %v4282_v47, 4  ;;  %v4293_v15 = vrot.slane %v4292_v19, 4  ;;  %v4309_v14 = vshll.u32 %v3958_v7, 16  ;;  %v3959_v47 = vld [vmem:[#allocation3 + $0xbc] sm:$0x1] }
 0x3db   : > { %v4313_v5 = vshrl.u32 %v3958_v7, 16  ;;  %v4619_v32 = vrot.slane %v4468_v6, 5  ;;  %v4623_v58 = vrot.slane %v11158_v2, 5  ;;  %v4302_v26 = vrot.slane %v4300_v11, 4  ;;  %v4900_v6 = vld [vmem:[#allocation3 + $0xb8] sm:$0xf] }
 0x3dc   : > { %v4305_v16 = vrot.slane %v4303_v18, 5  ;;  %v7506_v3 = vrot.slane %v4466_v10, 9  ;;  %v4297_v45 = vrot.slane %v4295_v39, 5  ;;  %v5213_v50 = vor.u32 %v5212_v25, %v11160_v23  ;;  %6968 = vmatmul.mubr.bf16.gmra.mrb[132].mxu0 %v8500_v4 }
 0x3dd   : > { %v5216_v17 = vshll.u32 %v4898_v49, 16  ;;  %v7489_v55 = vcombine.low %v4264_v54, %v4274_v22  ;;  %v4620_v31 = vsel %vm9984_vm5, %v4618_v20, %v4619_v32  ;;  %v11174_v28 = vcombine.low %v5185_v0, %v5195_v38  ;;  %6975 = vmatprep.mubr.bf16.mxu0 %v11123_v48  ;;  %v3960_v0 = vld [vmem:[#allocation3 + $0xc0] sm:$0xf]  ;;  %v3961_v38 = vld [vmem:[#allocation3 + $0xc4] sm:$0xf] }
 0x3de   : > { %v11176_v27 = vrot.slane %v5203_v57, 4  ;;  %v4288_v52 = vsel %vm9225_vm13, %v4283_v35, %v11139_v9  ;;  %v4298_v44 = vsel %vm9225_vm13, %v4293_v15, %v4297_v45  ;;  %v11183_v19 = vrot.slane %v4309_v14, 5  ;;  %v4474_v32 = vld [vmem:[#allocation3 + $0xc8] sm:$0x1] }
 0x3df   : > { %v4315_v21 = vrot.slane %v4313_v5, 4  ;;  %v4625_v29 = vrot.slane %v4623_v58, 4  ;;  %v4306_v54 = vor.u32 %v4305_v16, %v4302_v26  ;;  %v5221_v7 = vshrl.u32 %v4899_v60, 16  ;;  %6831 = vmatmul.mubr.bf16.gmra.mrb[112].mxu1 %v7489_v55 }
 0x3e0   : > { %v5224_v11 = vshll.u32 %v4899_v60, 16  ;;  %v4617_v9 = vsel %vm9984_vm5, %v7506_v3, %v4616_v37  ;;  %v7507_v18 = vrot.slane %v4469_v56, 9  ;;  %v11190_v22 = vrot.slane %v5213_v50, 4  ;;  %v4901_v56 = vld [vmem:[#allocation3 + $0xbc] sm:$0x1] }
 0x3e1   : > { %v11192_v39 = vrot.slane %v5216_v17, 5  ;;  %v7522_v2 = vcombine.low %v4617_v9, %v4620_v31  ;;  %v7490_v25 = vcombine.low %v4288_v52, %v4298_v44  ;;  %v4626_v10 = vrot.slane %v4471_v13, 5  ;;  %v7931_v50 = vpop.f32.mrb[76].mxu0  ;;  %v8502_v17 = vld [vmem:[#allocation3 + $0x90] sm:$0xff]   ;;  %v4902_v9 = vld [vmem:[#allocation3 + $0xc0] sm:$0xf] }
 0x3e2   : > { %v4319_v20 = vshll.u32 %v3959_v47, 16  ;;  %v4316_v49 = vor.u32 %v4315_v21, %v11183_v19  ;;  %v5209_v48 = vsel %vm9225_vm13, %v11176_v27, %v11160_v23  ;;  %v5230_v37 = vshll.u32 %v4900_v6, 16  ;;  %v7932_v52 = vpop.f32.mrb[77].mxu0  ;;  %v4472_v47 = vld [vmem:[#allocation3 + $0xc0] sm:$0xe] }
 0x3e3   : > { %v5234_v57 = vshrl.u32 %v4900_v6, 16  ;;  %6838 = vmatprep.mubr.bf16.mxu1 %v7522_v2  ;;  %v4627_v35 = vsel %vm9984_vm5, %v4625_v29, %v4626_v10  ;;  %v11203_v15 = vrot.slane %v4306_v54, 4  ;;  %v5223_v14 = vrot.slane %v5221_v7, 4  ;;  %v7934_v6 = vpop.f32.mrb[78].mxu0  ;;  %v4904_v23 = vld [vmem:[#allocation3 + $0xc8] sm:$0x1] }
 0x3e4   : > { %v5226_v5 = vrot.slane %v5224_v11, 5  ;;  %v4324_v26 = vshrl.u32 %v3960_v0, 16  ;;  %v4327_v16 = vshll.u32 %v3960_v0, 16  ;;  %v4333_v3 = vshll.u32 %v3961_v38, 16  ;;  %6976 = vmatmul.mubr.bf16.gmra.mrb[136].mxu0 %v8502_v17 }
 0x3e5   : > { %v4337_v45 = vshrl.u32 %v3961_v38, 16  ;;  %v4624_v60 = vsel %vm9984_vm5, %v7507_v18, %v4623_v58  ;;  %v4321_v4 = vrot.slane %v4319_v20, 5  ;;  %v5219_v55 = vsel %vm9225_vm13, %v11190_v22, %v11192_v39  ;;  %v4903_v18 = vld [vmem:[#allocation3 + $0xc4] sm:$0xf]  ;;  %v7935_v22 = vpop.f32.mrb[79].mxu0  ;;  %6983 = vmatprep.mubr.bf16.mxu0 %v11174_v28 }
 0x3e6   : > { %v4630_v31 = vrot.slane %v11199_v30, 5  ;;  %v7523_v44 = vcombine.low %v4624_v60, %v4627_v35  ;;  %v4317_v13 = vrot.slane %v4316_v49, 4  ;;  %v11212_v21 = vrot.slane %v5230_v37, 5  ;;  %v3962_v37 = vld [vmem:[#allocation3 + $0xc8] sm:$0x1] }
 0x3e7   : > { %v5236_v29 = vrot.slane %v5234_v57, 4  ;;  %v7933_v54 = vadd.f32 %v7932_v52, %v7931_v50  ;;  %v4312_v58 = vsel %vm9225_vm13, %v11203_v15, %v11183_v19  ;;  %v4633_v7 = vrot.slane %v4474_v32, 5  ;;  %v11224_v19 = vld [vmem:[#allocation3 + $0x30] sm:$0xe]  ;;  %6839 = vmatmul.mubr.bf16.gmra.mrb[116].mxu1 %v7490_v25  ;;  %v11229_v15 = vld [vmem:[#allocation3 + $0x34] sm:$0xf] }
 0x3e8   : > { %v5227_v11 = vor.u32 %v5226_v5, %v5223_v14  ;;  %v4326_v39 = vrot.slane %v4324_v26, 4  ;;  %v4329_v2 = vrot.slane %v4327_v16, 5  ;;  %v11219_v10 = vrot.slane %v4333_v3, 5  ;;  %6846 = vmatprep.mubr.bf16.mxu1 %v7523_v44  ;;  %v8503_v50 = vld [vmem:[#allocation3 + $0x9c] sm:$0xff]  }
 0x3e9   : > { %v4339_v20 = vrot.slane %v4337_v45, 4  ;;  %v11222_v0 = vadd.f32 %v7933_v54, %v11134_v24  ;;  %v7936_v38 = vadd.f32 %v7935_v22, %v7934_v6  ;;  %v7508_v49 = vrot.slane %v4472_v47, 9  ;;  %v4906_v54 = vld [vmem:[#allocation3 + $0xd0] sm:$0xf] }
 0x3ea   : > { %v4632_v30 = vrot.slane %v4630_v31, 4  ;;  %v4322_v57 = vsel %vm9225_vm13, %v4317_v13, %v4321_v4  ;;  %v5237_v28 = vor.u32 %v5236_v29, %v11212_v21  ;;  %v5240_v35 = vshll.u32 %v4901_v56, 16  ;;  %v4905_v29 = vld [vmem:[#allocation3 + $0xcc] sm:$0xf] }
 0x3eb   : > { %v5245_v14 = vshrl.u32 %v4902_v9, 16  ;;  %v11232_v5 = vadd.f32 %v7936_v38, %v11148_v34  ;;  %v5248_v24 = vshll.u32 %v4902_v9, 16  ;;  %v5254_v32 = vshll.u32 %v4903_v18, 16  ;;  %v5380_v34 = vld [vmem:[#allocation3 + $0x38] sm:$0x1] }
 0x3ec   : > { %v5258_v26 = vshrl.u32 %v4903_v18, 16  ;;  %v4330_v16 = vor.u32 %v4329_v2, %v4326_v39  ;;  %v4340_v3 = vor.u32 %v4339_v20, %v11219_v10  ;;  %v4343_v25 = vshll.u32 %v3962_v37, 16  ;;  %6984 = vmatmul.mubr.bf16.gmra.mrb[140].mxu0 %v8503_v50  ;;  %v8505_v50 = vld [vmem:[#allocation3 + $0xa8] sm:$0xff]  }
 0x3ed   : > { %v7559_v45 = vrot.slane %v11224_v19, 9  ;;  %v4631_v17 = vsel %vm9984_vm5, %v7508_v49, %v4630_v31  ;;  %v4634_v60 = vsel %vm9984_vm5, %v4632_v30, %v4633_v7  ;;  %v5228_v4 = vrot.slane %v5227_v11, 4  ;;  %v11248_v11 = vld [vmem:[#allocation3 + $0x40] sm:$0xf]  ;;  %v7825_v18 = vpop.f32.mrb[48].mxu1 }
 0x3ee   : > { %v5484_v56 = vrot.slane %v11229_v15, 5  ;;  %v7491_v52 = vcombine.low %v4312_v58, %v4322_v57  ;;  %v7553_v44 = vcombine.low %v5209_v48, %v5219_v55  ;;  %v5238_v13 = vrot.slane %v5237_v28, 4  ;;  %v7826_v27 = vpop.f32.mrb[49].mxu1 }
 0x3ef   : > { %v5242_v47 = vrot.slane %v5240_v35, 5  ;;  %v5247_v31 = vrot.slane %v5245_v14, 4  ;;  %v5250_v6 = vrot.slane %v5248_v24, 5  ;;  %v11246_v9 = vrot.slane %v5254_v32, 5  ;;  %v7828_v30 = vpop.f32.mrb[50].mxu1 }
 0x3f0   : > { %v5260_v7 = vrot.slane %v5258_v26, 4  ;;  %6991 = vmatprep.mubr.bf16.mxu0 %v7553_v44  ;;  %v7524_v58 = vcombine.low %v4631_v17, %v4634_v60  ;;  %v4331_v22 = vrot.slane %v4330_v16, 4  ;;  %v4341_v39 = vrot.slane %v4340_v3, 4  ;;  %6847 = vmatmul.mubr.bf16.gmra.mrb[120].mxu1 %v7491_v52  ;;  %v7829_v35 = vpop.f32.mrb[51].mxu1  ;;  %v5385_v26 = vld [vmem:[#allocation3 + $0x4c] sm:$0xf] }
 0x3f1   : > { %v4345_v2 = vrot.slane %v4343_v25, 5  ;;  %v5269_v48 = vshrl.u32 %v4905_v29, 16  ;;  %v5272_v55 = vshll.u32 %v4905_v29, 16  ;;  %v5278_v20 = vshll.u32 %v4906_v54, 16 }
 0x3f2   : > { %v5282_v38 = vshrl.u32 %v4906_v54, 16  ;;  %v11250_v49 = vadd.f32 %v7826_v27, %v7825_v18  ;;  %v5233_v37 = vsel %vm9225_vm13, %v5228_v4, %v11212_v21  ;;  %v5486_v57 = vrot.slane %v5484_v56, 4  ;;  %6854 = vmatprep.mubr.bf16.mxu1 %v7524_v58 }
 0x3f3   : > { %v5487_v28 = vrot.slane %v5380_v34, 5  ;;  %v5243_v15 = vsel %vm9225_vm13, %v5238_v13, %v5242_v47  ;;  %v5251_v14 = vor.u32 %v5250_v6, %v5247_v31  ;;  %v5261_v24 = vor.u32 %v5260_v7, %v11246_v9  ;;  %v4907_v47 = vld [vmem:[#allocation3 + $0xd4] sm:$0x1]  ;;  %v5383_v31 = vld [vmem:[#allocation3 + $0x44] sm:$0x1] }
 0x3f4   : > { %v5264_v32 = vshll.u32 %v4904_v23, 16  ;;  %v11258_v16 = vadd.f32 %v7829_v35, %v7828_v30  ;;  %v4336_v3 = vsel %vm9225_vm13, %v4331_v22, %v11219_v10  ;;  %v4346_v21 = vsel %vm9225_vm13, %v4341_v39, %v4345_v2  ;;  %6992 = vmatmul.mubr.bf16.gmra.mrb[144].mxu0 %v8505_v50  ;;  %v5384_v22 = vld [vmem:[#allocation3 + $0x48] sm:$0xe]  ;;  %v5386_v39 = vld [vmem:[#allocation3 + $0x50] sm:$0x1] }
 0x3f5   : > { %v5491_v25 = vrot.slane %v11248_v11, 5  ;;  %v5271_v17 = vrot.slane %v5269_v48, 4  ;;  %v5274_v60 = vrot.slane %v5272_v55, 5  ;;  %v11266_v4 = vrot.slane %v5278_v20, 5  ;;  %v5381_v11 = vld [vmem:[#allocation3 + $0x3c] sm:$0xe] }
 0x3f6   : > { %v5284_v34 = vrot.slane %v5282_v38, 4  ;;  %v7554_v52 = vcombine.low %v5233_v37, %v5243_v15  ;;  %v5488_v44 = vsel %vm9984_vm5, %v5486_v57, %v5487_v28  ;;  %v5498_v13 = vrot.slane %v5385_v26, 5  ;;  %v5388_v20 = vld [vmem:[#allocation3 + $0x58] sm:$0xf]  ;;  %v5391_v38 = vld [vmem:[#allocation3 + $0x64] sm:$0xf] }
 0x3f7   : > { %v5252_v29 = vrot.slane %v5251_v14, 4  ;;  %v5262_v10 = vrot.slane %v5261_v24, 4  ;;  %v5266_v54 = vrot.slane %v5264_v32, 5  ;;  %v7492_v6 = vcombine.low %v4336_v3, %v4346_v21  ;;  %v8506_v28 = vld [vmem:[#allocation3 + $0xb4] sm:$0xff]  }
 0x3f8   : > { %6999 = vmatprep.mubr.bf16.mxu0 %v7554_v52  ;;  %v5485_v7 = vsel %vm9984_vm5, %v7559_v45, %v5484_v56  ;;  %v5493_v18 = vrot.slane %v5491_v25, 4  ;;  %v5275_v2 = vor.u32 %v5274_v60, %v5271_v17  ;;  %v5285_v23 = vor.u32 %v5284_v34, %v11266_v4  ;;  %v5387_v17 = vld [vmem:[#allocation3 + $0x54] sm:$0xe]  ;;  %v5389_v60 = vld [vmem:[#allocation3 + $0x5c] sm:$0x1] }
 0x3f9   : > { %v7575_v58 = vcombine.low %v5485_v7, %v5488_v44  ;;  %v5288_v27 = vshll.u32 %v4907_v47, 16  ;;  %6855 = vmatmul.mubr.bf16.gmra.mrb[124].mxu1 %v7492_v6  ;;  %v5494_v48 = vrot.slane %v5383_v31, 5  ;;  %v5500_v55 = vrot.slane %v5498_v13, 4  ;;  %v11288_v34 = vld [vmem:[#allocation3 + $0x1c] sm:$0xf] }
 0x3fa   : > { %v5257_v19 = vsel %vm9225_vm13, %v5252_v29, %v11246_v9  ;;  %v5267_v45 = vsel %vm9225_vm13, %v5262_v10, %v5266_v54  ;;  %v7560_v56 = vrot.slane %v5381_v11, 9  ;;  %v7561_v37 = vrot.slane %v5384_v22, 9  ;;  %v5390_v47 = vld [vmem:[#allocation3 + $0x60] sm:$0xe]  ;;  %v5392_v29 = vld [vmem:[#allocation3 + $0x68] sm:$0x1] }
 0x3fb   : > { %8287 = vmatprep.mubr.bf16.mxu1 %v7575_v58  ;;  %v5495_v30 = vsel %vm9984_vm5, %v5493_v18, %v5494_v48  ;;  %v5501_v57 = vrot.slane %v5386_v39, 5  ;;  %v5505_v35 = vrot.slane %v5388_v20, 5  ;;  %v5276_v15 = vrot.slane %v5275_v2, 4  ;;  %v11295_v31 = vld [vmem:[#allocation3 + $0x70] sm:$0xf] }
 0x3fc   : > { %v5286_v14 = vrot.slane %v5285_v23, 4  ;;  %v5290_v24 = vrot.slane %v5288_v27, 5  ;;  %v7555_v32 = vcombine.low %v5257_v19, %v5267_v45  ;;  %v5512_v9 = vrot.slane %v5391_v38, 5  ;;  %7000 = vmatmul.mubr.bf16.gmra.mrb[148].mxu0 %v8506_v28  ;;  %v11298_v11 = vld [vmem:[#allocation3 + $0x7c] sm:$0xf] }
 0x3fd   : > { %v5502_v26 = vsel %vm9984_vm5, %v5500_v55, %v5501_v57  ;;  %v5492_v3 = vsel %vm9984_vm5, %v7560_v56, %v5491_v25  ;;  %v5499_v50 = vsel %vm9984_vm5, %v7561_v37, %v5498_v13  ;;  %v5507_v44 = vrot.slane %v5505_v35, 4  ;;  %v5372_v39 = vld [vmem:[#allocation3 + $0x18] sm:$0xe]  ;;  %v5374_v23 = vld [vmem:[#allocation3 + $0x20] sm:$0x1] }
 0x3fe   : > { %7007 = vmatprep.mubr.bf16.mxu0 %v7555_v32  ;;  %v7576_v21 = vcombine.low %v5492_v3, %v5495_v30  ;;  %v7577_v52 = vcombine.low %v5499_v50, %v5502_v26  ;;  %v5281_v10 = vsel %vm9225_vm13, %v5276_v15, %v11266_v4  ;;  %v5291_v25 = vsel %vm9225_vm13, %v5286_v14, %v5290_v24  ;;  %v8507_v4 = vld [vmem:[#allocation3 + $0xc0] sm:$0xff]   ;;  %v11308_v37 = vld [vmem:[#allocation3 + $0x28] sm:$0xf]  ;;  %v5393_v24 = vld [vmem:[#allocation3 + $0x6c] sm:$0xe] }
 0x3ff   : > { %v5514_v54 = vrot.slane %v5512_v9, 4  ;;  %v7562_v13 = vrot.slane %v5387_v17, 9  ;;  %v5508_v6 = vrot.slane %v5389_v60, 5  ;;  %v5470_v7 = vrot.slane %v11288_v34, 5  ;;  %v5395_v32 = vld [vmem:[#allocation3 + $0x74] sm:$0x1] }
 0x400   : > { %v7563_v18 = vrot.slane %v5390_v47, 9  ;;  %v5515_v58 = vrot.slane %v5392_v29, 5  ;;  %v7556_v22 = vcombine.low %v5281_v10, %v5291_v25  ;;  %v5519_v27 = vrot.slane %v11295_v31, 5  ;;  %v5398_v17 = vld [vmem:[#allocation3 + $0x80] sm:$0x1] }
 0x401   : > { %8288 = vmatmul.mubr.bf16.vlgmr.msra.gmra.mrb[128].mxu1 %v7576_v21  ;;  %v7937_v2 = vpop.f32.mrb[80].mxu0  ;;  %v5509_v36 = vsel %vm9984_vm5, %v5507_v44, %v5508_v6  ;;  %v5526_v20 = vrot.slane %v11298_v11, 5  ;;  %v5506_v56 = vsel %vm9984_vm5, %v7562_v13, %v5505_v35  ;;  %v7557_v38 = vrot.slane %v5372_v39, 9  ;;  %v5396_v35 = vld [vmem:[#allocation3 + $0x78] sm:$0xe] }
 0x402   : > { %8291 = vmatprep.mubr.bf16.mxu1 %v7577_v52  ;;  %v7938_v48 = vpop.f32.mrb[81].mxu0  ;;  %v5516_v55 = vsel %vm9984_vm5, %v5514_v54, %v5515_v58  ;;  %v5472_v30 = vrot.slane %v5470_v7, 4  ;;  %v7578_v28 = vcombine.low %v5506_v56, %v5509_v36  ;;  %v5513_v15 = vsel %vm9984_vm5, %v7563_v18, %v5512_v9  ;;  %v5400_v52 = vld [vmem:[#allocation3 + $0x88] sm:$0xf]  ;;  %v8508_v9 = vld [vmem:[#allocation3 + $0xcc] sm:$0xff]  }
 0x403   : > { %v7939_v19 = vadd.f32 %v7938_v48, %v7937_v2  ;;  %v7940_v45 = vpop.f32.mrb[82].mxu0  ;;  %v5473_v14 = vrot.slane %v5374_v23, 5  ;;  %v7579_v21 = vcombine.low %v5513_v15, %v5516_v55  ;;  %v5521_v50 = vrot.slane %v5519_v27, 4  ;;  %v5403_v10 = vld [vmem:[#allocation3 + $0x94] sm:$0xf] }
 0x404   : > { %7008 = vmatmul.mubr.bf16.gmra.mrb[152].mxu0 %v8507_v4  ;;  %v7941_v57 = vpop.f32.mrb[83].mxu0  ;;  %v5528_v60 = vrot.slane %v5526_v20, 4  ;;  %v5477_v34 = vrot.slane %v11308_v37, 5  ;;  %v5522_v29 = vrot.slane %v5395_v32, 5  ;;  %v7565_v25 = vrot.slane %v5396_v35, 9 }
 0x405   : > { %7015 = vmatprep.mubr.bf16.mxu0 %v7556_v22  ;;  %v11313_v26 = vadd.f32 %v7939_v19, %v11250_v49  ;;  %v7942_v3 = vadd.f32 %v7941_v57, %v7940_v45  ;;  %v5474_v47 = vsel %vm9984_vm5, %v5472_v30, %v5473_v14  ;;  %v7564_v49 = vrot.slane %v5393_v24, 9  ;;  %v5375_v31 = vld [vmem:[#allocation3 + $0x24] sm:$0xe]  ;;  %v5377_v11 = vld [vmem:[#allocation3 + $0x2c] sm:$0x1] }
 0x406   : > { %v5529_v54 = vrot.slane %v5398_v17, 5  ;;  %v5471_v13 = vsel %vm9984_vm5, %v7557_v38, %v5470_v7  ;;  %v5523_v6 = vsel %vm9984_vm5, %v5521_v50, %v5522_v29  ;;  %v5479_v22 = vrot.slane %v5477_v34, 4  ;;  %v5399_v55 = vld [vmem:[#allocation3 + $0x84] sm:$0xe]  ;;  %v5401_v19 = vld [vmem:[#allocation3 + $0x8c] sm:$0x1] }
 0x407   : > { %v11317_v44 = vadd.f32 %v7942_v3, %v11258_v16  ;;  %v5533_v16 = vrot.slane %v5400_v52, 5  ;;  %v7573_v18 = vcombine.low %v5471_v13, %v5474_v47  ;;  %v5540_v39 = vrot.slane %v5403_v10, 5  ;;  %v5402_v30 = vld [vmem:[#allocation3 + $0x90] sm:$0xe]  ;;  %v5404_v37 = vld [vmem:[#allocation3 + $0x98] sm:$0x1] }
 0x408   : > { %v5530_v58 = vsel %vm9984_vm5, %v5528_v60, %v5529_v54  ;;  %v5520_v2 = vsel %vm9984_vm5, %v7564_v49, %v5519_v27  ;;  %v7558_v4 = vrot.slane %v5375_v31, 9  ;;  %v5527_v7 = vsel %vm9984_vm5, %v7565_v25, %v5526_v20  ;;  %v5406_v14 = vld [vmem:[#allocation3 + $0xa0] sm:$0xf]  ;;  %v5409_v3 = vld [vmem:[#allocation3 + $0xac] sm:$0xf] }
 0x409   : > { %8292 = vmatmul.mubr.bf16.gmra.mrb[132].mxu1 %v7578_v28  ;;  %v7580_v23 = vcombine.low %v5520_v2, %v5523_v6  ;;  %v5480_v48 = vrot.slane %v5377_v11, 5  ;;  %v7581_v56 = vcombine.low %v5527_v7, %v5530_v58  ;;  %v5535_v38 = vrot.slane %v5533_v16, 4  ;;  %v5407_v54 = vld [vmem:[#allocation3 + $0xa4] sm:$0x1]  ;;  %v5408_v6 = vld [vmem:[#allocation3 + $0xa8] sm:$0xe] }
 0x40a   : > { %8295 = vmatprep.mubr.bf16.mxu1 %v7579_v21  ;;  %v5542_v15 = vrot.slane %v5540_v39, 4  ;;  %v7566_v20 = vrot.slane %v5399_v55, 9  ;;  %v5536_v32 = vrot.slane %v5401_v19, 5  ;;  %v5478_v50 = vsel %vm9984_vm5, %v7558_v4, %v5477_v34  ;;  %v5405_v34 = vld [vmem:[#allocation3 + $0x9c] sm:$0xe] }
 0x40b   : > { %v5481_v27 = vsel %vm9984_vm5, %v5479_v22, %v5480_v48  ;;  %v7567_v35 = vrot.slane %v5402_v30, 9  ;;  %v5543_v17 = vrot.slane %v5404_v37, 5  ;;  %v5554_v49 = vrot.slane %v5409_v3, 5  ;;  %v5410_v11 = vld [vmem:[#allocation3 + $0xb0] sm:$0x1] }
 0x40c   : > { %7016 = vmatmul.mubr.bf16.gmra.mrb[156].mxu0 %v8508_v9  ;;  %v7574_v60 = vcombine.low %v5478_v50, %v5481_v27  ;;  %v5537_v52 = vsel %vm9984_vm5, %v5535_v38, %v5536_v32  ;;  %v5547_v9 = vrot.slane %v5406_v14, 5  ;;  %v5534_v29 = vsel %vm9984_vm5, %v7566_v20, %v5533_v16  ;;  %v5412_v58 = vld [vmem:[#allocation3 + $0xb8] sm:$0xf]  ;;  %v5415_v4 = vld [vmem:[#allocation3 + $0xc4] sm:$0xf] }
 0x40d   : > { %v7831_v36 = vpop.f32.mrb[52].mxu1  ;;  %8283 = vmatprep.mubr.bf16.mxu0 %v7573_v18  ;;  %v5544_v47 = vsel %vm9984_vm5, %v5542_v15, %v5543_v17  ;;  %v7582_v10 = vcombine.low %v5534_v29, %v5537_v52  ;;  %v5541_v25 = vsel %vm9984_vm5, %v7567_v35, %v5540_v39  ;;  %v5556_v18 = vrot.slane %v5554_v49, 4  ;;  %v5411_v19 = vld [vmem:[#allocation3 + $0xb4] sm:$0xe]  ;;  %v5413_v37 = vld [vmem:[#allocation3 + $0xbc] sm:$0x1] }
 0x40e   : > { %v7832_v45 = vpop.f32.mrb[53].mxu1  ;;  %v7583_v31 = vcombine.low %v5541_v25, %v5544_v47  ;;  %v5549_v13 = vrot.slane %v5547_v9, 4  ;;  %v7568_v22 = vrot.slane %v5405_v34, 9  ;;  %v5550_v2 = vrot.slane %v5407_v54, 5  ;;  %v5417_v35 = vld [vmem:[#allocation3 + $0xcc] sm:$0xe] }
 0x40f   : > { %v11331_v57 = vadd.f32 %v7832_v45, %v7831_v36  ;;  %v7834_v28 = vpop.f32.mrb[54].mxu1  ;;  %v7569_v36 = vrot.slane %v5408_v6, 9  ;;  %v5561_v7 = vrot.slane %v5412_v58, 5  ;;  %v5568_v48 = vrot.slane %v5415_v4, 5  ;;  %v5414_v45 = vld [vmem:[#allocation3 + $0xc0] sm:$0xe] }
 0x410   : > { %v7835_v24 = vpop.f32.mrb[55].mxu1  ;;  %v5551_v16 = vsel %vm9984_vm5, %v5549_v13, %v5550_v2  ;;  %v5548_v55 = vsel %vm9984_vm5, %v7568_v22, %v5547_v9  ;;  %v7570_v14 = vrot.slane %v5411_v19, 9  ;;  %v5564_v3 = vrot.slane %v5413_v37, 5  ;;  %v5419_v17 = vld [vmem:[#allocation3 + $0xd4] sm:$0x1] }
 0x411   : > { %8296 = vmatmul.mubr.bf16.gmra.mrb[136].mxu1 %v7580_v23  ;;  %v11335_v21 = vadd.f32 %v7835_v24, %v7834_v28  ;;  %v5557_v23 = vrot.slane %v5410_v11, 5  ;;  %v7584_v38 = vcombine.low %v5548_v55, %v5551_v16  ;;  %v5555_v30 = vsel %vm9984_vm5, %v7569_v36, %v5554_v49  ;;  %v5418_v28 = vld [vmem:[#allocation3 + $0xd0] sm:$0xf] }
 0x412   : > { %8299 = vmatprep.mubr.bf16.mxu1 %v7581_v56  ;;  %v5416_v56 = vld [vmem:[#allocation3 + $0xc8] sm:$0x1]  ;;  %v5563_v15 = vrot.slane %v5561_v7, 4  ;;  %v7571_v24 = vrot.slane %v5414_v45, 9  ;;  %v5570_v20 = vrot.slane %v5568_v48, 4  ;;  %v5575_v50 = vrot.slane %v5418_v28, 5 }
 0x413   : > { %v5558_v39 = vsel %vm9984_vm5, %v5556_v18, %v5557_v23  ;;  %v5571_v32 = vrot.slane %v5416_v56, 5  ;;  %v5562_v47 = vsel %vm9984_vm5, %v7570_v14, %v5561_v7  ;;  %v7572_v34 = vrot.slane %v5417_v35, 9 }
 0x414   : > { %8284 = vmatmul.mubr.bf16.vlgmr.msra.gmra.mrb[160].mxu0 %v7574_v60  ;;  %v7585_v27 = vcombine.low %v5555_v30, %v5558_v39  ;;  %v5565_v52 = vsel %vm9984_vm5, %v5563_v15, %v5564_v3  ;;  %v5569_v49 = vsel %vm9984_vm5, %v7571_v24, %v5568_v48  ;;  %v5577_v54 = vrot.slane %v5575_v50, 4 }
 0x415   : > { %v5572_v29 = vsel %vm9984_vm5, %v5570_v20, %v5571_v32  ;;  %v7586_v6 = vcombine.low %v5562_v47, %v5565_v52  ;;  %v5576_v2 = vsel %vm9984_vm5, %v7572_v34, %v5575_v50 }
 0x416   : > { %v7587_v58 = vcombine.low %v5569_v49, %v5572_v29 }
 0x419   : > { %8300 = vmatmul.mubr.bf16.gmra.mrb[140].mxu1 %v7582_v10 }
 0x41a   : > { %8303 = vmatprep.mubr.bf16.mxu1 %v7583_v31  ;;  %v5578_v31 = vrot.slane %v5419_v17, 5 }
 0x41c   : > { %v5579_v4 = vsel %vm9984_vm5, %v5577_v54, %v5578_v31 }
 0x41d   : > { %v7588_v36 = vcombine.low %v5576_v2, %v5579_v4 }
 0x421   : > { %8304 = vmatmul.mubr.bf16.gmra.mrb[144].mxu1 %v7584_v38  ;;  %v7943_v60 = vpop.f32.mrb[84].mxu0 }
 0x422   : > { %8307 = vmatprep.mubr.bf16.mxu1 %v7585_v27  ;;  %v7944_v9 = vpop.f32.mrb[85].mxu0 }
 0x423   : > { %v7945_v10 = vadd.f32 %v7944_v9, %v7943_v60  ;;  %v7946_v25 = vpop.f32.mrb[86].mxu0 }
 0x424   : > { %v7947_v13 = vpop.f32.mrb[87].mxu0 }
 0x425   : > { %v11364_v11 = vadd.f32 %v7945_v10, %v11331_v57  ;;  %v7948_v18 = vadd.f32 %v7947_v13, %v7946_v25 }
 0x427   : > { %v11367_v22 = vadd.f32 %v7948_v18, %v11335_v21 }
 0x429   : > { %8308 = vmatmul.mubr.bf16.gmra.mrb[148].mxu1 %v7586_v6 }
 0x42a   : > { %8311 = vmatprep.mubr.bf16.mxu1 %v7587_v58 }
 0x42d   : > { %v7837_v23 = vpop.f32.mrb[56].mxu1 }
 0x42e   : > { %v7838_v16 = vpop.f32.mrb[57].mxu1 }
 0x42f   : > { %v7839_v7 = vadd.f32 %v7838_v16, %v7837_v23  ;;  %v7840_v39 = vpop.f32.mrb[58].mxu1 }
 0x430   : > { %v7841_v57 = vpop.f32.mrb[59].mxu1 }
 0x431   : > { %8312 = vmatmul.mubr.bf16.gmra.mrb[152].mxu1 %v7588_v36  ;;  %v7842_v48 = vadd.f32 %v7841_v57, %v7840_v39  ;;  %v11724_v39 = vld [vmem:[#allocation27_spill] sm:$0xff] }
 0x43e   : > { %v7949_v55 = vpop.f32.mrb[88].mxu0 }
 0x43f   : > { %v7950_v19 = vpop.f32.mrb[89].mxu0 }
 0x440   : > { %v7951_v45 = vadd.f32 %v7950_v19, %v7949_v55  ;;  %v7952_v21 = vpop.f32.mrb[90].mxu0  ;;  %v11725_v55 = vld [vmem:[#allocation28_spill] sm:$0xff] }
 0x441   : > { %v7953_v56 = vpop.f32.mrb[91].mxu0 }
 0x442   : > { %v11373_v38 = vadd.f32 %v7951_v45, %v7839_v7  ;;  %v7954_v30 = vadd.f32 %v7953_v56, %v7952_v21 }
 0x444   : > { %v11375_v37 = vadd.f32 %v7954_v30, %v7842_v48 }
 0x44a   : > { %v7843_v63 = vpop.f32.mrb[60].mxu1 }
 0x44b   : > { %v7844_v28 = vpop.f32.mrb[61].mxu1 }
 0x44c   : > { %v7845_v27 = vadd.f32 %v7844_v28, %v7843_v63  ;;  %v7846_v15 = vpop.f32.mrb[62].mxu1 }
 0x44d   : > { %v7847_v14 = vpop.f32.mrb[63].mxu1 }
 0x44e   : > { %v7848_v24 = vadd.f32 %v7847_v14, %v7846_v15 }
 0x452   : > { %v7977_v20 = vpop.f32.mrb[64].mxu1 }
 0x453   : > { %v7978_v32 = vpop.f32.mrb[65].mxu1 }
 0x454   : > { %v7979_v3 = vadd.f32 %v7978_v32, %v7977_v20  ;;  %v7980_v50 = vpop.f32.mrb[66].mxu1 }
 0x455   : > { %v7981_v35 = vpop.f32.mrb[67].mxu1 }
 0x456   : > { %v6737_v17 = vadd.f32 %v7979_v3, %v10559_v62  ;;  %v7982_v60 = vadd.f32 %v7981_v35, %v7980_v50 }
 0x458   : > { %v6740_v52 = vadd.f32 %v7982_v60, %v10573_v40 }
 0x45a   : > { %v7983_v9 = vpop.f32.mrb[68].mxu1 }
 0x45b   : > { %v7984_v47 = vpop.f32.mrb[69].mxu1 }
 0x45c   : > { %v7985_v49 = vadd.f32 %v7984_v47, %v7983_v9  ;;  %v7986_v29 = vpop.f32.mrb[70].mxu1 }
 0x45d   : > { %v7987_v10 = vpop.f32.mrb[71].mxu1 }
 0x45e   : > { %v6745_v25 = vadd.f32 %v7985_v49, %v10644_v42  ;;  %v7988_v34 = vadd.f32 %v7987_v10, %v7986_v29 }
 0x45f   : > { %v7955_v54 = vpop.f32.mrb[92].mxu0 }
 0x460   : > { %v6748_v31 = vadd.f32 %v7988_v34, %v10659_v12  ;;  %v7956_v13 = vpop.f32.mrb[93].mxu0 }
 0x461   : > { %v7957_v6 = vadd.f32 %v7956_v13, %v7955_v54  ;;  %v7958_v18 = vpop.f32.mrb[94].mxu0 }
 0x462   : > { %v7989_v58 = vpop.f32.mrb[72].mxu1  ;;  %v7959_v2 = vpop.f32.mrb[95].mxu0 }
 0x463   : > { %v11381_v62 = vadd.f32 %v7957_v6, %v7845_v27  ;;  %v7990_v4 = vpop.f32.mrb[73].mxu1  ;;  %v7960_v40 = vadd.f32 %v7959_v2, %v7958_v18  ;;  %v11726_v18 = vld [vmem:[#allocation16_spill] sm:$0xff] }
 0x464   : > { %v7991_v36 = vadd.f32 %v7990_v4, %v7989_v58  ;;  %v7992_v23 = vpop.f32.mrb[74].mxu1  ;;  %v11727_v4 = vld [vmem:[#allocation21_spill] sm:$0xff] }
 0x465   : > { %v11383_v16 = vadd.f32 %v7960_v40, %v7848_v24  ;;  %v7993_v7 = vpop.f32.mrb[75].mxu1 }
 0x466   : > { %v6753_v42 = vadd.f32 %v7991_v36, %v11724_v39  ;;  %v7994_v57 = vadd.f32 %v7993_v7, %v7992_v23 }
 0x467   : > { %v8089_v48 = vpop.f32.mrb[96].mxu0 }
 0x468   : > { %v6756_v12 = vadd.f32 %v7994_v57, %v11725_v55  ;;  %v8090_v19 = vpop.f32.mrb[97].mxu0 }
 0x469   : > { %v8091_v45 = vadd.f32 %v8090_v19, %v8089_v48  ;;  %v8092_v21 = vpop.f32.mrb[98].mxu0 }
 0x46a   : > { %v7995_v56 = vpop.f32.mrb[76].mxu1  ;;  %v8093_v30 = vpop.f32.mrb[99].mxu0 }
 0x46b   : > { %v7996_v63 = vpop.f32.mrb[77].mxu1  ;;  %v8094_v28 = vadd.f32 %v8093_v30, %v8092_v21  ;;  %v11387_v27 = vadd.f32 %v8091_v45, %v6737_v17  ;;  %v11728_v21 = vld [vmem:[#allocation18_spill] sm:$0xff] }
 0x46c   : > { %v7997_v15 = vadd.f32 %v7996_v63, %v7995_v56  ;;  %v7998_v14 = vpop.f32.mrb[78].mxu1 }
 0x46d   : > { %v7999_v24 = vpop.f32.mrb[79].mxu1  ;;  %v11389_v20 = vadd.f32 %v8094_v28, %v6740_v52  ;;  %v11729_v28 = vld [vmem:[#allocation8_spill] sm:$0xff] }
 0x46e   : > { %v6761_v32 = vadd.f32 %v7997_v15, %v10769_v33  ;;  %v8000_v3 = vadd.f32 %v7999_v24, %v7998_v14 }
 0x46f   : > { %v8095_v50 = vpop.f32.mrb[100].mxu0 }
 0x470   : > { %v6764_v35 = vadd.f32 %v8000_v3, %v10783_v46  ;;  %v8096_v60 = vpop.f32.mrb[101].mxu0 }
 0x471   : > { %v8097_v9 = vadd.f32 %v8096_v60, %v8095_v50  ;;  %v8098_v47 = vpop.f32.mrb[102].mxu0 }
 0x472   : > { %v8001_v49 = vpop.f32.mrb[80].mxu1  ;;  %v8099_v29 = vpop.f32.mrb[103].mxu0 }
 0x473   : > { %v8002_v10 = vpop.f32.mrb[81].mxu1  ;;  %v8100_v34 = vadd.f32 %v8099_v29, %v8098_v47  ;;  %v11393_v17 = vadd.f32 %v8097_v9, %v6745_v25 }
 0x474   : > { %v8003_v54 = vadd.f32 %v8002_v10, %v8001_v49  ;;  %v8004_v13 = vpop.f32.mrb[82].mxu1 }
 0x475   : > { %v8005_v6 = vpop.f32.mrb[83].mxu1  ;;  %v11395_v52 = vadd.f32 %v8100_v34, %v6748_v31  ;;  %v11730_v34 = vld [vmem:[#allocation17_spill] sm:$0xff] }
 0x476   : > { %v6769_v33 = vadd.f32 %v8003_v54, %v11726_v18  ;;  %v8006_v58 = vadd.f32 %v8005_v6, %v8004_v13  ;;  %v11731_v18 = vld [vmem:[#allocation9_spill] sm:$0xff] }
 0x477   : > { %v8101_v2 = vpop.f32.mrb[104].mxu0 }
 0x478   : > { %v6772_v46 = vadd.f32 %v8006_v58, %v11727_v4  ;;  %v8102_v40 = vpop.f32.mrb[105].mxu0 }
 0x479   : > { %v8103_v36 = vadd.f32 %v8102_v40, %v8101_v2  ;;  %v8104_v23 = vpop.f32.mrb[106].mxu0 }
 0x47a   : > { %v8007_v7 = vpop.f32.mrb[84].mxu1  ;;  %v8105_v39 = vpop.f32.mrb[107].mxu0 }
 0x47b   : > { %v8008_v57 = vpop.f32.mrb[85].mxu1  ;;  %v8106_v48 = vadd.f32 %v8105_v39, %v8104_v23  ;;  %v11399_v25 = vadd.f32 %v8103_v36, %v6753_v42 }
 0x47c   : > { %v8009_v55 = vadd.f32 %v8008_v57, %v8007_v7  ;;  %v8010_v19 = vpop.f32.mrb[86].mxu1 }
 0x47d   : > { %v8011_v45 = vpop.f32.mrb[87].mxu1  ;;  %v11401_v31 = vadd.f32 %v8106_v48, %v6756_v12 }
 0x47e   : > { %v6777_v56 = vadd.f32 %v8009_v55, %v11728_v21  ;;  %v8012_v30 = vadd.f32 %v8011_v45, %v8010_v19 }
 0x47f   : > { %v8107_v63 = vpop.f32.mrb[108].mxu0 }
 0x480   : > { %v6780_v15 = vadd.f32 %v8012_v30, %v11729_v28  ;;  %v8108_v14 = vpop.f32.mrb[109].mxu0 }
 0x481   : > { %v8109_v24 = vadd.f32 %v8108_v14, %v8107_v63  ;;  %v8110_v3 = vpop.f32.mrb[110].mxu0 }
 0x482   : > { %v8013_v50 = vpop.f32.mrb[88].mxu1  ;;  %v8111_v60 = vpop.f32.mrb[111].mxu0 }
 0x483   : > { %v8014_v9 = vpop.f32.mrb[89].mxu1  ;;  %v8112_v47 = vadd.f32 %v8111_v60, %v8110_v3  ;;  %v11405_v42 = vadd.f32 %v8109_v24, %v6761_v32 }
 0x484   : > { %v8015_v49 = vadd.f32 %v8014_v9, %v8013_v50  ;;  %v8016_v29 = vpop.f32.mrb[90].mxu1 }
 0x485   : > { %v8017_v10 = vpop.f32.mrb[91].mxu1  ;;  %v11407_v12 = vadd.f32 %v8112_v47, %v6764_v35 }
 0x486   : > { %v6785_v54 = vadd.f32 %v8015_v49, %v11730_v34  ;;  %v8018_v13 = vadd.f32 %v8017_v10, %v8016_v29 }
 0x487   : > { %v8113_v6 = vpop.f32.mrb[112].mxu0 }
 0x488   : > { %v6788_v58 = vadd.f32 %v8018_v13, %v11731_v18  ;;  %v8114_v2 = vpop.f32.mrb[113].mxu0 }
 0x489   : > { %v8115_v4 = vadd.f32 %v8114_v2, %v8113_v6  ;;  %v8116_v40 = vpop.f32.mrb[114].mxu0 }
 0x48a   : > { %v8019_v36 = vpop.f32.mrb[92].mxu1  ;;  %v8117_v23 = vpop.f32.mrb[115].mxu0 }
 0x48b   : > { %v8020_v7 = vpop.f32.mrb[93].mxu1  ;;  %v8118_v39 = vadd.f32 %v8117_v23, %v8116_v40  ;;  %v11411_v32 = vadd.f32 %v8115_v4, %v6769_v33 }
 0x48c   : > { %v8021_v57 = vadd.f32 %v8020_v7, %v8019_v36  ;;  %v8022_v48 = vpop.f32.mrb[94].mxu1 }
 0x48d   : > { %v8023_v55 = vpop.f32.mrb[95].mxu1  ;;  %v11413_v35 = vadd.f32 %v8118_v39, %v6772_v46 }
 0x48e   : > { %v6793_v19 = vadd.f32 %v8021_v57, %v11006_v43  ;;  %v8024_v45 = vadd.f32 %v8023_v55, %v8022_v48 }
 0x48f   : > { %v8119_v21 = vpop.f32.mrb[116].mxu0 }
 0x490   : > { %v6796_v30 = vadd.f32 %v8024_v45, %v11010_v8  ;;  %v8120_v63 = vpop.f32.mrb[117].mxu0 }
 0x491   : > { %v8121_v28 = vadd.f32 %v8120_v63, %v8119_v21  ;;  %v8122_v14 = vpop.f32.mrb[118].mxu0 }
 0x492   : > { %v8025_v24 = vpop.f32.mrb[96].mxu1  ;;  %v8123_v3 = vpop.f32.mrb[119].mxu0 }
 0x493   : > { %v8026_v50 = vpop.f32.mrb[97].mxu1  ;;  %v8124_v60 = vadd.f32 %v8123_v3, %v8122_v14  ;;  %v11417_v33 = vadd.f32 %v8121_v28, %v6777_v56 }
 0x494   : > { %v8027_v9 = vadd.f32 %v8026_v50, %v8025_v24  ;;  %v8028_v47 = vpop.f32.mrb[98].mxu1 }
 0x495   : > { %v8029_v49 = vpop.f32.mrb[99].mxu1  ;;  %v11419_v46 = vadd.f32 %v8124_v60, %v6780_v15 }
 0x496   : > { %v6801_v43 = vadd.f32 %v8027_v9, %v11049_v41  ;;  %v8030_v29 = vadd.f32 %v8029_v49, %v8028_v47 }
 0x497   : > { %v8125_v10 = vpop.f32.mrb[120].mxu0 }
 0x498   : > { %v6804_v8 = vadd.f32 %v8030_v29, %v11057_v59  ;;  %v8126_v34 = vpop.f32.mrb[121].mxu0 }
 0x499   : > { %v8127_v13 = vadd.f32 %v8126_v34, %v8125_v10  ;;  %v8128_v6 = vpop.f32.mrb[122].mxu0 }
 0x49a   : > { %v8031_v18 = vpop.f32.mrb[100].mxu1  ;;  %v8129_v2 = vpop.f32.mrb[123].mxu0 }
 0x49b   : > { %v8032_v4 = vpop.f32.mrb[101].mxu1  ;;  %v8130_v40 = vadd.f32 %v8129_v2, %v8128_v6  ;;  %v11423_v56 = vadd.f32 %v8127_v13, %v6785_v54 }
 0x49c   : > { %v8033_v36 = vadd.f32 %v8032_v4, %v8031_v18  ;;  %v8034_v23 = vpop.f32.mrb[102].mxu1 }
 0x49d   : > { %v8035_v7 = vpop.f32.mrb[103].mxu1  ;;  %v11425_v15 = vadd.f32 %v8130_v40, %v6788_v58 }
 0x49e   : > { %v6809_v41 = vadd.f32 %v8033_v36, %v11094_v53  ;;  %v8036_v39 = vadd.f32 %v8035_v7, %v8034_v23 }
 0x49f   : > { %v8131_v57 = vpop.f32.mrb[124].mxu0 }
 0x4a0   : > { %v6812_v59 = vadd.f32 %v8036_v39, %v11112_v51  ;;  %v8132_v48 = vpop.f32.mrb[125].mxu0 }
 0x4a1   : > { %v8133_v55 = vadd.f32 %v8132_v48, %v8131_v57  ;;  %v8134_v45 = vpop.f32.mrb[126].mxu0 }
 0x4a2   : > { %v8037_v21 = vpop.f32.mrb[104].mxu1  ;;  %v8135_v63 = vpop.f32.mrb[127].mxu0 }
 0x4a3   : > { %v8038_v28 = vpop.f32.mrb[105].mxu1  ;;  %v8136_v14 = vadd.f32 %v8135_v63, %v8134_v45  ;;  %v11429_v54 = vadd.f32 %v8133_v55, %v6793_v19 }
 0x4a4   : > { %v8039_v24 = vadd.f32 %v8038_v28, %v8037_v21  ;;  %v8040_v3 = vpop.f32.mrb[106].mxu1 }
 0x4a5   : > { %v8041_v50 = vpop.f32.mrb[107].mxu1  ;;  %v11431_v58 = vadd.f32 %v8136_v14, %v6796_v30 }
 0x4a6   : > { %v6817_v53 = vadd.f32 %v8039_v24, %v11127_v1  ;;  %v8042_v60 = vadd.f32 %v8041_v50, %v8040_v3 }
 0x4a7   : > { %v8137_v9 = vpop.f32.mrb[128].mxu0 }
 0x4a8   : > { %v6820_v51 = vadd.f32 %v8042_v60, %v11132_v61  ;;  %v8138_v47 = vpop.f32.mrb[129].mxu0 }
 0x4a9   : > { %v8139_v49 = vadd.f32 %v8138_v47, %v8137_v9  ;;  %v8140_v29 = vpop.f32.mrb[130].mxu0 }
 0x4aa   : > { %v8043_v10 = vpop.f32.mrb[108].mxu1  ;;  %v8141_v34 = vpop.f32.mrb[131].mxu0 }
 0x4ab   : > { %v8044_v13 = vpop.f32.mrb[109].mxu1  ;;  %v8142_v6 = vadd.f32 %v8141_v34, %v8140_v29  ;;  %v11435_v19 = vadd.f32 %v8139_v49, %v6801_v43 }
 0x4ac   : > { %v8045_v18 = vadd.f32 %v8044_v13, %v8043_v10  ;;  %v8046_v2 = vpop.f32.mrb[110].mxu1 }
 0x4ad   : > { %v8047_v4 = vpop.f32.mrb[111].mxu1  ;;  %v11437_v30 = vadd.f32 %v8142_v6, %v6804_v8 }
 0x4ae   : > { %v6825_v1 = vadd.f32 %v8045_v18, %v11222_v0  ;;  %v8048_v40 = vadd.f32 %v8047_v4, %v8046_v2 }
 0x4af   : > { %v8143_v36 = vpop.f32.mrb[132].mxu0 }
 0x4b0   : > { %v6828_v61 = vadd.f32 %v8048_v40, %v11232_v5  ;;  %v8144_v23 = vpop.f32.mrb[133].mxu0 }
 0x4b1   : > { %v8145_v7 = vadd.f32 %v8144_v23, %v8143_v36  ;;  %v8146_v39 = vpop.f32.mrb[134].mxu0 }
 0x4b2   : > { %v8049_v57 = vpop.f32.mrb[112].mxu1  ;;  %v8147_v48 = vpop.f32.mrb[135].mxu0 }
 0x4b3   : > { %v8050_v55 = vpop.f32.mrb[113].mxu1  ;;  %v8148_v45 = vadd.f32 %v8147_v48, %v8146_v39  ;;  %v11441_v43 = vadd.f32 %v8145_v7, %v6809_v41 }
 0x4b4   : > { %v8051_v21 = vadd.f32 %v8050_v55, %v8049_v57  ;;  %v8052_v63 = vpop.f32.mrb[114].mxu1 }
 0x4b5   : > { %v8053_v28 = vpop.f32.mrb[115].mxu1  ;;  %v11443_v8 = vadd.f32 %v8148_v45, %v6812_v59 }
 0x4b6   : > { %v6833_v0 = vadd.f32 %v8051_v21, %v11313_v26  ;;  %v8054_v14 = vadd.f32 %v8053_v28, %v8052_v63 }
 0x4b7   : > { %v8149_v24 = vpop.f32.mrb[136].mxu0 }
 0x4b8   : > { %v6836_v5 = vadd.f32 %v8054_v14, %v11317_v44  ;;  %v8150_v3 = vpop.f32.mrb[137].mxu0 }
 0x4b9   : > { %v8151_v50 = vadd.f32 %v8150_v3, %v8149_v24  ;;  %v8152_v60 = vpop.f32.mrb[138].mxu0 }
 0x4ba   : > { %v8055_v9 = vpop.f32.mrb[116].mxu1  ;;  %v8153_v47 = vpop.f32.mrb[139].mxu0 }
 0x4bb   : > { %v8056_v49 = vpop.f32.mrb[117].mxu1  ;;  %v8154_v29 = vadd.f32 %v8153_v47, %v8152_v60  ;;  %v11447_v41 = vadd.f32 %v8151_v50, %v6817_v53 }
 0x4bc   : > { %v8057_v10 = vadd.f32 %v8056_v49, %v8055_v9  ;;  %v8058_v34 = vpop.f32.mrb[118].mxu1 }
 0x4bd   : > { %v8059_v13 = vpop.f32.mrb[119].mxu1  ;;  %v11449_v59 = vadd.f32 %v8154_v29, %v6820_v51 }
 0x4be   : > { %v6841_v26 = vadd.f32 %v8057_v10, %v11364_v11  ;;  %v8060_v6 = vadd.f32 %v8059_v13, %v8058_v34 }
 0x4bf   : > { %v8155_v18 = vpop.f32.mrb[140].mxu0 }
 0x4c0   : > { %v6844_v44 = vadd.f32 %v8060_v6, %v11367_v22  ;;  %v8156_v2 = vpop.f32.mrb[141].mxu0 }
 0x4c1   : > { %v8157_v4 = vadd.f32 %v8156_v2, %v8155_v18  ;;  %v8158_v40 = vpop.f32.mrb[142].mxu0 }
 0x4c2   : > { %v8159_v23 = vpop.f32.mrb[143].mxu0 }
 0x4c3   : > { %v8061_v36 = vpop.f32.mrb[120].mxu1  ;;  %v8160_v39 = vadd.f32 %v8159_v23, %v8158_v40  ;;  %v11453_v53 = vadd.f32 %v8157_v4, %v6825_v1 }
 0x4c4   : > { %v8062_v7 = vpop.f32.mrb[121].mxu1 }
 0x4c5   : > { %v8063_v57 = vadd.f32 %v8062_v7, %v8061_v36  ;;  %v8064_v48 = vpop.f32.mrb[122].mxu1  ;;  %v11455_v51 = vadd.f32 %v8160_v39, %v6828_v61 }
 0x4c6   : > { %v8065_v55 = vpop.f32.mrb[123].mxu1 }
 0x4c7   : > { %v6849_v11 = vadd.f32 %v8063_v57, %v11373_v38  ;;  %v8066_v45 = vadd.f32 %v8065_v55, %v8064_v48  ;;  %v8161_v21 = vpop.f32.mrb[144].mxu0 }
 0x4c8   : > { %v8162_v63 = vpop.f32.mrb[145].mxu0 }
 0x4c9   : > { %v6852_v22 = vadd.f32 %v8066_v45, %v11375_v37  ;;  %v8163_v28 = vadd.f32 %v8162_v63, %v8161_v21  ;;  %v8164_v14 = vpop.f32.mrb[146].mxu0 }
 0x4ca   : > { %v8165_v3 = vpop.f32.mrb[147].mxu0 }
 0x4cb   : > { %v8166_v50 = vadd.f32 %v8165_v3, %v8164_v14  ;;  %v11459_v60 = vadd.f32 %v8163_v28, %v6833_v0 }
 0x4cc   : > { %v8067_v24 = vpop.f32.mrb[124].mxu1 }
 0x4cd   : > { %v8068_v1 = vpop.f32.mrb[125].mxu1  ;;  %v11461_v49 = vadd.f32 %v8166_v50, %v6836_v5 }
 0x4ce   : > { %v8069_v9 = vadd.f32 %v8068_v1, %v8067_v24  ;;  %v8070_v61 = vpop.f32.mrb[126].mxu1 }
 0x4cf   : > { %v8071_v47 = vpop.f32.mrb[127].mxu1  ;;  %v8167_v37 = vpop.f32.mrb[148].mxu0 }
 0x4d0   : > { %v11464_v38 = vadd.f32 %v8069_v9, %v11381_v62  ;;  %v8072_v29 = vadd.f32 %v8071_v47, %v8070_v61  ;;  %v8168_v34 = vpop.f32.mrb[149].mxu0 }
 0x4d1   : > { %v8169_v13 = vadd.f32 %v8168_v34, %v8167_v37  ;;  %v8170_v0 = vpop.f32.mrb[150].mxu0 }
 0x4d2   : > { %v11468_v10 = vadd.f32 %v8072_v29, %v11383_v16  ;;  %v8171_v18 = vpop.f32.mrb[151].mxu0 }
 0x4d3   : > { %v8172_v4 = vadd.f32 %v8171_v18, %v8170_v0  ;;  %v11473_v40 = vadd.f32 %v8169_v13, %v6841_v26 }
 0x4d4   : > { %v8289_v6 = vpop.f32.mrb[128].mxu1 }
 0x4d5   : > { %v7083_v2 = vadd.f32 %v8289_v6, %v11405_v42  ;;  %v7074_v5 = vpop.f32.mrb[129].mxu1  ;;  %v11477_v39 = vadd.f32 %v8172_v4, %v6844_v44 }
 0x4d6   : > { %v7075_v62 = vadd.f32 %v7074_v5, %v11399_v25  ;;  %v8290_v36 = vpop.f32.mrb[130].mxu1 }
 0x4d7   : > { %v7191_v23 = vmax.f32 %v7083_v2, 0.0  ;;  %v7086_v16 = vadd.f32 %v8290_v36, %v11407_v12  ;;  %v7077_v7 = vpop.f32.mrb[131].mxu1  ;;  %v8173_v26 = vpop.f32.mrb[152].mxu0 }
 0x4d8   : > { %v7189_v57 = vmax.f32 %v7075_v62, 0.0  ;;  %v7078_v48 = vadd.f32 %v7077_v7, %v11401_v31  ;;  %v8174_v55 = vpop.f32.mrb[153].mxu0 }
 0x4d9   : > { %7223 = vst [vmem:[%s11480_s30 + $0x30] sm:$0xff] %v7191_v23  ;;  %v7192_v42 = vmax.f32 %v7086_v16, 0.0  ;;  %v8175_v12 = vadd.f32 %v8174_v55, %v8173_v26  ;;  %v8176_v45 = vpop.f32.mrb[154].mxu0 }
 0x4da   : > { %7221 = vst [vmem:[%s11480_s30 + $0x20] sm:$0xff] %v7189_v57  ;;  %v7190_v25 = vmax.f32 %v7078_v48, 0.0  ;;  %v8177_v21 = vpop.f32.mrb[155].mxu0 }
 0x4db   : > { %7224 = vst [vmem:[%s11480_s30 + $0x38] sm:$0xff] %v7192_v42  ;;  %v8178_v28 = vadd.f32 %v8177_v21, %v8176_v45  ;;  %v11487_v14 = vadd.f32 %v8175_v12, %v6849_v11 }
 0x4dc   : > { %7222 = vst [vmem:[%s11480_s30 + $0x28] sm:$0xff] %v7190_v25  ;;  %v8293_v44 = vpop.f32.mrb[132].mxu1 }
 0x4dd   : > { %v7099_v31 = vadd.f32 %v8293_v44, %v11417_v33  ;;  %v7090_v63 = vpop.f32.mrb[133].mxu1  ;;  %v11491_v61 = vadd.f32 %v8178_v28, %v6852_v22 }
 0x4de   : > { %v7091_v24 = vadd.f32 %v7090_v63, %v11411_v32  ;;  %v8294_v3 = vpop.f32.mrb[134].mxu1 }
 0x4df   : > { %v7195_v1 = vmax.f32 %v7099_v31, 0.0  ;;  %v7102_v50 = vadd.f32 %v8294_v3, %v11419_v46  ;;  %v7093_v9 = vpop.f32.mrb[135].mxu1  ;;  %v8179_v37 = vpop.f32.mrb[156].mxu0 }
 0x4e0   : > { %v7193_v47 = vmax.f32 %v7091_v24, 0.0  ;;  %v7094_v29 = vadd.f32 %v7093_v9, %v11413_v35  ;;  %v8180_v11 = vpop.f32.mrb[157].mxu0 }
 0x4e1   : > { %7227 = vst [vmem:[%s11480_s30 + $0x50] sm:$0xff] %v7195_v1  ;;  %v7196_v33 = vmax.f32 %v7102_v50, 0.0  ;;  %v8181_v13 = vadd.f32 %v8180_v11, %v8179_v37  ;;  %v8182_v32 = vpop.f32.mrb[158].mxu0 }
 0x4e2   : > { %7225 = vst [vmem:[%s11480_s30 + $0x40] sm:$0xff] %v7193_v47  ;;  %v7194_v34 = vmax.f32 %v7094_v29, 0.0  ;;  %v8183_v6 = vpop.f32.mrb[159].mxu0 }
 0x4e3   : > { %7228 = vst [vmem:[%s11480_s30 + $0x58] sm:$0xff] %v7196_v33  ;;  %v8184_v18 = vadd.f32 %v8183_v6, %v8182_v32  ;;  %v11500_v35 = vadd.f32 %v8181_v13, %v11464_v38 }
 0x4e4   : > { %7226 = vst [vmem:[%s11480_s30 + $0x48] sm:$0xff] %v7194_v34  ;;  %v8297_v0 = vpop.f32.mrb[136].mxu1 }
 0x4e5   : > { %v7115_v46 = vadd.f32 %v8297_v0, %v11429_v54  ;;  %v7106_v22 = vpop.f32.mrb[137].mxu1  ;;  %v11505_v23 = vadd.f32 %v8184_v18, %v11468_v10 }
 0x4e6   : > { %v7107_v2 = vadd.f32 %v7106_v22, %v11423_v56  ;;  %v8298_v5 = vpop.f32.mrb[138].mxu1 }
 0x4e7   : > { %v7199_v4 = vmax.f32 %v7115_v46, 0.0  ;;  %v7118_v62 = vadd.f32 %v8298_v5, %v11431_v58  ;;  %v7109_v36 = vpop.f32.mrb[139].mxu1  ;;  %v8285_v57 = vpop.f32.mrb[160].mxu0 }
 0x4e8   : > { %v7197_v16 = vmax.f32 %v7107_v2, 0.0  ;;  %v7110_v54 = vadd.f32 %v7109_v36, %v11425_v15  ;;  %v7067_v56 = vadd.f32 %v8285_v57, %v11393_v17  ;;  %v7058_v48 = vpop.f32.mrb[161].mxu0 }
 0x4e9   : > { %7231 = vst [vmem:[%s11480_s30 + $0x70] sm:$0xff] %v7199_v4  ;;  %v7200_v7 = vmax.f32 %v7118_v62, 0.0  ;;  %v7059_v58 = vadd.f32 %v7058_v48, %v11387_v27  ;;  %v8286_v42 = vpop.f32.mrb[162].mxu0 }
 0x4ea   : > { %7229 = vst [vmem:[%s11480_s30 + $0x60] sm:$0xff] %v7197_v16  ;;  %v7198_v38 = vmax.f32 %v7110_v54, 0.0  ;;  %v7187_v10 = vmax.f32 %v7067_v56, 0.0  ;;  %v7070_v15 = vadd.f32 %v8286_v42, %v11395_v52  ;;  %v7061_v25 = vpop.f32.mrb[163].mxu0 }
 0x4eb   : > { %7232 = vst [vmem:[%s11480_s30 + $0x78] sm:$0xff] %v7200_v7  ;;  %v7185_v55 = vmax.f32 %v7059_v58, 0.0  ;;  %v7062_v17 = vadd.f32 %v7061_v25, %v11389_v20 }
 0x4ec   : > { %7230 = vst [vmem:[%s11480_s30 + $0x68] sm:$0xff] %v7198_v38  ;;  %v8301_v26 = vpop.f32.mrb[140].mxu1  ;;  %7219 = vst [vmem:[%s11480_s30 + $0x10] sm:$0xff] %v7187_v10  ;;  %v7188_v44 = vmax.f32 %v7070_v15, 0.0 }
 0x4ed   : > { %v7131_v12 = vadd.f32 %v8301_v26, %v11441_v43  ;;  %v7122_v45 = vpop.f32.mrb[141].mxu1  ;;  %7217 = vst [vmem:[%s11480_s30] sm:$0xff] %v7185_v55  ;;  %v7186_v52 = vmax.f32 %v7062_v17, 0.0 }
 0x4ee   : > { %v7123_v27 = vadd.f32 %v7122_v45, %v11435_v19  ;;  %v8302_v21 = vpop.f32.mrb[142].mxu1  ;;  %7220 = vst [vmem:[%s11480_s30 + $0x18] sm:$0xff] %v7188_v44 }
 0x4ef   : > { %v7203_v31 = vmax.f32 %v7131_v12, 0.0  ;;  %v7134_v63 = vadd.f32 %v8302_v21, %v11443_v8  ;;  %v7125_v28 = vpop.f32.mrb[143].mxu1  ;;  %7218 = vst [vmem:[%s11480_s30 + $0x8] sm:$0xff] %v7186_v52 }
 0x4f0   : > { %v7201_v43 = vmax.f32 %v7123_v27, 0.0  ;;  %v7126_v24 = vadd.f32 %v7125_v28, %v11437_v30 }
 0x4f1   : > { %7235 = vst [vmem:[%s11480_s30 + $0x90] sm:$0xff] %v7203_v31  ;;  %v7204_v20 = vmax.f32 %v7134_v63, 0.0 }
 0x4f2   : > { %7233 = vst [vmem:[%s11480_s30 + $0x80] sm:$0xff] %v7201_v43  ;;  %v7202_v3 = vmax.f32 %v7126_v24, 0.0 }
 0x4f3   : > { %7236 = vst [vmem:[%s11480_s30 + $0x98] sm:$0xff] %v7204_v20 }
 0x4f4   : > { %7234 = vst [vmem:[%s11480_s30 + $0x88] sm:$0xff] %v7202_v3  ;;  %v8305_v19 = vpop.f32.mrb[144].mxu1 }
 0x4f5   : > { %v7147_v1 = vadd.f32 %v8305_v19, %v11453_v53  ;;  %v7138_v8 = vpop.f32.mrb[145].mxu1 }
 0x4f6   : > { %v7139_v50 = vadd.f32 %v7138_v8, %v11447_v41  ;;  %v8306_v9 = vpop.f32.mrb[146].mxu1 }
 0x4f7   : > { %v7207_v47 = vmax.f32 %v7147_v1, 0.0  ;;  %v7150_v30 = vadd.f32 %v8306_v9, %v11455_v51  ;;  %v7141_v29 = vpop.f32.mrb[147].mxu1 }
 0x4f8   : > { %v7205_v33 = vmax.f32 %v7139_v50, 0.0  ;;  %v7142_v37 = vadd.f32 %v7141_v29, %v11449_v59 }
 0x4f9   : > { %7239 = vst [vmem:[%s11480_s30 + $0xb0] sm:$0xff] %v7207_v47  ;;  %v7208_v34 = vmax.f32 %v7150_v30, 0.0 }
 0x4fa   : > { %7237 = vst [vmem:[%s11480_s30 + $0xa0] sm:$0xff] %v7205_v33  ;;  %v7206_v11 = vmax.f32 %v7142_v37, 0.0 }
 0x4fb   : > { %7240 = vst [vmem:[%s11480_s30 + $0xb8] sm:$0xff] %v7208_v34 }
 0x4fc   : > { %7238 = vst [vmem:[%s11480_s30 + $0xa8] sm:$0xff] %v7206_v11  ;;  %v8309_v53 = vpop.f32.mrb[148].mxu1 }
 0x4fd   : > { %v7163_v41 = vadd.f32 %v8309_v53, %v11473_v40  ;;  %v7154_v13 = vpop.f32.mrb[149].mxu1 }
 0x4fe   : > { %v7155_v51 = vadd.f32 %v7154_v13, %v11459_v60  ;;  %v8310_v32 = vpop.f32.mrb[150].mxu1 }
 0x4ff   : > { %v7211_v0 = vmax.f32 %v7163_v41, 0.0  ;;  %v7166_v59 = vadd.f32 %v8310_v32, %v11477_v39  ;;  %v7157_v6 = vpop.f32.mrb[151].mxu1 }
 0x500   : > { %v7209_v46 = vmax.f32 %v7155_v51, 0.0  ;;  %v7158_v22 = vadd.f32 %v7157_v6, %v11461_v49 }
 0x501   : > { %7243 = vst [vmem:[%s11480_s30 + $0xd0] sm:$0xff] %v7211_v0  ;;  %v7212_v18 = vmax.f32 %v7166_v59, 0.0 }
 0x502   : > { %7241 = vst [vmem:[%s11480_s30 + $0xc0] sm:$0xff] %v7209_v46  ;;  %v7210_v2 = vmax.f32 %v7158_v22, 0.0 }
 0x503   : > { %7244 = vst [vmem:[%s11480_s30 + $0xd8] sm:$0xff] %v7212_v18 }
 0x504   : > { %7242 = vst [vmem:[%s11480_s30 + $0xc8] sm:$0xff] %v7210_v2  ;;  %v8313_v40 = vpop.f32.mrb[152].mxu1 }
 0x505   : > { %v7179_v60 = vadd.f32 %v8313_v40, %v11500_v35  ;;  %v7170_v5 = vpop.f32.mrb[153].mxu1 }
 0x506   : > { %v7171_v39 = vadd.f32 %v7170_v5, %v11487_v14  ;;  %v8314_v4 = vpop.f32.mrb[154].mxu1 }
 0x507   : > { %v7215_v49 = vmax.f32 %v7179_v60, 0.0  ;;  %v7182_v62 = vadd.f32 %v8314_v4, %v11505_v23  ;;  %v7173_v36 = vpop.f32.mrb[155].mxu1 }
 0x508   : > { %v7213_v16 = vmax.f32 %v7171_v39, 0.0  ;;  %v7174_v54 = vadd.f32 %v7173_v36, %v11491_v61 }
 0x509   : > { %7247 = vst [vmem:[%s11480_s30 + $0xf0] sm:$0xff] %v7215_v49  ;;  %v7216_v7 = vmax.f32 %v7182_v62, 0.0 }
 0x50a   : > { %7245 = vst [vmem:[%s11480_s30 + $0xe0] sm:$0xff] %v7213_v16  ;;  %v7214_v14 = vmax.f32 %v7174_v54, 0.0 }
 0x50b   : > { %7248 = vst [vmem:[%s11480_s30 + $0xf8] sm:$0xff] %v7216_v7 }
 0x50c   : > { %7246 = vst [vmem:[%s11480_s30 + $0xe8] sm:$0xff] %v7214_v14 }
 0x50d   : > { %8526 = shalt.err (!%p8523_p3)
}
 0x50e   : > { %s8527_s4 = scalar_lea.hbm %s11554_s11, 4096  ;;  %s8531_s8 = scalar_lea.hbm %s11608_s3, 8192 }
 0x50f   : > { %p8528_p4 = scmp.ne.s32.totalorder %s11554_s11, %s8527_s4  ;;  %p8532_p9 = scmp.lt.u32.totalorder %s11554_s11, %s11608_s3 }
 0x510   : > { %p8533_p10 = scmp.lt.u32.totalorder %s8531_s8, %s8527_s4  ;;  %p8535_p12 = scmp.lt.u32.totalorder %s8527_s4, %s11554_s11 }
 0x511   : > { %p8529_p7 = pnand %p8528_p4, %p8647_p5 }
 0x512   : > { %p8534_p11 = por %p8533_p10, %p8532_p9 }
 0x513   : > { %p8530_p8 = pneg %p8529_p7 }
 0x514   : > { %p8536_p13 = por %p8535_p12, %p8534_p11 }
 0x516   : > { %p8537_p0 = pnand %p8536_p13, %p8530_p8 }
 0x518   : > { %8540 = shalt.err (!%p8537_p0)
}
 0x519   : > { %s8588_s10 = smov 128  }
 0x51a   : > { %8339 = dma.vmem_to_hbm [thread:$0]  (%p8647_p5), %s11557_s24, 4096, %s11554_s11, %s11563_s16, %s8588_s10, %s8588_s10, %s8578_s29  }
 0x51b PF: > { %p8345_p1 = scmp.ge.s32.totalorder %s8575_s15, 2  ;;  %s7278_s30 = sand.u32 1, %s8563_s12  }
 0x51c   : > { %s7279_s6 = scalar_lea.sflag [#allocation6], %s7278_s30 }
 0x51d   : > { %p8342_p2 = pnand %p8345_p1, %p8651_p6 }
 0x51f   : > { %8558 = dma.done.wait (!%p8342_p2), %s7279_s6, 4096  }
 0x520   : > { %8560 = vsyncadd (!%p8342_p2), %s7279_s6, 4294963200  ;;  %p13_p3 = scmp.ge.s32.totalorder %s8634_s18, 4   ;;  %s11732_s12 = smov %s8567_s13 }
 0x521   : > { %s11733_s13 = smov %s8571_s14  ;;  %s11734_s14 = smov %s8645_s21 }
 0x522   : > { %s11735_s15 = smov %s8634_s18  ;;  %15 = sbr.rel (!%p13_p3) target bundleno = 3 (0x3), region = 71 }
 0x529   :  { %7284 = vsyncpa [#allocation6], 1 }
 0x52a   :  { %7286 = vsyncpa [#allocation6 + $0x1], 1 }

</bundles_post_ra>
